<compile_context>
chip_gen: v6e
topology: v6e:2x2x1
jax: 0.10.0
libtpu: 0.0.40
codegen_flags: <defaults>
</compile_context>

<pallas_src>
import functools
import math

import jax
import jax.numpy as jnp
from jax.experimental import pallas as pl
from jax.experimental.pallas import tpu as pltpu

# --------------------- config (scaled-down, structure-preserving) ----------
BATCH = 2
IMG_C, IMG_H, IMG_W = 3, 16, 16
PATCH = 4
N_PATCH = (IMG_H // PATCH) * (IMG_W // PATCH)            # 16 patches
PATCH_DIM = IMG_C * PATCH * PATCH                        # 48
N_TOK = N_PATCH + 1                                      # 17 (cls + patches)
VIT_DIM, VIT_HEADS, VIT_LAYERS, VIT_MLP = 64, 4, 2, 256  # stands in for ViT-B/16
D_MODEL, NHEAD, DEC_LAYERS = 32, 4, 2                    # stands in for 512/8/6
FFN = D_MODEL * 4                                        # 128
VOCAB = 50
VOCAB_PAD = 128                                          # lane-dense padded logits
SEQ = 8

_NEG_INF = -1e30
_MXU_DTYPE = jnp.bfloat16   # set to jnp.float32 for bit-closer f32 matmuls


# --------------------------- weight slab packing ----------------------------
class _SlabPacker:
    """Packs many small [r, width] arrays row-wise into one lane-dense slab.

    Every entry is padded to a multiple of 8 rows so all in-kernel slices are
    sublane-tile aligned.  Offsets are static Python ints (closed over by the
    kernel), so every read is a static slice.
    """

    def __init__(self, width):
        self.width = width
        self._parts, self._index, self._rows = [], {}, 0

    def add(self, name, arr):
        arr = jnp.asarray(arr, jnp.float32)
        if arr.ndim == 1:
            arr = arr[None, :]
        assert arr.ndim == 2 and arr.shape[1] == self.width, (name, arr.shape)
        r = arr.shape[0]
        self._index[name] = (self._rows, r)
        pad = (-r) % 8
        if pad:
            arr = jnp.pad(arr, ((0, pad), (0, 0)))
        self._parts.append(arr)
        self._rows += r + pad

    def finish(self):
        return jnp.concatenate(self._parts, axis=0), dict(self._index)


def _slab(ref, index, name):
    off, rows = index[name]
    return ref[pl.ds(off, rows), :]          # static slice (off/rows are Python ints)


# --------------------------- in-kernel math helpers -------------------------
def _mm(a, b):
    """MXU matmul with bf16 operands, f32 accumulation (VPU math stays f32)."""
    return jnp.dot(a.astype(_MXU_DTYPE), b.astype(_MXU_DTYPE),
                   preferred_element_type=jnp.float32)


def _gelu(x):
    # TODO(synk): PyTorch nn.GELU default is the exact erf form; tanh
    # approximation is used for guaranteed Mosaic lowering (~1e-3 diff).
    c = 0.7978845608028654  # sqrt(2/pi)
    return 0.5 * x * (1.0 + jnp.tanh(c * (x + 0.044715 * x * x * x)))


def _ln(x, g, b, eps):
    xf = x.astype(jnp.float32)
    mu = jnp.mean(xf, axis=-1, keepdims=True)
    var = jnp.mean(jnp.square(xf - mu), axis=-1, keepdims=True)
    return (xf - mu) * jax.lax.rsqrt(var + eps) * g + b


def _head_masks(d, nhead):
    """0/1 lane masks selecting each head's lanes (full-vreg, no lane slicing)."""
    dh = d // nhead
    lane = jax.lax.broadcasted_iota(jnp.int32, (1, d), 1)
    return [((lane >= h * dh) & (lane < (h + 1) * dh)).astype(jnp.float32)
            for h in range(nhead)]


def _mha_packed(q, k, v, wo, bo, head_masks, attn_mask):
    """Multi-head attention with heads packed along lanes.

    q/k/v: [L, d] f32 (1/sqrt(dh) already folded into the Q projection).
    Per-head contraction is done by zeroing the other heads' lanes of K and V
    (VPU multiply with a constant 0/1 mask) — q's foreign lanes then contribute
    exactly 0 to the dot, so no non-128-aligned lane slices / relayouts occur.
    """
    out = None
    for hm in head_masks:                          # static unroll over heads
        s = jax.lax.dot_general(q.astype(_MXU_DTYPE), (k * hm).astype(_MXU_DTYPE),
                                (((1,), (1,)), ((), ())),
                                preferred_element_type=jnp.float32)
        s = s + attn_mask                          # additive (0 / -1e30) mask
        s = s - jnp.max(s, axis=-1, keepdims=True)
        p = jnp.exp(s)
        p = p * pl.reciprocal(jnp.sum(p, axis=-1, keepdims=True), approx=True)
        oh = _mm(p, v * hm)                        # only head-h lanes nonzero
        out = oh if out is None else out + oh      # implicit head concat (disjoint lanes)
    return _mm(out, wo) + bo


# ------------------------------- fused kernel -------------------------------
def _make_kernel(index):
    idx32, idx64 = index["w32"], index["w64"]
    idx128, idx256 = index["w128"], index["w256"]

    def kernel(patches_ref, tgt_ref, enc_mask_ref, dec_mask_ref,
               w32_ref, w64_ref, w128_ref, w256_ref, out_ref):
        g32 = lambda n: _slab(w32_ref, idx32, n)
        g64 = lambda n: _slab(w64_ref, idx64, n)
        g128 = lambda n: _slab(w128_ref, idx128, n)
        g256 = lambda n: _slab(w256_ref, idx256, n)

        bt = patches_ref.shape[0]          # B * N_TOK  (batch folded into rows)
        b = bt // N_TOK
        bs = tgt_ref.shape[0]              # B * SEQ
        s = bs // b

        # ===================== ViT encoder (pre-LN blocks) ===================
        hm_e = _head_masks(VIT_DIM, VIT_HEADS)
        enc_mask = enc_mask_ref[...]       # block-diagonal (per-image) mask
        # cls token + conv bias + positional table pre-folded into "pos_eff";
        # the cls slot row of `patches` is all zeros.
        x = _mm(patches_ref[...], g64("conv_w")) + g64("pos_eff")
        for l in range(VIT_LAYERS):
            vec = g64(f"e{l}_vec")         # ln1_g,ln1_b,bq,bk,bv,bo,ln2_g,ln2_b,b2
            y = _ln(x, vec[0:1], vec[1:2], 1e-6)
            q = _mm(y, g64(f"e{l}_wq")) + vec[2:3]      # scale folded into wq/bq
            k = _mm(y, g64(f"e{l}_wk")) + vec[3:4]
            v = _mm(y, g64(f"e{l}_wv")) + vec[4:5]
            x = x + _mha_packed(q, k, v, g64(f"e{l}_wo"), vec[5:6], hm_e, enc_mask)
            y = _ln(x, vec[6:7], vec[7:8], 1e-6)
            h = _gelu(_mm(y, g256(f"e{l}_w1")) + g256(f"e{l}_b1"))
            x = x + _mm(h, g64(f"e{l}_w2")) + vec[8:9]
        lnf = g64("e_lnf")
        x = _ln(x, lnf[0:1], lnf[1:2], 1e-6)

        # class-token rows (row b*N_TOK of each image) via a one-hot matmul.
        rr = jax.lax.broadcasted_iota(jnp.int32, (b, bt), 0)
        cc = jax.lax.broadcasted_iota(jnp.int32, (b, bt), 1)
        sel_cls = (cc == rr * N_TOK).astype(jnp.float32)
        cls = jnp.dot(sel_cls, x, preferred_element_type=jnp.float32)   # [B, VIT_DIM]

        # feature_projection: Linear -> LN -> GELU -> (Dropout) -> Linear -> LN
        fv = g64("e_fp_vec")               # fp_b1, fp_ln1_g, fp_ln1_b
        h = _mm(cls, g64("fp_w1")) + fv[0:1]
        h = _gelu(_ln(h, fv[1:2], fv[2:3], 1e-5))
        fv2 = g32("fp_vec2")               # fp_b2, fp_ln2_g, fp_ln2_b
        mem = _ln(_mm(h, g32("fp_w2")) + fv2[0:1], fv2[1:2], fv2[2:3], 1e-5)  # [B, D]

        # ===================== Transformer decoder (post-LN) =================
        hm_d = _head_masks(D_MODEL, NHEAD)
        dec_mask = dec_mask_ref[...]       # batch-blocked causal mask
        row_id = jax.lax.broadcasted_iota(jnp.int32, (bs, 1), 0)
        batch_rows = [((row_id >= bb * s) & (row_id < (bb + 1) * s)).astype(jnp.float32)
                      for bb in range(b)]  # hoisted row->batch indicators

        x = tgt_ref[...].astype(jnp.float32)
        for l in range(DEC_LAYERS):
            vec = g32(f"d{l}_vec")
            # causal self-attention
            q = _mm(x, g32(f"d{l}_wq")) + vec[0:1]
            k = _mm(x, g32(f"d{l}_wk")) + vec[1:2]
            v = _mm(x, g32(f"d{l}_wv")) + vec[2:3]
            sa = _mha_packed(q, k, v, g32(f"d{l}_wo"), vec[3:4], hm_d, dec_mask)
            x = _ln(x + sa, vec[4:5], vec[5:6], 1e-5)
            # cross-attention over a SINGLE memory token: softmax == 1, so the
            # whole block reduces exactly to a per-batch additive row.
            ca_row = _mm(_mm(mem, g32(f"d{l}_ca_wv")) + vec[6:7],
                         g32(f"d{l}_ca_wo")) + vec[7:8]                  # [B, D]
            ca = None
            for bb in range(b):
                part = batch_rows[bb] * ca_row[bb:bb + 1, :]
                ca = part if ca is None else ca + part
            x = _ln(x + ca, vec[8:9], vec[9:10], 1e-5)
            # GELU feed-forward
            h = _gelu(_mm(x, g128(f"d{l}_ffw1")) + g128(f"d{l}_ffb1"))
            ff = _mm(h, g32(f"d{l}_ffw2")) + vec[10:11]
            x = _ln(x + ff, vec[11:12], vec[12:13], 1e-5)
        nm = g32("d_norm")
        x = _ln(x, nm[0:1], nm[1:2], 1e-5)

        # output_layer: Linear -> GELU -> (Dropout) -> Linear (vocab padded to 128)
        h = _gelu(_mm(x, g64("out_w1")) + g64("out_b1"))
        logits = _mm(h, g128("out_w2")) + g128("out_b2")
        out_ref[...] = logits.astype(out_ref.dtype)     # lane-dense [B*S, 128] store

    return kernel


def _fused_call(index, patches, tgt, enc_mask, dec_mask, w32, w64, w128, w256):
    kernel = _make_kernel(index)
    bs = tgt.shape[0]
    full = lambda a: pl.BlockSpec(a.shape, lambda i, _nd=a.ndim: (0,) * _nd)
    return pl.pallas_call(
        kernel,
        grid=(1,),                                   # whole model = one grid step
        in_specs=[full(patches), full(tgt), full(enc_mask), full(dec_mask),
                  full(w32), full(w64), full(w128), full(w256)],
        out_specs=pl.BlockSpec((bs, VOCAB_PAD), lambda i: (0, 0)),
        out_shape=jax.ShapeDtypeStruct((bs, VOCAB_PAD), jnp.float32),
        compiler_params=pltpu.CompilerParams(dimension_semantics=("arbitrary",)),
    )(patches, tgt, enc_mask, dec_mask, w32, w64, w128, w256)


# ------------------------------ model wrapper --------------------------------
def positional_encoding(seq_len, d_model):
    pos = jnp.arange(seq_len, dtype=jnp.float32)[:, None]
    div = jnp.exp(jnp.arange(0, d_model, 2, dtype=jnp.float32)
                  * (-math.log(10000.0) / d_model))
    pe = jnp.zeros((seq_len, d_model), jnp.float32)
    pe = pe.at[:, 0::2].set(jnp.sin(pos * div))
    pe = pe.at[:, 1::2].set(jnp.cos(pos * div))
    return pe


def generate_square_subsequent_mask(sz):
    i = jnp.arange(sz)[:, None]
    j = jnp.arange(sz)[None, :]
    return jnp.where(j <= i, 0.0, -jnp.inf).astype(jnp.float32)


def _build_masks(tgt_mask, b, s):
    """Block-diagonal masks for the batch-folded row layout."""
    neg = jnp.float32(_NEG_INF)
    same_tok = jnp.kron(jnp.eye(b, dtype=jnp.float32),
                        jnp.ones((N_TOK, N_TOK), jnp.float32))
    enc_mask = jnp.where(same_tok > 0.5, 0.0, neg).astype(jnp.float32)
    tm = jnp.maximum(tgt_mask.astype(jnp.float32), neg)   # clamp -inf for safe exp
    same_seq = jnp.kron(jnp.eye(b, dtype=jnp.float32),
                        jnp.ones((s, s), jnp.float32))
    dec_mask = jnp.where(same_seq > 0.5, jnp.tile(tm, (b, b)), neg)
    return enc_mask, dec_mask


def forward(index, params, images, captions, tgt_mask):
    b = images.shape[0]
    s = captions.shape[1]
    hp, wp = IMG_H // PATCH, IMG_W // PATCH
    # conv_proj (kernel == stride == PATCH) == patchify + matmul; patchify is a
    # pure layout op on the tiny input, fused by XLA outside the kernel.
    p = images.reshape(b, IMG_C, hp, PATCH, wp, PATCH)
    p = p.transpose(0, 2, 4, 1, 3, 5).reshape(b, hp * wp, PATCH_DIM)
    p = jnp.pad(p, ((0, 0), (1, 0), (0, 0)))            # zero row for the cls slot
    patches = p.reshape(b * N_TOK, PATCH_DIM)

    # caption embedding (tiny gather kept outside) + sinusoidal positions
    tgt = jnp.take(params["emb"], captions, axis=0)
    tgt = (tgt + positional_encoding(s, D_MODEL)[None]).reshape(b * s, D_MODEL)

    enc_mask, dec_mask = _build_masks(tgt_mask, b, s)

    logits = _fused_call(index, patches, tgt, enc_mask, dec_mask,
                         params["w32"], params["w64"], params["w128"], params["w256"])
    return logits.reshape(b, s, VOCAB_PAD)[:, :, :VOCAB]


# ------------------------------ parameter init -------------------------------
def init_params(seed=0):
    key = jax.random.PRNGKey(seed)

    def nk():
        nonlocal key
        key, sub = jax.random.split(key)
        return sub

    def xavier(shape):
        bound = math.sqrt(6.0 / (shape[0] + shape[1]))
        return jax.random.uniform(nk(), shape, jnp.float32, -bound, bound)

    scale_e = 1.0 / math.sqrt(VIT_DIM // VIT_HEADS)
    scale_d = 1.0 / math.sqrt(D_MODEL // NHEAD)
    ones = lambda d: jnp.ones((d,), jnp.float32)
    zeros = lambda d: jnp.zeros((d,), jnp.float32)

    # ---- encoder: fold cls token + conv bias + positions into one table ----
    conv_w = xavier((PATCH_DIM, VIT_DIM))
    conv_b = zeros(VIT_DIM)
    cls = 0.02 * jax.random.normal(nk(), (VIT_DIM,), jnp.float32)
    pos = 0.02 * jax.random.normal(nk(), (N_TOK, VIT_DIM), jnp.float32)
    pos_eff = jnp.concatenate([pos[0:1] + cls[None, :],
                               pos[1:] + conv_b[None, :]], axis=0)
    pos_eff = jnp.tile(pos_eff, (BATCH, 1))            # batch-folded row layout

    w32 = _SlabPacker(D_MODEL)
    w64 = _SlabPacker(VIT_DIM)            # VIT_DIM == 2*D_MODEL == 64
    w128 = _SlabPacker(FFN)               # FFN == VOCAB_PAD == 128
    w256 = _SlabPacker(VIT_MLP)

    w64.add("conv_w", conv_w)
    w64.add("pos_eff", pos_eff)
    for l in range(VIT_LAYERS):
        w64.add(f"e{l}_wq", xavier((VIT_DIM, VIT_DIM)) * scale_e)   # scale folded
        w64.add(f"e{l}_wk", xavier((VIT_DIM, VIT_DIM)))
        w64.add(f"e{l}_wv", xavier((VIT_DIM, VIT_DIM)))
        w64.add(f"e{l}_wo", xavier((VIT_DIM, VIT_DIM)))
        w64.add(f"e{l}_w2", xavier((VIT_MLP, VIT_DIM)))
        w64.add(f"e{l}_vec", jnp.stack([
            ones(VIT_DIM), zeros(VIT_DIM),                 # ln1_g, ln1_b
            zeros(VIT_DIM),                                # bq (scale folded)
            zeros(VIT_DIM), zeros(VIT_DIM), zeros(VIT_DIM),  # bk, bv, bo
            ones(VIT_DIM), zeros(VIT_DIM),                 # ln2_g, ln2_b
            zeros(VIT_DIM)]))                              # mlp b2
        w256.add(f"e{l}_w1", xavier((VIT_DIM, VIT_MLP)))
        w256.add(f"e{l}_b1", zeros(VIT_MLP))
    w64.add("e_lnf", jnp.stack([ones(VIT_DIM), zeros(VIT_DIM)]))
    w64.add("fp_w1", xavier((VIT_DIM, 2 * D_MODEL)))
    w64.add("e_fp_vec", jnp.stack([zeros(2 * D_MODEL),
                                   ones(2 * D_MODEL), zeros(2 * D_MODEL)]))
    w32.add("fp_w2", xavier((2 * D_MODEL, D_MODEL)))
    w32.add("fp_vec2", jnp.stack([zeros(D_MODEL), ones(D_MODEL), zeros(D_MODEL)]))

    # ---- decoder (cross-attn Wq/Wk dropped: provably unused for 1 memory token)
    for l in range(DEC_LAYERS):
        w32.add(f"d{l}_wq", xavier((D_MODEL, D_MODEL)) * scale_d)   # scale folded
        w32.add(f"d{l}_wk", xavier((D_MODEL, D_MODEL)))
        w32.add(f"d{l}_wv", xavier((D_MODEL, D_MODEL)))
        w32.add(f"d{l}_wo", xavier((D_MODEL, D_MODEL)))
        w32.add(f"d{l}_ca_wv", xavier((D_MODEL, D_MODEL)))
        w32.add(f"d{l}_ca_wo", xavier((D_MODEL, D_MODEL)))
        w32.add(f"d{l}_ffw2", xavier((FFN, D_MODEL)))
        w32.add(f"d{l}_vec", jnp.stack([
            zeros(D_MODEL), zeros(D_MODEL), zeros(D_MODEL), zeros(D_MODEL),  # sa b q/k/v/o
            ones(D_MODEL), zeros(D_MODEL),                                   # ln1 g/b
            zeros(D_MODEL), zeros(D_MODEL),                                  # ca bv/bo
            ones(D_MODEL), zeros(D_MODEL),                                   # ln2 g/b
            zeros(D_MODEL),                                                  # ff b2
            ones(D_MODEL), zeros(D_MODEL)]))                                 # ln3 g/b
        w128.add(f"d{l}_ffw1", xavier((D_MODEL, FFN)))
        w128.add(f"d{l}_ffb1", zeros(FFN))
    w32.add("d_norm", jnp.stack([ones(D_MODEL), zeros(D_MODEL)]))
    w64.add("out_w1", xavier((D_MODEL, 2 * D_MODEL)))
    w64.add("out_b1", zeros(2 * D_MODEL))
    w128.add("out_w2", jnp.pad(xavier((2 * D_MODEL, VOCAB)),
                               ((0, 0), (0, VOCAB_PAD - VOCAB))))
    w128.add("out_b2", zeros(VOCAB_PAD))

    emb = xavier((VOCAB, D_MODEL))

    slab32, idx32 = w32.finish()
    slab64, idx64 = w64.finish()
    slab128, idx128 = w128.finish()
    slab256, idx256 = w256.finish()
    params = {"emb": emb, "w32": slab32, "w64": slab64,
              "w128": slab128, "w256": slab256}
    index = {"w32": idx32, "w64": idx64, "w128": idx128, "w256": idx256}
    return params, index


# ----------------------------------- main ------------------------------------
if __name__ == "__main__":
    params, index = init_params(0)
    k_img, k_cap = jax.random.split(jax.random.PRNGKey(0))
    images = jax.random.normal(k_img, (BATCH, IMG_C, IMG_H, IMG_W), jnp.float32)
    captions = jax.random.randint(k_cap, (BATCH, SEQ), 0, VOCAB, dtype=jnp.int32)
    tgt_mask = generate_square_subsequent_mask(SEQ)

    fwd = jax.jit(functools.partial(forward, index))
    logits = jax.block_until_ready(fwd(params, images, captions, tgt_mask))
    assert logits.shape == (BATCH, SEQ, VOCAB)
    assert bool(jnp.all(jnp.isfinite(logits)))
    print("KERNEL_OK")
</pallas_src>

<mosaic_0001>
module attributes {stable_mosaic.version = 11 : i64} {
  func.func @kernel(%arg0: i32, %arg1: memref<34x48xf32, #tpu.memory_space<vmem>>, %arg2: memref<16x32xf32, #tpu.memory_space<vmem>>, %arg3: memref<34x34xf32, #tpu.memory_space<vmem>>, %arg4: memref<16x16xf32, #tpu.memory_space<vmem>>, %arg5: memref<752x32xf32, #tpu.memory_space<vmem>>, %arg6: memref<1264x64xf32, #tpu.memory_space<vmem>>, %arg7: memref<152x128xf32, #tpu.memory_space<vmem>>, %arg8: memref<144x256xf32, #tpu.memory_space<vmem>>, %arg9: memref<16x128xf32, #tpu.memory_space<vmem>>) attributes {dimension_semantics = [#tpu.dimension_semantics<arbitrary>], iteration_bounds = array<i64: 1>, scalar_prefetch = 0 : i64, scratch_operands = 0 : i64, tpu.core_type = #tpu.core_type<tc>, window_params = [{pipeline_mode = #tpu.pipeline_mode<synchronous>, transform_indices = @transform_0, window_bounds = array<i64: 34, 48>}, {pipeline_mode = #tpu.pipeline_mode<synchronous>, transform_indices = @transform_1, window_bounds = array<i64: 16, 32>}, {pipeline_mode = #tpu.pipeline_mode<synchronous>, transform_indices = @transform_2, window_bounds = array<i64: 34, 34>}, {pipeline_mode = #tpu.pipeline_mode<synchronous>, transform_indices = @transform_3, window_bounds = array<i64: 16, 16>}, {pipeline_mode = #tpu.pipeline_mode<synchronous>, transform_indices = @transform_4, window_bounds = array<i64: 752, 32>}, {pipeline_mode = #tpu.pipeline_mode<synchronous>, transform_indices = @transform_5, window_bounds = array<i64: 1264, 64>}, {pipeline_mode = #tpu.pipeline_mode<synchronous>, transform_indices = @transform_6, window_bounds = array<i64: 152, 128>}, {pipeline_mode = #tpu.pipeline_mode<synchronous>, transform_indices = @transform_7, window_bounds = array<i64: 144, 256>}, {pipeline_mode = #tpu.pipeline_mode<synchronous>, transform_indices = @transform_8, window_bounds = array<i64: 16, 128>}]} {
    %0 = tpu.iota {dimensions = array<i32: 1>} : vector<1x64xi32>
    %c0_i32 = arith.constant 0 : i32
    %1 = vector.broadcast %c0_i32 : i32 to vector<1x64xi32>
    %2 = arith.cmpi sge, %0, %1 : vector<1x64xi32>
    %c16_i32 = arith.constant 16 : i32
    %3 = vector.broadcast %c16_i32 : i32 to vector<1x64xi32>
    %4 = arith.cmpi slt, %0, %3 : vector<1x64xi32>
    %5 = arith.andi %2, %4 : vector<1x64xi1>
    %6 = arith.extui %5 : vector<1x64xi1> to vector<1x64xi32>
    %7 = arith.sitofp %6 : vector<1x64xi32> to vector<1x64xf32>
    %c16_i32_0 = arith.constant 16 : i32
    %8 = vector.broadcast %c16_i32_0 : i32 to vector<1x64xi32>
    %9 = arith.cmpi sge, %0, %8 : vector<1x64xi32>
    %c32_i32 = arith.constant 32 : i32
    %10 = vector.broadcast %c32_i32 : i32 to vector<1x64xi32>
    %11 = arith.cmpi slt, %0, %10 : vector<1x64xi32>
    %12 = arith.andi %9, %11 : vector<1x64xi1>
    %13 = arith.extui %12 : vector<1x64xi1> to vector<1x64xi32>
    %14 = arith.sitofp %13 : vector<1x64xi32> to vector<1x64xf32>
    %c32_i32_1 = arith.constant 32 : i32
    %15 = vector.broadcast %c32_i32_1 : i32 to vector<1x64xi32>
    %16 = arith.cmpi sge, %0, %15 : vector<1x64xi32>
    %c48_i32 = arith.constant 48 : i32
    %17 = vector.broadcast %c48_i32 : i32 to vector<1x64xi32>
    %18 = arith.cmpi slt, %0, %17 : vector<1x64xi32>
    %19 = arith.andi %16, %18 : vector<1x64xi1>
    %20 = arith.extui %19 : vector<1x64xi1> to vector<1x64xi32>
    %21 = arith.sitofp %20 : vector<1x64xi32> to vector<1x64xf32>
    %c48_i32_2 = arith.constant 48 : i32
    %22 = vector.broadcast %c48_i32_2 : i32 to vector<1x64xi32>
    %23 = arith.cmpi sge, %0, %22 : vector<1x64xi32>
    %c64_i32 = arith.constant 64 : i32
    %24 = vector.broadcast %c64_i32 : i32 to vector<1x64xi32>
    %25 = arith.cmpi slt, %0, %24 : vector<1x64xi32>
    %26 = arith.andi %23, %25 : vector<1x64xi1>
    %27 = arith.extui %26 : vector<1x64xi1> to vector<1x64xi32>
    %28 = arith.sitofp %27 : vector<1x64xi32> to vector<1x64xf32>
    %c0 = arith.constant 0 : index
    %c0_3 = arith.constant 0 : index
    %29 = vector.load %arg3[%c0, %c0_3] : memref<34x34xf32, #tpu.memory_space<vmem>>, vector<34x34xf32>
    %c0_4 = arith.constant 0 : index
    %c0_5 = arith.constant 0 : index
    %30 = vector.load %arg1[%c0_4, %c0_5] : memref<34x48xf32, #tpu.memory_space<vmem>>, vector<34x48xf32>
    %c0_6 = arith.constant 0 : index
    %c0_7 = arith.constant 0 : index
    %31 = vector.load %arg6[%c0_6, %c0_7] : memref<1264x64xf32, #tpu.memory_space<vmem>>, vector<48x64xf32>
    %32 = arith.truncf %30 : vector<34x48xf32> to vector<34x48xbf16>
    %33 = arith.truncf %31 : vector<48x64xf32> to vector<48x64xbf16>
    %cst = arith.constant dense<0.000000e+00> : vector<34x64xf32>
    %34 = tpu.matmul %32, %33, %cst {dimension_numbers = #tpu.dot_dimension_numbers<[1], [0], [0], [1], [0, 0, 1, 1], [], []>} : vector<34x48xbf16>, vector<48x64xbf16>, vector<34x64xf32> -> vector<34x64xf32>
    %c48 = arith.constant 48 : index
    %c0_8 = arith.constant 0 : index
    %35 = vector.load %arg6[%c48, %c0_8] : memref<1264x64xf32, #tpu.memory_space<vmem>>, vector<34x64xf32>
    %36 = arith.addf %34, %35 : vector<34x64xf32>
    %c600 = arith.constant 600 : index
    %c0_9 = arith.constant 0 : index
    %37 = vector.load %arg6[%c600, %c0_9] : memref<1264x64xf32, #tpu.memory_space<vmem>>, vector<9x64xf32>
    %38 = vector.extract_strided_slice %37 {offsets = [0, 0], sizes = [1, 64], strides = [1, 1]} : vector<9x64xf32> to vector<1x64xf32>
    %39 = vector.extract_strided_slice %37 {offsets = [1, 0], sizes = [1, 64], strides = [1, 1]} : vector<9x64xf32> to vector<1x64xf32>
    %cst_10 = arith.constant dense<0.000000e+00> : vector<34xf32>
    %40 = vector.multi_reduction <add>, %36, %cst_10 [1] : vector<34x64xf32> to vector<34xf32>
    %41 = vector.shape_cast %40 : vector<34xf32> to vector<34x1xf32>
    %cst_11 = arith.constant 6.400000e+01 : f32
    %42 = vector.broadcast %cst_11 : f32 to vector<34x1xf32>
    %43 = arith.divf %41, %42 : vector<34x1xf32>
    %44 = vector.broadcast %43 : vector<34x1xf32> to vector<34x64xf32>
    %45 = arith.subf %36, %44 : vector<34x64xf32>
    %46 = arith.mulf %45, %45 : vector<34x64xf32>
    %cst_12 = arith.constant dense<0.000000e+00> : vector<34xf32>
    %47 = vector.multi_reduction <add>, %46, %cst_12 [1] : vector<34x64xf32> to vector<34xf32>
    %48 = vector.shape_cast %47 : vector<34xf32> to vector<34x1xf32>
    %cst_13 = arith.constant 6.400000e+01 : f32
    %49 = vector.broadcast %cst_13 : f32 to vector<34x1xf32>
    %50 = arith.divf %48, %49 : vector<34x1xf32>
    %51 = vector.broadcast %43 : vector<34x1xf32> to vector<34x64xf32>
    %52 = arith.subf %36, %51 : vector<34x64xf32>
    %cst_14 = arith.constant 9.99999997E-7 : f32
    %53 = vector.broadcast %cst_14 : f32 to vector<34x1xf32>
    %54 = arith.addf %50, %53 : vector<34x1xf32>
    %55 = math.rsqrt %54 : vector<34x1xf32>
    %56 = vector.broadcast %55 : vector<34x1xf32> to vector<34x64xf32>
    %57 = arith.mulf %52, %56 : vector<34x64xf32>
    %58 = vector.broadcast %38 : vector<1x64xf32> to vector<34x64xf32>
    %59 = arith.mulf %57, %58 : vector<34x64xf32>
    %60 = vector.broadcast %39 : vector<1x64xf32> to vector<34x64xf32>
    %61 = arith.addf %59, %60 : vector<34x64xf32>
    %c88 = arith.constant 88 : index
    %c0_15 = arith.constant 0 : index
    %62 = vector.load %arg6[%c88, %c0_15] : memref<1264x64xf32, #tpu.memory_space<vmem>>, vector<64x64xf32>
    %63 = arith.truncf %61 : vector<34x64xf32> to vector<34x64xbf16>
    %64 = arith.truncf %62 : vector<64x64xf32> to vector<64x64xbf16>
    %cst_16 = arith.constant dense<0.000000e+00> : vector<34x64xf32>
    %65 = tpu.matmul %63, %64, %cst_16 {dimension_numbers = #tpu.dot_dimension_numbers<[1], [0], [0], [1], [0, 0, 1, 1], [], []>} : vector<34x64xbf16>, vector<64x64xbf16>, vector<34x64xf32> -> vector<34x64xf32>
    %66 = vector.extract_strided_slice %37 {offsets = [2, 0], sizes = [1, 64], strides = [1, 1]} : vector<9x64xf32> to vector<1x64xf32>
    %67 = vector.broadcast %66 : vector<1x64xf32> to vector<34x64xf32>
    %68 = arith.addf %65, %67 : vector<34x64xf32>
    %c152 = arith.constant 152 : index
    %c0_17 = arith.constant 0 : index
    %69 = vector.load %arg6[%c152, %c0_17] : memref<1264x64xf32, #tpu.memory_space<vmem>>, vector<64x64xf32>
    %70 = arith.truncf %61 : vector<34x64xf32> to vector<34x64xbf16>
    %71 = arith.truncf %69 : vector<64x64xf32> to vector<64x64xbf16>
    %cst_18 = arith.constant dense<0.000000e+00> : vector<34x64xf32>
    %72 = tpu.matmul %70, %71, %cst_18 {dimension_numbers = #tpu.dot_dimension_numbers<[1], [0], [0], [1], [0, 0, 1, 1], [], []>} : vector<34x64xbf16>, vector<64x64xbf16>, vector<34x64xf32> -> vector<34x64xf32>
    %73 = vector.extract_strided_slice %37 {offsets = [3, 0], sizes = [1, 64], strides = [1, 1]} : vector<9x64xf32> to vector<1x64xf32>
    %74 = vector.broadcast %73 : vector<1x64xf32> to vector<34x64xf32>
    %75 = arith.addf %72, %74 : vector<34x64xf32>
    %c216 = arith.constant 216 : index
    %c0_19 = arith.constant 0 : index
    %76 = vector.load %arg6[%c216, %c0_19] : memref<1264x64xf32, #tpu.memory_space<vmem>>, vector<64x64xf32>
    %77 = arith.truncf %61 : vector<34x64xf32> to vector<34x64xbf16>
    %78 = arith.truncf %76 : vector<64x64xf32> to vector<64x64xbf16>
    %cst_20 = arith.constant dense<0.000000e+00> : vector<34x64xf32>
    %79 = tpu.matmul %77, %78, %cst_20 {dimension_numbers = #tpu.dot_dimension_numbers<[1], [0], [0], [1], [0, 0, 1, 1], [], []>} : vector<34x64xbf16>, vector<64x64xbf16>, vector<34x64xf32> -> vector<34x64xf32>
    %80 = vector.extract_strided_slice %37 {offsets = [4, 0], sizes = [1, 64], strides = [1, 1]} : vector<9x64xf32> to vector<1x64xf32>
    %81 = vector.broadcast %80 : vector<1x64xf32> to vector<34x64xf32>
    %82 = arith.addf %79, %81 : vector<34x64xf32>
    %c280 = arith.constant 280 : index
    %c0_21 = arith.constant 0 : index
    %83 = vector.load %arg6[%c280, %c0_21] : memref<1264x64xf32, #tpu.memory_space<vmem>>, vector<64x64xf32>
    %84 = vector.extract_strided_slice %37 {offsets = [5, 0], sizes = [1, 64], strides = [1, 1]} : vector<9x64xf32> to vector<1x64xf32>
    %85 = arith.truncf %68 : vector<34x64xf32> to vector<34x64xbf16>
    %86 = vector.broadcast %7 : vector<1x64xf32> to vector<34x64xf32>
    %87 = arith.mulf %75, %86 : vector<34x64xf32>
    %88 = arith.truncf %87 : vector<34x64xf32> to vector<34x64xbf16>
    %cst_22 = arith.constant dense<0.000000e+00> : vector<34x34xf32>
    %89 = tpu.matmul %85, %88, %cst_22 {dimension_numbers = #tpu.dot_dimension_numbers<[1], [1], [0], [0], [0, 0, 1, 0], [], []>} : vector<34x64xbf16>, vector<34x64xbf16>, vector<34x34xf32> -> vector<34x34xf32>
    %90 = arith.addf %89, %29 : vector<34x34xf32>
    %cst_23 = arith.constant dense<0xFF800000> : vector<34xf32>
    %91 = vector.multi_reduction <maximumf>, %90, %cst_23 [1] : vector<34x34xf32> to vector<34xf32>
    %92 = vector.shape_cast %91 : vector<34xf32> to vector<34x1xf32>
    %93 = vector.broadcast %92 : vector<34x1xf32> to vector<34x34xf32>
    %94 = arith.subf %90, %93 : vector<34x34xf32>
    %95 = math.exp %94 : vector<34x34xf32>
    %cst_24 = arith.constant dense<0.000000e+00> : vector<34xf32>
    %96 = vector.multi_reduction <add>, %95, %cst_24 [1] : vector<34x34xf32> to vector<34xf32>
    %97 = vector.shape_cast %96 : vector<34xf32> to vector<34x1xf32>
    %98 = tpu.reciprocal %97 {approx = true} : vector<34x1xf32> -> vector<34x1xf32>
    %99 = vector.broadcast %98 : vector<34x1xf32> to vector<34x34xf32>
    %100 = arith.mulf %95, %99 : vector<34x34xf32>
    %101 = vector.broadcast %7 : vector<1x64xf32> to vector<34x64xf32>
    %102 = arith.mulf %82, %101 : vector<34x64xf32>
    %103 = arith.truncf %100 : vector<34x34xf32> to vector<34x34xbf16>
    %104 = arith.truncf %102 : vector<34x64xf32> to vector<34x64xbf16>
    %cst_25 = arith.constant dense<0.000000e+00> : vector<34x64xf32>
    %105 = tpu.matmul %103, %104, %cst_25 {dimension_numbers = #tpu.dot_dimension_numbers<[1], [0], [0], [1], [0, 0, 1, 1], [], []>} : vector<34x34xbf16>, vector<34x64xbf16>, vector<34x64xf32> -> vector<34x64xf32>
    %106 = arith.truncf %68 : vector<34x64xf32> to vector<34x64xbf16>
    %107 = vector.broadcast %14 : vector<1x64xf32> to vector<34x64xf32>
    %108 = arith.mulf %75, %107 : vector<34x64xf32>
    %109 = arith.truncf %108 : vector<34x64xf32> to vector<34x64xbf16>
    %cst_26 = arith.constant dense<0.000000e+00> : vector<34x34xf32>
    %110 = tpu.matmul %106, %109, %cst_26 {dimension_numbers = #tpu.dot_dimension_numbers<[1], [1], [0], [0], [0, 0, 1, 0], [], []>} : vector<34x64xbf16>, vector<34x64xbf16>, vector<34x34xf32> -> vector<34x34xf32>
    %111 = arith.addf %110, %29 : vector<34x34xf32>
    %cst_27 = arith.constant dense<0xFF800000> : vector<34xf32>
    %112 = vector.multi_reduction <maximumf>, %111, %cst_27 [1] : vector<34x34xf32> to vector<34xf32>
    %113 = vector.shape_cast %112 : vector<34xf32> to vector<34x1xf32>
    %114 = vector.broadcast %113 : vector<34x1xf32> to vector<34x34xf32>
    %115 = arith.subf %111, %114 : vector<34x34xf32>
    %116 = math.exp %115 : vector<34x34xf32>
    %cst_28 = arith.constant dense<0.000000e+00> : vector<34xf32>
    %117 = vector.multi_reduction <add>, %116, %cst_28 [1] : vector<34x34xf32> to vector<34xf32>
    %118 = vector.shape_cast %117 : vector<34xf32> to vector<34x1xf32>
    %119 = tpu.reciprocal %118 {approx = true} : vector<34x1xf32> -> vector<34x1xf32>
    %120 = vector.broadcast %119 : vector<34x1xf32> to vector<34x34xf32>
    %121 = arith.mulf %116, %120 : vector<34x34xf32>
    %122 = vector.broadcast %14 : vector<1x64xf32> to vector<34x64xf32>
    %123 = arith.mulf %82, %122 : vector<34x64xf32>
    %124 = arith.truncf %121 : vector<34x34xf32> to vector<34x34xbf16>
    %125 = arith.truncf %123 : vector<34x64xf32> to vector<34x64xbf16>
    %cst_29 = arith.constant dense<0.000000e+00> : vector<34x64xf32>
    %126 = tpu.matmul %124, %125, %cst_29 {dimension_numbers = #tpu.dot_dimension_numbers<[1], [0], [0], [1], [0, 0, 1, 1], [], []>} : vector<34x34xbf16>, vector<34x64xbf16>, vector<34x64xf32> -> vector<34x64xf32>
    %127 = arith.addf %105, %126 : vector<34x64xf32>
    %128 = arith.truncf %68 : vector<34x64xf32> to vector<34x64xbf16>
    %129 = vector.broadcast %21 : vector<1x64xf32> to vector<34x64xf32>
    %130 = arith.mulf %75, %129 : vector<34x64xf32>
    %131 = arith.truncf %130 : vector<34x64xf32> to vector<34x64xbf16>
    %cst_30 = arith.constant dense<0.000000e+00> : vector<34x34xf32>
    %132 = tpu.matmul %128, %131, %cst_30 {dimension_numbers = #tpu.dot_dimension_numbers<[1], [1], [0], [0], [0, 0, 1, 0], [], []>} : vector<34x64xbf16>, vector<34x64xbf16>, vector<34x34xf32> -> vector<34x34xf32>
    %133 = arith.addf %132, %29 : vector<34x34xf32>
    %cst_31 = arith.constant dense<0xFF800000> : vector<34xf32>
    %134 = vector.multi_reduction <maximumf>, %133, %cst_31 [1] : vector<34x34xf32> to vector<34xf32>
    %135 = vector.shape_cast %134 : vector<34xf32> to vector<34x1xf32>
    %136 = vector.broadcast %135 : vector<34x1xf32> to vector<34x34xf32>
    %137 = arith.subf %133, %136 : vector<34x34xf32>
    %138 = math.exp %137 : vector<34x34xf32>
    %cst_32 = arith.constant dense<0.000000e+00> : vector<34xf32>
    %139 = vector.multi_reduction <add>, %138, %cst_32 [1] : vector<34x34xf32> to vector<34xf32>
    %140 = vector.shape_cast %139 : vector<34xf32> to vector<34x1xf32>
    %141 = tpu.reciprocal %140 {approx = true} : vector<34x1xf32> -> vector<34x1xf32>
    %142 = vector.broadcast %141 : vector<34x1xf32> to vector<34x34xf32>
    %143 = arith.mulf %138, %142 : vector<34x34xf32>
    %144 = vector.broadcast %21 : vector<1x64xf32> to vector<34x64xf32>
    %145 = arith.mulf %82, %144 : vector<34x64xf32>
    %146 = arith.truncf %143 : vector<34x34xf32> to vector<34x34xbf16>
    %147 = arith.truncf %145 : vector<34x64xf32> to vector<34x64xbf16>
    %cst_33 = arith.constant dense<0.000000e+00> : vector<34x64xf32>
    %148 = tpu.matmul %146, %147, %cst_33 {dimension_numbers = #tpu.dot_dimension_numbers<[1], [0], [0], [1], [0, 0, 1, 1], [], []>} : vector<34x34xbf16>, vector<34x64xbf16>, vector<34x64xf32> -> vector<34x64xf32>
    %149 = arith.addf %127, %148 : vector<34x64xf32>
    %150 = arith.truncf %68 : vector<34x64xf32> to vector<34x64xbf16>
    %151 = vector.broadcast %28 : vector<1x64xf32> to vector<34x64xf32>
    %152 = arith.mulf %75, %151 : vector<34x64xf32>
    %153 = arith.truncf %152 : vector<34x64xf32> to vector<34x64xbf16>
    %cst_34 = arith.constant dense<0.000000e+00> : vector<34x34xf32>
    %154 = tpu.matmul %150, %153, %cst_34 {dimension_numbers = #tpu.dot_dimension_numbers<[1], [1], [0], [0], [0, 0, 1, 0], [], []>} : vector<34x64xbf16>, vector<34x64xbf16>, vector<34x34xf32> -> vector<34x34xf32>
    %155 = arith.addf %154, %29 : vector<34x34xf32>
    %cst_35 = arith.constant dense<0xFF800000> : vector<34xf32>
    %156 = vector.multi_reduction <maximumf>, %155, %cst_35 [1] : vector<34x34xf32> to vector<34xf32>
    %157 = vector.shape_cast %156 : vector<34xf32> to vector<34x1xf32>
    %158 = vector.broadcast %157 : vector<34x1xf32> to vector<34x34xf32>
    %159 = arith.subf %155, %158 : vector<34x34xf32>
    %160 = math.exp %159 : vector<34x34xf32>
    %cst_36 = arith.constant dense<0.000000e+00> : vector<34xf32>
    %161 = vector.multi_reduction <add>, %160, %cst_36 [1] : vector<34x34xf32> to vector<34xf32>
    %162 = vector.shape_cast %161 : vector<34xf32> to vector<34x1xf32>
    %163 = tpu.reciprocal %162 {approx = true} : vector<34x1xf32> -> vector<34x1xf32>
    %164 = vector.broadcast %163 : vector<34x1xf32> to vector<34x34xf32>
    %165 = arith.mulf %160, %164 : vector<34x34xf32>
    %166 = vector.broadcast %28 : vector<1x64xf32> to vector<34x64xf32>
    %167 = arith.mulf %82, %166 : vector<34x64xf32>
    %168 = arith.truncf %165 : vector<34x34xf32> to vector<34x34xbf16>
    %169 = arith.truncf %167 : vector<34x64xf32> to vector<34x64xbf16>
    %cst_37 = arith.constant dense<0.000000e+00> : vector<34x64xf32>
    %170 = tpu.matmul %168, %169, %cst_37 {dimension_numbers = #tpu.dot_dimension_numbers<[1], [0], [0], [1], [0, 0, 1, 1], [], []>} : vector<34x34xbf16>, vector<34x64xbf16>, vector<34x64xf32> -> vector<34x64xf32>
    %171 = arith.addf %149, %170 : vector<34x64xf32>
    %172 = arith.truncf %171 : vector<34x64xf32> to vector<34x64xbf16>
    %173 = arith.truncf %83 : vector<64x64xf32> to vector<64x64xbf16>
    %cst_38 = arith.constant dense<0.000000e+00> : vector<34x64xf32>
    %174 = tpu.matmul %172, %173, %cst_38 {dimension_numbers = #tpu.dot_dimension_numbers<[1], [0], [0], [1], [0, 0, 1, 1], [], []>} : vector<34x64xbf16>, vector<64x64xbf16>, vector<34x64xf32> -> vector<34x64xf32>
    %175 = vector.broadcast %84 : vector<1x64xf32> to vector<34x64xf32>
    %176 = arith.addf %174, %175 : vector<34x64xf32>
    %177 = arith.addf %36, %176 : vector<34x64xf32>
    %178 = vector.extract_strided_slice %37 {offsets = [6, 0], sizes = [1, 64], strides = [1, 1]} : vector<9x64xf32> to vector<1x64xf32>
    %179 = vector.extract_strided_slice %37 {offsets = [7, 0], sizes = [1, 64], strides = [1, 1]} : vector<9x64xf32> to vector<1x64xf32>
    %cst_39 = arith.constant dense<0.000000e+00> : vector<34xf32>
    %180 = vector.multi_reduction <add>, %177, %cst_39 [1] : vector<34x64xf32> to vector<34xf32>
    %181 = vector.shape_cast %180 : vector<34xf32> to vector<34x1xf32>
    %cst_40 = arith.constant 6.400000e+01 : f32
    %182 = vector.broadcast %cst_40 : f32 to vector<34x1xf32>
    %183 = arith.divf %181, %182 : vector<34x1xf32>
    %184 = vector.broadcast %183 : vector<34x1xf32> to vector<34x64xf32>
    %185 = arith.subf %177, %184 : vector<34x64xf32>
    %186 = arith.mulf %185, %185 : vector<34x64xf32>
    %cst_41 = arith.constant dense<0.000000e+00> : vector<34xf32>
    %187 = vector.multi_reduction <add>, %186, %cst_41 [1] : vector<34x64xf32> to vector<34xf32>
    %188 = vector.shape_cast %187 : vector<34xf32> to vector<34x1xf32>
    %cst_42 = arith.constant 6.400000e+01 : f32
    %189 = vector.broadcast %cst_42 : f32 to vector<34x1xf32>
    %190 = arith.divf %188, %189 : vector<34x1xf32>
    %191 = vector.broadcast %183 : vector<34x1xf32> to vector<34x64xf32>
    %192 = arith.subf %177, %191 : vector<34x64xf32>
    %cst_43 = arith.constant 9.99999997E-7 : f32
    %193 = vector.broadcast %cst_43 : f32 to vector<34x1xf32>
    %194 = arith.addf %190, %193 : vector<34x1xf32>
    %195 = math.rsqrt %194 : vector<34x1xf32>
    %196 = vector.broadcast %195 : vector<34x1xf32> to vector<34x64xf32>
    %197 = arith.mulf %192, %196 : vector<34x64xf32>
    %198 = vector.broadcast %178 : vector<1x64xf32> to vector<34x64xf32>
    %199 = arith.mulf %197, %198 : vector<34x64xf32>
    %200 = vector.broadcast %179 : vector<1x64xf32> to vector<34x64xf32>
    %201 = arith.addf %199, %200 : vector<34x64xf32>
    %c0_44 = arith.constant 0 : index
    %c0_45 = arith.constant 0 : index
    %202 = vector.load %arg8[%c0_44, %c0_45] : memref<144x256xf32, #tpu.memory_space<vmem>>, vector<64x256xf32>
    %203 = arith.truncf %201 : vector<34x64xf32> to vector<34x64xbf16>
    %204 = arith.truncf %202 : vector<64x256xf32> to vector<64x256xbf16>
    %cst_46 = arith.constant dense<0.000000e+00> : vector<34x256xf32>
    %205 = tpu.matmul %203, %204, %cst_46 {dimension_numbers = #tpu.dot_dimension_numbers<[1], [0], [0], [1], [0, 0, 1, 1], [], []>} : vector<34x64xbf16>, vector<64x256xbf16>, vector<34x256xf32> -> vector<34x256xf32>
    %c64 = arith.constant 64 : index
    %c0_47 = arith.constant 0 : index
    %206 = vector.load %arg8[%c64, %c0_47] : memref<144x256xf32, #tpu.memory_space<vmem>>, vector<1x256xf32>
    %207 = vector.broadcast %206 : vector<1x256xf32> to vector<34x256xf32>
    %208 = arith.addf %205, %207 : vector<34x256xf32>
    %cst_48 = arith.constant 5.000000e-01 : f32
    %209 = vector.broadcast %cst_48 : f32 to vector<34x256xf32>
    %210 = arith.mulf %209, %208 : vector<34x256xf32>
    %cst_49 = arith.constant 4.471500e-02 : f32
    %211 = vector.broadcast %cst_49 : f32 to vector<34x256xf32>
    %212 = arith.mulf %211, %208 : vector<34x256xf32>
    %213 = arith.mulf %212, %208 : vector<34x256xf32>
    %214 = arith.mulf %213, %208 : vector<34x256xf32>
    %215 = arith.addf %208, %214 : vector<34x256xf32>
    %cst_50 = arith.constant 0.797884583 : f32
    %216 = vector.broadcast %cst_50 : f32 to vector<34x256xf32>
    %217 = arith.mulf %216, %215 : vector<34x256xf32>
    %218 = math.tanh %217 : vector<34x256xf32>
    %cst_51 = arith.constant 1.000000e+00 : f32
    %219 = vector.broadcast %cst_51 : f32 to vector<34x256xf32>
    %220 = arith.addf %219, %218 : vector<34x256xf32>
    %221 = arith.mulf %210, %220 : vector<34x256xf32>
    %c344 = arith.constant 344 : index
    %c0_52 = arith.constant 0 : index
    %222 = vector.load %arg6[%c344, %c0_52] : memref<1264x64xf32, #tpu.memory_space<vmem>>, vector<256x64xf32>
    %223 = arith.truncf %221 : vector<34x256xf32> to vector<34x256xbf16>
    %224 = arith.truncf %222 : vector<256x64xf32> to vector<256x64xbf16>
    %cst_53 = arith.constant dense<0.000000e+00> : vector<34x64xf32>
    %225 = tpu.matmul %223, %224, %cst_53 {dimension_numbers = #tpu.dot_dimension_numbers<[1], [0], [0], [1], [0, 0, 1, 1], [], []>} : vector<34x256xbf16>, vector<256x64xbf16>, vector<34x64xf32> -> vector<34x64xf32>
    %226 = arith.addf %177, %225 : vector<34x64xf32>
    %227 = vector.extract_strided_slice %37 {offsets = [8, 0], sizes = [1, 64], strides = [1, 1]} : vector<9x64xf32> to vector<1x64xf32>
    %228 = vector.broadcast %227 : vector<1x64xf32> to vector<34x64xf32>
    %229 = arith.addf %226, %228 : vector<34x64xf32>
    %c1128 = arith.constant 1128 : index
    %c0_54 = arith.constant 0 : index
    %230 = vector.load %arg6[%c1128, %c0_54] : memref<1264x64xf32, #tpu.memory_space<vmem>>, vector<9x64xf32>
    %231 = vector.extract_strided_slice %230 {offsets = [0, 0], sizes = [1, 64], strides = [1, 1]} : vector<9x64xf32> to vector<1x64xf32>
    %232 = vector.extract_strided_slice %230 {offsets = [1, 0], sizes = [1, 64], strides = [1, 1]} : vector<9x64xf32> to vector<1x64xf32>
    %cst_55 = arith.constant dense<0.000000e+00> : vector<34xf32>
    %233 = vector.multi_reduction <add>, %229, %cst_55 [1] : vector<34x64xf32> to vector<34xf32>
    %234 = vector.shape_cast %233 : vector<34xf32> to vector<34x1xf32>
    %cst_56 = arith.constant 6.400000e+01 : f32
    %235 = vector.broadcast %cst_56 : f32 to vector<34x1xf32>
    %236 = arith.divf %234, %235 : vector<34x1xf32>
    %237 = vector.broadcast %236 : vector<34x1xf32> to vector<34x64xf32>
    %238 = arith.subf %229, %237 : vector<34x64xf32>
    %239 = arith.mulf %238, %238 : vector<34x64xf32>
    %cst_57 = arith.constant dense<0.000000e+00> : vector<34xf32>
    %240 = vector.multi_reduction <add>, %239, %cst_57 [1] : vector<34x64xf32> to vector<34xf32>
    %241 = vector.shape_cast %240 : vector<34xf32> to vector<34x1xf32>
    %cst_58 = arith.constant 6.400000e+01 : f32
    %242 = vector.broadcast %cst_58 : f32 to vector<34x1xf32>
    %243 = arith.divf %241, %242 : vector<34x1xf32>
    %244 = vector.broadcast %236 : vector<34x1xf32> to vector<34x64xf32>
    %245 = arith.subf %229, %244 : vector<34x64xf32>
    %cst_59 = arith.constant 9.99999997E-7 : f32
    %246 = vector.broadcast %cst_59 : f32 to vector<34x1xf32>
    %247 = arith.addf %243, %246 : vector<34x1xf32>
    %248 = math.rsqrt %247 : vector<34x1xf32>
    %249 = vector.broadcast %248 : vector<34x1xf32> to vector<34x64xf32>
    %250 = arith.mulf %245, %249 : vector<34x64xf32>
    %251 = vector.broadcast %231 : vector<1x64xf32> to vector<34x64xf32>
    %252 = arith.mulf %250, %251 : vector<34x64xf32>
    %253 = vector.broadcast %232 : vector<1x64xf32> to vector<34x64xf32>
    %254 = arith.addf %252, %253 : vector<34x64xf32>
    %c616 = arith.constant 616 : index
    %c0_60 = arith.constant 0 : index
    %255 = vector.load %arg6[%c616, %c0_60] : memref<1264x64xf32, #tpu.memory_space<vmem>>, vector<64x64xf32>
    %256 = arith.truncf %254 : vector<34x64xf32> to vector<34x64xbf16>
    %257 = arith.truncf %255 : vector<64x64xf32> to vector<64x64xbf16>
    %cst_61 = arith.constant dense<0.000000e+00> : vector<34x64xf32>
    %258 = tpu.matmul %256, %257, %cst_61 {dimension_numbers = #tpu.dot_dimension_numbers<[1], [0], [0], [1], [0, 0, 1, 1], [], []>} : vector<34x64xbf16>, vector<64x64xbf16>, vector<34x64xf32> -> vector<34x64xf32>
    %259 = vector.extract_strided_slice %230 {offsets = [2, 0], sizes = [1, 64], strides = [1, 1]} : vector<9x64xf32> to vector<1x64xf32>
    %260 = vector.broadcast %259 : vector<1x64xf32> to vector<34x64xf32>
    %261 = arith.addf %258, %260 : vector<34x64xf32>
    %c680 = arith.constant 680 : index
    %c0_62 = arith.constant 0 : index
    %262 = vector.load %arg6[%c680, %c0_62] : memref<1264x64xf32, #tpu.memory_space<vmem>>, vector<64x64xf32>
    %263 = arith.truncf %254 : vector<34x64xf32> to vector<34x64xbf16>
    %264 = arith.truncf %262 : vector<64x64xf32> to vector<64x64xbf16>
    %cst_63 = arith.constant dense<0.000000e+00> : vector<34x64xf32>
    %265 = tpu.matmul %263, %264, %cst_63 {dimension_numbers = #tpu.dot_dimension_numbers<[1], [0], [0], [1], [0, 0, 1, 1], [], []>} : vector<34x64xbf16>, vector<64x64xbf16>, vector<34x64xf32> -> vector<34x64xf32>
    %266 = vector.extract_strided_slice %230 {offsets = [3, 0], sizes = [1, 64], strides = [1, 1]} : vector<9x64xf32> to vector<1x64xf32>
    %267 = vector.broadcast %266 : vector<1x64xf32> to vector<34x64xf32>
    %268 = arith.addf %265, %267 : vector<34x64xf32>
    %c744 = arith.constant 744 : index
    %c0_64 = arith.constant 0 : index
    %269 = vector.load %arg6[%c744, %c0_64] : memref<1264x64xf32, #tpu.memory_space<vmem>>, vector<64x64xf32>
    %270 = arith.truncf %254 : vector<34x64xf32> to vector<34x64xbf16>
    %271 = arith.truncf %269 : vector<64x64xf32> to vector<64x64xbf16>
    %cst_65 = arith.constant dense<0.000000e+00> : vector<34x64xf32>
    %272 = tpu.matmul %270, %271, %cst_65 {dimension_numbers = #tpu.dot_dimension_numbers<[1], [0], [0], [1], [0, 0, 1, 1], [], []>} : vector<34x64xbf16>, vector<64x64xbf16>, vector<34x64xf32> -> vector<34x64xf32>
    %273 = vector.extract_strided_slice %230 {offsets = [4, 0], sizes = [1, 64], strides = [1, 1]} : vector<9x64xf32> to vector<1x64xf32>
    %274 = vector.broadcast %273 : vector<1x64xf32> to vector<34x64xf32>
    %275 = arith.addf %272, %274 : vector<34x64xf32>
    %c808 = arith.constant 808 : index
    %c0_66 = arith.constant 0 : index
    %276 = vector.load %arg6[%c808, %c0_66] : memref<1264x64xf32, #tpu.memory_space<vmem>>, vector<64x64xf32>
    %277 = vector.extract_strided_slice %230 {offsets = [5, 0], sizes = [1, 64], strides = [1, 1]} : vector<9x64xf32> to vector<1x64xf32>
    %278 = arith.truncf %261 : vector<34x64xf32> to vector<34x64xbf16>
    %279 = vector.broadcast %7 : vector<1x64xf32> to vector<34x64xf32>
    %280 = arith.mulf %268, %279 : vector<34x64xf32>
    %281 = arith.truncf %280 : vector<34x64xf32> to vector<34x64xbf16>
    %cst_67 = arith.constant dense<0.000000e+00> : vector<34x34xf32>
    %282 = tpu.matmul %278, %281, %cst_67 {dimension_numbers = #tpu.dot_dimension_numbers<[1], [1], [0], [0], [0, 0, 1, 0], [], []>} : vector<34x64xbf16>, vector<34x64xbf16>, vector<34x34xf32> -> vector<34x34xf32>
    %283 = arith.addf %282, %29 : vector<34x34xf32>
    %cst_68 = arith.constant dense<0xFF800000> : vector<34xf32>
    %284 = vector.multi_reduction <maximumf>, %283, %cst_68 [1] : vector<34x34xf32> to vector<34xf32>
    %285 = vector.shape_cast %284 : vector<34xf32> to vector<34x1xf32>
    %286 = vector.broadcast %285 : vector<34x1xf32> to vector<34x34xf32>
    %287 = arith.subf %283, %286 : vector<34x34xf32>
    %288 = math.exp %287 : vector<34x34xf32>
    %cst_69 = arith.constant dense<0.000000e+00> : vector<34xf32>
    %289 = vector.multi_reduction <add>, %288, %cst_69 [1] : vector<34x34xf32> to vector<34xf32>
    %290 = vector.shape_cast %289 : vector<34xf32> to vector<34x1xf32>
    %291 = tpu.reciprocal %290 {approx = true} : vector<34x1xf32> -> vector<34x1xf32>
    %292 = vector.broadcast %291 : vector<34x1xf32> to vector<34x34xf32>
    %293 = arith.mulf %288, %292 : vector<34x34xf32>
    %294 = vector.broadcast %7 : vector<1x64xf32> to vector<34x64xf32>
    %295 = arith.mulf %275, %294 : vector<34x64xf32>
    %296 = arith.truncf %293 : vector<34x34xf32> to vector<34x34xbf16>
    %297 = arith.truncf %295 : vector<34x64xf32> to vector<34x64xbf16>
    %cst_70 = arith.constant dense<0.000000e+00> : vector<34x64xf32>
    %298 = tpu.matmul %296, %297, %cst_70 {dimension_numbers = #tpu.dot_dimension_numbers<[1], [0], [0], [1], [0, 0, 1, 1], [], []>} : vector<34x34xbf16>, vector<34x64xbf16>, vector<34x64xf32> -> vector<34x64xf32>
    %299 = arith.truncf %261 : vector<34x64xf32> to vector<34x64xbf16>
    %300 = vector.broadcast %14 : vector<1x64xf32> to vector<34x64xf32>
    %301 = arith.mulf %268, %300 : vector<34x64xf32>
    %302 = arith.truncf %301 : vector<34x64xf32> to vector<34x64xbf16>
    %cst_71 = arith.constant dense<0.000000e+00> : vector<34x34xf32>
    %303 = tpu.matmul %299, %302, %cst_71 {dimension_numbers = #tpu.dot_dimension_numbers<[1], [1], [0], [0], [0, 0, 1, 0], [], []>} : vector<34x64xbf16>, vector<34x64xbf16>, vector<34x34xf32> -> vector<34x34xf32>
    %304 = arith.addf %303, %29 : vector<34x34xf32>
    %cst_72 = arith.constant dense<0xFF800000> : vector<34xf32>
    %305 = vector.multi_reduction <maximumf>, %304, %cst_72 [1] : vector<34x34xf32> to vector<34xf32>
    %306 = vector.shape_cast %305 : vector<34xf32> to vector<34x1xf32>
    %307 = vector.broadcast %306 : vector<34x1xf32> to vector<34x34xf32>
    %308 = arith.subf %304, %307 : vector<34x34xf32>
    %309 = math.exp %308 : vector<34x34xf32>
    %cst_73 = arith.constant dense<0.000000e+00> : vector<34xf32>
    %310 = vector.multi_reduction <add>, %309, %cst_73 [1] : vector<34x34xf32> to vector<34xf32>
    %311 = vector.shape_cast %310 : vector<34xf32> to vector<34x1xf32>
    %312 = tpu.reciprocal %311 {approx = true} : vector<34x1xf32> -> vector<34x1xf32>
    %313 = vector.broadcast %312 : vector<34x1xf32> to vector<34x34xf32>
    %314 = arith.mulf %309, %313 : vector<34x34xf32>
    %315 = vector.broadcast %14 : vector<1x64xf32> to vector<34x64xf32>
    %316 = arith.mulf %275, %315 : vector<34x64xf32>
    %317 = arith.truncf %314 : vector<34x34xf32> to vector<34x34xbf16>
    %318 = arith.truncf %316 : vector<34x64xf32> to vector<34x64xbf16>
    %cst_74 = arith.constant dense<0.000000e+00> : vector<34x64xf32>
    %319 = tpu.matmul %317, %318, %cst_74 {dimension_numbers = #tpu.dot_dimension_numbers<[1], [0], [0], [1], [0, 0, 1, 1], [], []>} : vector<34x34xbf16>, vector<34x64xbf16>, vector<34x64xf32> -> vector<34x64xf32>
    %320 = arith.addf %298, %319 : vector<34x64xf32>
    %321 = arith.truncf %261 : vector<34x64xf32> to vector<34x64xbf16>
    %322 = vector.broadcast %21 : vector<1x64xf32> to vector<34x64xf32>
    %323 = arith.mulf %268, %322 : vector<34x64xf32>
    %324 = arith.truncf %323 : vector<34x64xf32> to vector<34x64xbf16>
    %cst_75 = arith.constant dense<0.000000e+00> : vector<34x34xf32>
    %325 = tpu.matmul %321, %324, %cst_75 {dimension_numbers = #tpu.dot_dimension_numbers<[1], [1], [0], [0], [0, 0, 1, 0], [], []>} : vector<34x64xbf16>, vector<34x64xbf16>, vector<34x34xf32> -> vector<34x34xf32>
    %326 = arith.addf %325, %29 : vector<34x34xf32>
    %cst_76 = arith.constant dense<0xFF800000> : vector<34xf32>
    %327 = vector.multi_reduction <maximumf>, %326, %cst_76 [1] : vector<34x34xf32> to vector<34xf32>
    %328 = vector.shape_cast %327 : vector<34xf32> to vector<34x1xf32>
    %329 = vector.broadcast %328 : vector<34x1xf32> to vector<34x34xf32>
    %330 = arith.subf %326, %329 : vector<34x34xf32>
    %331 = math.exp %330 : vector<34x34xf32>
    %cst_77 = arith.constant dense<0.000000e+00> : vector<34xf32>
    %332 = vector.multi_reduction <add>, %331, %cst_77 [1] : vector<34x34xf32> to vector<34xf32>
    %333 = vector.shape_cast %332 : vector<34xf32> to vector<34x1xf32>
    %334 = tpu.reciprocal %333 {approx = true} : vector<34x1xf32> -> vector<34x1xf32>
    %335 = vector.broadcast %334 : vector<34x1xf32> to vector<34x34xf32>
    %336 = arith.mulf %331, %335 : vector<34x34xf32>
    %337 = vector.broadcast %21 : vector<1x64xf32> to vector<34x64xf32>
    %338 = arith.mulf %275, %337 : vector<34x64xf32>
    %339 = arith.truncf %336 : vector<34x34xf32> to vector<34x34xbf16>
    %340 = arith.truncf %338 : vector<34x64xf32> to vector<34x64xbf16>
    %cst_78 = arith.constant dense<0.000000e+00> : vector<34x64xf32>
    %341 = tpu.matmul %339, %340, %cst_78 {dimension_numbers = #tpu.dot_dimension_numbers<[1], [0], [0], [1], [0, 0, 1, 1], [], []>} : vector<34x34xbf16>, vector<34x64xbf16>, vector<34x64xf32> -> vector<34x64xf32>
    %342 = arith.addf %320, %341 : vector<34x64xf32>
    %343 = arith.truncf %261 : vector<34x64xf32> to vector<34x64xbf16>
    %344 = vector.broadcast %28 : vector<1x64xf32> to vector<34x64xf32>
    %345 = arith.mulf %268, %344 : vector<34x64xf32>
    %346 = arith.truncf %345 : vector<34x64xf32> to vector<34x64xbf16>
    %cst_79 = arith.constant dense<0.000000e+00> : vector<34x34xf32>
    %347 = tpu.matmul %343, %346, %cst_79 {dimension_numbers = #tpu.dot_dimension_numbers<[1], [1], [0], [0], [0, 0, 1, 0], [], []>} : vector<34x64xbf16>, vector<34x64xbf16>, vector<34x34xf32> -> vector<34x34xf32>
    %348 = arith.addf %347, %29 : vector<34x34xf32>
    %cst_80 = arith.constant dense<0xFF800000> : vector<34xf32>
    %349 = vector.multi_reduction <maximumf>, %348, %cst_80 [1] : vector<34x34xf32> to vector<34xf32>
    %350 = vector.shape_cast %349 : vector<34xf32> to vector<34x1xf32>
    %351 = vector.broadcast %350 : vector<34x1xf32> to vector<34x34xf32>
    %352 = arith.subf %348, %351 : vector<34x34xf32>
    %353 = math.exp %352 : vector<34x34xf32>
    %cst_81 = arith.constant dense<0.000000e+00> : vector<34xf32>
    %354 = vector.multi_reduction <add>, %353, %cst_81 [1] : vector<34x34xf32> to vector<34xf32>
    %355 = vector.shape_cast %354 : vector<34xf32> to vector<34x1xf32>
    %356 = tpu.reciprocal %355 {approx = true} : vector<34x1xf32> -> vector<34x1xf32>
    %357 = vector.broadcast %356 : vector<34x1xf32> to vector<34x34xf32>
    %358 = arith.mulf %353, %357 : vector<34x34xf32>
    %359 = vector.broadcast %28 : vector<1x64xf32> to vector<34x64xf32>
    %360 = arith.mulf %275, %359 : vector<34x64xf32>
    %361 = arith.truncf %358 : vector<34x34xf32> to vector<34x34xbf16>
    %362 = arith.truncf %360 : vector<34x64xf32> to vector<34x64xbf16>
    %cst_82 = arith.constant dense<0.000000e+00> : vector<34x64xf32>
    %363 = tpu.matmul %361, %362, %cst_82 {dimension_numbers = #tpu.dot_dimension_numbers<[1], [0], [0], [1], [0, 0, 1, 1], [], []>} : vector<34x34xbf16>, vector<34x64xbf16>, vector<34x64xf32> -> vector<34x64xf32>
    %364 = arith.addf %342, %363 : vector<34x64xf32>
    %365 = arith.truncf %364 : vector<34x64xf32> to vector<34x64xbf16>
    %366 = arith.truncf %276 : vector<64x64xf32> to vector<64x64xbf16>
    %cst_83 = arith.constant dense<0.000000e+00> : vector<34x64xf32>
    %367 = tpu.matmul %365, %366, %cst_83 {dimension_numbers = #tpu.dot_dimension_numbers<[1], [0], [0], [1], [0, 0, 1, 1], [], []>} : vector<34x64xbf16>, vector<64x64xbf16>, vector<34x64xf32> -> vector<34x64xf32>
    %368 = vector.broadcast %277 : vector<1x64xf32> to vector<34x64xf32>
    %369 = arith.addf %367, %368 : vector<34x64xf32>
    %370 = arith.addf %229, %369 : vector<34x64xf32>
    %371 = vector.extract_strided_slice %230 {offsets = [6, 0], sizes = [1, 64], strides = [1, 1]} : vector<9x64xf32> to vector<1x64xf32>
    %372 = vector.extract_strided_slice %230 {offsets = [7, 0], sizes = [1, 64], strides = [1, 1]} : vector<9x64xf32> to vector<1x64xf32>
    %cst_84 = arith.constant dense<0.000000e+00> : vector<34xf32>
    %373 = vector.multi_reduction <add>, %370, %cst_84 [1] : vector<34x64xf32> to vector<34xf32>
    %374 = vector.shape_cast %373 : vector<34xf32> to vector<34x1xf32>
    %cst_85 = arith.constant 6.400000e+01 : f32
    %375 = vector.broadcast %cst_85 : f32 to vector<34x1xf32>
    %376 = arith.divf %374, %375 : vector<34x1xf32>
    %377 = vector.broadcast %376 : vector<34x1xf32> to vector<34x64xf32>
    %378 = arith.subf %370, %377 : vector<34x64xf32>
    %379 = arith.mulf %378, %378 : vector<34x64xf32>
    %cst_86 = arith.constant dense<0.000000e+00> : vector<34xf32>
    %380 = vector.multi_reduction <add>, %379, %cst_86 [1] : vector<34x64xf32> to vector<34xf32>
    %381 = vector.shape_cast %380 : vector<34xf32> to vector<34x1xf32>
    %cst_87 = arith.constant 6.400000e+01 : f32
    %382 = vector.broadcast %cst_87 : f32 to vector<34x1xf32>
    %383 = arith.divf %381, %382 : vector<34x1xf32>
    %384 = vector.broadcast %376 : vector<34x1xf32> to vector<34x64xf32>
    %385 = arith.subf %370, %384 : vector<34x64xf32>
    %cst_88 = arith.constant 9.99999997E-7 : f32
    %386 = vector.broadcast %cst_88 : f32 to vector<34x1xf32>
    %387 = arith.addf %383, %386 : vector<34x1xf32>
    %388 = math.rsqrt %387 : vector<34x1xf32>
    %389 = vector.broadcast %388 : vector<34x1xf32> to vector<34x64xf32>
    %390 = arith.mulf %385, %389 : vector<34x64xf32>
    %391 = vector.broadcast %371 : vector<1x64xf32> to vector<34x64xf32>
    %392 = arith.mulf %390, %391 : vector<34x64xf32>
    %393 = vector.broadcast %372 : vector<1x64xf32> to vector<34x64xf32>
    %394 = arith.addf %392, %393 : vector<34x64xf32>
    %c72 = arith.constant 72 : index
    %c0_89 = arith.constant 0 : index
    %395 = vector.load %arg8[%c72, %c0_89] : memref<144x256xf32, #tpu.memory_space<vmem>>, vector<64x256xf32>
    %396 = arith.truncf %394 : vector<34x64xf32> to vector<34x64xbf16>
    %397 = arith.truncf %395 : vector<64x256xf32> to vector<64x256xbf16>
    %cst_90 = arith.constant dense<0.000000e+00> : vector<34x256xf32>
    %398 = tpu.matmul %396, %397, %cst_90 {dimension_numbers = #tpu.dot_dimension_numbers<[1], [0], [0], [1], [0, 0, 1, 1], [], []>} : vector<34x64xbf16>, vector<64x256xbf16>, vector<34x256xf32> -> vector<34x256xf32>
    %c136 = arith.constant 136 : index
    %c0_91 = arith.constant 0 : index
    %399 = vector.load %arg8[%c136, %c0_91] : memref<144x256xf32, #tpu.memory_space<vmem>>, vector<1x256xf32>
    %400 = vector.broadcast %399 : vector<1x256xf32> to vector<34x256xf32>
    %401 = arith.addf %398, %400 : vector<34x256xf32>
    %cst_92 = arith.constant 5.000000e-01 : f32
    %402 = vector.broadcast %cst_92 : f32 to vector<34x256xf32>
    %403 = arith.mulf %402, %401 : vector<34x256xf32>
    %cst_93 = arith.constant 4.471500e-02 : f32
    %404 = vector.broadcast %cst_93 : f32 to vector<34x256xf32>
    %405 = arith.mulf %404, %401 : vector<34x256xf32>
    %406 = arith.mulf %405, %401 : vector<34x256xf32>
    %407 = arith.mulf %406, %401 : vector<34x256xf32>
    %408 = arith.addf %401, %407 : vector<34x256xf32>
    %cst_94 = arith.constant 0.797884583 : f32
    %409 = vector.broadcast %cst_94 : f32 to vector<34x256xf32>
    %410 = arith.mulf %409, %408 : vector<34x256xf32>
    %411 = math.tanh %410 : vector<34x256xf32>
    %cst_95 = arith.constant 1.000000e+00 : f32
    %412 = vector.broadcast %cst_95 : f32 to vector<34x256xf32>
    %413 = arith.addf %412, %411 : vector<34x256xf32>
    %414 = arith.mulf %403, %413 : vector<34x256xf32>
    %c872 = arith.constant 872 : index
    %c0_96 = arith.constant 0 : index
    %415 = vector.load %arg6[%c872, %c0_96] : memref<1264x64xf32, #tpu.memory_space<vmem>>, vector<256x64xf32>
    %416 = arith.truncf %414 : vector<34x256xf32> to vector<34x256xbf16>
    %417 = arith.truncf %415 : vector<256x64xf32> to vector<256x64xbf16>
    %cst_97 = arith.constant dense<0.000000e+00> : vector<34x64xf32>
    %418 = tpu.matmul %416, %417, %cst_97 {dimension_numbers = #tpu.dot_dimension_numbers<[1], [0], [0], [1], [0, 0, 1, 1], [], []>} : vector<34x256xbf16>, vector<256x64xbf16>, vector<34x64xf32> -> vector<34x64xf32>
    %419 = arith.addf %370, %418 : vector<34x64xf32>
    %420 = vector.extract_strided_slice %230 {offsets = [8, 0], sizes = [1, 64], strides = [1, 1]} : vector<9x64xf32> to vector<1x64xf32>
    %421 = vector.broadcast %420 : vector<1x64xf32> to vector<34x64xf32>
    %422 = arith.addf %419, %421 : vector<34x64xf32>
    %c1144 = arith.constant 1144 : index
    %c0_98 = arith.constant 0 : index
    %423 = vector.load %arg6[%c1144, %c0_98] : memref<1264x64xf32, #tpu.memory_space<vmem>>, vector<2x64xf32>
    %424 = vector.extract_strided_slice %423 {offsets = [0, 0], sizes = [1, 64], strides = [1, 1]} : vector<2x64xf32> to vector<1x64xf32>
    %425 = vector.extract_strided_slice %423 {offsets = [1, 0], sizes = [1, 64], strides = [1, 1]} : vector<2x64xf32> to vector<1x64xf32>
    %cst_99 = arith.constant dense<0.000000e+00> : vector<34xf32>
    %426 = vector.multi_reduction <add>, %422, %cst_99 [1] : vector<34x64xf32> to vector<34xf32>
    %427 = vector.shape_cast %426 : vector<34xf32> to vector<34x1xf32>
    %cst_100 = arith.constant 6.400000e+01 : f32
    %428 = vector.broadcast %cst_100 : f32 to vector<34x1xf32>
    %429 = arith.divf %427, %428 : vector<34x1xf32>
    %430 = vector.broadcast %429 : vector<34x1xf32> to vector<34x64xf32>
    %431 = arith.subf %422, %430 : vector<34x64xf32>
    %432 = arith.mulf %431, %431 : vector<34x64xf32>
    %cst_101 = arith.constant dense<0.000000e+00> : vector<34xf32>
    %433 = vector.multi_reduction <add>, %432, %cst_101 [1] : vector<34x64xf32> to vector<34xf32>
    %434 = vector.shape_cast %433 : vector<34xf32> to vector<34x1xf32>
    %cst_102 = arith.constant 6.400000e+01 : f32
    %435 = vector.broadcast %cst_102 : f32 to vector<34x1xf32>
    %436 = arith.divf %434, %435 : vector<34x1xf32>
    %437 = vector.broadcast %429 : vector<34x1xf32> to vector<34x64xf32>
    %438 = arith.subf %422, %437 : vector<34x64xf32>
    %cst_103 = arith.constant 9.99999997E-7 : f32
    %439 = vector.broadcast %cst_103 : f32 to vector<34x1xf32>
    %440 = arith.addf %436, %439 : vector<34x1xf32>
    %441 = math.rsqrt %440 : vector<34x1xf32>
    %442 = vector.broadcast %441 : vector<34x1xf32> to vector<34x64xf32>
    %443 = arith.mulf %438, %442 : vector<34x64xf32>
    %444 = vector.broadcast %424 : vector<1x64xf32> to vector<34x64xf32>
    %445 = arith.mulf %443, %444 : vector<34x64xf32>
    %446 = vector.broadcast %425 : vector<1x64xf32> to vector<34x64xf32>
    %447 = arith.addf %445, %446 : vector<34x64xf32>
    %448 = tpu.iota {dimensions = array<i32: 0>} : vector<2x34xi32>
    %449 = tpu.iota {dimensions = array<i32: 1>} : vector<2x34xi32>
    %c17_i32 = arith.constant 17 : i32
    %450 = vector.broadcast %c17_i32 : i32 to vector<2x34xi32>
    %451 = arith.muli %448, %450 : vector<2x34xi32>
    %452 = arith.cmpi eq, %449, %451 : vector<2x34xi32>
    %453 = arith.extui %452 : vector<2x34xi1> to vector<2x34xi32>
    %454 = arith.sitofp %453 : vector<2x34xi32> to vector<2x34xf32>
    %cst_104 = arith.constant dense<0.000000e+00> : vector<2x64xf32>
    %455 = tpu.matmul %454, %447, %cst_104 {dimension_numbers = #tpu.dot_dimension_numbers<[1], [0], [0], [1], [0, 0, 1, 1], [], []>} : vector<2x34xf32>, vector<34x64xf32>, vector<2x64xf32> -> vector<2x64xf32>
    %c1216 = arith.constant 1216 : index
    %c0_105 = arith.constant 0 : index
    %456 = vector.load %arg6[%c1216, %c0_105] : memref<1264x64xf32, #tpu.memory_space<vmem>>, vector<3x64xf32>
    %c1152 = arith.constant 1152 : index
    %c0_106 = arith.constant 0 : index
    %457 = vector.load %arg6[%c1152, %c0_106] : memref<1264x64xf32, #tpu.memory_space<vmem>>, vector<64x64xf32>
    %458 = arith.truncf %455 : vector<2x64xf32> to vector<2x64xbf16>
    %459 = arith.truncf %457 : vector<64x64xf32> to vector<64x64xbf16>
    %cst_107 = arith.constant dense<0.000000e+00> : vector<2x64xf32>
    %460 = tpu.matmul %458, %459, %cst_107 {dimension_numbers = #tpu.dot_dimension_numbers<[1], [0], [0], [1], [0, 0, 1, 1], [], []>} : vector<2x64xbf16>, vector<64x64xbf16>, vector<2x64xf32> -> vector<2x64xf32>
    %461 = vector.extract_strided_slice %456 {offsets = [0, 0], sizes = [1, 64], strides = [1, 1]} : vector<3x64xf32> to vector<1x64xf32>
    %462 = vector.broadcast %461 : vector<1x64xf32> to vector<2x64xf32>
    %463 = arith.addf %460, %462 : vector<2x64xf32>
    %464 = vector.extract_strided_slice %456 {offsets = [1, 0], sizes = [1, 64], strides = [1, 1]} : vector<3x64xf32> to vector<1x64xf32>
    %465 = vector.extract_strided_slice %456 {offsets = [2, 0], sizes = [1, 64], strides = [1, 1]} : vector<3x64xf32> to vector<1x64xf32>
    %cst_108 = arith.constant dense<0.000000e+00> : vector<2xf32>
    %466 = vector.multi_reduction <add>, %463, %cst_108 [1] : vector<2x64xf32> to vector<2xf32>
    %467 = vector.shape_cast %466 : vector<2xf32> to vector<2x1xf32>
    %cst_109 = arith.constant 6.400000e+01 : f32
    %468 = vector.broadcast %cst_109 : f32 to vector<2x1xf32>
    %469 = arith.divf %467, %468 : vector<2x1xf32>
    %470 = vector.broadcast %469 : vector<2x1xf32> to vector<2x64xf32>
    %471 = arith.subf %463, %470 : vector<2x64xf32>
    %472 = arith.mulf %471, %471 : vector<2x64xf32>
    %cst_110 = arith.constant dense<0.000000e+00> : vector<2xf32>
    %473 = vector.multi_reduction <add>, %472, %cst_110 [1] : vector<2x64xf32> to vector<2xf32>
    %474 = vector.shape_cast %473 : vector<2xf32> to vector<2x1xf32>
    %cst_111 = arith.constant 6.400000e+01 : f32
    %475 = vector.broadcast %cst_111 : f32 to vector<2x1xf32>
    %476 = arith.divf %474, %475 : vector<2x1xf32>
    %477 = vector.broadcast %469 : vector<2x1xf32> to vector<2x64xf32>
    %478 = arith.subf %463, %477 : vector<2x64xf32>
    %cst_112 = arith.constant 9.99999974E-6 : f32
    %479 = vector.broadcast %cst_112 : f32 to vector<2x1xf32>
    %480 = arith.addf %476, %479 : vector<2x1xf32>
    %481 = math.rsqrt %480 : vector<2x1xf32>
    %482 = vector.broadcast %481 : vector<2x1xf32> to vector<2x64xf32>
    %483 = arith.mulf %478, %482 : vector<2x64xf32>
    %484 = vector.broadcast %464 : vector<1x64xf32> to vector<2x64xf32>
    %485 = arith.mulf %483, %484 : vector<2x64xf32>
    %486 = vector.broadcast %465 : vector<1x64xf32> to vector<2x64xf32>
    %487 = arith.addf %485, %486 : vector<2x64xf32>
    %cst_113 = arith.constant 5.000000e-01 : f32
    %488 = vector.broadcast %cst_113 : f32 to vector<2x64xf32>
    %489 = arith.mulf %488, %487 : vector<2x64xf32>
    %cst_114 = arith.constant 4.471500e-02 : f32
    %490 = vector.broadcast %cst_114 : f32 to vector<2x64xf32>
    %491 = arith.mulf %490, %487 : vector<2x64xf32>
    %492 = arith.mulf %491, %487 : vector<2x64xf32>
    %493 = arith.mulf %492, %487 : vector<2x64xf32>
    %494 = arith.addf %487, %493 : vector<2x64xf32>
    %cst_115 = arith.constant 0.797884583 : f32
    %495 = vector.broadcast %cst_115 : f32 to vector<2x64xf32>
    %496 = arith.mulf %495, %494 : vector<2x64xf32>
    %497 = math.tanh %496 : vector<2x64xf32>
    %cst_116 = arith.constant 1.000000e+00 : f32
    %498 = vector.broadcast %cst_116 : f32 to vector<2x64xf32>
    %499 = arith.addf %498, %497 : vector<2x64xf32>
    %500 = arith.mulf %489, %499 : vector<2x64xf32>
    %c64_117 = arith.constant 64 : index
    %c0_118 = arith.constant 0 : index
    %501 = vector.load %arg5[%c64_117, %c0_118] : memref<752x32xf32, #tpu.memory_space<vmem>>, vector<3x32xf32>
    %c0_119 = arith.constant 0 : index
    %c0_120 = arith.constant 0 : index
    %502 = vector.load %arg5[%c0_119, %c0_120] : memref<752x32xf32, #tpu.memory_space<vmem>>, vector<64x32xf32>
    %503 = arith.truncf %500 : vector<2x64xf32> to vector<2x64xbf16>
    %504 = arith.truncf %502 : vector<64x32xf32> to vector<64x32xbf16>
    %cst_121 = arith.constant dense<0.000000e+00> : vector<2x32xf32>
    %505 = tpu.matmul %503, %504, %cst_121 {dimension_numbers = #tpu.dot_dimension_numbers<[1], [0], [0], [1], [0, 0, 1, 1], [], []>} : vector<2x64xbf16>, vector<64x32xbf16>, vector<2x32xf32> -> vector<2x32xf32>
    %506 = vector.extract_strided_slice %501 {offsets = [0, 0], sizes = [1, 32], strides = [1, 1]} : vector<3x32xf32> to vector<1x32xf32>
    %507 = vector.broadcast %506 : vector<1x32xf32> to vector<2x32xf32>
    %508 = arith.addf %505, %507 : vector<2x32xf32>
    %509 = vector.extract_strided_slice %501 {offsets = [1, 0], sizes = [1, 32], strides = [1, 1]} : vector<3x32xf32> to vector<1x32xf32>
    %510 = vector.extract_strided_slice %501 {offsets = [2, 0], sizes = [1, 32], strides = [1, 1]} : vector<3x32xf32> to vector<1x32xf32>
    %cst_122 = arith.constant dense<0.000000e+00> : vector<2xf32>
    %511 = vector.multi_reduction <add>, %508, %cst_122 [1] : vector<2x32xf32> to vector<2xf32>
    %512 = vector.shape_cast %511 : vector<2xf32> to vector<2x1xf32>
    %cst_123 = arith.constant 3.200000e+01 : f32
    %513 = vector.broadcast %cst_123 : f32 to vector<2x1xf32>
    %514 = arith.divf %512, %513 : vector<2x1xf32>
    %515 = vector.broadcast %514 : vector<2x1xf32> to vector<2x32xf32>
    %516 = arith.subf %508, %515 : vector<2x32xf32>
    %517 = arith.mulf %516, %516 : vector<2x32xf32>
    %cst_124 = arith.constant dense<0.000000e+00> : vector<2xf32>
    %518 = vector.multi_reduction <add>, %517, %cst_124 [1] : vector<2x32xf32> to vector<2xf32>
    %519 = vector.shape_cast %518 : vector<2xf32> to vector<2x1xf32>
    %cst_125 = arith.constant 3.200000e+01 : f32
    %520 = vector.broadcast %cst_125 : f32 to vector<2x1xf32>
    %521 = arith.divf %519, %520 : vector<2x1xf32>
    %522 = vector.broadcast %514 : vector<2x1xf32> to vector<2x32xf32>
    %523 = arith.subf %508, %522 : vector<2x32xf32>
    %cst_126 = arith.constant 9.99999974E-6 : f32
    %524 = vector.broadcast %cst_126 : f32 to vector<2x1xf32>
    %525 = arith.addf %521, %524 : vector<2x1xf32>
    %526 = math.rsqrt %525 : vector<2x1xf32>
    %527 = vector.broadcast %526 : vector<2x1xf32> to vector<2x32xf32>
    %528 = arith.mulf %523, %527 : vector<2x32xf32>
    %529 = vector.broadcast %509 : vector<1x32xf32> to vector<2x32xf32>
    %530 = arith.mulf %528, %529 : vector<2x32xf32>
    %531 = vector.broadcast %510 : vector<1x32xf32> to vector<2x32xf32>
    %532 = arith.addf %530, %531 : vector<2x32xf32>
    %533 = tpu.iota {dimensions = array<i32: 1>} : vector<1x32xi32>
    %c0_i32_127 = arith.constant 0 : i32
    %534 = vector.broadcast %c0_i32_127 : i32 to vector<1x32xi32>
    %535 = arith.cmpi sge, %533, %534 : vector<1x32xi32>
    %c8_i32 = arith.constant 8 : i32
    %536 = vector.broadcast %c8_i32 : i32 to vector<1x32xi32>
    %537 = arith.cmpi slt, %533, %536 : vector<1x32xi32>
    %538 = arith.andi %535, %537 : vector<1x32xi1>
    %539 = arith.extui %538 : vector<1x32xi1> to vector<1x32xi32>
    %540 = arith.sitofp %539 : vector<1x32xi32> to vector<1x32xf32>
    %c8_i32_128 = arith.constant 8 : i32
    %541 = vector.broadcast %c8_i32_128 : i32 to vector<1x32xi32>
    %542 = arith.cmpi sge, %533, %541 : vector<1x32xi32>
    %c16_i32_129 = arith.constant 16 : i32
    %543 = vector.broadcast %c16_i32_129 : i32 to vector<1x32xi32>
    %544 = arith.cmpi slt, %533, %543 : vector<1x32xi32>
    %545 = arith.andi %542, %544 : vector<1x32xi1>
    %546 = arith.extui %545 : vector<1x32xi1> to vector<1x32xi32>
    %547 = arith.sitofp %546 : vector<1x32xi32> to vector<1x32xf32>
    %c16_i32_130 = arith.constant 16 : i32
    %548 = vector.broadcast %c16_i32_130 : i32 to vector<1x32xi32>
    %549 = arith.cmpi sge, %533, %548 : vector<1x32xi32>
    %c24_i32 = arith.constant 24 : i32
    %550 = vector.broadcast %c24_i32 : i32 to vector<1x32xi32>
    %551 = arith.cmpi slt, %533, %550 : vector<1x32xi32>
    %552 = arith.andi %549, %551 : vector<1x32xi1>
    %553 = arith.extui %552 : vector<1x32xi1> to vector<1x32xi32>
    %554 = arith.sitofp %553 : vector<1x32xi32> to vector<1x32xf32>
    %c24_i32_131 = arith.constant 24 : i32
    %555 = vector.broadcast %c24_i32_131 : i32 to vector<1x32xi32>
    %556 = arith.cmpi sge, %533, %555 : vector<1x32xi32>
    %c32_i32_132 = arith.constant 32 : i32
    %557 = vector.broadcast %c32_i32_132 : i32 to vector<1x32xi32>
    %558 = arith.cmpi slt, %533, %557 : vector<1x32xi32>
    %559 = arith.andi %556, %558 : vector<1x32xi1>
    %560 = arith.extui %559 : vector<1x32xi1> to vector<1x32xi32>
    %561 = arith.sitofp %560 : vector<1x32xi32> to vector<1x32xf32>
    %c0_133 = arith.constant 0 : index
    %c0_134 = arith.constant 0 : index
    %562 = vector.load %arg4[%c0_133, %c0_134] : memref<16x16xf32, #tpu.memory_space<vmem>>, vector<16x16xf32>
    %563 = tpu.iota {dimensions = array<i32: 0>} : vector<16x1xi32>
    %c0_i32_135 = arith.constant 0 : i32
    %564 = vector.broadcast %c0_i32_135 : i32 to vector<16x1xi32>
    %565 = arith.cmpi sge, %563, %564 : vector<16x1xi32>
    %c8_i32_136 = arith.constant 8 : i32
    %566 = vector.broadcast %c8_i32_136 : i32 to vector<16x1xi32>
    %567 = arith.cmpi slt, %563, %566 : vector<16x1xi32>
    %568 = arith.andi %565, %567 : vector<16x1xi1>
    %569 = arith.extui %568 : vector<16x1xi1> to vector<16x1xi32>
    %570 = arith.sitofp %569 : vector<16x1xi32> to vector<16x1xf32>
    %c8_i32_137 = arith.constant 8 : i32
    %571 = vector.broadcast %c8_i32_137 : i32 to vector<16x1xi32>
    %572 = arith.cmpi sge, %563, %571 : vector<16x1xi32>
    %c16_i32_138 = arith.constant 16 : i32
    %573 = vector.broadcast %c16_i32_138 : i32 to vector<16x1xi32>
    %574 = arith.cmpi slt, %563, %573 : vector<16x1xi32>
    %575 = arith.andi %572, %574 : vector<16x1xi1>
    %576 = arith.extui %575 : vector<16x1xi1> to vector<16x1xi32>
    %577 = arith.sitofp %576 : vector<16x1xi32> to vector<16x1xf32>
    %c0_139 = arith.constant 0 : index
    %c0_140 = arith.constant 0 : index
    %578 = vector.load %arg2[%c0_139, %c0_140] : memref<16x32xf32, #tpu.memory_space<vmem>>, vector<16x32xf32>
    %c392 = arith.constant 392 : index
    %c0_141 = arith.constant 0 : index
    %579 = vector.load %arg5[%c392, %c0_141] : memref<752x32xf32, #tpu.memory_space<vmem>>, vector<13x32xf32>
    %c72_142 = arith.constant 72 : index
    %c0_143 = arith.constant 0 : index
    %580 = vector.load %arg5[%c72_142, %c0_143] : memref<752x32xf32, #tpu.memory_space<vmem>>, vector<32x32xf32>
    %581 = arith.truncf %578 : vector<16x32xf32> to vector<16x32xbf16>
    %582 = arith.truncf %580 : vector<32x32xf32> to vector<32x32xbf16>
    %cst_144 = arith.constant dense<0.000000e+00> : vector<16x32xf32>
    %583 = tpu.matmul %581, %582, %cst_144 {dimension_numbers = #tpu.dot_dimension_numbers<[1], [0], [0], [1], [0, 0, 1, 1], [], []>} : vector<16x32xbf16>, vector<32x32xbf16>, vector<16x32xf32> -> vector<16x32xf32>
    %584 = vector.extract_strided_slice %579 {offsets = [0, 0], sizes = [1, 32], strides = [1, 1]} : vector<13x32xf32> to vector<1x32xf32>
    %585 = vector.broadcast %584 : vector<1x32xf32> to vector<16x32xf32>
    %586 = arith.addf %583, %585 : vector<16x32xf32>
    %c104 = arith.constant 104 : index
    %c0_145 = arith.constant 0 : index
    %587 = vector.load %arg5[%c104, %c0_145] : memref<752x32xf32, #tpu.memory_space<vmem>>, vector<32x32xf32>
    %588 = arith.truncf %578 : vector<16x32xf32> to vector<16x32xbf16>
    %589 = arith.truncf %587 : vector<32x32xf32> to vector<32x32xbf16>
    %cst_146 = arith.constant dense<0.000000e+00> : vector<16x32xf32>
    %590 = tpu.matmul %588, %589, %cst_146 {dimension_numbers = #tpu.dot_dimension_numbers<[1], [0], [0], [1], [0, 0, 1, 1], [], []>} : vector<16x32xbf16>, vector<32x32xbf16>, vector<16x32xf32> -> vector<16x32xf32>
    %591 = vector.extract_strided_slice %579 {offsets = [1, 0], sizes = [1, 32], strides = [1, 1]} : vector<13x32xf32> to vector<1x32xf32>
    %592 = vector.broadcast %591 : vector<1x32xf32> to vector<16x32xf32>
    %593 = arith.addf %590, %592 : vector<16x32xf32>
    %c136_147 = arith.constant 136 : index
    %c0_148 = arith.constant 0 : index
    %594 = vector.load %arg5[%c136_147, %c0_148] : memref<752x32xf32, #tpu.memory_space<vmem>>, vector<32x32xf32>
    %595 = arith.truncf %578 : vector<16x32xf32> to vector<16x32xbf16>
    %596 = arith.truncf %594 : vector<32x32xf32> to vector<32x32xbf16>
    %cst_149 = arith.constant dense<0.000000e+00> : vector<16x32xf32>
    %597 = tpu.matmul %595, %596, %cst_149 {dimension_numbers = #tpu.dot_dimension_numbers<[1], [0], [0], [1], [0, 0, 1, 1], [], []>} : vector<16x32xbf16>, vector<32x32xbf16>, vector<16x32xf32> -> vector<16x32xf32>
    %598 = vector.extract_strided_slice %579 {offsets = [2, 0], sizes = [1, 32], strides = [1, 1]} : vector<13x32xf32> to vector<1x32xf32>
    %599 = vector.broadcast %598 : vector<1x32xf32> to vector<16x32xf32>
    %600 = arith.addf %597, %599 : vector<16x32xf32>
    %c168 = arith.constant 168 : index
    %c0_150 = arith.constant 0 : index
    %601 = vector.load %arg5[%c168, %c0_150] : memref<752x32xf32, #tpu.memory_space<vmem>>, vector<32x32xf32>
    %602 = vector.extract_strided_slice %579 {offsets = [3, 0], sizes = [1, 32], strides = [1, 1]} : vector<13x32xf32> to vector<1x32xf32>
    %603 = arith.truncf %586 : vector<16x32xf32> to vector<16x32xbf16>
    %604 = vector.broadcast %540 : vector<1x32xf32> to vector<16x32xf32>
    %605 = arith.mulf %593, %604 : vector<16x32xf32>
    %606 = arith.truncf %605 : vector<16x32xf32> to vector<16x32xbf16>
    %cst_151 = arith.constant dense<0.000000e+00> : vector<16x16xf32>
    %607 = tpu.matmul %603, %606, %cst_151 {dimension_numbers = #tpu.dot_dimension_numbers<[1], [1], [0], [0], [0, 0, 1, 0], [], []>} : vector<16x32xbf16>, vector<16x32xbf16>, vector<16x16xf32> -> vector<16x16xf32>
    %608 = arith.addf %607, %562 : vector<16x16xf32>
    %cst_152 = arith.constant dense<0xFF800000> : vector<16xf32>
    %609 = vector.multi_reduction <maximumf>, %608, %cst_152 [1] : vector<16x16xf32> to vector<16xf32>
    %610 = vector.shape_cast %609 : vector<16xf32> to vector<16x1xf32>
    %611 = vector.broadcast %610 : vector<16x1xf32> to vector<16x16xf32>
    %612 = arith.subf %608, %611 : vector<16x16xf32>
    %613 = math.exp %612 : vector<16x16xf32>
    %cst_153 = arith.constant dense<0.000000e+00> : vector<16xf32>
    %614 = vector.multi_reduction <add>, %613, %cst_153 [1] : vector<16x16xf32> to vector<16xf32>
    %615 = vector.shape_cast %614 : vector<16xf32> to vector<16x1xf32>
    %616 = tpu.reciprocal %615 {approx = true} : vector<16x1xf32> -> vector<16x1xf32>
    %617 = vector.broadcast %616 : vector<16x1xf32> to vector<16x16xf32>
    %618 = arith.mulf %613, %617 : vector<16x16xf32>
    %619 = vector.broadcast %540 : vector<1x32xf32> to vector<16x32xf32>
    %620 = arith.mulf %600, %619 : vector<16x32xf32>
    %621 = arith.truncf %618 : vector<16x16xf32> to vector<16x16xbf16>
    %622 = arith.truncf %620 : vector<16x32xf32> to vector<16x32xbf16>
    %cst_154 = arith.constant dense<0.000000e+00> : vector<16x32xf32>
    %623 = tpu.matmul %621, %622, %cst_154 {dimension_numbers = #tpu.dot_dimension_numbers<[1], [0], [0], [1], [0, 0, 1, 1], [], []>} : vector<16x16xbf16>, vector<16x32xbf16>, vector<16x32xf32> -> vector<16x32xf32>
    %624 = arith.truncf %586 : vector<16x32xf32> to vector<16x32xbf16>
    %625 = vector.broadcast %547 : vector<1x32xf32> to vector<16x32xf32>
    %626 = arith.mulf %593, %625 : vector<16x32xf32>
    %627 = arith.truncf %626 : vector<16x32xf32> to vector<16x32xbf16>
    %cst_155 = arith.constant dense<0.000000e+00> : vector<16x16xf32>
    %628 = tpu.matmul %624, %627, %cst_155 {dimension_numbers = #tpu.dot_dimension_numbers<[1], [1], [0], [0], [0, 0, 1, 0], [], []>} : vector<16x32xbf16>, vector<16x32xbf16>, vector<16x16xf32> -> vector<16x16xf32>
    %629 = arith.addf %628, %562 : vector<16x16xf32>
    %cst_156 = arith.constant dense<0xFF800000> : vector<16xf32>
    %630 = vector.multi_reduction <maximumf>, %629, %cst_156 [1] : vector<16x16xf32> to vector<16xf32>
    %631 = vector.shape_cast %630 : vector<16xf32> to vector<16x1xf32>
    %632 = vector.broadcast %631 : vector<16x1xf32> to vector<16x16xf32>
    %633 = arith.subf %629, %632 : vector<16x16xf32>
    %634 = math.exp %633 : vector<16x16xf32>
    %cst_157 = arith.constant dense<0.000000e+00> : vector<16xf32>
    %635 = vector.multi_reduction <add>, %634, %cst_157 [1] : vector<16x16xf32> to vector<16xf32>
    %636 = vector.shape_cast %635 : vector<16xf32> to vector<16x1xf32>
    %637 = tpu.reciprocal %636 {approx = true} : vector<16x1xf32> -> vector<16x1xf32>
    %638 = vector.broadcast %637 : vector<16x1xf32> to vector<16x16xf32>
    %639 = arith.mulf %634, %638 : vector<16x16xf32>
    %640 = vector.broadcast %547 : vector<1x32xf32> to vector<16x32xf32>
    %641 = arith.mulf %600, %640 : vector<16x32xf32>
    %642 = arith.truncf %639 : vector<16x16xf32> to vector<16x16xbf16>
    %643 = arith.truncf %641 : vector<16x32xf32> to vector<16x32xbf16>
    %cst_158 = arith.constant dense<0.000000e+00> : vector<16x32xf32>
    %644 = tpu.matmul %642, %643, %cst_158 {dimension_numbers = #tpu.dot_dimension_numbers<[1], [0], [0], [1], [0, 0, 1, 1], [], []>} : vector<16x16xbf16>, vector<16x32xbf16>, vector<16x32xf32> -> vector<16x32xf32>
    %645 = arith.addf %623, %644 : vector<16x32xf32>
    %646 = arith.truncf %586 : vector<16x32xf32> to vector<16x32xbf16>
    %647 = vector.broadcast %554 : vector<1x32xf32> to vector<16x32xf32>
    %648 = arith.mulf %593, %647 : vector<16x32xf32>
    %649 = arith.truncf %648 : vector<16x32xf32> to vector<16x32xbf16>
    %cst_159 = arith.constant dense<0.000000e+00> : vector<16x16xf32>
    %650 = tpu.matmul %646, %649, %cst_159 {dimension_numbers = #tpu.dot_dimension_numbers<[1], [1], [0], [0], [0, 0, 1, 0], [], []>} : vector<16x32xbf16>, vector<16x32xbf16>, vector<16x16xf32> -> vector<16x16xf32>
    %651 = arith.addf %650, %562 : vector<16x16xf32>
    %cst_160 = arith.constant dense<0xFF800000> : vector<16xf32>
    %652 = vector.multi_reduction <maximumf>, %651, %cst_160 [1] : vector<16x16xf32> to vector<16xf32>
    %653 = vector.shape_cast %652 : vector<16xf32> to vector<16x1xf32>
    %654 = vector.broadcast %653 : vector<16x1xf32> to vector<16x16xf32>
    %655 = arith.subf %651, %654 : vector<16x16xf32>
    %656 = math.exp %655 : vector<16x16xf32>
    %cst_161 = arith.constant dense<0.000000e+00> : vector<16xf32>
    %657 = vector.multi_reduction <add>, %656, %cst_161 [1] : vector<16x16xf32> to vector<16xf32>
    %658 = vector.shape_cast %657 : vector<16xf32> to vector<16x1xf32>
    %659 = tpu.reciprocal %658 {approx = true} : vector<16x1xf32> -> vector<16x1xf32>
    %660 = vector.broadcast %659 : vector<16x1xf32> to vector<16x16xf32>
    %661 = arith.mulf %656, %660 : vector<16x16xf32>
    %662 = vector.broadcast %554 : vector<1x32xf32> to vector<16x32xf32>
    %663 = arith.mulf %600, %662 : vector<16x32xf32>
    %664 = arith.truncf %661 : vector<16x16xf32> to vector<16x16xbf16>
    %665 = arith.truncf %663 : vector<16x32xf32> to vector<16x32xbf16>
    %cst_162 = arith.constant dense<0.000000e+00> : vector<16x32xf32>
    %666 = tpu.matmul %664, %665, %cst_162 {dimension_numbers = #tpu.dot_dimension_numbers<[1], [0], [0], [1], [0, 0, 1, 1], [], []>} : vector<16x16xbf16>, vector<16x32xbf16>, vector<16x32xf32> -> vector<16x32xf32>
    %667 = arith.addf %645, %666 : vector<16x32xf32>
    %668 = arith.truncf %586 : vector<16x32xf32> to vector<16x32xbf16>
    %669 = vector.broadcast %561 : vector<1x32xf32> to vector<16x32xf32>
    %670 = arith.mulf %593, %669 : vector<16x32xf32>
    %671 = arith.truncf %670 : vector<16x32xf32> to vector<16x32xbf16>
    %cst_163 = arith.constant dense<0.000000e+00> : vector<16x16xf32>
    %672 = tpu.matmul %668, %671, %cst_163 {dimension_numbers = #tpu.dot_dimension_numbers<[1], [1], [0], [0], [0, 0, 1, 0], [], []>} : vector<16x32xbf16>, vector<16x32xbf16>, vector<16x16xf32> -> vector<16x16xf32>
    %673 = arith.addf %672, %562 : vector<16x16xf32>
    %cst_164 = arith.constant dense<0xFF800000> : vector<16xf32>
    %674 = vector.multi_reduction <maximumf>, %673, %cst_164 [1] : vector<16x16xf32> to vector<16xf32>
    %675 = vector.shape_cast %674 : vector<16xf32> to vector<16x1xf32>
    %676 = vector.broadcast %675 : vector<16x1xf32> to vector<16x16xf32>
    %677 = arith.subf %673, %676 : vector<16x16xf32>
    %678 = math.exp %677 : vector<16x16xf32>
    %cst_165 = arith.constant dense<0.000000e+00> : vector<16xf32>
    %679 = vector.multi_reduction <add>, %678, %cst_165 [1] : vector<16x16xf32> to vector<16xf32>
    %680 = vector.shape_cast %679 : vector<16xf32> to vector<16x1xf32>
    %681 = tpu.reciprocal %680 {approx = true} : vector<16x1xf32> -> vector<16x1xf32>
    %682 = vector.broadcast %681 : vector<16x1xf32> to vector<16x16xf32>
    %683 = arith.mulf %678, %682 : vector<16x16xf32>
    %684 = vector.broadcast %561 : vector<1x32xf32> to vector<16x32xf32>
    %685 = arith.mulf %600, %684 : vector<16x32xf32>
    %686 = arith.truncf %683 : vector<16x16xf32> to vector<16x16xbf16>
    %687 = arith.truncf %685 : vector<16x32xf32> to vector<16x32xbf16>
    %cst_166 = arith.constant dense<0.000000e+00> : vector<16x32xf32>
    %688 = tpu.matmul %686, %687, %cst_166 {dimension_numbers = #tpu.dot_dimension_numbers<[1], [0], [0], [1], [0, 0, 1, 1], [], []>} : vector<16x16xbf16>, vector<16x32xbf16>, vector<16x32xf32> -> vector<16x32xf32>
    %689 = arith.addf %667, %688 : vector<16x32xf32>
    %690 = arith.truncf %689 : vector<16x32xf32> to vector<16x32xbf16>
    %691 = arith.truncf %601 : vector<32x32xf32> to vector<32x32xbf16>
    %cst_167 = arith.constant dense<0.000000e+00> : vector<16x32xf32>
    %692 = tpu.matmul %690, %691, %cst_167 {dimension_numbers = #tpu.dot_dimension_numbers<[1], [0], [0], [1], [0, 0, 1, 1], [], []>} : vector<16x32xbf16>, vector<32x32xbf16>, vector<16x32xf32> -> vector<16x32xf32>
    %693 = vector.broadcast %602 : vector<1x32xf32> to vector<16x32xf32>
    %694 = arith.addf %692, %693 : vector<16x32xf32>
    %695 = arith.addf %578, %694 : vector<16x32xf32>
    %696 = vector.extract_strided_slice %579 {offsets = [4, 0], sizes = [1, 32], strides = [1, 1]} : vector<13x32xf32> to vector<1x32xf32>
    %697 = vector.extract_strided_slice %579 {offsets = [5, 0], sizes = [1, 32], strides = [1, 1]} : vector<13x32xf32> to vector<1x32xf32>
    %cst_168 = arith.constant dense<0.000000e+00> : vector<16xf32>
    %698 = vector.multi_reduction <add>, %695, %cst_168 [1] : vector<16x32xf32> to vector<16xf32>
    %699 = vector.shape_cast %698 : vector<16xf32> to vector<16x1xf32>
    %cst_169 = arith.constant 3.200000e+01 : f32
    %700 = vector.broadcast %cst_169 : f32 to vector<16x1xf32>
    %701 = arith.divf %699, %700 : vector<16x1xf32>
    %702 = vector.broadcast %701 : vector<16x1xf32> to vector<16x32xf32>
    %703 = arith.subf %695, %702 : vector<16x32xf32>
    %704 = arith.mulf %703, %703 : vector<16x32xf32>
    %cst_170 = arith.constant dense<0.000000e+00> : vector<16xf32>
    %705 = vector.multi_reduction <add>, %704, %cst_170 [1] : vector<16x32xf32> to vector<16xf32>
    %706 = vector.shape_cast %705 : vector<16xf32> to vector<16x1xf32>
    %cst_171 = arith.constant 3.200000e+01 : f32
    %707 = vector.broadcast %cst_171 : f32 to vector<16x1xf32>
    %708 = arith.divf %706, %707 : vector<16x1xf32>
    %709 = vector.broadcast %701 : vector<16x1xf32> to vector<16x32xf32>
    %710 = arith.subf %695, %709 : vector<16x32xf32>
    %cst_172 = arith.constant 9.99999974E-6 : f32
    %711 = vector.broadcast %cst_172 : f32 to vector<16x1xf32>
    %712 = arith.addf %708, %711 : vector<16x1xf32>
    %713 = math.rsqrt %712 : vector<16x1xf32>
    %714 = vector.broadcast %713 : vector<16x1xf32> to vector<16x32xf32>
    %715 = arith.mulf %710, %714 : vector<16x32xf32>
    %716 = vector.broadcast %696 : vector<1x32xf32> to vector<16x32xf32>
    %717 = arith.mulf %715, %716 : vector<16x32xf32>
    %718 = vector.broadcast %697 : vector<1x32xf32> to vector<16x32xf32>
    %719 = arith.addf %717, %718 : vector<16x32xf32>
    %c200 = arith.constant 200 : index
    %c0_173 = arith.constant 0 : index
    %720 = vector.load %arg5[%c200, %c0_173] : memref<752x32xf32, #tpu.memory_space<vmem>>, vector<32x32xf32>
    %721 = arith.truncf %532 : vector<2x32xf32> to vector<2x32xbf16>
    %722 = arith.truncf %720 : vector<32x32xf32> to vector<32x32xbf16>
    %cst_174 = arith.constant dense<0.000000e+00> : vector<2x32xf32>
    %723 = tpu.matmul %721, %722, %cst_174 {dimension_numbers = #tpu.dot_dimension_numbers<[1], [0], [0], [1], [0, 0, 1, 1], [], []>} : vector<2x32xbf16>, vector<32x32xbf16>, vector<2x32xf32> -> vector<2x32xf32>
    %724 = vector.extract_strided_slice %579 {offsets = [6, 0], sizes = [1, 32], strides = [1, 1]} : vector<13x32xf32> to vector<1x32xf32>
    %725 = vector.broadcast %724 : vector<1x32xf32> to vector<2x32xf32>
    %726 = arith.addf %723, %725 : vector<2x32xf32>
    %c232 = arith.constant 232 : index
    %c0_175 = arith.constant 0 : index
    %727 = vector.load %arg5[%c232, %c0_175] : memref<752x32xf32, #tpu.memory_space<vmem>>, vector<32x32xf32>
    %728 = arith.truncf %726 : vector<2x32xf32> to vector<2x32xbf16>
    %729 = arith.truncf %727 : vector<32x32xf32> to vector<32x32xbf16>
    %cst_176 = arith.constant dense<0.000000e+00> : vector<2x32xf32>
    %730 = tpu.matmul %728, %729, %cst_176 {dimension_numbers = #tpu.dot_dimension_numbers<[1], [0], [0], [1], [0, 0, 1, 1], [], []>} : vector<2x32xbf16>, vector<32x32xbf16>, vector<2x32xf32> -> vector<2x32xf32>
    %731 = vector.extract_strided_slice %579 {offsets = [7, 0], sizes = [1, 32], strides = [1, 1]} : vector<13x32xf32> to vector<1x32xf32>
    %732 = vector.broadcast %731 : vector<1x32xf32> to vector<2x32xf32>
    %733 = arith.addf %730, %732 : vector<2x32xf32>
    %734 = vector.extract_strided_slice %733 {offsets = [0, 0], sizes = [1, 32], strides = [1, 1]} : vector<2x32xf32> to vector<1x32xf32>
    %735 = vector.broadcast %570 : vector<16x1xf32> to vector<16x32xf32>
    %736 = vector.broadcast %734 : vector<1x32xf32> to vector<16x32xf32>
    %737 = arith.mulf %735, %736 : vector<16x32xf32>
    %738 = vector.extract_strided_slice %733 {offsets = [1, 0], sizes = [1, 32], strides = [1, 1]} : vector<2x32xf32> to vector<1x32xf32>
    %739 = vector.broadcast %577 : vector<16x1xf32> to vector<16x32xf32>
    %740 = vector.broadcast %738 : vector<1x32xf32> to vector<16x32xf32>
    %741 = arith.mulf %739, %740 : vector<16x32xf32>
    %742 = arith.addf %737, %741 : vector<16x32xf32>
    %743 = arith.addf %719, %742 : vector<16x32xf32>
    %744 = vector.extract_strided_slice %579 {offsets = [8, 0], sizes = [1, 32], strides = [1, 1]} : vector<13x32xf32> to vector<1x32xf32>
    %745 = vector.extract_strided_slice %579 {offsets = [9, 0], sizes = [1, 32], strides = [1, 1]} : vector<13x32xf32> to vector<1x32xf32>
    %cst_177 = arith.constant dense<0.000000e+00> : vector<16xf32>
    %746 = vector.multi_reduction <add>, %743, %cst_177 [1] : vector<16x32xf32> to vector<16xf32>
    %747 = vector.shape_cast %746 : vector<16xf32> to vector<16x1xf32>
    %cst_178 = arith.constant 3.200000e+01 : f32
    %748 = vector.broadcast %cst_178 : f32 to vector<16x1xf32>
    %749 = arith.divf %747, %748 : vector<16x1xf32>
    %750 = vector.broadcast %749 : vector<16x1xf32> to vector<16x32xf32>
    %751 = arith.subf %743, %750 : vector<16x32xf32>
    %752 = arith.mulf %751, %751 : vector<16x32xf32>
    %cst_179 = arith.constant dense<0.000000e+00> : vector<16xf32>
    %753 = vector.multi_reduction <add>, %752, %cst_179 [1] : vector<16x32xf32> to vector<16xf32>
    %754 = vector.shape_cast %753 : vector<16xf32> to vector<16x1xf32>
    %cst_180 = arith.constant 3.200000e+01 : f32
    %755 = vector.broadcast %cst_180 : f32 to vector<16x1xf32>
    %756 = arith.divf %754, %755 : vector<16x1xf32>
    %757 = vector.broadcast %749 : vector<16x1xf32> to vector<16x32xf32>
    %758 = arith.subf %743, %757 : vector<16x32xf32>
    %cst_181 = arith.constant 9.99999974E-6 : f32
    %759 = vector.broadcast %cst_181 : f32 to vector<16x1xf32>
    %760 = arith.addf %756, %759 : vector<16x1xf32>
    %761 = math.rsqrt %760 : vector<16x1xf32>
    %762 = vector.broadcast %761 : vector<16x1xf32> to vector<16x32xf32>
    %763 = arith.mulf %758, %762 : vector<16x32xf32>
    %764 = vector.broadcast %744 : vector<1x32xf32> to vector<16x32xf32>
    %765 = arith.mulf %763, %764 : vector<16x32xf32>
    %766 = vector.broadcast %745 : vector<1x32xf32> to vector<16x32xf32>
    %767 = arith.addf %765, %766 : vector<16x32xf32>
    %c0_182 = arith.constant 0 : index
    %c0_183 = arith.constant 0 : index
    %768 = vector.load %arg7[%c0_182, %c0_183] : memref<152x128xf32, #tpu.memory_space<vmem>>, vector<32x128xf32>
    %769 = arith.truncf %767 : vector<16x32xf32> to vector<16x32xbf16>
    %770 = arith.truncf %768 : vector<32x128xf32> to vector<32x128xbf16>
    %cst_184 = arith.constant dense<0.000000e+00> : vector<16x128xf32>
    %771 = tpu.matmul %769, %770, %cst_184 {dimension_numbers = #tpu.dot_dimension_numbers<[1], [0], [0], [1], [0, 0, 1, 1], [], []>} : vector<16x32xbf16>, vector<32x128xbf16>, vector<16x128xf32> -> vector<16x128xf32>
    %c32 = arith.constant 32 : index
    %c0_185 = arith.constant 0 : index
    %772 = vector.load %arg7[%c32, %c0_185] : memref<152x128xf32, #tpu.memory_space<vmem>>, vector<1x128xf32>
    %773 = vector.broadcast %772 : vector<1x128xf32> to vector<16x128xf32>
    %774 = arith.addf %771, %773 : vector<16x128xf32>
    %cst_186 = arith.constant 5.000000e-01 : f32
    %775 = vector.broadcast %cst_186 : f32 to vector<16x128xf32>
    %776 = arith.mulf %775, %774 : vector<16x128xf32>
    %cst_187 = arith.constant 4.471500e-02 : f32
    %777 = vector.broadcast %cst_187 : f32 to vector<16x128xf32>
    %778 = arith.mulf %777, %774 : vector<16x128xf32>
    %779 = arith.mulf %778, %774 : vector<16x128xf32>
    %780 = arith.mulf %779, %774 : vector<16x128xf32>
    %781 = arith.addf %774, %780 : vector<16x128xf32>
    %cst_188 = arith.constant 0.797884583 : f32
    %782 = vector.broadcast %cst_188 : f32 to vector<16x128xf32>
    %783 = arith.mulf %782, %781 : vector<16x128xf32>
    %784 = math.tanh %783 : vector<16x128xf32>
    %cst_189 = arith.constant 1.000000e+00 : f32
    %785 = vector.broadcast %cst_189 : f32 to vector<16x128xf32>
    %786 = arith.addf %785, %784 : vector<16x128xf32>
    %787 = arith.mulf %776, %786 : vector<16x128xf32>
    %c264 = arith.constant 264 : index
    %c0_190 = arith.constant 0 : index
    %788 = vector.load %arg5[%c264, %c0_190] : memref<752x32xf32, #tpu.memory_space<vmem>>, vector<128x32xf32>
    %789 = arith.truncf %787 : vector<16x128xf32> to vector<16x128xbf16>
    %790 = arith.truncf %788 : vector<128x32xf32> to vector<128x32xbf16>
    %cst_191 = arith.constant dense<0.000000e+00> : vector<16x32xf32>
    %791 = tpu.matmul %789, %790, %cst_191 {dimension_numbers = #tpu.dot_dimension_numbers<[1], [0], [0], [1], [0, 0, 1, 1], [], []>} : vector<16x128xbf16>, vector<128x32xbf16>, vector<16x32xf32> -> vector<16x32xf32>
    %792 = vector.extract_strided_slice %579 {offsets = [10, 0], sizes = [1, 32], strides = [1, 1]} : vector<13x32xf32> to vector<1x32xf32>
    %793 = vector.broadcast %792 : vector<1x32xf32> to vector<16x32xf32>
    %794 = arith.addf %791, %793 : vector<16x32xf32>
    %795 = arith.addf %767, %794 : vector<16x32xf32>
    %796 = vector.extract_strided_slice %579 {offsets = [11, 0], sizes = [1, 32], strides = [1, 1]} : vector<13x32xf32> to vector<1x32xf32>
    %797 = vector.extract_strided_slice %579 {offsets = [12, 0], sizes = [1, 32], strides = [1, 1]} : vector<13x32xf32> to vector<1x32xf32>
    %cst_192 = arith.constant dense<0.000000e+00> : vector<16xf32>
    %798 = vector.multi_reduction <add>, %795, %cst_192 [1] : vector<16x32xf32> to vector<16xf32>
    %799 = vector.shape_cast %798 : vector<16xf32> to vector<16x1xf32>
    %cst_193 = arith.constant 3.200000e+01 : f32
    %800 = vector.broadcast %cst_193 : f32 to vector<16x1xf32>
    %801 = arith.divf %799, %800 : vector<16x1xf32>
    %802 = vector.broadcast %801 : vector<16x1xf32> to vector<16x32xf32>
    %803 = arith.subf %795, %802 : vector<16x32xf32>
    %804 = arith.mulf %803, %803 : vector<16x32xf32>
    %cst_194 = arith.constant dense<0.000000e+00> : vector<16xf32>
    %805 = vector.multi_reduction <add>, %804, %cst_194 [1] : vector<16x32xf32> to vector<16xf32>
    %806 = vector.shape_cast %805 : vector<16xf32> to vector<16x1xf32>
    %cst_195 = arith.constant 3.200000e+01 : f32
    %807 = vector.broadcast %cst_195 : f32 to vector<16x1xf32>
    %808 = arith.divf %806, %807 : vector<16x1xf32>
    %809 = vector.broadcast %801 : vector<16x1xf32> to vector<16x32xf32>
    %810 = arith.subf %795, %809 : vector<16x32xf32>
    %cst_196 = arith.constant 9.99999974E-6 : f32
    %811 = vector.broadcast %cst_196 : f32 to vector<16x1xf32>
    %812 = arith.addf %808, %811 : vector<16x1xf32>
    %813 = math.rsqrt %812 : vector<16x1xf32>
    %814 = vector.broadcast %813 : vector<16x1xf32> to vector<16x32xf32>
    %815 = arith.mulf %810, %814 : vector<16x32xf32>
    %816 = vector.broadcast %796 : vector<1x32xf32> to vector<16x32xf32>
    %817 = arith.mulf %815, %816 : vector<16x32xf32>
    %818 = vector.broadcast %797 : vector<1x32xf32> to vector<16x32xf32>
    %819 = arith.addf %817, %818 : vector<16x32xf32>
    %c728 = arith.constant 728 : index
    %c0_197 = arith.constant 0 : index
    %820 = vector.load %arg5[%c728, %c0_197] : memref<752x32xf32, #tpu.memory_space<vmem>>, vector<13x32xf32>
    %c408 = arith.constant 408 : index
    %c0_198 = arith.constant 0 : index
    %821 = vector.load %arg5[%c408, %c0_198] : memref<752x32xf32, #tpu.memory_space<vmem>>, vector<32x32xf32>
    %822 = arith.truncf %819 : vector<16x32xf32> to vector<16x32xbf16>
    %823 = arith.truncf %821 : vector<32x32xf32> to vector<32x32xbf16>
    %cst_199 = arith.constant dense<0.000000e+00> : vector<16x32xf32>
    %824 = tpu.matmul %822, %823, %cst_199 {dimension_numbers = #tpu.dot_dimension_numbers<[1], [0], [0], [1], [0, 0, 1, 1], [], []>} : vector<16x32xbf16>, vector<32x32xbf16>, vector<16x32xf32> -> vector<16x32xf32>
    %825 = vector.extract_strided_slice %820 {offsets = [0, 0], sizes = [1, 32], strides = [1, 1]} : vector<13x32xf32> to vector<1x32xf32>
    %826 = vector.broadcast %825 : vector<1x32xf32> to vector<16x32xf32>
    %827 = arith.addf %824, %826 : vector<16x32xf32>
    %c440 = arith.constant 440 : index
    %c0_200 = arith.constant 0 : index
    %828 = vector.load %arg5[%c440, %c0_200] : memref<752x32xf32, #tpu.memory_space<vmem>>, vector<32x32xf32>
    %829 = arith.truncf %819 : vector<16x32xf32> to vector<16x32xbf16>
    %830 = arith.truncf %828 : vector<32x32xf32> to vector<32x32xbf16>
    %cst_201 = arith.constant dense<0.000000e+00> : vector<16x32xf32>
    %831 = tpu.matmul %829, %830, %cst_201 {dimension_numbers = #tpu.dot_dimension_numbers<[1], [0], [0], [1], [0, 0, 1, 1], [], []>} : vector<16x32xbf16>, vector<32x32xbf16>, vector<16x32xf32> -> vector<16x32xf32>
    %832 = vector.extract_strided_slice %820 {offsets = [1, 0], sizes = [1, 32], strides = [1, 1]} : vector<13x32xf32> to vector<1x32xf32>
    %833 = vector.broadcast %832 : vector<1x32xf32> to vector<16x32xf32>
    %834 = arith.addf %831, %833 : vector<16x32xf32>
    %c472 = arith.constant 472 : index
    %c0_202 = arith.constant 0 : index
    %835 = vector.load %arg5[%c472, %c0_202] : memref<752x32xf32, #tpu.memory_space<vmem>>, vector<32x32xf32>
    %836 = arith.truncf %819 : vector<16x32xf32> to vector<16x32xbf16>
    %837 = arith.truncf %835 : vector<32x32xf32> to vector<32x32xbf16>
    %cst_203 = arith.constant dense<0.000000e+00> : vector<16x32xf32>
    %838 = tpu.matmul %836, %837, %cst_203 {dimension_numbers = #tpu.dot_dimension_numbers<[1], [0], [0], [1], [0, 0, 1, 1], [], []>} : vector<16x32xbf16>, vector<32x32xbf16>, vector<16x32xf32> -> vector<16x32xf32>
    %839 = vector.extract_strided_slice %820 {offsets = [2, 0], sizes = [1, 32], strides = [1, 1]} : vector<13x32xf32> to vector<1x32xf32>
    %840 = vector.broadcast %839 : vector<1x32xf32> to vector<16x32xf32>
    %841 = arith.addf %838, %840 : vector<16x32xf32>
    %c504 = arith.constant 504 : index
    %c0_204 = arith.constant 0 : index
    %842 = vector.load %arg5[%c504, %c0_204] : memref<752x32xf32, #tpu.memory_space<vmem>>, vector<32x32xf32>
    %843 = vector.extract_strided_slice %820 {offsets = [3, 0], sizes = [1, 32], strides = [1, 1]} : vector<13x32xf32> to vector<1x32xf32>
    %844 = arith.truncf %827 : vector<16x32xf32> to vector<16x32xbf16>
    %845 = vector.broadcast %540 : vector<1x32xf32> to vector<16x32xf32>
    %846 = arith.mulf %834, %845 : vector<16x32xf32>
    %847 = arith.truncf %846 : vector<16x32xf32> to vector<16x32xbf16>
    %cst_205 = arith.constant dense<0.000000e+00> : vector<16x16xf32>
    %848 = tpu.matmul %844, %847, %cst_205 {dimension_numbers = #tpu.dot_dimension_numbers<[1], [1], [0], [0], [0, 0, 1, 0], [], []>} : vector<16x32xbf16>, vector<16x32xbf16>, vector<16x16xf32> -> vector<16x16xf32>
    %849 = arith.addf %848, %562 : vector<16x16xf32>
    %cst_206 = arith.constant dense<0xFF800000> : vector<16xf32>
    %850 = vector.multi_reduction <maximumf>, %849, %cst_206 [1] : vector<16x16xf32> to vector<16xf32>
    %851 = vector.shape_cast %850 : vector<16xf32> to vector<16x1xf32>
    %852 = vector.broadcast %851 : vector<16x1xf32> to vector<16x16xf32>
    %853 = arith.subf %849, %852 : vector<16x16xf32>
    %854 = math.exp %853 : vector<16x16xf32>
    %cst_207 = arith.constant dense<0.000000e+00> : vector<16xf32>
    %855 = vector.multi_reduction <add>, %854, %cst_207 [1] : vector<16x16xf32> to vector<16xf32>
    %856 = vector.shape_cast %855 : vector<16xf32> to vector<16x1xf32>
    %857 = tpu.reciprocal %856 {approx = true} : vector<16x1xf32> -> vector<16x1xf32>
    %858 = vector.broadcast %857 : vector<16x1xf32> to vector<16x16xf32>
    %859 = arith.mulf %854, %858 : vector<16x16xf32>
    %860 = vector.broadcast %540 : vector<1x32xf32> to vector<16x32xf32>
    %861 = arith.mulf %841, %860 : vector<16x32xf32>
    %862 = arith.truncf %859 : vector<16x16xf32> to vector<16x16xbf16>
    %863 = arith.truncf %861 : vector<16x32xf32> to vector<16x32xbf16>
    %cst_208 = arith.constant dense<0.000000e+00> : vector<16x32xf32>
    %864 = tpu.matmul %862, %863, %cst_208 {dimension_numbers = #tpu.dot_dimension_numbers<[1], [0], [0], [1], [0, 0, 1, 1], [], []>} : vector<16x16xbf16>, vector<16x32xbf16>, vector<16x32xf32> -> vector<16x32xf32>
    %865 = arith.truncf %827 : vector<16x32xf32> to vector<16x32xbf16>
    %866 = vector.broadcast %547 : vector<1x32xf32> to vector<16x32xf32>
    %867 = arith.mulf %834, %866 : vector<16x32xf32>
    %868 = arith.truncf %867 : vector<16x32xf32> to vector<16x32xbf16>
    %cst_209 = arith.constant dense<0.000000e+00> : vector<16x16xf32>
    %869 = tpu.matmul %865, %868, %cst_209 {dimension_numbers = #tpu.dot_dimension_numbers<[1], [1], [0], [0], [0, 0, 1, 0], [], []>} : vector<16x32xbf16>, vector<16x32xbf16>, vector<16x16xf32> -> vector<16x16xf32>
    %870 = arith.addf %869, %562 : vector<16x16xf32>
    %cst_210 = arith.constant dense<0xFF800000> : vector<16xf32>
    %871 = vector.multi_reduction <maximumf>, %870, %cst_210 [1] : vector<16x16xf32> to vector<16xf32>
    %872 = vector.shape_cast %871 : vector<16xf32> to vector<16x1xf32>
    %873 = vector.broadcast %872 : vector<16x1xf32> to vector<16x16xf32>
    %874 = arith.subf %870, %873 : vector<16x16xf32>
    %875 = math.exp %874 : vector<16x16xf32>
    %cst_211 = arith.constant dense<0.000000e+00> : vector<16xf32>
    %876 = vector.multi_reduction <add>, %875, %cst_211 [1] : vector<16x16xf32> to vector<16xf32>
    %877 = vector.shape_cast %876 : vector<16xf32> to vector<16x1xf32>
    %878 = tpu.reciprocal %877 {approx = true} : vector<16x1xf32> -> vector<16x1xf32>
    %879 = vector.broadcast %878 : vector<16x1xf32> to vector<16x16xf32>
    %880 = arith.mulf %875, %879 : vector<16x16xf32>
    %881 = vector.broadcast %547 : vector<1x32xf32> to vector<16x32xf32>
    %882 = arith.mulf %841, %881 : vector<16x32xf32>
    %883 = arith.truncf %880 : vector<16x16xf32> to vector<16x16xbf16>
    %884 = arith.truncf %882 : vector<16x32xf32> to vector<16x32xbf16>
    %cst_212 = arith.constant dense<0.000000e+00> : vector<16x32xf32>
    %885 = tpu.matmul %883, %884, %cst_212 {dimension_numbers = #tpu.dot_dimension_numbers<[1], [0], [0], [1], [0, 0, 1, 1], [], []>} : vector<16x16xbf16>, vector<16x32xbf16>, vector<16x32xf32> -> vector<16x32xf32>
    %886 = arith.addf %864, %885 : vector<16x32xf32>
    %887 = arith.truncf %827 : vector<16x32xf32> to vector<16x32xbf16>
    %888 = vector.broadcast %554 : vector<1x32xf32> to vector<16x32xf32>
    %889 = arith.mulf %834, %888 : vector<16x32xf32>
    %890 = arith.truncf %889 : vector<16x32xf32> to vector<16x32xbf16>
    %cst_213 = arith.constant dense<0.000000e+00> : vector<16x16xf32>
    %891 = tpu.matmul %887, %890, %cst_213 {dimension_numbers = #tpu.dot_dimension_numbers<[1], [1], [0], [0], [0, 0, 1, 0], [], []>} : vector<16x32xbf16>, vector<16x32xbf16>, vector<16x16xf32> -> vector<16x16xf32>
    %892 = arith.addf %891, %562 : vector<16x16xf32>
    %cst_214 = arith.constant dense<0xFF800000> : vector<16xf32>
    %893 = vector.multi_reduction <maximumf>, %892, %cst_214 [1] : vector<16x16xf32> to vector<16xf32>
    %894 = vector.shape_cast %893 : vector<16xf32> to vector<16x1xf32>
    %895 = vector.broadcast %894 : vector<16x1xf32> to vector<16x16xf32>
    %896 = arith.subf %892, %895 : vector<16x16xf32>
    %897 = math.exp %896 : vector<16x16xf32>
    %cst_215 = arith.constant dense<0.000000e+00> : vector<16xf32>
    %898 = vector.multi_reduction <add>, %897, %cst_215 [1] : vector<16x16xf32> to vector<16xf32>
    %899 = vector.shape_cast %898 : vector<16xf32> to vector<16x1xf32>
    %900 = tpu.reciprocal %899 {approx = true} : vector<16x1xf32> -> vector<16x1xf32>
    %901 = vector.broadcast %900 : vector<16x1xf32> to vector<16x16xf32>
    %902 = arith.mulf %897, %901 : vector<16x16xf32>
    %903 = vector.broadcast %554 : vector<1x32xf32> to vector<16x32xf32>
    %904 = arith.mulf %841, %903 : vector<16x32xf32>
    %905 = arith.truncf %902 : vector<16x16xf32> to vector<16x16xbf16>
    %906 = arith.truncf %904 : vector<16x32xf32> to vector<16x32xbf16>
    %cst_216 = arith.constant dense<0.000000e+00> : vector<16x32xf32>
    %907 = tpu.matmul %905, %906, %cst_216 {dimension_numbers = #tpu.dot_dimension_numbers<[1], [0], [0], [1], [0, 0, 1, 1], [], []>} : vector<16x16xbf16>, vector<16x32xbf16>, vector<16x32xf32> -> vector<16x32xf32>
    %908 = arith.addf %886, %907 : vector<16x32xf32>
    %909 = arith.truncf %827 : vector<16x32xf32> to vector<16x32xbf16>
    %910 = vector.broadcast %561 : vector<1x32xf32> to vector<16x32xf32>
    %911 = arith.mulf %834, %910 : vector<16x32xf32>
    %912 = arith.truncf %911 : vector<16x32xf32> to vector<16x32xbf16>
    %cst_217 = arith.constant dense<0.000000e+00> : vector<16x16xf32>
    %913 = tpu.matmul %909, %912, %cst_217 {dimension_numbers = #tpu.dot_dimension_numbers<[1], [1], [0], [0], [0, 0, 1, 0], [], []>} : vector<16x32xbf16>, vector<16x32xbf16>, vector<16x16xf32> -> vector<16x16xf32>
    %914 = arith.addf %913, %562 : vector<16x16xf32>
    %cst_218 = arith.constant dense<0xFF800000> : vector<16xf32>
    %915 = vector.multi_reduction <maximumf>, %914, %cst_218 [1] : vector<16x16xf32> to vector<16xf32>
    %916 = vector.shape_cast %915 : vector<16xf32> to vector<16x1xf32>
    %917 = vector.broadcast %916 : vector<16x1xf32> to vector<16x16xf32>
    %918 = arith.subf %914, %917 : vector<16x16xf32>
    %919 = math.exp %918 : vector<16x16xf32>
    %cst_219 = arith.constant dense<0.000000e+00> : vector<16xf32>
    %920 = vector.multi_reduction <add>, %919, %cst_219 [1] : vector<16x16xf32> to vector<16xf32>
    %921 = vector.shape_cast %920 : vector<16xf32> to vector<16x1xf32>
    %922 = tpu.reciprocal %921 {approx = true} : vector<16x1xf32> -> vector<16x1xf32>
    %923 = vector.broadcast %922 : vector<16x1xf32> to vector<16x16xf32>
    %924 = arith.mulf %919, %923 : vector<16x16xf32>
    %925 = vector.broadcast %561 : vector<1x32xf32> to vector<16x32xf32>
    %926 = arith.mulf %841, %925 : vector<16x32xf32>
    %927 = arith.truncf %924 : vector<16x16xf32> to vector<16x16xbf16>
    %928 = arith.truncf %926 : vector<16x32xf32> to vector<16x32xbf16>
    %cst_220 = arith.constant dense<0.000000e+00> : vector<16x32xf32>
    %929 = tpu.matmul %927, %928, %cst_220 {dimension_numbers = #tpu.dot_dimension_numbers<[1], [0], [0], [1], [0, 0, 1, 1], [], []>} : vector<16x16xbf16>, vector<16x32xbf16>, vector<16x32xf32> -> vector<16x32xf32>
    %930 = arith.addf %908, %929 : vector<16x32xf32>
    %931 = arith.truncf %930 : vector<16x32xf32> to vector<16x32xbf16>
    %932 = arith.truncf %842 : vector<32x32xf32> to vector<32x32xbf16>
    %cst_221 = arith.constant dense<0.000000e+00> : vector<16x32xf32>
    %933 = tpu.matmul %931, %932, %cst_221 {dimension_numbers = #tpu.dot_dimension_numbers<[1], [0], [0], [1], [0, 0, 1, 1], [], []>} : vector<16x32xbf16>, vector<32x32xbf16>, vector<16x32xf32> -> vector<16x32xf32>
    %934 = vector.broadcast %843 : vector<1x32xf32> to vector<16x32xf32>
    %935 = arith.addf %933, %934 : vector<16x32xf32>
    %936 = arith.addf %819, %935 : vector<16x32xf32>
    %937 = vector.extract_strided_slice %820 {offsets = [4, 0], sizes = [1, 32], strides = [1, 1]} : vector<13x32xf32> to vector<1x32xf32>
    %938 = vector.extract_strided_slice %820 {offsets = [5, 0], sizes = [1, 32], strides = [1, 1]} : vector<13x32xf32> to vector<1x32xf32>
    %cst_222 = arith.constant dense<0.000000e+00> : vector<16xf32>
    %939 = vector.multi_reduction <add>, %936, %cst_222 [1] : vector<16x32xf32> to vector<16xf32>
    %940 = vector.shape_cast %939 : vector<16xf32> to vector<16x1xf32>
    %cst_223 = arith.constant 3.200000e+01 : f32
    %941 = vector.broadcast %cst_223 : f32 to vector<16x1xf32>
    %942 = arith.divf %940, %941 : vector<16x1xf32>
    %943 = vector.broadcast %942 : vector<16x1xf32> to vector<16x32xf32>
    %944 = arith.subf %936, %943 : vector<16x32xf32>
    %945 = arith.mulf %944, %944 : vector<16x32xf32>
    %cst_224 = arith.constant dense<0.000000e+00> : vector<16xf32>
    %946 = vector.multi_reduction <add>, %945, %cst_224 [1] : vector<16x32xf32> to vector<16xf32>
    %947 = vector.shape_cast %946 : vector<16xf32> to vector<16x1xf32>
    %cst_225 = arith.constant 3.200000e+01 : f32
    %948 = vector.broadcast %cst_225 : f32 to vector<16x1xf32>
    %949 = arith.divf %947, %948 : vector<16x1xf32>
    %950 = vector.broadcast %942 : vector<16x1xf32> to vector<16x32xf32>
    %951 = arith.subf %936, %950 : vector<16x32xf32>
    %cst_226 = arith.constant 9.99999974E-6 : f32
    %952 = vector.broadcast %cst_226 : f32 to vector<16x1xf32>
    %953 = arith.addf %949, %952 : vector<16x1xf32>
    %954 = math.rsqrt %953 : vector<16x1xf32>
    %955 = vector.broadcast %954 : vector<16x1xf32> to vector<16x32xf32>
    %956 = arith.mulf %951, %955 : vector<16x32xf32>
    %957 = vector.broadcast %937 : vector<1x32xf32> to vector<16x32xf32>
    %958 = arith.mulf %956, %957 : vector<16x32xf32>
    %959 = vector.broadcast %938 : vector<1x32xf32> to vector<16x32xf32>
    %960 = arith.addf %958, %959 : vector<16x32xf32>
    %c536 = arith.constant 536 : index
    %c0_227 = arith.constant 0 : index
    %961 = vector.load %arg5[%c536, %c0_227] : memref<752x32xf32, #tpu.memory_space<vmem>>, vector<32x32xf32>
    %962 = arith.truncf %532 : vector<2x32xf32> to vector<2x32xbf16>
    %963 = arith.truncf %961 : vector<32x32xf32> to vector<32x32xbf16>
    %cst_228 = arith.constant dense<0.000000e+00> : vector<2x32xf32>
    %964 = tpu.matmul %962, %963, %cst_228 {dimension_numbers = #tpu.dot_dimension_numbers<[1], [0], [0], [1], [0, 0, 1, 1], [], []>} : vector<2x32xbf16>, vector<32x32xbf16>, vector<2x32xf32> -> vector<2x32xf32>
    %965 = vector.extract_strided_slice %820 {offsets = [6, 0], sizes = [1, 32], strides = [1, 1]} : vector<13x32xf32> to vector<1x32xf32>
    %966 = vector.broadcast %965 : vector<1x32xf32> to vector<2x32xf32>
    %967 = arith.addf %964, %966 : vector<2x32xf32>
    %c568 = arith.constant 568 : index
    %c0_229 = arith.constant 0 : index
    %968 = vector.load %arg5[%c568, %c0_229] : memref<752x32xf32, #tpu.memory_space<vmem>>, vector<32x32xf32>
    %969 = arith.truncf %967 : vector<2x32xf32> to vector<2x32xbf16>
    %970 = arith.truncf %968 : vector<32x32xf32> to vector<32x32xbf16>
    %cst_230 = arith.constant dense<0.000000e+00> : vector<2x32xf32>
    %971 = tpu.matmul %969, %970, %cst_230 {dimension_numbers = #tpu.dot_dimension_numbers<[1], [0], [0], [1], [0, 0, 1, 1], [], []>} : vector<2x32xbf16>, vector<32x32xbf16>, vector<2x32xf32> -> vector<2x32xf32>
    %972 = vector.extract_strided_slice %820 {offsets = [7, 0], sizes = [1, 32], strides = [1, 1]} : vector<13x32xf32> to vector<1x32xf32>
    %973 = vector.broadcast %972 : vector<1x32xf32> to vector<2x32xf32>
    %974 = arith.addf %971, %973 : vector<2x32xf32>
    %975 = vector.extract_strided_slice %974 {offsets = [0, 0], sizes = [1, 32], strides = [1, 1]} : vector<2x32xf32> to vector<1x32xf32>
    %976 = vector.broadcast %570 : vector<16x1xf32> to vector<16x32xf32>
    %977 = vector.broadcast %975 : vector<1x32xf32> to vector<16x32xf32>
    %978 = arith.mulf %976, %977 : vector<16x32xf32>
    %979 = vector.extract_strided_slice %974 {offsets = [1, 0], sizes = [1, 32], strides = [1, 1]} : vector<2x32xf32> to vector<1x32xf32>
    %980 = vector.broadcast %577 : vector<16x1xf32> to vector<16x32xf32>
    %981 = vector.broadcast %979 : vector<1x32xf32> to vector<16x32xf32>
    %982 = arith.mulf %980, %981 : vector<16x32xf32>
    %983 = arith.addf %978, %982 : vector<16x32xf32>
    %984 = arith.addf %960, %983 : vector<16x32xf32>
    %985 = vector.extract_strided_slice %820 {offsets = [8, 0], sizes = [1, 32], strides = [1, 1]} : vector<13x32xf32> to vector<1x32xf32>
    %986 = vector.extract_strided_slice %820 {offsets = [9, 0], sizes = [1, 32], strides = [1, 1]} : vector<13x32xf32> to vector<1x32xf32>
    %cst_231 = arith.constant dense<0.000000e+00> : vector<16xf32>
    %987 = vector.multi_reduction <add>, %984, %cst_231 [1] : vector<16x32xf32> to vector<16xf32>
    %988 = vector.shape_cast %987 : vector<16xf32> to vector<16x1xf32>
    %cst_232 = arith.constant 3.200000e+01 : f32
    %989 = vector.broadcast %cst_232 : f32 to vector<16x1xf32>
    %990 = arith.divf %988, %989 : vector<16x1xf32>
    %991 = vector.broadcast %990 : vector<16x1xf32> to vector<16x32xf32>
    %992 = arith.subf %984, %991 : vector<16x32xf32>
    %993 = arith.mulf %992, %992 : vector<16x32xf32>
    %cst_233 = arith.constant dense<0.000000e+00> : vector<16xf32>
    %994 = vector.multi_reduction <add>, %993, %cst_233 [1] : vector<16x32xf32> to vector<16xf32>
    %995 = vector.shape_cast %994 : vector<16xf32> to vector<16x1xf32>
    %cst_234 = arith.constant 3.200000e+01 : f32
    %996 = vector.broadcast %cst_234 : f32 to vector<16x1xf32>
    %997 = arith.divf %995, %996 : vector<16x1xf32>
    %998 = vector.broadcast %990 : vector<16x1xf32> to vector<16x32xf32>
    %999 = arith.subf %984, %998 : vector<16x32xf32>
    %cst_235 = arith.constant 9.99999974E-6 : f32
    %1000 = vector.broadcast %cst_235 : f32 to vector<16x1xf32>
    %1001 = arith.addf %997, %1000 : vector<16x1xf32>
    %1002 = math.rsqrt %1001 : vector<16x1xf32>
    %1003 = vector.broadcast %1002 : vector<16x1xf32> to vector<16x32xf32>
    %1004 = arith.mulf %999, %1003 : vector<16x32xf32>
    %1005 = vector.broadcast %985 : vector<1x32xf32> to vector<16x32xf32>
    %1006 = arith.mulf %1004, %1005 : vector<16x32xf32>
    %1007 = vector.broadcast %986 : vector<1x32xf32> to vector<16x32xf32>
    %1008 = arith.addf %1006, %1007 : vector<16x32xf32>
    %c40 = arith.constant 40 : index
    %c0_236 = arith.constant 0 : index
    %1009 = vector.load %arg7[%c40, %c0_236] : memref<152x128xf32, #tpu.memory_space<vmem>>, vector<32x128xf32>
    %1010 = arith.truncf %1008 : vector<16x32xf32> to vector<16x32xbf16>
    %1011 = arith.truncf %1009 : vector<32x128xf32> to vector<32x128xbf16>
    %cst_237 = arith.constant dense<0.000000e+00> : vector<16x128xf32>
    %1012 = tpu.matmul %1010, %1011, %cst_237 {dimension_numbers = #tpu.dot_dimension_numbers<[1], [0], [0], [1], [0, 0, 1, 1], [], []>} : vector<16x32xbf16>, vector<32x128xbf16>, vector<16x128xf32> -> vector<16x128xf32>
    %c72_238 = arith.constant 72 : index
    %c0_239 = arith.constant 0 : index
    %1013 = vector.load %arg7[%c72_238, %c0_239] : memref<152x128xf32, #tpu.memory_space<vmem>>, vector<1x128xf32>
    %1014 = vector.broadcast %1013 : vector<1x128xf32> to vector<16x128xf32>
    %1015 = arith.addf %1012, %1014 : vector<16x128xf32>
    %cst_240 = arith.constant 5.000000e-01 : f32
    %1016 = vector.broadcast %cst_240 : f32 to vector<16x128xf32>
    %1017 = arith.mulf %1016, %1015 : vector<16x128xf32>
    %cst_241 = arith.constant 4.471500e-02 : f32
    %1018 = vector.broadcast %cst_241 : f32 to vector<16x128xf32>
    %1019 = arith.mulf %1018, %1015 : vector<16x128xf32>
    %1020 = arith.mulf %1019, %1015 : vector<16x128xf32>
    %1021 = arith.mulf %1020, %1015 : vector<16x128xf32>
    %1022 = arith.addf %1015, %1021 : vector<16x128xf32>
    %cst_242 = arith.constant 0.797884583 : f32
    %1023 = vector.broadcast %cst_242 : f32 to vector<16x128xf32>
    %1024 = arith.mulf %1023, %1022 : vector<16x128xf32>
    %1025 = math.tanh %1024 : vector<16x128xf32>
    %cst_243 = arith.constant 1.000000e+00 : f32
    %1026 = vector.broadcast %cst_243 : f32 to vector<16x128xf32>
    %1027 = arith.addf %1026, %1025 : vector<16x128xf32>
    %1028 = arith.mulf %1017, %1027 : vector<16x128xf32>
    %c600_244 = arith.constant 600 : index
    %c0_245 = arith.constant 0 : index
    %1029 = vector.load %arg5[%c600_244, %c0_245] : memref<752x32xf32, #tpu.memory_space<vmem>>, vector<128x32xf32>
    %1030 = arith.truncf %1028 : vector<16x128xf32> to vector<16x128xbf16>
    %1031 = arith.truncf %1029 : vector<128x32xf32> to vector<128x32xbf16>
    %cst_246 = arith.constant dense<0.000000e+00> : vector<16x32xf32>
    %1032 = tpu.matmul %1030, %1031, %cst_246 {dimension_numbers = #tpu.dot_dimension_numbers<[1], [0], [0], [1], [0, 0, 1, 1], [], []>} : vector<16x128xbf16>, vector<128x32xbf16>, vector<16x32xf32> -> vector<16x32xf32>
    %1033 = vector.extract_strided_slice %820 {offsets = [10, 0], sizes = [1, 32], strides = [1, 1]} : vector<13x32xf32> to vector<1x32xf32>
    %1034 = vector.broadcast %1033 : vector<1x32xf32> to vector<16x32xf32>
    %1035 = arith.addf %1032, %1034 : vector<16x32xf32>
    %1036 = arith.addf %1008, %1035 : vector<16x32xf32>
    %1037 = vector.extract_strided_slice %820 {offsets = [11, 0], sizes = [1, 32], strides = [1, 1]} : vector<13x32xf32> to vector<1x32xf32>
    %1038 = vector.extract_strided_slice %820 {offsets = [12, 0], sizes = [1, 32], strides = [1, 1]} : vector<13x32xf32> to vector<1x32xf32>
    %cst_247 = arith.constant dense<0.000000e+00> : vector<16xf32>
    %1039 = vector.multi_reduction <add>, %1036, %cst_247 [1] : vector<16x32xf32> to vector<16xf32>
    %1040 = vector.shape_cast %1039 : vector<16xf32> to vector<16x1xf32>
    %cst_248 = arith.constant 3.200000e+01 : f32
    %1041 = vector.broadcast %cst_248 : f32 to vector<16x1xf32>
    %1042 = arith.divf %1040, %1041 : vector<16x1xf32>
    %1043 = vector.broadcast %1042 : vector<16x1xf32> to vector<16x32xf32>
    %1044 = arith.subf %1036, %1043 : vector<16x32xf32>
    %1045 = arith.mulf %1044, %1044 : vector<16x32xf32>
    %cst_249 = arith.constant dense<0.000000e+00> : vector<16xf32>
    %1046 = vector.multi_reduction <add>, %1045, %cst_249 [1] : vector<16x32xf32> to vector<16xf32>
    %1047 = vector.shape_cast %1046 : vector<16xf32> to vector<16x1xf32>
    %cst_250 = arith.constant 3.200000e+01 : f32
    %1048 = vector.broadcast %cst_250 : f32 to vector<16x1xf32>
    %1049 = arith.divf %1047, %1048 : vector<16x1xf32>
    %1050 = vector.broadcast %1042 : vector<16x1xf32> to vector<16x32xf32>
    %1051 = arith.subf %1036, %1050 : vector<16x32xf32>
    %cst_251 = arith.constant 9.99999974E-6 : f32
    %1052 = vector.broadcast %cst_251 : f32 to vector<16x1xf32>
    %1053 = arith.addf %1049, %1052 : vector<16x1xf32>
    %1054 = math.rsqrt %1053 : vector<16x1xf32>
    %1055 = vector.broadcast %1054 : vector<16x1xf32> to vector<16x32xf32>
    %1056 = arith.mulf %1051, %1055 : vector<16x32xf32>
    %1057 = vector.broadcast %1037 : vector<1x32xf32> to vector<16x32xf32>
    %1058 = arith.mulf %1056, %1057 : vector<16x32xf32>
    %1059 = vector.broadcast %1038 : vector<1x32xf32> to vector<16x32xf32>
    %1060 = arith.addf %1058, %1059 : vector<16x32xf32>
    %c744_252 = arith.constant 744 : index
    %c0_253 = arith.constant 0 : index
    %1061 = vector.load %arg5[%c744_252, %c0_253] : memref<752x32xf32, #tpu.memory_space<vmem>>, vector<2x32xf32>
    %1062 = vector.extract_strided_slice %1061 {offsets = [0, 0], sizes = [1, 32], strides = [1, 1]} : vector<2x32xf32> to vector<1x32xf32>
    %1063 = vector.extract_strided_slice %1061 {offsets = [1, 0], sizes = [1, 32], strides = [1, 1]} : vector<2x32xf32> to vector<1x32xf32>
    %cst_254 = arith.constant dense<0.000000e+00> : vector<16xf32>
    %1064 = vector.multi_reduction <add>, %1060, %cst_254 [1] : vector<16x32xf32> to vector<16xf32>
    %1065 = vector.shape_cast %1064 : vector<16xf32> to vector<16x1xf32>
    %cst_255 = arith.constant 3.200000e+01 : f32
    %1066 = vector.broadcast %cst_255 : f32 to vector<16x1xf32>
    %1067 = arith.divf %1065, %1066 : vector<16x1xf32>
    %1068 = vector.broadcast %1067 : vector<16x1xf32> to vector<16x32xf32>
    %1069 = arith.subf %1060, %1068 : vector<16x32xf32>
    %1070 = arith.mulf %1069, %1069 : vector<16x32xf32>
    %cst_256 = arith.constant dense<0.000000e+00> : vector<16xf32>
    %1071 = vector.multi_reduction <add>, %1070, %cst_256 [1] : vector<16x32xf32> to vector<16xf32>
    %1072 = vector.shape_cast %1071 : vector<16xf32> to vector<16x1xf32>
    %cst_257 = arith.constant 3.200000e+01 : f32
    %1073 = vector.broadcast %cst_257 : f32 to vector<16x1xf32>
    %1074 = arith.divf %1072, %1073 : vector<16x1xf32>
    %1075 = vector.broadcast %1067 : vector<16x1xf32> to vector<16x32xf32>
    %1076 = arith.subf %1060, %1075 : vector<16x32xf32>
    %cst_258 = arith.constant 9.99999974E-6 : f32
    %1077 = vector.broadcast %cst_258 : f32 to vector<16x1xf32>
    %1078 = arith.addf %1074, %1077 : vector<16x1xf32>
    %1079 = math.rsqrt %1078 : vector<16x1xf32>
    %1080 = vector.broadcast %1079 : vector<16x1xf32> to vector<16x32xf32>
    %1081 = arith.mulf %1076, %1080 : vector<16x32xf32>
    %1082 = vector.broadcast %1062 : vector<1x32xf32> to vector<16x32xf32>
    %1083 = arith.mulf %1081, %1082 : vector<16x32xf32>
    %1084 = vector.broadcast %1063 : vector<1x32xf32> to vector<16x32xf32>
    %1085 = arith.addf %1083, %1084 : vector<16x32xf32>
    %c1224 = arith.constant 1224 : index
    %c0_259 = arith.constant 0 : index
    %1086 = vector.load %arg6[%c1224, %c0_259] : memref<1264x64xf32, #tpu.memory_space<vmem>>, vector<32x64xf32>
    %1087 = arith.truncf %1085 : vector<16x32xf32> to vector<16x32xbf16>
    %1088 = arith.truncf %1086 : vector<32x64xf32> to vector<32x64xbf16>
    %cst_260 = arith.constant dense<0.000000e+00> : vector<16x64xf32>
    %1089 = tpu.matmul %1087, %1088, %cst_260 {dimension_numbers = #tpu.dot_dimension_numbers<[1], [0], [0], [1], [0, 0, 1, 1], [], []>} : vector<16x32xbf16>, vector<32x64xbf16>, vector<16x64xf32> -> vector<16x64xf32>
    %c1256 = arith.constant 1256 : index
    %c0_261 = arith.constant 0 : index
    %1090 = vector.load %arg6[%c1256, %c0_261] : memref<1264x64xf32, #tpu.memory_space<vmem>>, vector<1x64xf32>
    %1091 = vector.broadcast %1090 : vector<1x64xf32> to vector<16x64xf32>
    %1092 = arith.addf %1089, %1091 : vector<16x64xf32>
    %cst_262 = arith.constant 5.000000e-01 : f32
    %1093 = vector.broadcast %cst_262 : f32 to vector<16x64xf32>
    %1094 = arith.mulf %1093, %1092 : vector<16x64xf32>
    %cst_263 = arith.constant 4.471500e-02 : f32
    %1095 = vector.broadcast %cst_263 : f32 to vector<16x64xf32>
    %1096 = arith.mulf %1095, %1092 : vector<16x64xf32>
    %1097 = arith.mulf %1096, %1092 : vector<16x64xf32>
    %1098 = arith.mulf %1097, %1092 : vector<16x64xf32>
    %1099 = arith.addf %1092, %1098 : vector<16x64xf32>
    %cst_264 = arith.constant 0.797884583 : f32
    %1100 = vector.broadcast %cst_264 : f32 to vector<16x64xf32>
    %1101 = arith.mulf %1100, %1099 : vector<16x64xf32>
    %1102 = math.tanh %1101 : vector<16x64xf32>
    %cst_265 = arith.constant 1.000000e+00 : f32
    %1103 = vector.broadcast %cst_265 : f32 to vector<16x64xf32>
    %1104 = arith.addf %1103, %1102 : vector<16x64xf32>
    %1105 = arith.mulf %1094, %1104 : vector<16x64xf32>
    %c80 = arith.constant 80 : index
    %c0_266 = arith.constant 0 : index
    %1106 = vector.load %arg7[%c80, %c0_266] : memref<152x128xf32, #tpu.memory_space<vmem>>, vector<64x128xf32>
    %1107 = arith.truncf %1105 : vector<16x64xf32> to vector<16x64xbf16>
    %1108 = arith.truncf %1106 : vector<64x128xf32> to vector<64x128xbf16>
    %cst_267 = arith.constant dense<0.000000e+00> : vector<16x128xf32>
    %1109 = tpu.matmul %1107, %1108, %cst_267 {dimension_numbers = #tpu.dot_dimension_numbers<[1], [0], [0], [1], [0, 0, 1, 1], [], []>} : vector<16x64xbf16>, vector<64x128xbf16>, vector<16x128xf32> -> vector<16x128xf32>
    %c144 = arith.constant 144 : index
    %c0_268 = arith.constant 0 : index
    %1110 = vector.load %arg7[%c144, %c0_268] : memref<152x128xf32, #tpu.memory_space<vmem>>, vector<1x128xf32>
    %1111 = vector.broadcast %1110 : vector<1x128xf32> to vector<16x128xf32>
    %1112 = arith.addf %1109, %1111 : vector<16x128xf32>
    %c0_269 = arith.constant 0 : index
    %c0_270 = arith.constant 0 : index
    %1113 = vector.load %arg9[%c0_269, %c0_270] : memref<16x128xf32, #tpu.memory_space<vmem>>, vector<16x128xf32>
    tpu.vector_store %arg9[%c0_269, %c0_270], %1112 {strides = array<i32>} : memref<16x128xf32, #tpu.memory_space<vmem>>, vector<16x128xf32>,
    return
  }
  func.func @transform_0(%arg0: i32) -> (i32, i32) {
    %c0_i32 = arith.constant 0 : i32
    %c0_i32_0 = arith.constant 0 : i32
    %c0_i32_1 = arith.constant 0 : i32
    return %c0_i32, %c0_i32_0 : i32, i32
  }
  func.func @transform_1(%arg0: i32) -> (i32, i32) {
    %c0_i32 = arith.constant 0 : i32
    %c0_i32_0 = arith.constant 0 : i32
    %c0_i32_1 = arith.constant 0 : i32
    return %c0_i32, %c0_i32_0 : i32, i32
  }
  func.func @transform_2(%arg0: i32) -> (i32, i32) {
    %c0_i32 = arith.constant 0 : i32
    %c0_i32_0 = arith.constant 0 : i32
    %c0_i32_1 = arith.constant 0 : i32
    return %c0_i32, %c0_i32_0 : i32, i32
  }
  func.func @transform_3(%arg0: i32) -> (i32, i32) {
    %c0_i32 = arith.constant 0 : i32
    %c0_i32_0 = arith.constant 0 : i32
    %c0_i32_1 = arith.constant 0 : i32
    return %c0_i32, %c0_i32_0 : i32, i32
  }
  func.func @transform_4(%arg0: i32) -> (i32, i32) {
    %c0_i32 = arith.constant 0 : i32
    %c0_i32_0 = arith.constant 0 : i32
    %c0_i32_1 = arith.constant 0 : i32
    return %c0_i32, %c0_i32_0 : i32, i32
  }
  func.func @transform_5(%arg0: i32) -> (i32, i32) {
    %c0_i32 = arith.constant 0 : i32
    %c0_i32_0 = arith.constant 0 : i32
    %c0_i32_1 = arith.constant 0 : i32
    return %c0_i32, %c0_i32_0 : i32, i32
  }
  func.func @transform_6(%arg0: i32) -> (i32, i32) {
    %c0_i32 = arith.constant 0 : i32
    %c0_i32_0 = arith.constant 0 : i32
    %c0_i32_1 = arith.constant 0 : i32
    return %c0_i32, %c0_i32_0 : i32, i32
  }
  func.func @transform_7(%arg0: i32) -> (i32, i32) {
    %c0_i32 = arith.constant 0 : i32
    %c0_i32_0 = arith.constant 0 : i32
    %c0_i32_1 = arith.constant 0 : i32
    return %c0_i32, %c0_i32_0 : i32, i32
  }
  func.func @transform_8(%arg0: i32) -> (i32, i32) {
    %c0_i32 = arith.constant 0 : i32
    %c0_i32_0 = arith.constant 0 : i32
    %c0_i32_1 = arith.constant 0 : i32
    return %c0_i32, %c0_i32_0 : i32, i32
  }
}

</mosaic_0001>

<bundles_post_ra>
// kernel: forward.1
= control target key start
LH: loop header
LB: loop body
LE: loop exit
PB: predicated region body
PF: predicated region fallthrough
CT: control target
= control target key end

     0   :  { %v11105_v3 = vmov 0.0   ;;  %vm7845_vm0 = vmmov 0   ;;  %s11096_s0 = inlined_call_operand.vmem [shape: f32[34,48], index: 0, kind: input, shape index: {}]   ;;  %s11097_s1 = inlined_call_operand.vmem [shape: f32[16,32], index: 1, kind: input, shape index: {}]   ;;  %s11098_s2 = inlined_call_operand.vmem [shape: f32[34,34], index: 2, kind: input, shape index: {}]   ;;  %s11099_s3 = inlined_call_operand.vmem [shape: f32[16,16], index: 3, kind: input, shape index: {}]   ;;  %s11100_s4 = inlined_call_operand.vmem [shape: f32[752,32], index: 4, kind: input, shape index: {}]   ;;  %s11101_s5 = inlined_call_operand.vmem [shape: f32[1264,64], index: 5, kind: input, shape index: {}]   ;;  %s11102_s6 = inlined_call_operand.vmem [shape: f32[152,128], index: 6, kind: input, shape index: {}]   ;;  %s11103_s7 = inlined_call_operand.vmem [shape: f32[144,256], index: 7, kind: input, shape index: {}]   ;;  %s11104_s8 = inlined_call_operand.hbm [shape: f32[16,128], index: 8, kind: output, shape index: {}]  }
   0x1   :  { %v67_v0 = vld [vmem:[%s11101_s5 + $0x20] sm:$0xff]  ;;  %v68_v1 = vld [vmem:[%s11101_s5 + $0x28] sm:$0xff]  ;;  %v65_v2 = vld [vmem:[%s11101_s5 + $0x10] sm:$0xff]  ;;  %6676 = vmatprep.subr.bf16.mxu0 %v11105_v3  ;;  %6682 = vmatprep.mubr.msk.bf16.mxu0 %vm7845_vm0, %v11105_v3 }
   0x2   :  { %v74_v4 = vpack.c.bf16 %v68_v1, %v67_v0  ;;  %v66_v5 = vld [vmem:[%s11101_s5 + $0x18] sm:$0xff]  ;;  %6694 = vmatprep.subr.bf16.mxu1 %v11105_v3  ;;  %6702 = vmatprep.mubr.msk.bf16.mxu1 %vm7845_vm0, %v11105_v3  ;;  %v63_v7 = vld [vmem:[%s11101_s5] sm:$0xff]  ;;  %v64_v8 = vld [vmem:[%s11101_s5 + $0x8] sm:$0xff] }
   0x3   :  { %v73_v6 = vpack.c.bf16 %v66_v5, %v65_v2 }
   0x4   :  { %6677 = vmatpush3.bf16.msra.mxu0 %v74_v4 }
   0x5   :  { %6678 = vmatprep.subr.bf16.mxu0 %v11105_v3 }
   0x6   :  { %13 = vsyncpa [#allocation3], 0  ;;  %v72_v9 = vpack.c.bf16 %v64_v8, %v63_v7  ;;  %v58_v10 = vld [vmem:[%s11096_s0] sm:$0xff]  ;;  %v59_v11 = vld [vmem:[%s11096_s0 + $0x8] sm:$0xff]  ;;  %vm80_vm1 = vcmask 392192   ;;  %vm148_vm2 = vcmask 523264  }
   0x7   :  { %v69_v12 = vpack.c.bf16 %v59_v11, %v58_v10  ;;  %v60_v13 = vld [vmem:[%s11096_s0 + $0x10] sm:$0xff]  ;;  %v61_v14 = vld [vmem:[%s11096_s0 + $0x18] sm:$0xff]  ;;  %v62_v16 = vld [vmem:[%s11096_s0 + $0x20] sm:$0x3]  ;;  %vm161_vm3 = vcmask 517120   ;;  %vm771_vm14 = vcmask 1040384  }
   0x8   :  { %6679 = vmatpush3.bf16.msra.mxu0 %v73_v6  ;;  %v70_v15 = vpack.c.bf16 %v61_v14, %v60_v13  ;;  %v71_v17 = vpack.c.bf16 %v62_v16, %v62_v16  ;;  %v75_v18 = vld [vmem:[%s11101_s5 + $0x30] sm:$0xff]  ;;  %v76_v22 = vld [vmem:[%s11101_s5 + $0x38] sm:$0xff]  ;;  %v77_v27 = vld [vmem:[%s11101_s5 + $0x40] sm:$0xff]  ;;  %vm555_vm15 = vcmask 277504  }
   0x9   :  { %6680 = vmatprep.subr.bf16.mxu0 %v11105_v3  ;;  %v78_v32 = vld [vmem:[%s11101_s5 + $0x48] sm:$0xff]  ;;  %v79_v37 = vld [vmem:[%s11101_s5 + $0x50] sm:$0x3]  ;;  %v238_v13 = vld [vmem:[%s11101_s5 + $0x78] sm:$0xff] }
   0xa   :  { %v240_v7 = vld [vmem:[%s11101_s5 + $0x88] sm:$0xff]  ;;  %v241_v8 = vld [vmem:[%s11101_s5 + $0x90] sm:$0xff]  ;;  %v239_v14 = vld [vmem:[%s11101_s5 + $0x80] sm:$0xff] }
   0xb   :  { %v248_v10 = vpack.c.bf16 %v241_v8, %v240_v7  ;;  %v325_v11 = vld [vmem:[%s11101_s5 + $0xd0] sm:$0xff]  ;;  %v247_v16 = vpack.c.bf16 %v239_v14, %v238_v13  ;;  %v394_v13 = vld [vmem:[%s11101_s5 + $0xf8] sm:$0xff]  ;;  %v395_v14 = vld [vmem:[%s11101_s5 + $0x100] sm:$0xff] }
   0xc   :  { %6681 = vmatpush3.bf16.msra.mxu0 %v72_v9  ;;  %v324_v9 = vld [vmem:[%s11101_s5 + $0xc8] sm:$0xff]  ;;  %v397_v7 = vld [vmem:[%s11101_s5 + $0x110] sm:$0xff] }
   0xd   :  { %6714 = vmatprep.subr.bf16.mxu0 %v11105_v3  ;;  %6695 = vmatpush3.bf16.msra.mxu1 %v248_v10 }
   0xe   :  { %6696 = vmatprep.subr.bf16.mxu1 %v11105_v3 }
   0xf   :  { %6683 = vmatmul.mubr.msk.bf16.vlgmr.msra.gmra.mxu0 %vm80_vm1, %v69_v12  ;;  %v329_v12 = vpack.c.bf16 %v325_v11, %v324_v9 }
  0x10   :  { %6686 = vmatprep.mubr.msk.bf16.mxu0 %vm7845_vm0, %v11105_v3 }
  0x11   :  { %6715 = vmatpush3.bf16.msra.mxu0 %v329_v12  ;;  %6697 = vmatpush3.bf16.msra.mxu1 %v247_v16 }
  0x12   :  { %6716 = vmatprep.subr.bf16.mxu0 %v11105_v3  ;;  %6698 = vmatprep.subr.bf16.mxu1 %v11105_v3 }
  0x17   :  { %6687 = vmatmul.mubr.msk.bf16.gmra.mxu0 %vm80_vm1, %v70_v15  ;;  %v322_v15 = vld [vmem:[%s11101_s5 + $0xb8] sm:$0xff] }
  0x18   :  { %6690 = vmatprep.mubr.msk.bf16.mxu0 %vm7845_vm0, %v11105_v3 }
  0x1f   :  { %6691 = vmatmul.mubr.msk.bf16.gmra.mxu0 %vm80_vm1, %v71_v17  ;;  %v323_v17 = vld [vmem:[%s11101_s5 + $0xc0] sm:$0xff]  ;;  %vm568_vm1 = vcmask 271360  }
  0x20   :  { %6722 = vmatprep.mubr.msk.bf16.mxu0 %vm7845_vm0, %v11105_v3 }
  0xcf   :  { %v124_v19 = vpop.f32.mrf.mxu0 }
  0xd0   :  { %v7946_v20 = vadd.f32 %v124_v19, %v75_v18  ;;  %v328_v18 = vpack.c.bf16 %v323_v17, %v322_v15  ;;  %v236_v19 = vld [vmem:[%s11101_s5 + $0x68] sm:$0xff]  ;;  %v400_v17 = vpack.c.bf16 %v395_v14, %v394_v13 }
  0xd1   :  { %v6684_v21 = vpop.f32.mrf.mxu0 }
  0xd2   :  { %v149_v23 = vsel %vm148_vm2, %v7946_v20, 0.0  ;;  %6717 = vmatpush3.bf16.msra.mxu0 %v328_v18  ;;  %v237_v21 = vld [vmem:[%s11101_s5 + $0x70] sm:$0xff] }
  0xd3   :  { %150 = vadd.xlane.f32.xlu0 %v149_v23  ;;  %v127_v24 = vpop.f32.mrf.mxu0  ;;  %6718 = vmatprep.subr.bf16.mxu0 %v11105_v3  ;;  %v246_v23 = vpack.c.bf16 %v237_v21, %v236_v19  ;;  %v392_v19 = vld [vmem:[%s11101_s5 + $0xe8] sm:$0xff] }
  0xd4   :  { %v7953_v25 = vadd.f32 %v127_v24, %v76_v22  ;;  %v320_v22 = vld [vmem:[%s11101_s5 + $0xa8] sm:$0xff]  ;;  %v321_v24 = vld [vmem:[%s11101_s5 + $0xb0] sm:$0xff] }
  0xd5   :  { %v6685_v26 = vpop.f32.mrf.mxu0  ;;  %6699 = vmatpush3.bf16.msra.mxu1 %v246_v23 }
  0xd6   :  { %v152_v28 = vsel %vm148_vm2, %v7953_v25, 0.0  ;;  %v234_v26 = vld [vmem:[%s11101_s5 + $0x58] sm:$0xff]  ;;  %6700 = vmatprep.subr.bf16.mxu1 %v11105_v3 }
  0xd7   :  { %153 = vadd.xlane.f32.xlu0 %v152_v28  ;;  %v132_v29 = vpop.f32.mrf.mxu0  ;;  %v327_v28 = vpack.c.bf16 %v321_v24, %v320_v22 }
  0xd8   :  { %v7960_v30 = vadd.f32 %v132_v29, %v77_v27  ;;  %v235_v27 = vld [vmem:[%s11101_s5 + $0x60] sm:$0xff]  ;;  %v318_v29 = vld [vmem:[%s11101_s5 + $0x98] sm:$0xff] }
  0xd9   :  { %v6688_v31 = vpop.f32.mrf.mxu0  ;;  %6719 = vmatpush3.bf16.msra.mxu0 %v327_v28  ;;  %v390_v28 = vld [vmem:[%s11101_s5 + $0xd8] sm:$0xff] }
  0xda   :  { %v155_v33 = vsel %vm148_vm2, %v7960_v30, 0.0  ;;  %v319_v31 = vld [vmem:[%s11101_s5 + $0xa0] sm:$0xff]  ;;  %6720 = vmatprep.subr.bf16.mxu0 %v11105_v3 }
  0xdb   :  { %156 = vadd.xlane.f32.xlu1 %v155_v33  ;;  %v135_v34 = vpop.f32.mrf.mxu0  ;;  %v326_v33 = vpack.c.bf16 %v319_v31, %v318_v29  ;;  %v391_v29 = vld [vmem:[%s11101_s5 + $0xe0] sm:$0xff] }
  0xdc   :  { %v7967_v35 = vadd.f32 %v135_v34, %v78_v32  ;;  %v245_v32 = vpack.c.bf16 %v235_v27, %v234_v26  ;;  %v398_v31 = vpack.c.bf16 %v391_v29, %v390_v28 }
  0xdd   :  { %v6689_v36 = vpop.f32.mrf.mxu0  ;;  %6721 = vmatpush3.bf16.msra.mxu0 %v326_v33 }
  0xde   :  { %v158_v38 = vsel %vm148_vm2, %v7967_v35, 0.0  ;;  %6701 = vmatpush3.bf16.msra.mxu1 %v245_v32  ;;  %6754 = vmatprep.subr.bf16.mxu0 %v11105_v3 }
  0xdf   :  { %159 = vadd.xlane.f32.xlu1 %v158_v38  ;;  %v140_v39 = vpop.f32.mrf.mxu0  ;;  %6734 = vmatprep.subr.bf16.mxu1 %v11105_v3 }
  0xe0   :  { %v7974_v40 = vadd.f32 %v140_v39, %v79_v37 }
  0xe1   :  { %v6692_v41 = vpop.f32.mrf.mxu0 }
  0xe2   :  { %v162_v42 = vsel %vm161_vm3, %v7974_v40, 0.0 }
  0xe3   :  { %163 = vadd.xlane.f32.xlu0 %v162_v42  ;;  %v143_v43 = vpop.f32.mrf.mxu0  ;;  %v31_v42 = vlaneseq }
  0xe5   :  { %v6693_v44 = vpop.f32.mrf.mxu0  ;;  %v8143_v33 = vand.u32 127, %v31_v42 }
  0xe7   :  { %11129 = vst [vmem:[#allocation8_spill] sm:$0xff] %v8143_v33  ;;  %vm43_vm4 = vcmp.ge.s32.totalorder %v8143_v33, 32  ;;  %vm44_vm5 = vcmp.lt.s32.totalorder %v8143_v33, 48  ;;  %vm48_vm6 = vcmp.ge.s32.totalorder %v8143_v33, 48  ;;  %vm49_vm7 = vcmp.lt.s32.totalorder %v8143_v33, 64 }
  0xe8   :  { %vm45_vm8 = vmand %vm43_vm4, %vm44_vm5  ;;  %vm38_vm10 = vcmp.ge.s32.totalorder %v8143_v33, 16  ;;  %vm39_vm11 = vcmp.lt.s32.totalorder %v8143_v33, 32  ;;  %vm34_vm12 = vcmp.lt.s32.totalorder %v8143_v33, 16  ;;  %vm3563_vm4 = vcmask 1041408  }
  0xe9   :  { %vm50_vm9 = vmand %vm48_vm6, %vm49_vm7  ;;  %vm3870_vm6 = vcmask 261120  }
  0xea   :  { %vm40_vm13 = vmand %vm38_vm10, %vm39_vm11 }
 0x15c   :  { %v151_v45 = vpop.xlane.xlu0 %150 }
 0x15d   :  { %v166_v46 = vmul.f32 0.015625, %v151_v45 }
 0x15f   :  { %v7979_v47 = vsub.f32 %v7946_v20, %v166_v46  ;;  %v8065_v46 = vshrl.u32 %v31_v42, 7 }
 0x160   :  { %v154_v48 = vpop.xlane.xlu0 %153 }
 0x161   :  { %v167_v49 = vmul.f32 0.015625, %v154_v48  ;;  %v176_v50 = vmul.f32 %v7979_v47, %v7979_v47  ;;  %11126 = vst [vmem:[#allocation5_spill] sm:$0xff] %v8065_v46 }
 0x163   :  { %v7984_v51 = vsub.f32 %v7953_v25, %v167_v49  ;;  %v181_v52 = vsel %vm148_vm2, %v176_v50, 0.0 }
 0x164   :  { %v157_v53 = vpop.xlane.xlu1 %156  ;;  %182 = vadd.xlane.f32.xlu1 %v181_v52  ;;  %v8068_v52 = vsub.s32 0, %v8065_v46 }
 0x165   :  { %v168_v54 = vmul.f32 0.015625, %v157_v53  ;;  %v177_v55 = vmul.f32 %v7984_v51, %v7984_v51 }
 0x166   :  { %11127 = vst [vmem:[#allocation6_spill] sm:$0xff] %v8068_v52 }
 0x167   :  { %v7990_v56 = vsub.f32 %v7960_v30, %v168_v54  ;;  %v184_v57 = vsel %vm148_vm2, %v177_v55, 0.0  ;;  %v8073_v54 = vld [vmem:[%s11101_s5 + $0x258] sm:$0xff] }
 0x168   :  { %v160_v58 = vpop.xlane.xlu1 %159  ;;  %185 = vadd.xlane.f32.xlu0 %v184_v57 }
 0x169   :  { %v169_v59 = vmul.f32 0.015625, %v160_v58  ;;  %v178_v60 = vmul.f32 %v7990_v56, %v7990_v56 }
 0x16b   :  { %v7996_v61 = vsub.f32 %v7967_v35, %v169_v59  ;;  %v187_v62 = vsel %vm148_vm2, %v178_v60, 0.0  ;;  %v219_v60 = vrot.slane %v8073_v54, %v8068_v52 }
 0x16c   :  { %188 = vadd.xlane.f32.xlu1 %v187_v62  ;;  %v164_v63 = vpop.xlane.xlu0 %163  ;;  %v8079_v62 = vsub.s32 1, %v8065_v46 }
 0x16d   :  { %v170_v0 = vmul.f32 0.015625, %v164_v63  ;;  %v179_v1 = vmul.f32 %v7996_v61, %v7996_v61 }
 0x16e   :  { %11128 = vst [vmem:[#allocation7_spill] sm:$0xff] %v8079_v62 }
 0x16f   :  { %v8002_v2 = vsub.f32 %v7974_v40, %v170_v0  ;;  %v190_v4 = vsel %vm148_vm2, %v179_v1, 0.0 }
 0x170   :  { %191 = vadd.xlane.f32.xlu0 %v190_v4  ;;  %v228_v4 = vrot.slane %v8073_v54, %v8079_v62 }
 0x171   :  { %v180_v5 = vmul.f32 %v8002_v2, %v8002_v2 }
 0x173   :  { %v193_v6 = vsel %vm161_vm3, %v180_v5, 0.0 }
 0x174   :  { %194 = vadd.xlane.f32.xlu1 %v193_v6 }
 0x1ed   :  { %v183_v34 = vpop.xlane.xlu1 %182 }
 0x1ee   :  { %v196_v36 = vmul.f32 0.015625, %v183_v34  ;;  %v8146_v34 = vsub.s32 3, %v8065_v46 }
 0x1f0   :  { %v201_v37 = vadd.f32 1e-06, %v196_v36  ;;  %11130 = vst [vmem:[#allocation9_spill] sm:$0xff] %v8146_v34 }
 0x1f1   :  { %v186_v38 = vpop.xlane.xlu0 %185 }
 0x1f2   :  { %7453 = vrsqrt.f32 %v201_v37  ;;  %v197_v39 = vmul.f32 0.015625, %v186_v38  ;;  %v333_v37 = vrot.slane %v8073_v54, %v8146_v34 }
 0x1f4   :  { %v202_v41 = vadd.f32 1e-06, %v197_v39 }
 0x1f5   :  { %v189_v43 = vpop.xlane.xlu1 %188 }
 0x1f6   :  { %7455 = vrsqrt.f32 %v202_v41  ;;  %v198_v44 = vmul.f32 0.015625, %v189_v43 }
 0x1f8   :  { %v203_v45 = vadd.f32 1e-06, %v198_v44 }
 0x1f9   :  { %v192_v48 = vpop.xlane.xlu0 %191 }
 0x1fa   :  { %7457 = vrsqrt.f32 %v203_v45  ;;  %v199_v49 = vmul.f32 0.015625, %v192_v48  ;;  %v8163_v48 = vsel %vm45_vm8, 1.0, %v11105_v3 }
 0x1fc   :  { %v204_v50 = vadd.f32 1e-06, %v199_v49  ;;  %v8166_v49 = vsel %vm50_vm9, 1.0, %v11105_v3 }
 0x1fd   :  { %v195_v53 = vpop.xlane.xlu1 %194 }
 0x1fe   :  { %7459 = vrsqrt.f32 %v204_v50  ;;  %v200_v55 = vmul.f32 0.015625, %v195_v53 }
 0x1ff   :  { %v7454_v57 = vpop.eup %7453 }
 0x200   :  { %v205_v58 = vadd.f32 1e-06, %v200_v55  ;;  %v211_v59 = vmul.f32 %v7454_v57, %v7979_v47  ;;  %v396_v47 = vld [vmem:[%s11101_s5 + $0x108] sm:$0xff] }
 0x202   :  { %7461 = vrsqrt.f32 %v205_v58  ;;  %v220_v1 = vmul.f32 %v219_v60, %v211_v59 }
 0x203   :  { %v7456_v63 = vpop.eup %7455 }
 0x204   :  { %v212_v0 = vmul.f32 %v7456_v63, %v7984_v51  ;;  %v229_v8 = vadd.f32 %v228_v4, %v220_v1  ;;  %v401_v51 = vpack.c.bf16 %v397_v7, %v396_v47 }
 0x206   :  { %v221_v5 = vmul.f32 %v219_v60, %v212_v0 }
 0x207   :  { %v7458_v6 = vpop.eup %7457 }
 0x208   :  { %v230_v9 = vadd.f32 %v228_v4, %v221_v5  ;;  %v213_v10 = vmul.f32 %v7458_v6, %v7990_v56 }
 0x20a   :  { %v242_v11 = vpack.c.bf16 %v230_v9, %v229_v8  ;;  %v222_v16 = vmul.f32 %v219_v60, %v213_v10 }
 0x20b   :  { %v7460_v12 = vpop.eup %7459 }
 0x20c   :  { %6703 = vmatmul.mubr.msk.bf16.vlgmr.msra.gmra.mxu1 %vm148_vm2, %v242_v11  ;;  %6723 = vmatmul.mubr.msk.bf16.vlgmr.msra.gmra.mxu0 %vm148_vm2, %v242_v11  ;;  %v214_v15 = vmul.f32 %v7460_v12, %v7996_v61  ;;  %v393_v61 = vld [vmem:[%s11101_s5 + $0xf0] sm:$0xff]  ;;  %v231_v21 = vadd.f32 %v228_v4, %v222_v16 }
 0x20d   :  { %6706 = vmatprep.mubr.msk.bf16.mxu1 %vm7845_vm0, %v11105_v3  ;;  %6726 = vmatprep.mubr.msk.bf16.mxu0 %vm7845_vm0, %v11105_v3  ;;  %v399_v27 = vpack.c.bf16 %v393_v61, %v392_v19  ;;  %v8221_v19 = vsel %vm40_vm13, 1.0, %v11105_v3 }
 0x20e   :  { %v223_v56 = vmul.f32 %v219_v60, %v214_v15  ;;  %6735 = vmatpush3.bf16.msra.mxu1 %v401_v51  ;;  %11132 = vst [vmem:[#allocation11_spill] sm:$0xff] %v8221_v19 }
 0x20f   :  { %v7462_v18 = vpop.eup %7461  ;;  %6736 = vmatprep.subr.bf16.mxu1 %v11105_v3 }
 0x210   :  { %v232_v22 = vadd.f32 %v228_v4, %v223_v56  ;;  %v215_v23 = vmul.f32 %v7462_v18, %v8002_v2  ;;  %v8218_v18 = vsel %vm34_vm12, 1.0, %v11105_v3 }
 0x211   :  { %11131 = vst [vmem:[#allocation10_spill] sm:$0xff] %v8218_v18 }
 0x212   :  { %v243_v24 = vpack.c.bf16 %v232_v22, %v231_v21  ;;  %6737 = vmatpush3.bf16.msra.mxu1 %v400_v17  ;;  %v224_v26 = vmul.f32 %v219_v60, %v215_v23 }
 0x213   :  { %6738 = vmatprep.subr.bf16.mxu1 %v11105_v3 }
 0x214   :  { %6707 = vmatmul.mubr.msk.bf16.gmra.mxu1 %vm148_vm2, %v243_v24  ;;  %6727 = vmatmul.mubr.msk.bf16.gmra.mxu0 %vm148_vm2, %v243_v24  ;;  %v233_v2 = vadd.f32 %v228_v4, %v224_v26 }
 0x215   :  { %6710 = vmatprep.mubr.msk.bf16.mxu1 %vm7845_vm0, %v11105_v3  ;;  %6730 = vmatprep.mubr.msk.bf16.mxu0 %vm7845_vm0, %v11105_v3 }
 0x216   :  { %6739 = vmatpush3.bf16.msra.mxu1 %v399_v27  ;;  %v244_v32 = vpack.c.bf16 %v233_v2, %v233_v2  ;;  %v8232_v27 = vsub.s32 4, %v8065_v46 }
 0x217   :  { %6740 = vmatprep.subr.bf16.mxu1 %v11105_v3 }
 0x218   :  { %11133 = vst [vmem:[#allocation12_spill] sm:$0xff] %v8232_v27 }
 0x21a   :  { %6741 = vmatpush3.bf16.msra.mxu1 %v398_v31 }
 0x21b   :  { %6772 = vmatprep.subr.bf16.mxu1 %v11105_v3 }
 0x21c   :  { %6711 = vmatmul.mubr.msk.bf16.gmra.mxu1 %vm148_vm2, %v244_v32  ;;  %6731 = vmatmul.mubr.msk.bf16.gmra.mxu0 %vm148_vm2, %v244_v32 }
 0x21d   :  { %6742 = vmatprep.mubr.msk.bf16.mxu1 %vm7845_vm0, %v11105_v3  ;;  %6760 = vmatprep.mubr.msk.bf16.mxu0 %vm7845_vm0, %v11105_v3 }
 0x224   :  { %6743 = vmatmul.mubr.msk.bf16.vlgmr.msra.gmra.mxu1 %vm148_vm2, %v242_v11 }
 0x225   :  { %6746 = vmatprep.mubr.msk.bf16.mxu1 %vm7845_vm0, %v11105_v3 }
 0x22c   :  { %6747 = vmatmul.mubr.msk.bf16.gmra.mxu1 %vm148_vm2, %v243_v24 }
 0x22d   :  { %6750 = vmatprep.mubr.msk.bf16.mxu1 %vm7845_vm0, %v11105_v3 }
 0x234   :  { %6751 = vmatmul.mubr.msk.bf16.gmra.mxu1 %vm148_vm2, %v244_v32 }
 0x235   :  { %6778 = vmatprep.mubr.msk.bf16.mxu1 %vm7845_vm0, %v11105_v3 }
 0x2cc   :  { %v8152_v36 = vpop.f32.mrf.mxu1  ;;  %v368_v38 = vpop.f32.mrf.mxu0 }
 0x2cd   :  { %v8156_v42 = vadd.f32 %v368_v38, %v333_v37 }
 0x2ce   :  { %v6704_v39 = vpop.f32.mrf.mxu1  ;;  %v6724_v41 = vpop.f32.mrf.mxu0 }
 0x2cf   :  { %v8176_v59 = vmul.f32 %v8163_v48, %v8156_v42  ;;  %v8180_v60 = vmul.f32 %v8166_v49, %v8156_v42  ;;  %v405_v41 = vrot.slane %v8073_v54, %v8232_v27 }
 0x2d0   :  { %v8158_v43 = vpop.f32.mrf.mxu1  ;;  %v371_v44 = vpop.f32.mrf.mxu0 }
 0x2d1   :  { %v8160_v45 = vadd.f32 %v371_v44, %v333_v37 }
 0x2d2   :  { %v6705_v50 = vpop.f32.mrf.mxu1  ;;  %v6725_v53 = vpop.f32.mrf.mxu0 }
 0x2d3   :  { %v8170_v55 = vmul.f32 %v8163_v48, %v8160_v45  ;;  %v8184_v63 = vmul.f32 %v8166_v49, %v8160_v45 }
 0x2d4   :  { %v8172_v57 = vpop.f32.mrf.mxu1  ;;  %v376_v58 = vpop.f32.mrf.mxu0 }
 0x2d5   :  { %v377_v6 = vadd.f32 %v376_v58, %v333_v37 }
 0x2d6   :  { %v6708_v0 = vpop.f32.mrf.mxu1  ;;  %v6728_v1 = vpop.f32.mrf.mxu0 }
 0x2d7   :  { %v8205_v13 = vmul.f32 %v8163_v48, %v377_v6  ;;  %v8208_v14 = vmul.f32 %v8166_v49, %v377_v6  ;;  %v475_v50 = vmul.f32 %v8218_v18, %v377_v6  ;;  %v625_v53 = vmul.f32 %v8221_v19, %v377_v6 }
 0x2d8   :  { %v8190_v47 = vpop.f32.mrf.mxu1  ;;  %v379_v7 = vpop.f32.mrf.mxu0 }
 0x2d9   :  { %v380_v8 = vadd.f32 %v379_v7, %v333_v37 }
 0x2da   :  { %v6709_v9 = vpop.f32.mrf.mxu1  ;;  %v6729_v10 = vpop.f32.mrf.mxu0 }
 0x2db   :  { %v8200_v11 = vmul.f32 %v8163_v48, %v380_v8  ;;  %v8211_v15 = vmul.f32 %v8166_v49, %v380_v8  ;;  %v476_v38 = vmul.f32 %v8218_v18, %v380_v8  ;;  %v626_v39 = vmul.f32 %v8221_v19, %v380_v8 }
 0x2dc   :  { %v8202_v51 = vpop.f32.mrf.mxu1  ;;  %v384_v12 = vpop.f32.mrf.mxu0 }
 0x2dd   :  { %v8213_v16 = vadd.f32 %v384_v12, %v333_v37  ;;  %v479_v0 = vpack.c.bf16 %v476_v38, %v475_v50  ;;  %v629_v1 = vpack.c.bf16 %v626_v39, %v625_v53  ;;  %v474_v12 = vmul.f32 %v8218_v18, %v8160_v45 }
 0x2de   :  { %v6712_v56 = vpop.f32.mrf.mxu1  ;;  %v6732_v17 = vpop.f32.mrf.mxu0 }
 0x2df   :  { %v477_v22 = vmul.f32 %v8218_v18, %v8213_v16  ;;  %v627_v23 = vmul.f32 %v8221_v19, %v8213_v16  ;;  %v624_v56 = vmul.f32 %v8221_v19, %v8160_v45 }
 0x2e0   :  { %v315_v24 = vpop.f32.mrf.mxu1  ;;  %v387_v26 = vpop.f32.mrf.mxu0 }
 0x2e1   :  { %v480_v28 = vpack.c.bf16 %v477_v22, %v477_v22  ;;  %v630_v29 = vpack.c.bf16 %v627_v23, %v627_v23  ;;  %v494_v22 = vsel %vm148_vm2, %v479_v0, 0  ;;  %v635_v23 = vsel %vm148_vm2, %v629_v1, 0 }
 0x2e2   :  { %v6713_v2 = vpop.f32.mrf.mxu1  ;;  %v6733_v31 = vpop.f32.mrf.mxu0 }
 0x2e3   :  { %v497_v32 = vsel %vm148_vm2, %v480_v28, 0  ;;  %v638_v37 = vsel %vm148_vm2, %v630_v29, 0  ;;  %v473_v28 = vmul.f32 %v8218_v18, %v8156_v42  ;;  %v623_v29 = vmul.f32 %v8221_v19, %v8156_v42 }
 0x2e4   :  { %v440_v44 = vpop.f32.mrf.mxu1  ;;  %6755 = vmatpush3.bf16.xpose.msra.mxu0 %v497_v32  ;;  %6773 = vmatpush3.bf16.xpose.msra.mxu1 %v638_v37  ;;  %v8277_v2 = vsub.s32 2, %v8065_v46 }
 0x2e5   :  { %6756 = vmatprep.subr.bf16.mxu0 %v11105_v3  ;;  %6774 = vmatprep.subr.bf16.mxu1 %v11105_v3  ;;  %v8244_v7 = vadd.f32 %v440_v44, %v405_v41  ;;  %v478_v38 = vpack.c.bf16 %v474_v12, %v473_v28  ;;  %v628_v39 = vpack.c.bf16 %v624_v56, %v623_v29 }
 0x2e6   :  { %v6744_v58 = vpop.f32.mrf.mxu1  ;;  %11134 = vst [vmem:[#allocation13_spill] sm:$0xff] %v8277_v2 }
 0x2e7   :  { %v8264_v24 = vmul.f32 %v8163_v48, %v8244_v7  ;;  %v8268_v26 = vmul.f32 %v8166_v49, %v8244_v7  ;;  %v252_v58 = vrot.slane %v8073_v54, %v8277_v2 }
 0x2e8   :  { %v443_v8 = vpop.f32.mrf.mxu1 }
 0x2e9   :  { %v8246_v9 = vadd.f32 %v443_v8, %v405_v41  ;;  %v491_v8 = vsel %vm148_vm2, %v478_v38, 0  ;;  %v300_v54 = vadd.f32 %v8158_v43, %v252_v58 }
 0x2ea   :  { %v6745_v10 = vpop.f32.mrf.mxu1 }
 0x2eb   :  { %v8254_v17 = vmul.f32 %v8163_v48, %v8246_v9  ;;  %v8258_v6 = vmul.f32 %v8166_v49, %v8246_v9  ;;  %v632_v10 = vsel %vm148_vm2, %v628_v39, 0 }
 0x2ec   :  { %v448_v45 = vpop.f32.mrf.mxu1  ;;  %6757 = vmatpush3.bf16.xpose.msra.mxu0 %v494_v22  ;;  %6775 = vmatpush3.bf16.xpose.msra.mxu1 %v635_v23 }
 0x2ed   :  { %6758 = vmatprep.subr.bf16.mxu0 %v11105_v3  ;;  %6776 = vmatprep.subr.bf16.mxu1 %v11105_v3  ;;  %v449_v44 = vadd.f32 %v448_v45, %v405_v41 }
 0x2ee   :  { %v6748_v31 = vpop.f32.mrf.mxu1 }
 0x2ef   :  { %v8294_v12 = vmul.f32 %v8163_v48, %v449_v44  ;;  %v8297_v56 = vmul.f32 %v8166_v49, %v449_v44  ;;  %v297_v31 = vadd.f32 %v8152_v36, %v252_v58 }
 0x2f0   :  { %v451_v50 = vpop.f32.mrf.mxu1 }
 0x2f1   :  { %v452_v53 = vadd.f32 %v451_v50, %v405_v41  ;;  %v8313_v39 = vpack.c.bf16 %v300_v54, %v297_v31  ;;  %v614_v54 = vmul.f32 %v8218_v18, %v449_v44  ;;  %v753_v31 = vmul.f32 %v8221_v19, %v449_v44 }
 0x2f2   :  { %v6749_v0 = vpop.f32.mrf.mxu1  ;;  %v612_v44 = vmul.f32 %v8218_v18, %v8244_v7 }
 0x2f3   :  { %v8286_v42 = vmul.f32 %v8163_v48, %v452_v53  ;;  %v8289_v1 = vmul.f32 %v8166_v49, %v452_v53 }
 0x2f4   :  { %v456_v22 = vpop.f32.mrf.mxu1  ;;  %6759 = vmatpush3.bf16.xpose.msra.mxu0 %v491_v8  ;;  %6777 = vmatpush3.bf16.xpose.msra.mxu1 %v632_v10  ;;  %v615_v8 = vmul.f32 %v8218_v18, %v452_v53  ;;  %v754_v10 = vmul.f32 %v8221_v19, %v452_v53  ;;  %v613_v53 = vmul.f32 %v8218_v18, %v8246_v9 }
 0x2f5   :  { %v8300_v23 = vadd.f32 %v456_v22, %v405_v41  ;;  %6790 = vmatprep.subr.bf16.mxu0 %v11105_v3  ;;  %6808 = vmatprep.subr.bf16.mxu1 %v11105_v3 }
 0x2f6   :  { %v6752_v45 = vpop.f32.mrf.mxu1 }
 0x2f7   :  { %v755_v38 = vmul.f32 %v8221_v19, %v8300_v23  ;;  %v616_v43 = vmul.f32 %v8218_v18, %v8300_v23 }
 0x2f8   :  { %v459_v41 = vpop.f32.mrf.mxu1 }
 0x2f9   :  { %v761_v50 = vpack.c.bf16 %v755_v38, %v755_v38  ;;  %v622_v0 = vpack.c.bf16 %v616_v43, %v616_v43  ;;  %v308_v38 = vadd.f32 %v8190_v47, %v252_v58  ;;  %v752_v43 = vmul.f32 %v8221_v19, %v8246_v9 }
 0x2fa   :  { %v6753_v22 = vpop.f32.mrf.mxu1  ;;  %v760_v41 = vpack.c.bf16 %v754_v10, %v753_v31  ;;  %v305_v47 = vadd.f32 %v8172_v57, %v252_v58  ;;  %v313_v57 = vadd.f32 %v8202_v51, %v252_v58  ;;  %v8369_v51 = vld [vmem:[%s11098_s2] sm:$0xff]  ;;  %v8377_v31 = vld [vmem:[%s11098_s2 + $0x8] sm:$0xff] }
 0x2fb   :  { %6761 = vmatmul.mubr.msk.bf16.vlgmr.msra.gmra.mxu0 %vm148_vm2, %v8313_v39  ;;  %6779 = vmatmul.mubr.msk.bf16.vlgmr.msra.gmra.mxu1 %vm148_vm2, %v8313_v39  ;;  %v773_v36 = vsel %vm771_vm14, %v761_v50, 0  ;;  %v841_v45 = vsel %vm771_vm14, %v622_v0, 0  ;;  %v621_v50 = vpack.c.bf16 %v615_v8, %v614_v54  ;;  %v751_v0 = vmul.f32 %v8221_v19, %v8244_v7 }
 0x2fc   :  { %6791 = vmatpush3.bf16.msra.mxu0 %v773_v36  ;;  %6809 = vmatpush3.bf16.msra.mxu1 %v841_v45  ;;  %v8341_v22 = vpack.c.bf16 %v308_v38, %v305_v47  ;;  %v620_v8 = vpack.c.bf16 %v613_v53, %v612_v44  ;;  %v8356_v7 = vpack.c.bf16 %v313_v57, %v313_v57  ;;  %v8386_v44 = vld [vmem:[%s11098_s2 + $0x10] sm:$0xff] }
 0x2fd   :  { %6792 = vmatprep.subr.bf16.mxu0 %v11105_v3  ;;  %6810 = vmatprep.subr.bf16.mxu1 %v11105_v3  ;;  %v759_v9 = vpack.c.bf16 %v752_v43, %v751_v0 }
 0x2fe   :  { %6764 = vmatprep.mubr.msk.bf16.mxu0 %vm7845_vm0, %v11105_v3  ;;  %6782 = vmatprep.mubr.msk.bf16.mxu1 %vm7845_vm0, %v11105_v3 }
 0x300   :  { %6793 = vmatpush3.bf16.msra.mxu0 %v760_v41  ;;  %6811 = vmatpush3.bf16.msra.mxu1 %v621_v50 }
 0x301   :  { %6794 = vmatprep.subr.bf16.mxu0 %v11105_v3  ;;  %6812 = vmatprep.subr.bf16.mxu1 %v11105_v3 }
 0x303   :  { %6765 = vmatmul.mubr.msk.bf16.gmra.mxu0 %vm148_vm2, %v8341_v22  ;;  %6783 = vmatmul.mubr.msk.bf16.gmra.mxu1 %vm148_vm2, %v8341_v22 }
 0x304   :  { %6795 = vmatpush3.bf16.msra.mxu0 %v759_v9  ;;  %6813 = vmatpush3.bf16.msra.mxu1 %v620_v8 }
 0x305   :  { %6768 = vmatprep.mubr.msk.bf16.mxu0 %vm7845_vm0, %v11105_v3  ;;  %6786 = vmatprep.mubr.msk.bf16.mxu1 %vm7845_vm0, %v11105_v3 }
 0x306   :  { %6826 = vmatprep.subr.bf16.mxu0 %v11105_v3  ;;  %6844 = vmatprep.subr.bf16.mxu1 %v11105_v3 }
 0x30b   :  { %6769 = vmatmul.mubr.msk.bf16.gmra.mxu0 %vm148_vm2, %v8356_v7  ;;  %6787 = vmatmul.mubr.msk.bf16.gmra.mxu1 %vm148_vm2, %v8356_v7 }
 0x30c   :  { %6796 = vmatprep.mubr.msk.bf16.mxu0 %vm7845_vm0, %v11105_v3  ;;  %6814 = vmatprep.mubr.msk.bf16.mxu1 %vm7845_vm0, %v11105_v3 }
 0x3bb   :  { %v8371_v58 = vpop.f32.mrf.mxu0  ;;  %v674_v10 = vpop.f32.mrf.mxu1 }
 0x3bc   :  { %v675_v36 = vadd.f32 %v674_v10, %v8369_v51 }
 0x3bd   :  { %v6762_v45 = vpop.f32.mrf.mxu0  ;;  %v6780_v54 = vpop.f32.mrf.mxu1 }
 0x3be   :  { %v696_v38 = vsel %vm555_vm15, %v675_v36, -inf  ;;  %v8395_v54 = vld [vmem:[%s11098_s2 + $0x18] sm:$0xff] }
 0x3bf   :  { %697 = vmax.xlane.f32.xlu0 %v696_v38  ;;  %v8380_v53 = vpop.f32.mrf.mxu0  ;;  %v677_v43 = vpop.f32.mrf.mxu1 }
 0x3c0   :  { %v678_v41 = vadd.f32 %v677_v43, %v8377_v31 }
 0x3c1   :  { %v6763_v50 = vpop.f32.mrf.mxu0  ;;  %v6781_v47 = vpop.f32.mrf.mxu1 }
 0x3c2   :  { %v699_v0 = vsel %vm555_vm15, %v678_v41, -inf }
 0x3c3   :  { %700 = vmax.xlane.f32.xlu1 %v699_v0  ;;  %v8389_v9 = vpop.f32.mrf.mxu0  ;;  %v682_v8 = vpop.f32.mrf.mxu1 }
 0x3c4   :  { %v683_v57 = vadd.f32 %v682_v8, %v8386_v44  ;;  %v8402_v8 = vld [vmem:[%s11098_s2 + $0x20] sm:$0x3] }
 0x3c5   :  { %v6766_v10 = vpop.f32.mrf.mxu0  ;;  %v6784_v45 = vpop.f32.mrf.mxu1 }
 0x3c6   :  { %v702_v38 = vsel %vm555_vm15, %v683_v57, -inf }
 0x3c7   :  { %703 = vmax.xlane.f32.xlu0 %v702_v38  ;;  %v544_v43 = vpop.f32.mrf.mxu0  ;;  %v685_v50 = vpop.f32.mrf.mxu1 }
 0x3c8   :  { %v686_v47 = vadd.f32 %v685_v50, %v8395_v54 }
 0x3c9   :  { %v6767_v0 = vpop.f32.mrf.mxu0  ;;  %v6785_v37 = vpop.f32.mrf.mxu1 }
 0x3ca   :  { %v705_v10 = vsel %vm555_vm15, %v686_v47, -inf }
 0x3cb   :  { %706 = vmax.xlane.f32.xlu1 %v705_v10  ;;  %v549_v45 = vpop.f32.mrf.mxu0  ;;  %v690_v29 = vpop.f32.mrf.mxu1 }
 0x3cc   :  { %v691_v32 = vadd.f32 %v690_v29, %v8402_v8 }
 0x3cd   :  { %v6770_v38 = vpop.f32.mrf.mxu0  ;;  %v6788_v28 = vpop.f32.mrf.mxu1 }
 0x3ce   :  { %v708_v5 = vsel %vm568_vm1, %v691_v32, -inf }
 0x3cf   :  { %709 = vmax.xlane.f32.xlu0 %v708_v5  ;;  %v552_v50 = vpop.f32.mrf.mxu0  ;;  %v693_v37 = vpop.f32.mrf.mxu1 }
 0x3d1   :  { %v6771_v0 = vpop.f32.mrf.mxu0  ;;  %v6789_v21 = vpop.f32.mrf.mxu1 }
 0x3d2   :  { %v8430_v0 = vadd.f32 %v549_v45, %v8402_v8 }
 0x448   :  { %v698_v4 = vpop.xlane.xlu0 %697 }
 0x449   :  { %v711_v61 = vsub.f32 %v675_v36, %v698_v4  ;;  %v8417_v36 = vadd.f32 %v8380_v53, %v8377_v31 }
 0x44b   :  { %v716_v3 = vmul.f32 1.442695, %v711_v61  ;;  %v559_v53 = vsel %vm555_vm15, %v8417_v36, -inf }
 0x44c   :  { %v701_v33 = vpop.xlane.xlu1 %700 }
 0x44d   :  { %7463 = vpow2.f32 %v716_v3  ;;  %v712_v10 = vsub.f32 %v678_v41, %v701_v33  ;;  %v8421_v41 = vadd.f32 %v8389_v9, %v8386_v44 }
 0x44f   :  { %v718_v2 = vmul.f32 1.442695, %v712_v10  ;;  %v562_v9 = vsel %vm555_vm15, %v8421_v41, -inf }
 0x450   :  { %v704_v34 = vpop.xlane.xlu0 %703 }
 0x451   :  { %7465 = vpow2.f32 %v718_v2  ;;  %v713_v19 = vsub.f32 %v683_v57, %v704_v34  ;;  %v8412_v2 = vadd.f32 %v8371_v58, %v8369_v51  ;;  %v8427_v58 = vadd.f32 %v544_v43, %v8395_v54 }
 0x453   :  { %v720_v29 = vmul.f32 1.442695, %v713_v19  ;;  %v565_v10 = vsel %vm555_vm15, %v8427_v58, -inf }
 0x454   :  { %v707_v38 = vpop.xlane.xlu1 %706 }
 0x455   :  { %7467 = vpow2.f32 %v720_v29  ;;  %v714_v28 = vsub.f32 %v686_v47, %v707_v38  ;;  %v556_v47 = vsel %vm555_vm15, %v8412_v2, -inf  ;;  %v569_v29 = vsel %vm568_vm1, %v8430_v0, -inf }
 0x457   :  { %v722_v18 = vmul.f32 1.442695, %v714_v28 }
 0x458   :  { %v710_v5 = vpop.xlane.xlu0 %709 }
 0x459   :  { %7469 = vpow2.f32 %v722_v18  ;;  %v715_v50 = vsub.f32 %v691_v32, %v710_v5  ;;  %v903_v5 = vmul.f32 %v8163_v48, %v8213_v16 }
 0x45a   :  { %v7464_v37 = vpop.eup %7463 }
 0x45b   :  { %v724_v21 = vmul.f32 1.442695, %v715_v50  ;;  %v726_v4 = vsel %vm555_vm15, %v7464_v37, 0.0 }
 0x45c   :  { %727 = vadd.xlane.f32.xlu1 %v726_v4 }
 0x45d   :  { %7471 = vpow2.f32 %v724_v21 }
 0x45e   :  { %v7466_v3 = vpop.eup %7465 }
 0x45f   :  { %v729_v33 = vsel %vm555_vm15, %v7466_v3, 0.0 }
 0x460   :  { %730 = vadd.xlane.f32.xlu0 %v729_v33 }
 0x462   :  { %v7468_v61 = vpop.eup %7467 }
 0x463   :  { %v732_v34 = vsel %vm555_vm15, %v7468_v61, 0.0 }
 0x464   :  { %733 = vadd.xlane.f32.xlu1 %v732_v34 }
 0x466   :  { %v7470_v19 = vpop.eup %7469 }
 0x467   :  { %v735_v18 = vsel %vm555_vm15, %v7470_v19, 0.0 }
 0x468   :  { %736 = vadd.xlane.f32.xlu0 %v735_v18  ;;  %v906_v18 = vpack.c.bf16 %v903_v5, %v903_v5 }
 0x46a   :  { %v7472_v32 = vpop.eup %7471 }
 0x46b   :  { %v738_v57 = vsel %vm568_vm1, %v7472_v32, 0.0 }
 0x46c   :  { %739 = vadd.xlane.f32.xlu1 %v738_v57  ;;  %557 = vmax.xlane.f32.xlu0 %v556_v47  ;;  %v914_v47 = vsel %vm148_vm2, %v906_v18, 0 }
 0x470   :  { %560 = vmax.xlane.f32.xlu1 %v559_v53  ;;  %563 = vmax.xlane.f32.xlu0 %v562_v9  ;;  %v11135_v9 = vmov 0.0  }
 0x474   :  { %566 = vmax.xlane.f32.xlu1 %v565_v10  ;;  %570 = vmax.xlane.f32.xlu0 %v569_v29 }
 0x4e5   :  { %v728_v43 = vpop.xlane.xlu1 %727 }
 0x4e6   :  { %7473 = vrcp.f32 %v728_v43 }
 0x4e9   :  { %v731_v45 = vpop.xlane.xlu0 %730 }
 0x4ea   :  { %7475 = vrcp.f32 %v731_v45 }
 0x4ed   :  { %v734_v38 = vpop.xlane.xlu1 %733 }
 0x4ee   :  { %7477 = vrcp.f32 %v734_v38 }
 0x4f1   :  { %v737_v28 = vpop.xlane.xlu0 %736 }
 0x4f2   :  { %7479 = vrcp.f32 %v737_v28 }
 0x4f3   :  { %v7474_v50 = vpop.eup %7473 }
 0x4f4   :  { %v746_v33 = vmul.f32 %v7474_v50, %v7464_v37  ;;  %v11136_v37 = vpack.c.bf16 %v8200_v11, %v8205_v13  ;;  %v1115_v11 = vmul.f32 %v8166_v49, %v8213_v16  ;;  %v11139_v16 = vpack.c.bf16 %v8184_v63, %v8180_v60 }
 0x4f5   :  { %v740_v21 = vpop.xlane.xlu1 %739 }
 0x4f6   :  { %7481 = vrcp.f32 %v740_v21  ;;  %v1118_v13 = vpack.c.bf16 %v1115_v11, %v1115_v11  ;;  %v1120_v50 = vsel %vm148_vm2, %v11139_v16, 0 }
 0x4f7   :  { %v7476_v4 = vpop.eup %7475 }
 0x4f8   :  { %v747_v34 = vmul.f32 %v7476_v4, %v7466_v3  ;;  %v911_v3 = vsel %vm148_vm2, %v11136_v37, 0 }
 0x4fa   :  { %v756_v57 = vpack.c.bf16 %v747_v34, %v746_v33 }
 0x4fb   :  { %v7478_v53 = vpop.eup %7477 }
 0x4fc   :  { %6797 = vmatmul.mubr.msk.bf16.vlgmr.msra.gmra.mxu0 %vm555_vm15, %v756_v57  ;;  %v748_v29 = vmul.f32 %v7478_v53, %v7468_v61  ;;  %v11137_v61 = vpack.c.bf16 %v8170_v55, %v8176_v59  ;;  %v11138_v55 = vpack.c.bf16 %v8211_v15, %v8208_v14 }
 0x4fd   :  { %6827 = vmatpush3.bf16.xpose.msra.mxu0 %v914_v47  ;;  %6800 = vmatprep.mubr.msk.bf16.mxu0 %vm7845_vm0, %v11135_v9 }
 0x4fe   :  { %6828 = vmatprep.subr.bf16.mxu0 %v11135_v9  ;;  %v1123_v59 = vsel %vm148_vm2, %v11138_v55, 0 }
 0x4ff   :  { %v7480_v10 = vpop.eup %7479 }
 0x500   :  { %v749_v43 = vmul.f32 %v7480_v10, %v7470_v19  ;;  %v908_v19 = vsel %vm148_vm2, %v11137_v61, 0  ;;  %v558_v61 = vpop.xlane.xlu0 %557 }
 0x502   :  { %v757_v45 = vpack.c.bf16 %v749_v43, %v748_v29 }
 0x503   :  { %v7482_v38 = vpop.eup %7481 }
 0x504   :  { %6801 = vmatmul.mubr.msk.bf16.gmra.mxu0 %vm555_vm15, %v757_v45  ;;  %v750_v28 = vmul.f32 %v7482_v38, %v7472_v32  ;;  %v1126_v32 = vsel %vm148_vm2, %v1118_v13, 0 }
 0x505   :  { %6829 = vmatpush3.bf16.xpose.msra.mxu0 %v911_v3  ;;  %6804 = vmatprep.mubr.msk.bf16.mxu0 %vm7845_vm0, %v11135_v9 }
 0x506   :  { %6830 = vmatprep.subr.bf16.mxu0 %v11135_v9  ;;  %v758_v5 = vpack.c.bf16 %v750_v28, %v750_v28 }
 0x50c   :  { %6805 = vmatmul.mubr.msk.bf16.gmra.mxu0 %vm555_vm15, %v758_v5 }
 0x50d   :  { %6831 = vmatpush3.bf16.xpose.msra.mxu0 %v908_v19  ;;  %6832 = vmatprep.mubr.msk.bf16.mxu0 %vm7845_vm0, %v11135_v9 }
 0x50e   :  { %6862 = vmatprep.subr.bf16.mxu0 %v11135_v9 }
 0x514   :  { %6833 = vmatmul.mubr.msk.bf16.vlgmr.msra.gmra.mxu0 %vm148_vm2, %v8313_v39 }
 0x515   :  { %6863 = vmatpush3.bf16.xpose.msra.mxu0 %v1126_v32  ;;  %6836 = vmatprep.mubr.msk.bf16.mxu0 %vm7845_vm0, %v11135_v9 }
 0x516   :  { %6864 = vmatprep.subr.bf16.mxu0 %v11135_v9 }
 0x51c   :  { %6837 = vmatmul.mubr.msk.bf16.gmra.mxu0 %vm148_vm2, %v8341_v22 }
 0x51d   :  { %6865 = vmatpush3.bf16.xpose.msra.mxu0 %v1123_v59  ;;  %6840 = vmatprep.mubr.msk.bf16.mxu0 %vm7845_vm0, %v11135_v9  ;;  %v561_v59 = vpop.xlane.xlu1 %560 }
 0x51e   :  { %6866 = vmatprep.subr.bf16.mxu0 %v11135_v9 }
 0x524   :  { %6841 = vmatmul.mubr.msk.bf16.gmra.mxu0 %vm148_vm2, %v8356_v7 }
 0x525   :  { %6867 = vmatpush3.bf16.xpose.msra.mxu0 %v1120_v50  ;;  %6868 = vmatprep.mubr.msk.bf16.mxu0 %vm7845_vm0, %v11135_v9  ;;  %v564_v50 = vpop.xlane.xlu0 %563 }
 0x526   :  { %6898 = vmatprep.subr.bf16.mxu0 %v11135_v9 }
 0x52c   :  { %6869 = vmatmul.mubr.msk.bf16.vlgmr.msra.gmra.mxu0 %vm148_vm2, %v8313_v39 }
 0x52d   :  { %6872 = vmatprep.mubr.msk.bf16.mxu0 %vm7845_vm0, %v11135_v9 }
 0x534   :  { %6873 = vmatmul.mubr.msk.bf16.gmra.mxu0 %vm148_vm2, %v8341_v22 }
 0x535   :  { %6876 = vmatprep.mubr.msk.bf16.mxu0 %vm7845_vm0, %v11135_v9 }
 0x53c   :  { %6877 = vmatmul.mubr.msk.bf16.gmra.mxu0 %vm148_vm2, %v8356_v7 }
 0x53d   :  { %6906 = vmatprep.mubr.msk.bf16.mxu0 %vm7845_vm0, %v11135_v9 }
 0x5bc   :  { %v8501_v60 = vpop.f32.mrf.mxu0 }
 0x5be   :  { %v6798_v63 = vpop.f32.mrf.mxu0 }
 0x5c0   :  { %v8503_v14 = vpop.f32.mrf.mxu0 }
 0x5c2   :  { %v6799_v15 = vpop.f32.mrf.mxu0 }
 0x5c3   :  { %v572_v15 = vsub.f32 %v8412_v2, %v558_v61 }
 0x5c4   :  { %v8505_v39 = vpop.f32.mrf.mxu0 }
 0x5c6   :  { %v6802_v21 = vpop.f32.mrf.mxu0 }
 0x5c8   :  { %v8507_v4 = vpop.f32.mrf.mxu0 }
 0x5ca   :  { %v6803_v22 = vpop.f32.mrf.mxu0 }
 0x5cc   :  { %v8509_v33 = vpop.f32.mrf.mxu0 }
 0x5ce   :  { %v6806_v34 = vpop.f32.mrf.mxu0 }
 0x5cf   :  { %v573_v34 = vsub.f32 %v8417_v36, %v561_v59 }
 0x5d0   :  { %v828_v18 = vpop.f32.mrf.mxu0 }
 0x5d2   :  { %v6807_v7 = vpop.f32.mrf.mxu0 }
 0x5d3   :  { %v577_v7 = vmul.f32 1.442695, %v572_v15 }
 0x5d4   :  { %v950_v57 = vpop.f32.mrf.mxu0 }
 0x5d5   :  { %v8512_v47 = vadd.f32 %v950_v57, %v8369_v51  ;;  %v574_v57 = vsub.f32 %v8421_v41, %v564_v50  ;;  %7483 = vpow2.f32 %v577_v7 }
 0x5d6   :  { %v6834_v53 = vpop.f32.mrf.mxu0 }
 0x5d7   :  { %v972_v10 = vsel %vm555_vm15, %v8512_v47, -inf  ;;  %v567_v53 = vpop.xlane.xlu1 %566 }
 0x5d8   :  { %973 = vmax.xlane.f32.xlu1 %v972_v10  ;;  %v953_v29 = vpop.f32.mrf.mxu0  ;;  %v571_v10 = vpop.xlane.xlu0 %570  ;;  %v575_v2 = vsub.f32 %v8427_v58, %v567_v53 }
 0x5d9   :  { %v8517_v43 = vadd.f32 %v953_v29, %v8377_v31 }
 0x5da   :  { %v6835_v45 = vpop.f32.mrf.mxu0 }
 0x5db   :  { %v975_v38 = vsel %vm555_vm15, %v8517_v43, -inf }
 0x5dc   :  { %976 = vmax.xlane.f32.xlu0 %v975_v38  ;;  %v958_v37 = vpop.f32.mrf.mxu0  ;;  %v579_v38 = vmul.f32 1.442695, %v573_v34 }
 0x5dd   :  { %v8522_v3 = vadd.f32 %v958_v37, %v8386_v44 }
 0x5de   :  { %v6838_v28 = vpop.f32.mrf.mxu0  ;;  %7485 = vpow2.f32 %v579_v38 }
 0x5df   :  { %v978_v5 = vsel %vm555_vm15, %v8522_v3, -inf  ;;  %v581_v28 = vmul.f32 1.442695, %v574_v57 }
 0x5e0   :  { %979 = vmax.xlane.f32.xlu1 %v978_v5  ;;  %v961_v19 = vpop.f32.mrf.mxu0  ;;  %v576_v5 = vsub.f32 %v8430_v0, %v571_v10 }
 0x5e1   :  { %v8527_v11 = vadd.f32 %v961_v19, %v8395_v54  ;;  %v583_v19 = vmul.f32 1.442695, %v575_v2  ;;  %7487 = vpow2.f32 %v581_v28 }
 0x5e2   :  { %v6839_v13 = vpop.f32.mrf.mxu0 }
 0x5e3   :  { %v981_v32 = vsel %vm555_vm15, %v8527_v11, -inf  ;;  %v585_v13 = vmul.f32 1.442695, %v576_v5  ;;  %7489 = vpow2.f32 %v583_v19 }
 0x5e4   :  { %982 = vmax.xlane.f32.xlu0 %v981_v32  ;;  %v966_v55 = vpop.f32.mrf.mxu0 }
 0x5e5   :  { %v8532_v16 = vadd.f32 %v966_v55, %v8402_v8  ;;  %7491 = vpow2.f32 %v585_v13 }
 0x5e6   :  { %v6842_v63 = vpop.f32.mrf.mxu0 }
 0x5e7   :  { %v984_v21 = vsel %vm568_vm1, %v8532_v16, -inf }
 0x5e8   :  { %985 = vmax.xlane.f32.xlu1 %v984_v21  ;;  %v969_v22 = vpop.f32.mrf.mxu0  ;;  %v8561_v21 = vpop.eup %7483 }
 0x5e9   :  { %v587_v7 = vsel %vm555_vm15, %v8561_v21, 0.0 }
 0x5ea   :  { %v6843_v18 = vpop.f32.mrf.mxu0 }
 0x5eb   :  { %v8566_v18 = vpop.eup %7485 }
 0x5ec   :  { %v1162_v29 = vpop.f32.mrf.mxu0  ;;  %v590_v38 = vsel %vm555_vm15, %v8566_v18, 0.0 }
 0x5ed   :  { %v8540_v45 = vadd.f32 %v1162_v29, %v8369_v51 }
 0x5ee   :  { %v6870_v37 = vpop.f32.mrf.mxu0  ;;  %v8572_v57 = vpop.eup %7487 }
 0x5ef   :  { %v1184_v36 = vsel %vm555_vm15, %v8540_v45, -inf }
 0x5f0   :  { %1185 = vmax.xlane.f32.xlu0 %v1184_v36  ;;  %v1165_v61 = vpop.f32.mrf.mxu0  ;;  %v8574_v29 = vpop.eup %7489 }
 0x5f1   :  { %v8547_v41 = vadd.f32 %v1165_v61, %v8377_v31  ;;  %v596_v28 = vsel %vm555_vm15, %v8574_v29, 0.0 }
 0x5f2   :  { %v6871_v51 = vpop.f32.mrf.mxu0  ;;  %v8580_v2 = vpop.eup %7491 }
 0x5f3   :  { %v1187_v58 = vsel %vm555_vm15, %v8547_v41, -inf  ;;  %v599_v37 = vsel %vm568_vm1, %v8580_v2, 0.0 }
 0x5f4   :  { %1188 = vmax.xlane.f32.xlu1 %v1187_v58  ;;  %v1170_v32 = vpop.f32.mrf.mxu0 }
 0x5f5   :  { %v8552_v0 = vadd.f32 %v1170_v32, %v8386_v44 }
 0x5f6   :  { %v6874_v55 = vpop.f32.mrf.mxu0 }
 0x5f7   :  { %v1190_v31 = vsel %vm555_vm15, %v8552_v0, -inf }
 0x5f8   :  { %1191 = vmax.xlane.f32.xlu0 %v1190_v31  ;;  %v1173_v59 = vpop.f32.mrf.mxu0 }
 0x5f9   :  { %v8557_v50 = vadd.f32 %v1173_v59, %v8395_v54 }
 0x5fa   :  { %v6875_v63 = vpop.f32.mrf.mxu0 }
 0x5fb   :  { %v1193_v15 = vsel %vm555_vm15, %v8557_v50, -inf }
 0x5fc   :  { %1194 = vmax.xlane.f32.xlu1 %v1193_v15  ;;  %v1178_v44 = vpop.f32.mrf.mxu0 }
 0x5fd   :  { %v8564_v22 = vadd.f32 %v1178_v44, %v8402_v8  ;;  %v593_v8 = vsel %vm555_vm15, %v8572_v57, 0.0 }
 0x5fe   :  { %v6878_v34 = vpop.f32.mrf.mxu0 }
 0x5ff   :  { %v1196_v54 = vsel %vm568_vm1, %v8564_v22, -inf }
 0x600   :  { %588 = vadd.xlane.f32.xlu1 %v587_v7  ;;  %1197 = vmax.xlane.f32.xlu0 %v1196_v54  ;;  %v1181_v53 = vpop.f32.mrf.mxu0 }
 0x602   :  { %v6879_v10 = vpop.f32.mrf.mxu0 }
 0x604   :  { %594 = vadd.xlane.f32.xlu1 %v593_v8  ;;  %591 = vadd.xlane.f32.xlu0 %v590_v38 }
 0x608   :  { %600 = vadd.xlane.f32.xlu1 %v599_v37  ;;  %597 = vadd.xlane.f32.xlu0 %v596_v28 }
 0x661   :  { %v974_v5 = vpop.xlane.xlu1 %973 }
 0x662   :  { %v987_v36 = vsub.f32 %v8512_v47, %v974_v5 }
 0x664   :  { %v992_v61 = vmul.f32 1.442695, %v987_v36 }
 0x665   :  { %v977_v19 = vpop.xlane.xlu0 %976 }
 0x666   :  { %7493 = vpow2.f32 %v992_v61  ;;  %v988_v51 = vsub.f32 %v8517_v43, %v977_v19 }
 0x668   :  { %v994_v13 = vmul.f32 1.442695, %v988_v51 }
 0x669   :  { %v980_v58 = vpop.xlane.xlu1 %979 }
 0x66a   :  { %7495 = vpow2.f32 %v994_v13  ;;  %v989_v32 = vsub.f32 %v8522_v3, %v980_v58 }
 0x66c   :  { %v996_v55 = vmul.f32 1.442695, %v989_v32 }
 0x66d   :  { %v983_v31 = vpop.xlane.xlu0 %982 }
 0x66e   :  { %7497 = vpow2.f32 %v996_v55  ;;  %v990_v59 = vsub.f32 %v8527_v11, %v983_v31 }
 0x670   :  { %v998_v63 = vmul.f32 1.442695, %v990_v59 }
 0x671   :  { %v986_v15 = vpop.xlane.xlu1 %985 }
 0x672   :  { %7499 = vpow2.f32 %v998_v63  ;;  %v991_v47 = vsub.f32 %v8532_v16, %v986_v15 }
 0x673   :  { %v8591_v44 = vpop.eup %7493 }
 0x674   :  { %v1000_v34 = vmul.f32 1.442695, %v991_v47  ;;  %v1002_v43 = vsel %vm555_vm15, %v8591_v44, 0.0 }
 0x675   :  { %1003 = vadd.xlane.f32.xlu0 %v1002_v43 }
 0x676   :  { %7501 = vpow2.f32 %v1000_v34 }
 0x677   :  { %v8595_v7 = vpop.eup %7495 }
 0x678   :  { %v1005_v3 = vsel %vm555_vm15, %v8595_v7, 0.0 }
 0x679   :  { %v1186_v54 = vpop.xlane.xlu0 %1185  ;;  %1006 = vadd.xlane.f32.xlu1 %v1005_v3 }
 0x67a   :  { %v1199_v11 = vsub.f32 %v8540_v45, %v1186_v54 }
 0x67b   :  { %v8600_v53 = vpop.eup %7497 }
 0x67c   :  { %v1204_v16 = vmul.f32 1.442695, %v1199_v11  ;;  %v1008_v10 = vsel %vm555_vm15, %v8600_v53, 0.0 }
 0x67d   :  { %v1189_v8 = vpop.xlane.xlu1 %1188  ;;  %1009 = vadd.xlane.f32.xlu0 %v1008_v10 }
 0x67e   :  { %7503 = vpow2.f32 %v1204_v16  ;;  %v1200_v38 = vsub.f32 %v8547_v41, %v1189_v8  ;;  %v1031_v8 = vmul.f32 %v8163_v48, %v8300_v23 }
 0x67f   :  { %v8605_v37 = vpop.eup %7499 }
 0x680   :  { %v1206_v28 = vmul.f32 1.442695, %v1200_v38  ;;  %v1011_v5 = vsel %vm555_vm15, %v8605_v37, 0.0 }
 0x681   :  { %v1192_v36 = vpop.xlane.xlu0 %1191  ;;  %1012 = vadd.xlane.f32.xlu1 %v1011_v5 }
 0x682   :  { %7505 = vpow2.f32 %v1206_v28  ;;  %v1201_v45 = vsub.f32 %v8552_v0, %v1192_v36 }
 0x683   :  { %v8610_v61 = vpop.eup %7501 }
 0x684   :  { %v1208_v19 = vmul.f32 1.442695, %v1201_v45  ;;  %v1014_v51 = vsel %vm568_vm1, %v8610_v61, 0.0 }
 0x685   :  { %v1195_v13 = vpop.xlane.xlu1 %1194  ;;  %1015 = vadd.xlane.f32.xlu0 %v1014_v51 }
 0x686   :  { %7507 = vpow2.f32 %v1208_v19  ;;  %v1202_v41 = vsub.f32 %v8557_v50, %v1195_v13  ;;  %v1037_v19 = vpack.c.bf16 %v1031_v8, %v1031_v8 }
 0x688   :  { %v1210_v58 = vmul.f32 1.442695, %v1202_v41  ;;  %v1048_v41 = vsel %vm771_vm14, %v1037_v19, 0  ;;  %v11143_v19 = vpack.c.bf16 %v8258_v6, %v8268_v26 }
 0x689   :  { %v1198_v32 = vpop.xlane.xlu0 %1197  ;;  %v589_v55 = vpop.xlane.xlu1 %588 }
 0x68a   :  { %7509 = vpow2.f32 %v1210_v58  ;;  %v1203_v31 = vsub.f32 %v8564_v22, %v1198_v32 }
 0x68b   :  { %v8616_v59 = vpop.eup %7503  ;;  %7511 = vrcp.f32 %v589_v55 }
 0x68c   :  { %v1212_v0 = vmul.f32 1.442695, %v1203_v31  ;;  %v1214_v63 = vsel %vm555_vm15, %v8616_v59, 0.0 }
 0x68d   :  { %1215 = vadd.xlane.f32.xlu1 %v1214_v63  ;;  %v592_v15 = vpop.xlane.xlu0 %591  ;;  %v595_v22 = vpop.xlane.xlu1 %594 }
 0x68e   :  { %7513 = vpow2.f32 %v1212_v0  ;;  %v11141_v0 = vpack.c.bf16 %v8254_v17, %v8264_v24  ;;  %v1243_v24 = vmul.f32 %v8166_v49, %v8300_v23 }
 0x68f   :  { %v8620_v47 = vpop.eup %7505  ;;  %7515 = vrcp.f32 %v592_v15 }
 0x690   :  { %v1217_v50 = vsel %vm555_vm15, %v8620_v47, 0.0 }
 0x691   :  { %1218 = vadd.xlane.f32.xlu0 %v1217_v50  ;;  %v598_v34 = vpop.xlane.xlu0 %597  ;;  %v601_v16 = vpop.xlane.xlu1 %600 }
 0x692   :  { %7517 = vrcp.f32 %v598_v34 }
 0x693   :  { %v8624_v43 = vpop.eup %7507  ;;  %7519 = vrcp.f32 %v595_v22 }
 0x694   :  { %v1220_v3 = vsel %vm555_vm15, %v8624_v43, 0.0  ;;  %7521 = vrcp.f32 %v601_v16 }
 0x695   :  { %1221 = vadd.xlane.f32.xlu1 %v1220_v3  ;;  %v1249_v3 = vpack.c.bf16 %v1243_v24, %v1243_v24 }
 0x697   :  { %v8628_v54 = vpop.eup %7509  ;;  %v1260_v16 = vsel %vm771_vm14, %v1249_v3, 0 }
 0x698   :  { %v1223_v11 = vsel %vm555_vm15, %v8628_v54, 0.0  ;;  %v7512_v10 = vpop.eup %7511 }
 0x699   :  { %1224 = vadd.xlane.f32.xlu0 %v1223_v11  ;;  %v607_v36 = vmul.f32 %v7512_v10, %v8561_v21 }
 0x69b   :  { %v8634_v38 = vpop.eup %7513 }
 0x69c   :  { %v1226_v28 = vsel %vm568_vm1, %v8634_v38, 0.0  ;;  %v7516_v5 = vpop.eup %7515 }
 0x69d   :  { %1227 = vadd.xlane.f32.xlu1 %v1226_v28  ;;  %v608_v45 = vmul.f32 %v7516_v5, %v8566_v18  ;;  %v11140_v18 = vpack.c.bf16 %v8286_v42, %v8294_v12  ;;  %v11142_v28 = vpack.c.bf16 %v8289_v1, %v8297_v56 }
 0x69f   :  { %v617_v51 = vpack.c.bf16 %v608_v45, %v607_v36  ;;  %v7518_v13 = vpop.eup %7517 }
 0x6a0   :  { %v7520_v58 = vpop.eup %7519  ;;  %v610_v32 = vmul.f32 %v7518_v13, %v8574_v29 }
 0x6a1   :  { %6815 = vmatmul.mubr.msk.bf16.vlgmr.msra.gmra.mxu1 %vm555_vm15, %v617_v51  ;;  %v609_v21 = vmul.f32 %v7520_v58, %v8572_v57  ;;  %v7522_v31 = vpop.eup %7521 }
 0x6a2   :  { %6845 = vmatpush3.bf16.msra.mxu1 %v1048_v41  ;;  %6818 = vmatprep.mubr.msk.bf16.mxu1 %vm7845_vm0, %v11135_v9  ;;  %v611_v29 = vmul.f32 %v7522_v31, %v8580_v2 }
 0x6a3   :  { %6846 = vmatprep.subr.bf16.mxu1 %v11135_v9  ;;  %v618_v55 = vpack.c.bf16 %v610_v32, %v609_v21 }
 0x6a4   :  { %v619_v57 = vpack.c.bf16 %v611_v29, %v611_v29 }
 0x6a6   :  { %6847 = vmatpush3.bf16.msra.mxu1 %v11140_v18 }
 0x6a7   :  { %6848 = vmatprep.subr.bf16.mxu1 %v11135_v9 }
 0x6a9   :  { %6819 = vmatmul.mubr.msk.bf16.gmra.mxu1 %vm555_vm15, %v618_v55 }
 0x6aa   :  { %6849 = vmatpush3.bf16.msra.mxu1 %v11141_v0  ;;  %6822 = vmatprep.mubr.msk.bf16.mxu1 %vm7845_vm0, %v11135_v9 }
 0x6ab   :  { %6880 = vmatprep.subr.bf16.mxu1 %v11135_v9 }
 0x6b1   :  { %6823 = vmatmul.mubr.msk.bf16.gmra.mxu1 %vm555_vm15, %v619_v57 }
 0x6b2   :  { %6850 = vmatprep.mubr.msk.bf16.mxu1 %vm7845_vm0, %v11135_v9 }
 0x6fe   :  { %v1004_v42 = vpop.xlane.xlu0 %1003 }
 0x6ff   :  { %7523 = vrcp.f32 %v1004_v42 }
 0x702   :  { %v1007_v12 = vpop.xlane.xlu1 %1006 }
 0x703   :  { %7525 = vrcp.f32 %v1007_v12 }
 0x706   :  { %v1010_v63 = vpop.xlane.xlu0 %1009 }
 0x707   :  { %7527 = vrcp.f32 %v1010_v63 }
 0x70a   :  { %v1013_v17 = vpop.xlane.xlu1 %1012 }
 0x70b   :  { %7529 = vrcp.f32 %v1013_v17  ;;  %v467_v17 = vld [vmem:[%s11101_s5 + $0x140] sm:$0xff] }
 0x70c   :  { %v7524_v2 = vpop.eup %7523 }
 0x70d   :  { %v1022_v34 = vmul.f32 %v7524_v2, %v8591_v44 }
 0x70e   :  { %v1016_v15 = vpop.xlane.xlu0 %1015 }
 0x70f   :  { %7531 = vrcp.f32 %v1016_v15 }
 0x710   :  { %v7526_v50 = vpop.eup %7525 }
 0x711   :  { %v1023_v22 = vmul.f32 %v7526_v50, %v8595_v7  ;;  %v464_v50 = vld [vmem:[%s11101_s5 + $0x128] sm:$0xff] }
 0x713   :  { %v1032_v11 = vpack.c.bf16 %v1023_v22, %v1022_v34  ;;  %v465_v34 = vld [vmem:[%s11101_s5 + $0x130] sm:$0xff] }
 0x714   :  { %v7528_v10 = vpop.eup %7527  ;;  %v1327_v3 = vpack.c.bf16 %v465_v34, %v464_v50 }
 0x715   :  { %6851 = vmatmul.mubr.msk.bf16.vlgmr.msra.gmra.mxu1 %vm555_vm15, %v1032_v11  ;;  %v1024_v44 = vmul.f32 %v7528_v10, %v8600_v53  ;;  %v463_v10 = vld [vmem:[%s11101_s5 + $0x120] sm:$0xff] }
 0x716   :  { %6881 = vmatpush3.bf16.msra.mxu1 %v1260_v16  ;;  %v1216_v8 = vpop.xlane.xlu1 %1215  ;;  %6854 = vmatprep.mubr.msk.bf16.mxu1 %vm7845_vm0, %v11135_v9  ;;  %v462_v16 = vld [vmem:[%s11101_s5 + $0x118] sm:$0xff] }
 0x717   :  { %6882 = vmatprep.subr.bf16.mxu1 %v11135_v9  ;;  %7533 = vrcp.f32 %v1216_v8 }
 0x718   :  { %v7530_v23 = vpop.eup %7529 }
 0x719   :  { %v1025_v7 = vmul.f32 %v7530_v23, %v8605_v37  ;;  %v1326_v23 = vpack.c.bf16 %v463_v10, %v462_v16 }
 0x71a   :  { %6883 = vmatpush3.bf16.msra.mxu1 %v11142_v28  ;;  %v1219_v5 = vpop.xlane.xlu0 %1218 }
 0x71b   :  { %7535 = vrcp.f32 %v1219_v5  ;;  %6884 = vmatprep.subr.bf16.mxu1 %v11135_v9  ;;  %v1033_v36 = vpack.c.bf16 %v1025_v7, %v1024_v44 }
 0x71c   :  { %v7532_v45 = vpop.eup %7531 }
 0x71d   :  { %6855 = vmatmul.mubr.msk.bf16.gmra.mxu1 %vm555_vm15, %v1033_v36  ;;  %v1026_v53 = vmul.f32 %v7532_v45, %v8610_v61 }
 0x71e   :  { %6885 = vmatpush3.bf16.msra.mxu1 %v11143_v19  ;;  %v1222_v51 = vpop.xlane.xlu1 %1221  ;;  %6858 = vmatprep.mubr.msk.bf16.mxu1 %vm7845_vm0, %v11135_v9 }
 0x71f   :  { %7537 = vrcp.f32 %v1222_v51  ;;  %v1034_v56 = vpack.c.bf16 %v1026_v53, %v1026_v53 }
 0x722   :  { %v1225_v1 = vpop.xlane.xlu0 %1224 }
 0x723   :  { %7539 = vrcp.f32 %v1225_v1 }
 0x724   :  { %v7534_v37 = vpop.eup %7533 }
 0x725   :  { %6859 = vmatmul.mubr.msk.bf16.gmra.mxu1 %vm555_vm15, %v1034_v56  ;;  %v1234_v26 = vmul.f32 %v7534_v37, %v8616_v59 }
 0x726   :  { %v1228_v13 = vpop.xlane.xlu1 %1227  ;;  %6886 = vmatprep.mubr.msk.bf16.mxu1 %vm7845_vm0, %v11135_v9 }
 0x727   :  { %7541 = vrcp.f32 %v1228_v13 }
 0x728   :  { %v7536_v6 = vpop.eup %7535 }
 0x729   :  { %v1235_v41 = vmul.f32 %v7536_v6, %v8620_v47 }
 0x72b   :  { %v1244_v58 = vpack.c.bf16 %v1235_v41, %v1234_v26 }
 0x72c   :  { %v7538_v61 = vpop.eup %7537 }
 0x72d   :  { %6887 = vmatmul.mubr.msk.bf16.vlgmr.msra.gmra.mxu1 %vm555_vm15, %v1244_v58  ;;  %v1236_v21 = vmul.f32 %v7538_v61, %v8624_v43  ;;  %v468_v43 = vld [vmem:[%s11101_s5 + $0x148] sm:$0xff] }
 0x72e   :  { %6890 = vmatprep.mubr.msk.bf16.mxu1 %vm7845_vm0, %v11135_v9 }
 0x730   :  { %v7540_v32 = vpop.eup %7539 }
 0x731   :  { %v1237_v18 = vmul.f32 %v7540_v32, %v8628_v54  ;;  %v469_v54 = vld [vmem:[%s11101_s5 + $0x150] sm:$0xff] }
 0x732   :  { %v1329_v12 = vpack.c.bf16 %v469_v54, %v468_v43 }
 0x733   :  { %v1245_v55 = vpack.c.bf16 %v1237_v18, %v1236_v21 }
 0x734   :  { %v7542_v31 = vpop.eup %7541  ;;  %6899 = vmatpush3.bf16.msra.mxu0 %v1329_v12 }
 0x735   :  { %6891 = vmatmul.mubr.msk.bf16.gmra.mxu1 %vm555_vm15, %v1245_v55  ;;  %v1238_v59 = vmul.f32 %v7542_v31, %v8634_v38  ;;  %6900 = vmatprep.subr.bf16.mxu0 %v11135_v9  ;;  %v466_v38 = vld [vmem:[%s11101_s5 + $0x138] sm:$0xff] }
 0x736   :  { %6894 = vmatprep.mubr.msk.bf16.mxu1 %vm7845_vm0, %v11135_v9  ;;  %v1328_v2 = vpack.c.bf16 %v467_v17, %v466_v38 }
 0x737   :  { %v1246_v47 = vpack.c.bf16 %v1238_v59, %v1238_v59 }
 0x738   :  { %6901 = vmatpush3.bf16.msra.mxu0 %v1328_v2 }
 0x739   :  { %6902 = vmatprep.subr.bf16.mxu0 %v11135_v9 }
 0x73c   :  { %6903 = vmatpush3.bf16.msra.mxu0 %v1327_v3 }
 0x73d   :  { %6895 = vmatmul.mubr.msk.bf16.gmra.mxu1 %vm555_vm15, %v1246_v47  ;;  %6904 = vmatprep.subr.bf16.mxu0 %v11135_v9 }
 0x740   :  { %6905 = vmatpush3.bf16.msra.mxu0 %v1326_v23 }
 0x761   :  { %v877_v0 = vpop.f32.mrf.mxu1 }
 0x762   :  { %v878_v41 = vadd.f32 %v877_v0, %v8501_v60 }
 0x763   :  { %v6816_v29 = vpop.f32.mrf.mxu1 }
 0x765   :  { %v880_v57 = vpop.f32.mrf.mxu1 }
 0x766   :  { %v881_v58 = vadd.f32 %v880_v57, %v8503_v14 }
 0x767   :  { %v6817_v42 = vpop.f32.mrf.mxu1 }
 0x769   :  { %v885_v63 = vpop.f32.mrf.mxu1 }
 0x76a   :  { %v886_v43 = vadd.f32 %v885_v63, %v8505_v39 }
 0x76b   :  { %v6820_v24 = vpop.f32.mrf.mxu1 }
 0x76d   :  { %v888_v15 = vpop.f32.mrf.mxu1 }
 0x76e   :  { %v889_v54 = vadd.f32 %v888_v15, %v8507_v4 }
 0x76f   :  { %v6821_v22 = vpop.f32.mrf.mxu1 }
 0x770   :  { %v8739_v22 = vsub.s32 5, %v8065_v46 }
 0x771   :  { %v893_v11 = vpop.f32.mrf.mxu1 }
 0x772   :  { %v894_v17 = vadd.f32 %v893_v11, %v8509_v33  ;;  %v8744_v33 = vld [vmem:[%s11101_s5 + $0x258] sm:$0xff] }
 0x773   :  { %v6824_v8 = vpop.f32.mrf.mxu1  ;;  %v1333_v3 = vrot.slane %v8744_v33, %v8739_v22 }
 0x775   :  { %v896_v44 = vpop.f32.mrf.mxu1 }
 0x777   :  { %v6825_v7 = vpop.f32.mrf.mxu1 }
 0x7d5   :  { %v1084_v28 = vpop.f32.mrf.mxu1 }
 0x7d6   :  { %v1106_v32 = vadd.f32 %v1084_v28, %v878_v41 }
 0x7d7   :  { %v6852_v5 = vpop.f32.mrf.mxu1 }
 0x7d9   :  { %v1087_v36 = vpop.f32.mrf.mxu1 }
 0x7da   :  { %v1107_v21 = vadd.f32 %v1087_v36, %v881_v58 }
 0x7db   :  { %v6853_v45 = vpop.f32.mrf.mxu1 }
 0x7dd   :  { %v1092_v19 = vpop.f32.mrf.mxu1 }
 0x7de   :  { %v1108_v60 = vadd.f32 %v1092_v19, %v886_v43 }
 0x7df   :  { %v6856_v51 = vpop.f32.mrf.mxu1 }
 0x7e1   :  { %v1095_v53 = vpop.f32.mrf.mxu1 }
 0x7e2   :  { %v1109_v14 = vadd.f32 %v1095_v53, %v889_v54 }
 0x7e3   :  { %v6857_v1 = vpop.f32.mrf.mxu1 }
 0x7e5   :  { %v1100_v56 = vpop.f32.mrf.mxu1 }
 0x7e6   :  { %v1110_v50 = vadd.f32 %v1100_v56, %v894_v17 }
 0x7e7   :  { %v6860_v37 = vpop.f32.mrf.mxu1 }
 0x7e9   :  { %v1103_v13 = vpop.f32.mrf.mxu1 }
 0x7eb   :  { %v6861_v6 = vpop.f32.mrf.mxu1 }
 0x7ed   :  { %v1296_v26 = vpop.f32.mrf.mxu1 }
 0x7ee   :  { %v1318_v55 = vadd.f32 %v1296_v26, %v1106_v32 }
 0x7ef   :  { %v6888_v61 = vpop.f32.mrf.mxu1 }
 0x7f1   :  { %v1299_v18 = vpop.f32.mrf.mxu1 }
 0x7f2   :  { %v1319_v31 = vadd.f32 %v1299_v18, %v1107_v21 }
 0x7f3   :  { %v6889_v59 = vpop.f32.mrf.mxu1 }
 0x7f4   :  { %v1323_v47 = vpack.c.bf16 %v1319_v31, %v1318_v55 }
 0x7f5   :  { %v1304_v29 = vpop.f32.mrf.mxu1 }
 0x7f6   :  { %6907 = vmatmul.mubr.msk.bf16.vlgmr.msra.gmra.mxu0 %vm148_vm2, %v1323_v47  ;;  %v1320_v57 = vadd.f32 %v1304_v29, %v1108_v60 }
 0x7f7   :  { %v6892_v42 = vpop.f32.mrf.mxu1  ;;  %6910 = vmatprep.mubr.msk.bf16.mxu0 %vm7845_vm0, %v11135_v9 }
 0x7f9   :  { %v1307_v0 = vpop.f32.mrf.mxu1 }
 0x7fa   :  { %v1321_v12 = vadd.f32 %v1307_v0, %v1109_v14 }
 0x7fb   :  { %v6893_v38 = vpop.f32.mrf.mxu1 }
 0x7fc   :  { %v1324_v24 = vpack.c.bf16 %v1321_v12, %v1320_v57 }
 0x7fd   :  { %v1312_v2 = vpop.f32.mrf.mxu1 }
 0x7fe   :  { %6911 = vmatmul.mubr.msk.bf16.gmra.mxu0 %vm148_vm2, %v1324_v24  ;;  %v1322_v4 = vadd.f32 %v1312_v2, %v1110_v50 }
 0x7ff   :  { %v6896_v39 = vpop.f32.mrf.mxu1  ;;  %6914 = vmatprep.mubr.msk.bf16.mxu0 %vm7845_vm0, %v11135_v9 }
 0x800   :  { %v1325_v34 = vpack.c.bf16 %v1322_v4, %v1322_v4 }
 0x801   :  { %v1315_v63 = vpop.f32.mrf.mxu1 }
 0x803   :  { %v6897_v15 = vpop.f32.mrf.mxu1 }
 0x804   :  { %v1500_v15 = vld [vmem:[%s11103_s7 + $0x68] sm:$0xff] }
 0x806   :  { %6915 = vmatmul.mubr.msk.bf16.gmra.mxu0 %vm148_vm2, %v1325_v34  ;;  %v1502_v34 = vld [vmem:[%s11103_s7 + $0x78] sm:$0xff] }
 0x8b6   :  { %v1377_v11 = vpop.f32.mrf.mxu0 }
 0x8b7   :  { %v1378_v16 = vadd.f32 %v1377_v11, %v1333_v3  ;;  %v1499_v11 = vld [vmem:[%s11103_s7 + $0x60] sm:$0xff] }
 0x8b8   :  { %v6908_v10 = vpop.f32.mrf.mxu0 }
 0x8b9   :  { %v8749_v8 = vadd.f32 %v1378_v16, %v7946_v20  ;;  %v1501_v16 = vld [vmem:[%s11103_s7 + $0x70] sm:$0xff] }
 0x8ba   :  { %v1380_v23 = vpop.f32.mrf.mxu0  ;;  %v1512_v10 = vpack.c.bf16 %v1501_v16, %v1499_v11 }
 0x8bb   :  { %v1381_v44 = vadd.f32 %v1380_v23, %v1333_v3  ;;  %v1404_v7 = vsel %vm148_vm2, %v8749_v8, 0.0  ;;  %v1496_v23 = vld [vmem:[%s11103_s7 + $0x48] sm:$0xff] }
 0x8bc   :  { %1405 = vadd.xlane.f32.xlu0 %v1404_v7  ;;  %v6909_v28 = vpop.f32.mrf.mxu0 }
 0x8bd   :  { %v8754_v5 = vadd.f32 %v1381_v44, %v7953_v25  ;;  %v1498_v44 = vld [vmem:[%s11103_s7 + $0x58] sm:$0xff]  ;;  %v1495_v28 = vld [vmem:[%s11103_s7 + $0x40] sm:$0xff] }
 0x8be   :  { %v1385_v36 = vpop.f32.mrf.mxu0  ;;  %v1511_v7 = vpack.c.bf16 %v1498_v44, %v1496_v23 }
 0x8bf   :  { %v1386_v45 = vadd.f32 %v1385_v36, %v1333_v3  ;;  %v1407_v19 = vsel %vm148_vm2, %v8754_v5, 0.0  ;;  %v1497_v36 = vld [vmem:[%s11103_s7 + $0x50] sm:$0xff] }
 0x8c0   :  { %1408 = vadd.xlane.f32.xlu1 %v1407_v19  ;;  %v6912_v51 = vpop.f32.mrf.mxu0  ;;  %v1492_v19 = vld [vmem:[%s11103_s7 + $0x28] sm:$0xff] }
 0x8c1   :  { %v8759_v20 = vadd.f32 %v1386_v45, %v7960_v30  ;;  %v1510_v45 = vpack.c.bf16 %v1497_v36, %v1495_v28  ;;  %v1494_v51 = vld [vmem:[%s11103_s7 + $0x38] sm:$0xff] }
 0x8c2   :  { %v1388_v53 = vpop.f32.mrf.mxu0 }
 0x8c3   :  { %v1389_v1 = vadd.f32 %v1388_v53, %v1333_v3  ;;  %v1410_v56 = vsel %vm148_vm2, %v8759_v20, 0.0  ;;  %v1509_v53 = vpack.c.bf16 %v1494_v51, %v1492_v19 }
 0x8c4   :  { %1411 = vadd.xlane.f32.xlu0 %v1410_v56  ;;  %v6913_v37 = vpop.f32.mrf.mxu0  ;;  %v1493_v56 = vld [vmem:[%s11103_s7 + $0x30] sm:$0xff] }
 0x8c5   :  { %v8764_v25 = vadd.f32 %v1389_v1, %v7967_v35  ;;  %v1491_v1 = vld [vmem:[%s11103_s7 + $0x20] sm:$0xff] }
 0x8c6   :  { %v1393_v13 = vpop.f32.mrf.mxu0  ;;  %v1508_v37 = vpack.c.bf16 %v1493_v56, %v1491_v1 }
 0x8c7   :  { %v1394_v6 = vadd.f32 %v1393_v13, %v1333_v3  ;;  %v1413_v26 = vsel %vm148_vm2, %v8764_v25, 0.0  ;;  %v1513_v3 = vpack.c.bf16 %v1502_v34, %v1500_v15  ;;  %v1488_v13 = vld [vmem:[%s11103_s7 + $0x8] sm:$0xff] }
 0x8c8   :  { %1414 = vadd.xlane.f32.xlu1 %v1413_v26  ;;  %v6916_v41 = vpop.f32.mrf.mxu0  ;;  %v1487_v26 = vld [vmem:[%s11103_s7] sm:$0xff] }
 0x8c9   :  { %v8769_v30 = vadd.f32 %v1394_v6, %v7974_v40  ;;  %1544 = vmatprep.subr.bf16.mxu1 %v1513_v3  ;;  %v1490_v6 = vld [vmem:[%s11103_s7 + $0x18] sm:$0xff] }
 0x8ca   :  { %v1396_v58 = vpop.f32.mrf.mxu0  ;;  %1545 = vmatpush1.bf16.msra.mxu1 %v1512_v10  ;;  %v1507_v41 = vpack.c.bf16 %v1490_v6, %v1488_v13  ;;  %v1701_v6 = vld [vmem:[%s11101_s5 + $0x1c8] sm:$0xff] }
 0x8cb   :  { %v1416_v61 = vsel %vm161_vm3, %v8769_v30, 0.0  ;;  %1546 = vmatprep.subr.bf16.mxu1 %v1511_v7  ;;  %v1489_v58 = vld [vmem:[%s11103_s7 + $0x10] sm:$0xff] }
 0x8cc   :  { %1417 = vadd.xlane.f32.xlu0 %v1416_v61  ;;  %v6917_v32 = vpop.f32.mrf.mxu0  ;;  %v11117_v61 = vmov 0  }
 0x8cd   :  { %1568 = vmatprep.mubr.bf16.mxu1 %v11117_v61  ;;  %v1506_v32 = vpack.c.bf16 %v1489_v58, %v1487_v26  ;;  %v1702_v26 = vld [vmem:[%s11101_s5 + $0x1d0] sm:$0xff]  ;;  %v1715_v58 = vld [vmem:[%s11101_s5 + $0x238] sm:$0xff] }
 0x8ce   :  { %1547 = vmatpush1.bf16.msra.mxu1 %v1510_v45 }
 0x8cf   :  { %1548 = vmatprep.subr.bf16.mxu1 %v1509_v53 }
 0x8d2   :  { %1549 = vmatpush1.bf16.msra.mxu1 %v1508_v37 }
 0x8d3   :  { %1550 = vmatprep.subr.bf16.mxu1 %v1507_v41  ;;  %v1732_v41 = vpack.c.bf16 %v1702_v26, %v1701_v6 }
 0x8d6   :  { %1551 = vmatpush1.bf16.msra.mxu1 %v1506_v32  ;;  %v1716_v32 = vld [vmem:[%s11101_s5 + $0x240] sm:$0xff] }
 0x8d7   :  { %6918 = vmatprep.subr.bf16.mxu1 %v11135_v9 }
 0x945   :  { %v1406_v21 = vpop.xlane.xlu0 %1405 }
 0x946   :  { %v1419_v18 = vmul.f32 0.015625, %v1406_v21 }
 0x948   :  { %v8774_v35 = vsub.f32 %v8749_v8, %v1419_v18 }
 0x949   :  { %v1409_v55 = vpop.xlane.xlu1 %1408 }
 0x94a   :  { %v1420_v31 = vmul.f32 0.015625, %v1409_v55  ;;  %v1429_v59 = vmul.f32 %v8774_v35, %v8774_v35 }
 0x94c   :  { %v8779_v47 = vsub.f32 %v8754_v5, %v1420_v31  ;;  %v1434_v40 = vsel %vm148_vm2, %v1429_v59, 0.0 }
 0x94d   :  { %v1412_v29 = vpop.xlane.xlu0 %1411  ;;  %1435 = vadd.xlane.f32.xlu1 %v1434_v40 }
 0x94e   :  { %v1421_v43 = vmul.f32 0.015625, %v1412_v29  ;;  %v1430_v54 = vmul.f32 %v8779_v47, %v8779_v47 }
 0x950   :  { %v8785_v42 = vsub.f32 %v8759_v20, %v1421_v43  ;;  %v1437_v60 = vsel %vm148_vm2, %v1430_v54, 0.0 }
 0x951   :  { %v1415_v14 = vpop.xlane.xlu1 %1414  ;;  %1438 = vadd.xlane.f32.xlu0 %v1437_v60 }
 0x952   :  { %v1422_v0 = vmul.f32 0.015625, %v1415_v14  ;;  %v1431_v57 = vmul.f32 %v8785_v42, %v8785_v42 }
 0x954   :  { %v8791_v12 = vsub.f32 %v8764_v25, %v1422_v0  ;;  %v1440_v38 = vsel %vm148_vm2, %v1431_v57, 0.0  ;;  %v8854_v0 = vsub.s32 6, %v8065_v46 }
 0x955   :  { %1441 = vadd.xlane.f32.xlu1 %v1440_v38  ;;  %v1418_v17 = vpop.xlane.xlu0 %1417 }
 0x956   :  { %v1423_v24 = vmul.f32 0.015625, %v1418_v17  ;;  %v1432_v2 = vmul.f32 %v8791_v12, %v8791_v12 }
 0x958   :  { %v8797_v50 = vsub.f32 %v8769_v30, %v1423_v24  ;;  %v1443_v39 = vsel %vm148_vm2, %v1432_v2, 0.0  ;;  %v1472_v2 = vrot.slane %v8744_v33, %v8854_v0 }
 0x959   :  { %1444 = vadd.xlane.f32.xlu0 %v1443_v39 }
 0x95a   :  { %v1433_v4 = vmul.f32 %v8797_v50, %v8797_v50 }
 0x95c   :  { %v1446_v63 = vsel %vm161_vm3, %v1433_v4, 0.0 }
 0x95d   :  { %1447 = vadd.xlane.f32.xlu1 %v1446_v63  ;;  %v8860_v63 = vsub.s32 7, %v8065_v46 }
 0x95f   :  { %v1481_v11 = vrot.slane %v8744_v33, %v8860_v63 }
 0x9d6   :  { %v1436_v21 = vpop.xlane.xlu1 %1435 }
 0x9d7   :  { %v1449_v18 = vmul.f32 0.015625, %v1436_v21  ;;  %v1739_v21 = vpack.c.bf16 %v1716_v32, %v1715_v58 }
 0x9d9   :  { %v1454_v55 = vadd.f32 1e-06, %v1449_v18  ;;  %v1699_v18 = vld [vmem:[%s11101_s5 + $0x1b8] sm:$0xff] }
 0x9da   :  { %v1439_v31 = vpop.xlane.xlu0 %1438 }
 0x9db   :  { %7543 = vrsqrt.f32 %v1454_v55  ;;  %v1450_v59 = vmul.f32 0.015625, %v1439_v31  ;;  %v1700_v55 = vld [vmem:[%s11101_s5 + $0x1c0] sm:$0xff] }
 0x9dc   :  { %v1731_v31 = vpack.c.bf16 %v1700_v55, %v1699_v18 }
 0x9dd   :  { %v1455_v40 = vadd.f32 1e-06, %v1450_v59  ;;  %v1713_v59 = vld [vmem:[%s11101_s5 + $0x228] sm:$0xff] }
 0x9de   :  { %v1442_v29 = vpop.xlane.xlu1 %1441 }
 0x9df   :  { %7545 = vrsqrt.f32 %v1455_v40  ;;  %v1451_v43 = vmul.f32 0.015625, %v1442_v29  ;;  %v1714_v40 = vld [vmem:[%s11101_s5 + $0x230] sm:$0xff] }
 0x9e0   :  { %v1738_v29 = vpack.c.bf16 %v1714_v40, %v1713_v59 }
 0x9e1   :  { %v1456_v54 = vadd.f32 1e-06, %v1451_v43  ;;  %v1697_v43 = vld [vmem:[%s11101_s5 + $0x1a8] sm:$0xff] }
 0x9e2   :  { %v1445_v60 = vpop.xlane.xlu0 %1444 }
 0x9e3   :  { %7547 = vrsqrt.f32 %v1456_v54  ;;  %v1452_v14 = vmul.f32 0.015625, %v1445_v60  ;;  %v1698_v54 = vld [vmem:[%s11101_s5 + $0x1b0] sm:$0xff] }
 0x9e4   :  { %v1730_v60 = vpack.c.bf16 %v1698_v54, %v1697_v43 }
 0x9e5   :  { %v1457_v57 = vadd.f32 1e-06, %v1452_v14  ;;  %v1711_v14 = vld [vmem:[%s11101_s5 + $0x218] sm:$0xff] }
 0x9e6   :  { %v1448_v38 = vpop.xlane.xlu1 %1447 }
 0x9e7   :  { %7549 = vrsqrt.f32 %v1457_v57  ;;  %v1453_v17 = vmul.f32 0.015625, %v1448_v38  ;;  %v1712_v57 = vld [vmem:[%s11101_s5 + $0x220] sm:$0xff] }
 0x9e8   :  { %v7544_v24 = vpop.eup %7543  ;;  %v1737_v38 = vpack.c.bf16 %v1712_v57, %v1711_v14 }
 0x9e9   :  { %v1464_v39 = vmul.f32 %v7544_v24, %v8774_v35  ;;  %v1458_v4 = vadd.f32 1e-06, %v1453_v17  ;;  %v1695_v17 = vld [vmem:[%s11101_s5 + $0x198] sm:$0xff]  ;;  %v1696_v24 = vld [vmem:[%s11101_s5 + $0x1a0] sm:$0xff] }
 0x9eb   :  { %7551 = vrsqrt.f32 %v1458_v4  ;;  %v1473_v34 = vmul.f32 %v1472_v2, %v1464_v39  ;;  %v1709_v39 = vld [vmem:[%s11101_s5 + $0x208] sm:$0xff]  ;;  %v1710_v4 = vld [vmem:[%s11101_s5 + $0x210] sm:$0xff] }
 0x9ec   :  { %v7546_v15 = vpop.eup %7545 }
 0x9ed   :  { %v1465_v3 = vmul.f32 %v7546_v15, %v8779_v47  ;;  %v1482_v23 = vadd.f32 %v1481_v11, %v1473_v34  ;;  %v1693_v15 = vld [vmem:[%s11101_s5 + $0x188] sm:$0xff]  ;;  %v1736_v34 = vpack.c.bf16 %v1710_v4, %v1709_v39 }
 0x9ef   :  { %v1474_v16 = vmul.f32 %v1472_v2, %v1465_v3  ;;  %v1694_v3 = vld [vmem:[%s11101_s5 + $0x190] sm:$0xff] }
 0x9f0   :  { %v7548_v10 = vpop.eup %7547 }
 0x9f1   :  { %v1483_v44 = vadd.f32 %v1481_v11, %v1474_v16  ;;  %v1466_v7 = vmul.f32 %v7548_v10, %v8785_v42  ;;  %v1708_v16 = vld [vmem:[%s11101_s5 + $0x200] sm:$0xff]  ;;  %v1728_v10 = vpack.c.bf16 %v1694_v3, %v1693_v15 }
 0x9f3   :  { %v1503_v28 = vpack.c.bf16 %v1483_v44, %v1482_v23  ;;  %v1475_v45 = vmul.f32 %v1472_v2, %v1466_v7  ;;  %v1691_v44 = vld [vmem:[%s11101_s5 + $0x178] sm:$0xff]  ;;  %v1692_v7 = vld [vmem:[%s11101_s5 + $0x180] sm:$0xff] }
 0x9f4   :  { %v7550_v35 = vpop.eup %7549 }
 0x9f5   :  { %6244 = vmatmul.mubr.msk.bf16.vlgmr.msra.gmra.mxu1 %vm148_vm2, %v1503_v28  ;;  %v1467_v36 = vmul.f32 %v7550_v35, %v8791_v12  ;;  %v1484_v51 = vadd.f32 %v1481_v11, %v1475_v45  ;;  %v1717_v12 = vld [vmem:[%s11101_s5 + $0x248] sm:$0xff]  ;;  %v1706_v35 = vld [vmem:[%s11101_s5 + $0x1f0] sm:$0xff] }
 0x9f6   :  { %1578 = vmatprep.mubr.bf16.mxu1 %v11117_v61  ;;  %v1705_v28 = vld [vmem:[%s11101_s5 + $0x1e8] sm:$0xff] }
 0x9f7   :  { %v1476_v19 = vmul.f32 %v1472_v2, %v1467_v36  ;;  %v1727_v36 = vpack.c.bf16 %v1692_v7, %v1691_v44  ;;  %v1734_v45 = vpack.c.bf16 %v1706_v35, %v1705_v28 }
 0x9f8   :  { %v7552_v47 = vpop.eup %7551 }
 0x9f9   :  { %v1485_v53 = vadd.f32 %v1481_v11, %v1476_v19  ;;  %v1468_v33 = vmul.f32 %v7552_v47, %v8797_v50  ;;  %v1718_v50 = vld [vmem:[%s11101_s5 + $0x250] sm:$0xff]  ;;  %v1689_v19 = vld [vmem:[%s11101_s5 + $0x168] sm:$0xff] }
 0x9fa   :  { %v1740_v13 = vpack.c.bf16 %v1718_v50, %v1717_v12  ;;  %v1690_v47 = vld [vmem:[%s11101_s5 + $0x170] sm:$0xff]  ;;  %v6243_v12 = vld [vmem:[%s11103_s7 + $0x80] ss:$8 sm:$0x3] }
 0x9fb   :  { %v1504_v1 = vpack.c.bf16 %v1485_v53, %v1484_v51  ;;  %v1477_v56 = vmul.f32 %v1472_v2, %v1468_v33  ;;  %v1729_v2 = vpack.c.bf16 %v1696_v24, %v1695_v17  ;;  %v1703_v51 = vld [vmem:[%s11101_s5 + $0x1d8] sm:$0xff]  ;;  %v1704_v53 = vld [vmem:[%s11101_s5 + $0x1e0] sm:$0xff]  ;;  %v1726_v33 = vpack.c.bf16 %v1690_v47, %v1689_v19 }
 0x9fc   :  { %6416 = vmatprep.subr.bf16.mxu0 %v1740_v13  ;;  %v1520_v50 = vrot.slane %v6243_v12, %v8068_v52  ;;  %v1524_v13 = vrot.slane %v6243_v12, %v8079_v62 }
 0x9fd   :  { %6245 = vmatmul.mubr.msk.bf16.gmra.mxu1 %vm148_vm2, %v1504_v1  ;;  %v1486_v42 = vadd.f32 %v1481_v11, %v1477_v56  ;;  %6417 = vmatpush3.bf16.msra.mxu0 %v1732_v41  ;;  %v1707_v11 = vld [vmem:[%s11101_s5 + $0x1f8] sm:$0xff]  ;;  %v1733_v1 = vpack.c.bf16 %v1704_v53, %v1703_v51 }
 0x9fe   :  { %1588 = vmatprep.mubr.bf16.mxu1 %v11117_v61  ;;  %6418 = vmatprep.subr.bf16.mxu0 %v1739_v21  ;;  %v1735_v23 = vpack.c.bf16 %v1708_v16, %v1707_v11  ;;  %v1687_v56 = vld [vmem:[%s11101_s5 + $0x158] sm:$0xff] }
 0x9ff   :  { %v1505_v37 = vpack.c.bf16 %v1486_v42, %v1486_v42  ;;  %v1688_v42 = vld [vmem:[%s11101_s5 + $0x160] sm:$0xff] }
 0xa01   :  { %6419 = vmatpush3.bf16.msra.mxu0 %v1731_v31 }
 0xa02   :  { %6420 = vmatprep.subr.bf16.mxu0 %v1738_v29 }
 0xa05   :  { %6246 = vmatmul.mubr.msk.bf16.gmra.mxu1 %vm148_vm2, %v1505_v37  ;;  %6421 = vmatpush3.bf16.msra.mxu0 %v1730_v60  ;;  %v1725_v37 = vpack.c.bf16 %v1688_v42, %v1687_v56 }
 0xa06   :  { %6926 = vmatprep.mubr.msk.bf16.mxu1 %vm7845_vm0, %v11135_v9  ;;  %6422 = vmatprep.subr.bf16.mxu0 %v1737_v38 }
 0xa09   :  { %6423 = vmatpush3.bf16.msra.mxu0 %v1729_v2 }
 0xa0a   :  { %6424 = vmatprep.subr.bf16.mxu0 %v1736_v34 }
 0xa0d   :  { %6425 = vmatpush3.bf16.msra.mxu0 %v1728_v10 }
 0xa0e   :  { %6426 = vmatprep.subr.bf16.mxu0 %v1735_v23 }
 0xa11   :  { %6427 = vmatpush3.bf16.msra.mxu0 %v1727_v36 }
 0xa12   :  { %6428 = vmatprep.subr.bf16.mxu0 %v1734_v45 }
 0xa15   :  { %6429 = vmatpush3.bf16.msra.mxu0 %v1726_v33 }
 0xa16   :  { %6430 = vmatprep.subr.bf16.mxu0 %v1733_v1 }
 0xa19   :  { %6431 = vmatpush3.bf16.msra.mxu0 %v1725_v37 }
 0xa1a   :  { %6958 = vmatprep.subr.bf16.mxu0 %v11135_v9 }
 0xab5   :  { %v1570_v6 = vpop.f32.mrf.mxu1 }
 0xab6   :  { %v8977_v26 = vadd.f32 %v1570_v6, %v1520_v50 }
 0xab7   :  { %v1572_v41 = vpop.f32.mrf.mxu1 }
 0xab8   :  { %v1607_v58 = vmul.f32 0.044715, %v8977_v26  ;;  %v8980_v32 = vadd.f32 %v1572_v41, %v1524_v13 }
 0xab9   :  { %v1574_v21 = vpop.f32.mrf.mxu1 }
 0xaba   :  { %v1617_v18 = vmul.f32 %v1607_v58, %v8977_v26  ;;  %v1608_v55 = vmul.f32 0.044715, %v8980_v32  ;;  %v8984_v31 = vadd.f32 %v1574_v21, %v1520_v50 }
 0xabb   :  { %v1576_v59 = vpop.f32.mrf.mxu1 }
 0xabc   :  { %v1627_v40 = vmul.f32 %v1617_v18, %v8977_v26  ;;  %v1618_v29 = vmul.f32 %v1608_v55, %v8980_v32  ;;  %v1609_v43 = vmul.f32 0.044715, %v8984_v31  ;;  %v8989_v54 = vadd.f32 %v1576_v59, %v1524_v13 }
 0xabd   :  { %v1580_v60 = vpop.f32.mrf.mxu1 }
 0xabe   :  { %v1637_v14 = vadd.f32 %v1627_v40, %v8977_v26  ;;  %v1628_v57 = vmul.f32 %v1618_v29, %v8980_v32  ;;  %v1619_v38 = vmul.f32 %v1609_v43, %v8984_v31  ;;  %v8994_v17 = vadd.f32 %v1580_v60, %v1520_v50 }
 0xabf   :  { %v1610_v24 = vmul.f32 0.044715, %v8989_v54  ;;  %v1582_v2 = vpop.f32.mrf.mxu1 }
 0xac0   :  { %v1647_v39 = vmul.f32 0.7978846, %v1637_v14  ;;  %v1629_v4 = vmul.f32 %v1619_v38, %v8984_v31  ;;  %v1611_v15 = vmul.f32 0.044715, %v8994_v17  ;;  %v8999_v34 = vadd.f32 %v1582_v2, %v1524_v13 }
 0xac1   :  { %v1620_v3 = vmul.f32 %v1610_v24, %v8989_v54  ;;  %v1584_v11 = vpop.f32.mrf.mxu1  ;;  %v1638_v16 = vadd.f32 %v1628_v57, %v8980_v32 }
 0xac2   :  { %v1639_v10 = vadd.f32 %v1629_v4, %v8984_v31  ;;  %v1621_v23 = vmul.f32 %v1611_v15, %v8994_v17  ;;  %v1612_v44 = vmul.f32 0.044715, %v8999_v34  ;;  %7553 = vtanh.f32 %v1647_v39 }
 0xac3   :  { %v1630_v7 = vmul.f32 %v1620_v3, %v8989_v54  ;;  %v9007_v28 = vadd.f32 %v1584_v11, %v1520_v50  ;;  %v1586_v35 = vpop.f32.mrf.mxu1  ;;  %v1648_v36 = vmul.f32 0.7978846, %v1638_v16 }
 0xac4   :  { %v1649_v45 = vmul.f32 0.7978846, %v1639_v10  ;;  %v1631_v19 = vmul.f32 %v1621_v23, %v8994_v17  ;;  %v1622_v47 = vmul.f32 %v1612_v44, %v8999_v34  ;;  %v9011_v51 = vadd.f32 %v1586_v35, %v1524_v13 }
 0xac5   :  { %v1613_v53 = vmul.f32 0.044715, %v9007_v28  ;;  %v1590_v33 = vpop.f32.mrf.mxu1  ;;  %v1640_v1 = vadd.f32 %v1630_v7, %v8989_v54  ;;  %7555 = vtanh.f32 %v1648_v36 }
 0xac6   :  { %7557 = vtanh.f32 %v1649_v45  ;;  %v1632_v56 = vmul.f32 %v1622_v47, %v8999_v34  ;;  %v1614_v42 = vmul.f32 0.044715, %v9011_v51  ;;  %v9017_v37 = vadd.f32 %v1590_v33, %v1520_v50 }
 0xac7   :  { %v1623_v12 = vmul.f32 %v1613_v53, %v9007_v28  ;;  %v1592_v6 = vpop.f32.mrf.mxu1  ;;  %v1650_v41 = vmul.f32 0.7978846, %v1640_v1  ;;  %v1641_v58 = vadd.f32 %v1631_v19, %v8994_v17  ;;  %v1599_v47 = vmul.f32 0.5, %v8984_v31 }
 0xac8   :  { %v1624_v21 = vmul.f32 %v1614_v42, %v9011_v51  ;;  %v1615_v18 = vmul.f32 0.044715, %v9017_v37  ;;  %v9023_v55 = vadd.f32 %v1592_v6, %v1524_v13  ;;  %v1642_v59 = vadd.f32 %v1632_v56, %v8999_v34 }
 0xac9   :  { %v1633_v40 = vmul.f32 %v1623_v12, %v9007_v28  ;;  %v1594_v29 = vpop.f32.mrf.mxu1  ;;  %7559 = vtanh.f32 %v1650_v41  ;;  %v1651_v50 = vmul.f32 0.7978846, %v1641_v58  ;;  %v1598_v33 = vmul.f32 0.5, %v8980_v32 }
 0xaca   :  { %v1634_v43 = vmul.f32 %v1624_v21, %v9011_v51  ;;  %v1625_v60 = vmul.f32 %v1615_v18, %v9017_v37  ;;  %v1616_v14 = vmul.f32 0.044715, %v9023_v55  ;;  %v1652_v57 = vmul.f32 0.7978846, %v1642_v59 }
 0xacb   :  { %v1595_v38 = vpop.f32.mrf.mxu1  ;;  %v1643_v24 = vadd.f32 %v1633_v40, %v9007_v28  ;;  %v1600_v1 = vmul.f32 0.5, %v8989_v54  ;;  %v1597_v42 = vmul.f32 0.5, %v8977_v26  ;;  %v1602_v31 = vmul.f32 0.5, %v8999_v34 }
 0xacc   :  { %v1626_v13 = vmul.f32 %v1616_v14, %v9023_v55  ;;  %v1644_v2 = vadd.f32 %v1634_v43, %v9011_v51  ;;  %7561 = vtanh.f32 %v1652_v57  ;;  %v1635_v39 = vmul.f32 %v1625_v60, %v9017_v37 }
 0xacd   :  { %v1653_v4 = vmul.f32 0.7978846, %v1643_v24  ;;  %7563 = vtanh.f32 %v1651_v50  ;;  %v1604_v54 = vmul.f32 0.5, %v9011_v51  ;;  %v1603_v26 = vmul.f32 0.5, %v9007_v28 }
 0xace   :  { %v1654_v15 = vmul.f32 0.7978846, %v1644_v2  ;;  %v1636_v3 = vmul.f32 %v1626_v13, %v9023_v55  ;;  %v1645_v11 = vadd.f32 %v1635_v39, %v9017_v37  ;;  %v1601_v13 = vmul.f32 0.5, %v8994_v17 }
 0xacf   :  { %7565 = vtanh.f32 %v1653_v4  ;;  %v7554_v16 = vpop.eup %7553  ;;  %v1605_v28 = vmul.f32 0.5, %v9017_v37 }
 0xad0   :  { %7567 = vtanh.f32 %v1654_v15  ;;  %v1646_v10 = vadd.f32 %v1636_v3, %v9023_v55  ;;  %v1655_v23 = vmul.f32 0.7978846, %v1645_v11  ;;  %v1667_v53 = vadd.f32 1.0, %v7554_v16 }
 0xad1   :  { %v1606_v3 = vmul.f32 0.5, %v9023_v55 }
 0xad2   :  { %v7556_v44 = vpop.eup %7555  ;;  %v1656_v7 = vmul.f32 0.7978846, %v1646_v10  ;;  %7569 = vtanh.f32 %v1655_v23  ;;  %v1677_v21 = vmul.f32 %v1667_v53, %v1597_v42 }
 0xad3   :  { %v7558_v35 = vpop.eup %7557  ;;  %v1668_v45 = vadd.f32 1.0, %v7556_v44 }
 0xad4   :  { %v1669_v36 = vadd.f32 1.0, %v7558_v35  ;;  %7571 = vtanh.f32 %v1656_v7 }
 0xad5   :  { %v1678_v41 = vmul.f32 %v1668_v45, %v1598_v33 }
 0xad6   :  { %v7560_v19 = vpop.eup %7559  ;;  %v1679_v12 = vmul.f32 %v1669_v36, %v1599_v47  ;;  %v6247_v36 = vld [vmem:[%s11101_s5 + $0x260] ss:$0 sm:$0xff] }
 0xad7   :  { %v1670_v56 = vadd.f32 1.0, %v7560_v19 }
 0xad8   :  { %v1719_v29 = vpack.c.bf16 %v1679_v12, %v1677_v21 }
 0xad9   :  { %v7562_v6 = vpop.eup %7561  ;;  %v1680_v58 = vmul.f32 %v1670_v56, %v1600_v1 }
 0xada   :  { %v7564_v18 = vpop.eup %7563  ;;  %v1672_v50 = vadd.f32 1.0, %v7562_v6 }
 0xadb   :  { %v1720_v59 = vpack.c.bf16 %v1680_v58, %v1678_v41  ;;  %v1671_v14 = vadd.f32 1.0, %v7564_v18 }
 0xadc   :  { %v7566_v40 = vpop.eup %7565  ;;  %v1682_v38 = vmul.f32 %v1672_v50, %v1602_v31 }
 0xadd   :  { %v7568_v43 = vpop.eup %7567  ;;  %1773 = vmatprep.mubr.bf16.mxu0 %v1720_v59  ;;  %v1673_v32 = vadd.f32 1.0, %v7566_v40  ;;  %v1681_v15 = vmul.f32 %v1671_v14, %v1601_v13 }
 0xade   :  { %1774 = vmatmul.mubr.bf16.vlgmr.msra.gmra.mxu0 %v1719_v29  ;;  %v1674_v60 = vadd.f32 1.0, %v7568_v43 }
 0xadf   :  { %v7570_v57 = vpop.eup %7569  ;;  %v1683_v2 = vmul.f32 %v1673_v32, %v1603_v26 }
 0xae0   :  { %v1684_v24 = vmul.f32 %v1674_v60, %v1604_v54  ;;  %v1675_v51 = vadd.f32 1.0, %v7570_v57 }
 0xae1   :  { %v7572_v39 = vpop.eup %7571  ;;  %v1721_v11 = vpack.c.bf16 %v1683_v2, %v1681_v15 }
 0xae2   :  { %v1722_v4 = vpack.c.bf16 %v1684_v24, %v1682_v38  ;;  %v1676_v34 = vadd.f32 1.0, %v7572_v39  ;;  %v1685_v23 = vmul.f32 %v1675_v51, %v1605_v28 }
 0xae4   :  { %1781 = vmatprep.mubr.bf16.mxu0 %v1722_v4  ;;  %v1686_v16 = vmul.f32 %v1676_v34, %v1606_v3  ;;  %v1723_v44 = vpack.c.bf16 %v1685_v23, %v1685_v23 }
 0xae6   :  { %1782 = vmatmul.mubr.bf16.gmra.mxu0 %v1721_v11  ;;  %v1724_v10 = vpack.c.bf16 %v1686_v16, %v1686_v16 }
 0xae8   :  { %1789 = vmatprep.mubr.bf16.mxu0 %v1724_v10 }
 0xaee   :  { %1790 = vmatmul.mubr.bf16.gmra.mxu0 %v1723_v44 }
 0xaef   :  { %6966 = vmatprep.mubr.msk.bf16.mxu0 %vm7845_vm0, %v11135_v9 }
 0xb9e   :  { %v6432_v17 = vpop.f32.mrf.mxu0 }
 0xba0   :  { %v6433_v7 = vpop.f32.mrf.mxu0 }
 0xba1   :  { %v6434_v35 = vadd.f32 %v6433_v7, %v6432_v17 }
 0xba2   :  { %v6435_v55 = vpop.f32.mrf.mxu0 }
 0xba3   :  { %v1797_v45 = vadd.f32 %v6434_v35, %v8749_v8 }
 0xba4   :  { %v6436_v19 = vpop.f32.mrf.mxu0 }
 0xba5   :  { %v6437_v47 = vadd.f32 %v6436_v19, %v6435_v55  ;;  %v9053_v37 = vadd.f32 %v6247_v36, %v1797_v45  ;;  %v1902_v45 = vld [vmem:[%s11101_s5 + $0x298] sm:$0xff]  ;;  %v1903_v19 = vld [vmem:[%s11101_s5 + $0x2a0] sm:$0xff] }
 0xba6   :  { %v6438_v53 = vpop.f32.mrf.mxu0 }
 0xba7   :  { %v1798_v33 = vadd.f32 %v6437_v47, %v8754_v5  ;;  %v1813_v1 = vsel %vm148_vm2, %v9053_v37, 0.0  ;;  %v2058_v47 = vld [vmem:[%s11101_s5 + $0x318] sm:$0xff] }
 0xba8   :  { %v6439_v56 = vpop.f32.mrf.mxu0  ;;  %1814 = vadd.xlane.f32.xlu0 %v1813_v1 }
 0xba9   :  { %v9058_v42 = vadd.f32 %v6247_v36, %v1798_v33  ;;  %v6440_v12 = vadd.f32 %v6439_v56, %v6438_v53  ;;  %v1910_v53 = vpack.c.bf16 %v1903_v19, %v1902_v45  ;;  %v2059_v33 = vld [vmem:[%s11101_s5 + $0x320] sm:$0xff]  ;;  %v1900_v56 = vld [vmem:[%s11101_s5 + $0x288] sm:$0xff] }
 0xbaa   :  { %v6441_v6 = vpop.f32.mrf.mxu0  ;;  %v2063_v1 = vpack.c.bf16 %v2059_v33, %v2058_v47 }
 0xbab   :  { %v1799_v41 = vadd.f32 %v6440_v12, %v8759_v20  ;;  %v1816_v8 = vsel %vm148_vm2, %v9058_v42, 0.0  ;;  %6919 = vmatpush3.bf16.msra.mxu1 %v1910_v53  ;;  %v1901_v12 = vld [vmem:[%s11101_s5 + $0x290] sm:$0xff] }
 0xbac   :  { %v6442_v58 = vpop.f32.mrf.mxu0  ;;  %1817 = vadd.xlane.f32.xlu1 %v1816_v8  ;;  %6959 = vmatpush3.bf16.msra.mxu0 %v2063_v1  ;;  %v2057_v8 = vld [vmem:[%s11101_s5 + $0x310] sm:$0xff] }
 0xbad   :  { %v6443_v21 = vadd.f32 %v6442_v58, %v6441_v6  ;;  %v9063_v18 = vadd.f32 %v6247_v36, %v1799_v41  ;;  %6920 = vmatprep.subr.bf16.mxu1 %v11135_v9  ;;  %v2056_v6 = vld [vmem:[%s11101_s5 + $0x308] sm:$0xff]  ;;  %6960 = vmatprep.subr.bf16.mxu0 %v11135_v9  ;;  %v1909_v41 = vpack.c.bf16 %v1901_v12, %v1900_v56  ;;  %v1986_v56 = vld [vmem:[%s11101_s5 + $0x2d8] sm:$0xff]  ;;  %v1987_v12 = vld [vmem:[%s11101_s5 + $0x2e0] sm:$0xff] }
 0xbae   :  { %v6444_v5 = vpop.f32.mrf.mxu0  ;;  %v2062_v58 = vpack.c.bf16 %v2057_v8, %v2056_v6 }
 0xbaf   :  { %v1800_v59 = vadd.f32 %v6443_v21, %v8764_v25  ;;  %v1819_v40 = vsel %vm148_vm2, %v9063_v18, 0.0  ;;  %6921 = vmatpush3.bf16.msra.mxu1 %v1909_v41  ;;  %v1898_v21 = vld [vmem:[%s11101_s5 + $0x278] sm:$0xff] }
 0xbb0   :  { %v6445_v29 = vpop.f32.mrf.mxu0  ;;  %1820 = vadd.xlane.f32.xlu0 %v1819_v40  ;;  %6961 = vmatpush3.bf16.msra.mxu0 %v2062_v58  ;;  %v1991_v58 = vpack.c.bf16 %v1987_v12, %v1986_v56 }
 0xbb1   :  { %v9068_v50 = vadd.f32 %v6247_v36, %v1800_v59  ;;  %v6446_v43 = vadd.f32 %v6445_v29, %v6444_v5  ;;  %6922 = vmatprep.subr.bf16.mxu1 %v11135_v9  ;;  %v1899_v5 = vld [vmem:[%s11101_s5 + $0x280] sm:$0xff]  ;;  %v2054_v59 = vld [vmem:[%s11101_s5 + $0x2f8] sm:$0xff]  ;;  %6962 = vmatprep.subr.bf16.mxu0 %v11135_v9 }
 0xbb2   :  { %v6447_v20 = vpop.f32.mrf.mxu0  ;;  %v1908_v40 = vpack.c.bf16 %v1899_v5, %v1898_v21  ;;  %v2055_v29 = vld [vmem:[%s11101_s5 + $0x300] sm:$0xff]  ;;  %v1984_v21 = vld [vmem:[%s11101_s5 + $0x2c8] sm:$0xff]  ;;  %v1985_v5 = vld [vmem:[%s11101_s5 + $0x2d0] sm:$0xff] }
 0xbb3   :  { %v1801_v31 = vadd.f32 %v6446_v43, %v8769_v30  ;;  %v1822_v32 = vsel %vm148_vm2, %v9068_v50, 0.0  ;;  %v2061_v43 = vpack.c.bf16 %v2055_v29, %v2054_v59  ;;  %v1896_v20 = vld [vmem:[%s11101_s5 + $0x268] sm:$0xff]  ;;  %v1990_v29 = vpack.c.bf16 %v1985_v5, %v1984_v21 }
 0xbb4   :  { %v6448_v54 = vpop.f32.mrf.mxu0  ;;  %1823 = vadd.xlane.f32.xlu1 %v1822_v32  ;;  %v2052_v32 = vld [vmem:[%s11101_s5 + $0x2e8] sm:$0xff]  ;;  %6923 = vmatpush3.bf16.msra.mxu1 %v1908_v40 }
 0xbb5   :  { %v9073_v60 = vadd.f32 %v6247_v36, %v1801_v31  ;;  %v1897_v31 = vld [vmem:[%s11101_s5 + $0x270] sm:$0xff]  ;;  %6963 = vmatpush3.bf16.msra.mxu0 %v2061_v43  ;;  %6924 = vmatprep.subr.bf16.mxu1 %v11135_v9 }
 0xbb6   :  { %v1907_v54 = vpack.c.bf16 %v1897_v31, %v1896_v20  ;;  %6964 = vmatprep.subr.bf16.mxu0 %v11135_v9  ;;  %v1982_v20 = vld [vmem:[%s11101_s5 + $0x2b8] sm:$0xff] }
 0xbb7   :  { %v1825_v25 = vsel %vm161_vm3, %v9073_v60, 0.0 }
 0xbb8   :  { %1826 = vadd.xlane.f32.xlu0 %v1825_v25  ;;  %v2053_v25 = vld [vmem:[%s11101_s5 + $0x2f0] sm:$0xff]  ;;  %6925 = vmatpush3.bf16.msra.mxu1 %v1907_v54 }
 0xbb9   :  { %6938 = vmatprep.subr.bf16.mxu1 %v11135_v9 }
 0xc31   :  { %v1815_v26 = vpop.xlane.xlu0 %1814 }
 0xc32   :  { %v1828_v14 = vmul.f32 0.015625, %v1815_v26  ;;  %v2060_v26 = vpack.c.bf16 %v2053_v25, %v2052_v32 }
 0xc34   :  { %v9078_v57 = vsub.f32 %v9053_v37, %v1828_v14  ;;  %6965 = vmatpush3.bf16.msra.mxu0 %v2060_v26 }
 0xc35   :  { %v1818_v38 = vpop.xlane.xlu1 %1817  ;;  %6996 = vmatprep.subr.bf16.mxu0 %v11135_v9 }
 0xc36   :  { %v1829_v24 = vmul.f32 0.015625, %v1818_v38  ;;  %v1838_v30 = vmul.f32 %v9078_v57, %v9078_v57 }
 0xc38   :  { %v9083_v13 = vsub.f32 %v9058_v42, %v1829_v24  ;;  %v1843_v2 = vsel %vm148_vm2, %v1838_v30, 0.0 }
 0xc39   :  { %1844 = vadd.xlane.f32.xlu1 %v1843_v2  ;;  %v1821_v39 = vpop.xlane.xlu0 %1820 }
 0xc3a   :  { %v1830_v4 = vmul.f32 0.015625, %v1821_v39  ;;  %v1839_v15 = vmul.f32 %v9083_v13, %v9083_v13 }
 0xc3c   :  { %v9089_v3 = vsub.f32 %v9063_v18, %v1830_v4  ;;  %v1846_v34 = vsel %vm148_vm2, %v1839_v15, 0.0 }
 0xc3d   :  { %v1824_v11 = vpop.xlane.xlu1 %1823  ;;  %1847 = vadd.xlane.f32.xlu0 %v1846_v34 }
 0xc3e   :  { %v1831_v16 = vmul.f32 0.015625, %v1824_v11  ;;  %v1840_v51 = vmul.f32 %v9089_v3, %v9089_v3 }
 0xc40   :  { %v9095_v10 = vsub.f32 %v9068_v50, %v1831_v16  ;;  %v1849_v28 = vsel %vm148_vm2, %v1840_v51, 0.0 }
 0xc41   :  { %1850 = vadd.xlane.f32.xlu1 %v1849_v28  ;;  %v1827_v23 = vpop.xlane.xlu0 %1826  ;;  %v9166_v28 = vld [vmem:[%s11101_s5 + $0x468] sm:$0xff] }
 0xc42   :  { %v1832_v44 = vmul.f32 0.015625, %v1827_v23  ;;  %v1841_v17 = vmul.f32 %v9095_v10, %v9095_v10  ;;  %v1890_v53 = vrot.slane %v9166_v28, %v8079_v62 }
 0xc44   :  { %v9101_v7 = vsub.f32 %v9073_v60, %v1832_v44  ;;  %v1852_v35 = vsel %vm148_vm2, %v1841_v17, 0.0 }
 0xc45   :  { %1853 = vadd.xlane.f32.xlu0 %v1852_v35  ;;  %v1881_v35 = vrot.slane %v9166_v28, %v8068_v52 }
 0xc46   :  { %v1842_v55 = vmul.f32 %v9101_v7, %v9101_v7 }
 0xc48   :  { %v1855_v36 = vsel %vm161_vm3, %v1842_v55, 0.0 }
 0xc49   :  { %1856 = vadd.xlane.f32.xlu1 %v1855_v36 }
 0xcc2   :  { %v1845_v14 = vpop.xlane.xlu1 %1844 }
 0xcc3   :  { %v1858_v38 = vmul.f32 0.015625, %v1845_v14 }
 0xcc5   :  { %v1863_v24 = vadd.f32 1e-06, %v1858_v38  ;;  %v1980_v38 = vld [vmem:[%s11101_s5 + $0x2a8] sm:$0xff] }
 0xcc6   :  { %v1848_v30 = vpop.xlane.xlu0 %1847 }
 0xcc7   :  { %7573 = vrsqrt.f32 %v1863_v24  ;;  %v1859_v2 = vmul.f32 0.015625, %v1848_v30  ;;  %v1981_v24 = vld [vmem:[%s11101_s5 + $0x2b0] sm:$0xff] }
 0xcc8   :  { %v1988_v30 = vpack.c.bf16 %v1981_v24, %v1980_v38 }
 0xcc9   :  { %v1864_v39 = vadd.f32 1e-06, %v1859_v2 }
 0xcca   :  { %v1851_v4 = vpop.xlane.xlu1 %1850 }
 0xccb   :  { %7575 = vrsqrt.f32 %v1864_v39  ;;  %v1860_v15 = vmul.f32 0.015625, %v1851_v4  ;;  %v9234_v39 = vrot.slane %v9166_v28, %v8232_v27 }
 0xccd   :  { %v1865_v34 = vadd.f32 1e-06, %v1860_v15 }
 0xcce   :  { %v1854_v11 = vpop.xlane.xlu0 %1853 }
 0xccf   :  { %7577 = vrsqrt.f32 %v1865_v34  ;;  %v1861_v16 = vmul.f32 0.015625, %v1854_v11 }
 0xcd1   :  { %v1866_v51 = vadd.f32 1e-06, %v1861_v16 }
 0xcd2   :  { %v1857_v23 = vpop.xlane.xlu1 %1856 }
 0xcd3   :  { %7579 = vrsqrt.f32 %v1866_v51  ;;  %v1862_v44 = vmul.f32 0.015625, %v1857_v23 }
 0xcd4   :  { %v7574_v17 = vpop.eup %7573 }
 0xcd5   :  { %v1873_v55 = vmul.f32 %v7574_v17, %v9078_v57  ;;  %v1867_v36 = vadd.f32 1e-06, %v1862_v44  ;;  %v11144_v17 = vld [vmem:[#allocation10_spill] sm:$0xff] }
 0xcd7   :  { %7581 = vrsqrt.f32 %v1867_v36  ;;  %v1882_v19 = vmul.f32 %v1881_v35, %v1873_v55 }
 0xcd8   :  { %v7576_v45 = vpop.eup %7575 }
 0xcd9   :  { %v1874_v47 = vmul.f32 %v7576_v45, %v9083_v13  ;;  %v1891_v57 = vadd.f32 %v1890_v53, %v1882_v19  ;;  %v11145_v45 = vld [vmem:[#allocation11_spill] sm:$0xff] }
 0xcdb   :  { %v1883_v33 = vmul.f32 %v1881_v35, %v1874_v47 }
 0xcdc   :  { %v7578_v1 = vpop.eup %7577 }
 0xcdd   :  { %v1892_v6 = vadd.f32 %v1890_v53, %v1883_v33  ;;  %v1875_v41 = vmul.f32 %v7578_v1, %v9089_v3 }
 0xcdf   :  { %v1904_v8 = vpack.c.bf16 %v1892_v6, %v1891_v57  ;;  %v1884_v40 = vmul.f32 %v1881_v35, %v1875_v41 }
 0xce0   :  { %v7580_v13 = vpop.eup %7579 }
 0xce1   :  { %6927 = vmatmul.mubr.msk.bf16.vlgmr.msra.gmra.mxu1 %vm148_vm2, %v1904_v8  ;;  %6967 = vmatmul.mubr.msk.bf16.vlgmr.msra.gmra.mxu0 %vm148_vm2, %v1904_v8  ;;  %v1876_v59 = vmul.f32 %v7580_v13, %v9095_v10  ;;  %v1983_v10 = vld [vmem:[%s11101_s5 + $0x2c0] sm:$0xff]  ;;  %v1893_v31 = vadd.f32 %v1890_v53, %v1884_v40 }
 0xce2   :  { %6930 = vmatprep.mubr.msk.bf16.mxu1 %vm7845_vm0, %v11135_v9  ;;  %6970 = vmatprep.mubr.msk.bf16.mxu0 %vm7845_vm0, %v11135_v9  ;;  %v1989_v14 = vpack.c.bf16 %v1983_v10, %v1982_v20 }
 0xce3   :  { %v1885_v3 = vmul.f32 %v1881_v35, %v1876_v59  ;;  %6939 = vmatpush3.bf16.msra.mxu1 %v1991_v58 }
 0xce4   :  { %v7582_v43 = vpop.eup %7581  ;;  %6940 = vmatprep.subr.bf16.mxu1 %v11135_v9 }
 0xce5   :  { %v1894_v32 = vadd.f32 %v1890_v53, %v1885_v3  ;;  %v1877_v54 = vmul.f32 %v7582_v43, %v9101_v7 }
 0xce7   :  { %v1905_v25 = vpack.c.bf16 %v1894_v32, %v1893_v31  ;;  %6941 = vmatpush3.bf16.msra.mxu1 %v1990_v29  ;;  %v1886_v26 = vmul.f32 %v1881_v35, %v1877_v54 }
 0xce8   :  { %6942 = vmatprep.subr.bf16.mxu1 %v11135_v9 }
 0xce9   :  { %6931 = vmatmul.mubr.msk.bf16.gmra.mxu1 %vm148_vm2, %v1905_v25  ;;  %6971 = vmatmul.mubr.msk.bf16.gmra.mxu0 %vm148_vm2, %v1905_v25  ;;  %v1895_v7 = vadd.f32 %v1890_v53, %v1886_v26 }
 0xcea   :  { %6934 = vmatprep.mubr.msk.bf16.mxu1 %vm7845_vm0, %v11135_v9  ;;  %6974 = vmatprep.mubr.msk.bf16.mxu0 %vm7845_vm0, %v11135_v9 }
 0xceb   :  { %6943 = vmatpush3.bf16.msra.mxu1 %v1989_v14  ;;  %v1906_v2 = vpack.c.bf16 %v1895_v7, %v1895_v7 }
 0xcec   :  { %6944 = vmatprep.subr.bf16.mxu1 %v11135_v9 }
 0xcef   :  { %6945 = vmatpush3.bf16.msra.mxu1 %v1988_v30 }
 0xcf0   :  { %6978 = vmatprep.subr.bf16.mxu1 %v11135_v9 }
 0xcf1   :  { %6935 = vmatmul.mubr.msk.bf16.gmra.mxu1 %vm148_vm2, %v1906_v2  ;;  %6975 = vmatmul.mubr.msk.bf16.gmra.mxu0 %vm148_vm2, %v1906_v2 }
 0xcf2   :  { %6946 = vmatprep.mubr.msk.bf16.mxu1 %vm7845_vm0, %v11135_v9  ;;  %7002 = vmatprep.mubr.msk.bf16.mxu0 %vm7845_vm0, %v11135_v9 }
 0xcf9   :  { %6947 = vmatmul.mubr.msk.bf16.vlgmr.msra.gmra.mxu1 %vm148_vm2, %v1904_v8 }
 0xcfa   :  { %6950 = vmatprep.mubr.msk.bf16.mxu1 %vm7845_vm0, %v11135_v9 }
 0xd01   :  { %6951 = vmatmul.mubr.msk.bf16.gmra.mxu1 %vm148_vm2, %v1905_v25 }
 0xd02   :  { %6954 = vmatprep.mubr.msk.bf16.mxu1 %vm7845_vm0, %v11135_v9 }
 0xd09   :  { %6955 = vmatmul.mubr.msk.bf16.gmra.mxu1 %vm148_vm2, %v1906_v2 }
 0xd0a   :  { %6984 = vmatprep.mubr.msk.bf16.mxu1 %vm7845_vm0, %v11135_v9 }
 0xda1   :  { %v9236_v4 = vpop.f32.mrf.mxu1  ;;  %v2102_v15 = vpop.f32.mrf.mxu0 }
 0xda2   :  { %v2103_v34 = vadd.f32 %v2102_v15, %v9234_v39 }
 0xda3   :  { %v6928_v11 = vpop.f32.mrf.mxu1  ;;  %v6968_v16 = vpop.f32.mrf.mxu0 }
 0xda4   :  { %v9243_v35 = vmul.f32 %v11144_v17, %v2103_v34  ;;  %v9246_v19 = vmul.f32 %v11145_v45, %v2103_v34  ;;  %v9258_v1 = vmul.f32 %v8163_v48, %v2103_v34  ;;  %v9261_v56 = vmul.f32 %v8166_v49, %v2103_v34  ;;  %v11146_v11 = vld [vmem:[#allocation9_spill] sm:$0xff] }
 0xda5   :  { %v9239_v51 = vpop.f32.mrf.mxu1  ;;  %v2105_v23 = vpop.f32.mrf.mxu0  ;;  %v1995_v16 = vrot.slane %v9166_v28, %v11146_v11 }
 0xda6   :  { %v2106_v44 = vadd.f32 %v2105_v23, %v9234_v39 }
 0xda7   :  { %v6929_v55 = vpop.f32.mrf.mxu1  ;;  %v6969_v36 = vpop.f32.mrf.mxu0 }
 0xda8   :  { %v9249_v47 = vmul.f32 %v11144_v17, %v2106_v44  ;;  %v9252_v53 = vmul.f32 %v11145_v45, %v2106_v44  ;;  %v9255_v33 = vmul.f32 %v8163_v48, %v2106_v44  ;;  %v9264_v12 = vmul.f32 %v8166_v49, %v2106_v44 }
 0xda9   :  { %v9266_v57 = vpop.f32.mrf.mxu1  ;;  %v2110_v6 = vpop.f32.mrf.mxu0 }
 0xdaa   :  { %v9277_v59 = vadd.f32 %v2110_v6, %v9234_v39 }
 0xdab   :  { %v6932_v58 = vpop.f32.mrf.mxu1  ;;  %v6972_v13 = vpop.f32.mrf.mxu0 }
 0xdac   :  { %v9290_v31 = vmul.f32 %v8163_v48, %v9277_v59  ;;  %v9294_v32 = vmul.f32 %v8166_v49, %v9277_v59 }
 0xdad   :  { %v9279_v40 = vpop.f32.mrf.mxu1  ;;  %v2113_v3 = vpop.f32.mrf.mxu0 }
 0xdae   :  { %v9282_v29 = vadd.f32 %v2113_v3, %v9234_v39 }
 0xdaf   :  { %v6933_v43 = vpop.f32.mrf.mxu1  ;;  %v6973_v20 = vpop.f32.mrf.mxu0 }
 0xdb0   :  { %v9286_v10 = vmul.f32 %v8163_v48, %v9282_v29  ;;  %v9298_v54 = vmul.f32 %v8166_v49, %v9282_v29 }
 0xdb1   :  { %v9300_v25 = vpop.f32.mrf.mxu1  ;;  %v9302_v26 = vpop.f32.mrf.mxu0 }
 0xdb3   :  { %v6936_v14 = vpop.f32.mrf.mxu1  ;;  %v6976_v38 = vpop.f32.mrf.mxu0 }
 0xdb5   :  { %v1977_v30 = vpop.f32.mrf.mxu1  ;;  %v2121_v2 = vpop.f32.mrf.mxu0 }
 0xdb7   :  { %v6937_v15 = vpop.f32.mrf.mxu1  ;;  %v6977_v34 = vpop.f32.mrf.mxu0 }
 0xdb9   :  { %v2030_v23 = vpop.f32.mrf.mxu1 }
 0xdba   :  { %v2031_v55 = vadd.f32 %v2030_v23, %v1995_v16 }
 0xdbb   :  { %v6948_v44 = vpop.f32.mrf.mxu1 }
 0xdbc   :  { %v9311_v13 = vmul.f32 %v8163_v48, %v2031_v55  ;;  %v9320_v14 = vmul.f32 %v8166_v49, %v2031_v55 }
 0xdbd   :  { %v2033_v36 = vpop.f32.mrf.mxu1 }
 0xdbe   :  { %v2034_v6 = vadd.f32 %v2033_v36, %v1995_v16 }
 0xdbf   :  { %v6949_v58 = vpop.f32.mrf.mxu1 }
 0xdc0   :  { %v9314_v3 = vmul.f32 %v8163_v48, %v2034_v6  ;;  %v9317_v43 = vmul.f32 %v8166_v49, %v2034_v6 }
 0xdc1   :  { %v2038_v20 = vpop.f32.mrf.mxu1 }
 0xdc2   :  { %v2039_v15 = vadd.f32 %v2038_v20, %v1995_v16 }
 0xdc3   :  { %v6952_v30 = vpop.f32.mrf.mxu1 }
 0xdc4   :  { %v9327_v36 = vmul.f32 %v8163_v48, %v2039_v15  ;;  %v9336_v7 = vmul.f32 %v8166_v49, %v2039_v15 }
 0xdc5   :  { %v2041_v34 = vpop.f32.mrf.mxu1 }
 0xdc6   :  { %v2042_v23 = vadd.f32 %v2041_v34, %v1995_v16 }
 0xdc7   :  { %v6953_v44 = vpop.f32.mrf.mxu1 }
 0xdc8   :  { %v9330_v58 = vmul.f32 %v8163_v48, %v2042_v23  ;;  %v9333_v61 = vmul.f32 %v8166_v49, %v2042_v23  ;;  %v2138_v20 = vmul.f32 %v11144_v17, %v2042_v23  ;;  %v2137_v44 = vmul.f32 %v11144_v17, %v2039_v15 }
 0xdc9   :  { %v2046_v5 = vpop.f32.mrf.mxu1 }
 0xdca   :  { %v9338_v30 = vadd.f32 %v2046_v5, %v1995_v16 }
 0xdcb   :  { %v6956_v34 = vpop.f32.mrf.mxu1 }
 0xdcc   :  { %v2139_v21 = vmul.f32 %v11144_v17, %v9338_v30  ;;  %v2287_v24 = vmul.f32 %v11145_v45, %v9338_v30  ;;  %v2286_v34 = vmul.f32 %v11145_v45, %v2042_v23  ;;  %v2284_v23 = vmul.f32 %v11145_v45, %v2034_v6 }
 0xdcd   :  { %v2049_v2 = vpop.f32.mrf.mxu1 }
 0xdce   :  { %v2142_v38 = vpack.c.bf16 %v2139_v21, %v2139_v21  ;;  %v2290_v8 = vpack.c.bf16 %v2287_v24, %v2287_v24  ;;  %v2285_v21 = vmul.f32 %v11145_v45, %v2039_v15  ;;  %v2141_v24 = vpack.c.bf16 %v2138_v20, %v2137_v44 }
 0xdcf   :  { %v6957_v41 = vpop.f32.mrf.mxu1  ;;  %v2136_v2 = vmul.f32 %v11144_v17, %v2034_v6  ;;  %v2283_v15 = vmul.f32 %v11145_v45, %v2031_v55  ;;  %v9366_v20 = vadd.f32 %v9302_v26, %v9234_v39 }
 0xdd0   :  { %v2159_v5 = vsel %vm148_vm2, %v2142_v38, 0  ;;  %v2298_v16 = vsel %vm148_vm2, %v2290_v8, 0  ;;  %v2289_v41 = vpack.c.bf16 %v2286_v34, %v2285_v21  ;;  %v2156_v38 = vsel %vm148_vm2, %v2141_v24, 0  ;;  %v11147_v34 = vld [vmem:[#allocation13_spill] sm:$0xff] }
 0xdd1   :  { %6979 = vmatpush3.bf16.xpose.msra.mxu1 %v2159_v5  ;;  %6997 = vmatpush3.bf16.xpose.msra.mxu0 %v2298_v16  ;;  %v2135_v5 = vmul.f32 %v11144_v17, %v2031_v55  ;;  %v2288_v16 = vpack.c.bf16 %v2284_v23, %v2283_v15  ;;  %v1914_v21 = vrot.slane %v9166_v28, %v11147_v34 }
 0xdd2   :  { %6980 = vmatprep.subr.bf16.mxu1 %v11135_v9  ;;  %6998 = vmatprep.subr.bf16.mxu0 %v11135_v9  ;;  %v2295_v8 = vsel %vm148_vm2, %v2289_v41, 0  ;;  %v2415_v41 = vmul.f32 %v11145_v45, %v9366_v20  ;;  %v2414_v23 = vmul.f32 %v11145_v45, %v9282_v29  ;;  %v2413_v15 = vmul.f32 %v11145_v45, %v9277_v59 }
 0xdd3   :  { %v2140_v44 = vpack.c.bf16 %v2136_v2, %v2135_v5  ;;  %v2292_v24 = vsel %vm148_vm2, %v2288_v16, 0  ;;  %v1962_v39 = vadd.f32 %v9239_v51, %v1914_v21  ;;  %v1959_v28 = vadd.f32 %v9236_v4, %v1914_v21 }
 0xdd4   :  { %v2421_v26 = vpack.c.bf16 %v2415_v41, %v2415_v41  ;;  %v2275_v2 = vmul.f32 %v11144_v17, %v9282_v29  ;;  %v2274_v5 = vmul.f32 %v11144_v17, %v9277_v59  ;;  %v1970_v29 = vadd.f32 %v9279_v40, %v1914_v21 }
 0xdd5   :  { %v2153_v6 = vsel %vm148_vm2, %v2140_v44, 0  ;;  %v2420_v44 = vpack.c.bf16 %v2414_v23, %v2413_v15  ;;  %v11148_v59 = vpack.c.bf16 %v9252_v53, %v9246_v19  ;;  %v1975_v40 = vadd.f32 %v9300_v25, %v1914_v21 }
 0xdd6   :  { %v2432_v51 = vsel %vm771_vm14, %v2421_v26, 0  ;;  %v2281_v16 = vpack.c.bf16 %v2275_v2, %v2274_v5 }
 0xdd9   :  { %6981 = vmatpush3.bf16.xpose.msra.mxu1 %v2156_v38  ;;  %6999 = vmatpush3.bf16.xpose.msra.mxu0 %v2295_v8  ;;  %v2276_v38 = vmul.f32 %v11144_v17, %v9366_v20  ;;  %v9380_v8 = vpack.c.bf16 %v1962_v39, %v1959_v28  ;;  %v1967_v17 = vadd.f32 %v9266_v57, %v1914_v21  ;;  %v9449_v39 = vld [vmem:[%s11098_s2 + $0x8] sm:$0xff] }
 0xdda   :  { %6982 = vmatprep.subr.bf16.mxu1 %v11135_v9  ;;  %7000 = vmatprep.subr.bf16.mxu0 %v11135_v9  ;;  %v11149_v57 = vpack.c.bf16 %v9249_v47, %v9243_v35  ;;  %v9440_v47 = vld [vmem:[%s11098_s2] sm:$0xff] }
 0xddb   :  { %v2282_v55 = vpack.c.bf16 %v2276_v38, %v2276_v38  ;;  %v9404_v45 = vpack.c.bf16 %v1970_v29, %v1967_v17 }
 0xddd   :  { %v2500_v4 = vsel %vm771_vm14, %v2282_v55, 0 }
 0xde1   :  { %6983 = vmatpush3.bf16.xpose.msra.mxu1 %v2153_v6  ;;  %7001 = vmatpush3.bf16.xpose.msra.mxu0 %v2292_v24  ;;  %v9425_v6 = vpack.c.bf16 %v1975_v40, %v1975_v40 }
 0xde2   :  { %7014 = vmatprep.subr.bf16.mxu1 %v11135_v9  ;;  %7032 = vmatprep.subr.bf16.mxu0 %v11135_v9 }
 0xde8   :  { %6985 = vmatmul.mubr.msk.bf16.vlgmr.msra.gmra.mxu1 %vm148_vm2, %v9380_v8  ;;  %7003 = vmatmul.mubr.msk.bf16.vlgmr.msra.gmra.mxu0 %vm148_vm2, %v9380_v8 }
 0xde9   :  { %7015 = vmatpush3.bf16.msra.mxu1 %v2432_v51  ;;  %7033 = vmatpush3.bf16.msra.mxu0 %v2500_v4  ;;  %v9458_v4 = vld [vmem:[%s11098_s2 + $0x10] sm:$0xff] }
 0xdea   :  { %7016 = vmatprep.subr.bf16.mxu1 %v11135_v9  ;;  %7034 = vmatprep.subr.bf16.mxu0 %v11135_v9 }
 0xdeb   :  { %6988 = vmatprep.mubr.msk.bf16.mxu1 %vm7845_vm0, %v11135_v9  ;;  %7006 = vmatprep.mubr.msk.bf16.mxu0 %vm7845_vm0, %v11135_v9 }
 0xded   :  { %7017 = vmatpush3.bf16.msra.mxu1 %v2420_v44  ;;  %7035 = vmatpush3.bf16.msra.mxu0 %v2281_v16 }
 0xdee   :  { %7018 = vmatprep.subr.bf16.mxu1 %v11135_v9  ;;  %7036 = vmatprep.subr.bf16.mxu0 %v11135_v9 }
 0xdf0   :  { %6989 = vmatmul.mubr.msk.bf16.gmra.mxu1 %vm148_vm2, %v9404_v45  ;;  %7007 = vmatmul.mubr.msk.bf16.gmra.mxu0 %vm148_vm2, %v9404_v45 }
 0xdf1   :  { %7019 = vmatpush3.bf16.msra.mxu1 %v11148_v59  ;;  %7037 = vmatpush3.bf16.msra.mxu0 %v11149_v57  ;;  %v9465_v59 = vld [vmem:[%s11098_s2 + $0x18] sm:$0xff] }
 0xdf2   :  { %6992 = vmatprep.mubr.msk.bf16.mxu1 %vm7845_vm0, %v11135_v9  ;;  %7010 = vmatprep.mubr.msk.bf16.mxu0 %vm7845_vm0, %v11135_v9 }
 0xdf3   :  { %7050 = vmatprep.subr.bf16.mxu1 %v11135_v9  ;;  %7068 = vmatprep.subr.bf16.mxu0 %v11135_v9 }
 0xdf8   :  { %6993 = vmatmul.mubr.msk.bf16.gmra.mxu1 %vm148_vm2, %v9425_v6  ;;  %7011 = vmatmul.mubr.msk.bf16.gmra.mxu0 %vm148_vm2, %v9425_v6 }
 0xdf9   :  { %7020 = vmatprep.mubr.msk.bf16.mxu1 %vm7845_vm0, %v11135_v9  ;;  %7038 = vmatprep.mubr.msk.bf16.mxu0 %vm7845_vm0, %v11135_v9 }
 0xea8   :  { %v9435_v35 = vpop.f32.mrf.mxu1  ;;  %v2334_v19 = vpop.f32.mrf.mxu0 }
 0xea9   :  { %v2335_v53 = vadd.f32 %v9440_v47, %v2334_v19 }
 0xeaa   :  { %v6986_v25 = vpop.f32.mrf.mxu1  ;;  %v7004_v21 = vpop.f32.mrf.mxu0 }
 0xeab   :  { %v2356_v24 = vsel %vm555_vm15, %v2335_v53, -inf }
 0xeac   :  { %2357 = vmax.xlane.f32.xlu0 %v2356_v24  ;;  %v9444_v41 = vpop.f32.mrf.mxu1  ;;  %v2337_v38 = vpop.f32.mrf.mxu0 }
 0xead   :  { %v2338_v28 = vadd.f32 %v9449_v39, %v2337_v38  ;;  %v9472_v38 = vld [vmem:[%s11098_s2 + $0x20] sm:$0x3]  ;;  %s7847_s2 = smov [#allocation2]  }
 0xeae   :  { %v6987_v26 = vpop.f32.mrf.mxu1  ;;  %v7005_v55 = vpop.f32.mrf.mxu0  ;;  %s6189_s22 = sshll.u32 %s7847_s2, 4  ;;  %s6190_s22 = int_to_ptr.vmem [resolvable:$true] %s6189_s22 }
 0xeaf   :  { %v2359_v2 = vsel %vm555_vm15, %v2338_v28, -inf  ;;  %s7822_s23 = scalar_lea.vmem %s6190_s22, 256  ;;  %p7827_p1 = scmp.lt.s32.totalorder %s6190_s22, %s6190_s22 }
 0xeb0   :  { %2360 = vmax.xlane.f32.xlu1 %v2359_v2  ;;  %v9453_v23 = vpop.f32.mrf.mxu1  ;;  %v2342_v51 = vpop.f32.mrf.mxu0  ;;  %p7823_p0 = scmp.ne.s32.totalorder %s6190_s22, %s7822_s23  ;;  %p7828_p2 = scmp.lt.s32.totalorder %s7822_s23, %s7822_s23 }
 0xeb1   :  { %v2343_v5 = vadd.f32 %v9458_v4, %v2342_v51 }
 0xeb2   :  { %v6990_v15 = vpop.f32.mrf.mxu1  ;;  %v7008_v29 = vpop.f32.mrf.mxu0  ;;  %p7829_p3 = por %p7828_p2, %p7827_p1 }
 0xeb3   :  { %v2362_v44 = vsel %vm555_vm15, %v2343_v5, -inf }
 0xeb4   :  { %2363 = vmax.xlane.f32.xlu0 %v2362_v44  ;;  %v2206_v16 = vpop.f32.mrf.mxu1  ;;  %v2345_v17 = vpop.f32.mrf.mxu0  ;;  %p7830_p4 = pnand %p7829_p3, %p7823_p0 }
 0xeb5   :  { %v2346_v57 = vadd.f32 %v9465_v59, %v2345_v17 }
 0xeb6   :  { %v6991_v40 = vpop.f32.mrf.mxu1  ;;  %v7009_v19 = vpop.f32.mrf.mxu0 }
 0xeb7   :  { %v2365_v25 = vsel %vm555_vm15, %v2346_v57, -inf }
 0xeb8   :  { %2366 = vmax.xlane.f32.xlu1 %v2365_v25  ;;  %v2211_v21 = vpop.f32.mrf.mxu1  ;;  %v2350_v24 = vpop.f32.mrf.mxu0 }
 0xeb9   :  { %v2351_v26 = vadd.f32 %v9472_v38, %v2350_v24 }
 0xeba   :  { %v6994_v55 = vpop.f32.mrf.mxu1  ;;  %v7012_v2 = vpop.f32.mrf.mxu0 }
 0xebb   :  { %v2368_v51 = vsel %vm568_vm1, %v2351_v26, -inf }
 0xebc   :  { %2369 = vmax.xlane.f32.xlu0 %v2368_v51  ;;  %v2214_v15 = vpop.f32.mrf.mxu1  ;;  %v2353_v29 = vpop.f32.mrf.mxu0 }
 0xebe   :  { %v6995_v44 = vpop.f32.mrf.mxu1  ;;  %v7013_v17 = vpop.f32.mrf.mxu0 }
 0xf35   :  { %v2358_v40 = vpop.xlane.xlu0 %2357 }
 0xf36   :  { %v2371_v19 = vsub.f32 %v2335_v53, %v2358_v40 }
 0xf38   :  { %v2376_v25 = vmul.f32 1.442695, %v2371_v19  ;;  %v9499_v19 = vadd.f32 %v9472_v38, %v2211_v21 }
 0xf39   :  { %v2361_v27 = vpop.xlane.xlu1 %2360 }
 0xf3a   :  { %7583 = vpow2.f32 %v2376_v25  ;;  %v2372_v11 = vsub.f32 %v2338_v28, %v2361_v27 }
 0xf3c   :  { %v2378_v34 = vmul.f32 1.442695, %v2372_v11 }
 0xf3d   :  { %v2364_v46 = vpop.xlane.xlu0 %2363 }
 0xf3e   :  { %7585 = vpow2.f32 %v2378_v34  ;;  %v2373_v62 = vsub.f32 %v2343_v5, %v2364_v46  ;;  %v9481_v34 = vadd.f32 %v9440_v47, %v9435_v35  ;;  %v9486_v5 = vadd.f32 %v9449_v39, %v9444_v41 }
 0xf3f   :  { %v9496_v35 = vadd.f32 %v9465_v59, %v2206_v16 }
 0xf40   :  { %v2380_v24 = vmul.f32 1.442695, %v2373_v62  ;;  %v2217_v40 = vsel %vm555_vm15, %v9481_v34, -inf  ;;  %v2220_v41 = vsel %vm555_vm15, %v9486_v5, -inf }
 0xf41   :  { %v2367_v55 = vpop.xlane.xlu1 %2366  ;;  %v2226_v25 = vsel %vm555_vm15, %v9496_v35, -inf }
 0xf42   :  { %7587 = vpow2.f32 %v2380_v24  ;;  %v2374_v2 = vsub.f32 %v2346_v57, %v2367_v55  ;;  %v9490_v57 = vadd.f32 %v9458_v4, %v9453_v23  ;;  %v2229_v24 = vsel %vm568_vm1, %v9499_v19, -inf }
 0xf44   :  { %v2382_v52 = vmul.f32 1.442695, %v2374_v2  ;;  %v2223_v23 = vsel %vm555_vm15, %v9490_v57, -inf }
 0xf45   :  { %v2370_v51 = vpop.xlane.xlu0 %2369 }
 0xf46   :  { %7589 = vpow2.f32 %v2382_v52  ;;  %v2375_v15 = vsub.f32 %v2351_v26, %v2370_v51  ;;  %v2562_v51 = vmul.f32 %v8163_v48, %v9338_v30 }
 0xf47   :  { %v7584_v29 = vpop.eup %7583 }
 0xf48   :  { %v2384_v44 = vmul.f32 1.442695, %v2375_v15  ;;  %v2386_v53 = vsel %vm555_vm15, %v7584_v29, 0.0 }
 0xf49   :  { %2387 = vadd.xlane.f32.xlu1 %v2386_v53 }
 0xf4a   :  { %7591 = vpow2.f32 %v2384_v44 }
 0xf4b   :  { %v7586_v17 = vpop.eup %7585 }
 0xf4c   :  { %v2389_v27 = vsel %vm555_vm15, %v7586_v17, 0.0 }
 0xf4d   :  { %2390 = vadd.xlane.f32.xlu0 %v2389_v27 }
 0xf4f   :  { %v7588_v11 = vpop.eup %7587 }
 0xf50   :  { %v2392_v46 = vsel %vm555_vm15, %v7588_v11, 0.0 }
 0xf51   :  { %2393 = vadd.xlane.f32.xlu1 %v2392_v46 }
 0xf53   :  { %v7590_v62 = vpop.eup %7589 }
 0xf54   :  { %v2395_v52 = vsel %vm555_vm15, %v7590_v62, 0.0 }
 0xf55   :  { %2396 = vadd.xlane.f32.xlu0 %v2395_v52  ;;  %v2565_v52 = vpack.c.bf16 %v2562_v51, %v2562_v51 }
 0xf57   :  { %v7592_v28 = vpop.eup %7591 }
 0xf58   :  { %v2398_v26 = vsel %vm568_vm1, %v7592_v28, 0.0 }
 0xf59   :  { %2399 = vadd.xlane.f32.xlu1 %v2398_v26  ;;  %2218 = vmax.xlane.f32.xlu0 %v2217_v40  ;;  %v2573_v40 = vsel %vm148_vm2, %v2565_v52, 0 }
 0xf5d   :  { %2221 = vmax.xlane.f32.xlu1 %v2220_v41  ;;  %2224 = vmax.xlane.f32.xlu0 %v2223_v23 }
 0xf61   :  { %2227 = vmax.xlane.f32.xlu1 %v2226_v25  ;;  %2230 = vmax.xlane.f32.xlu0 %v2229_v24 }
 0xfd2   :  { %v2388_v16 = vpop.xlane.xlu1 %2387 }
 0xfd3   :  { %7593 = vrcp.f32 %v2388_v16 }
 0xfd6   :  { %v2391_v21 = vpop.xlane.xlu0 %2390 }
 0xfd7   :  { %7595 = vrcp.f32 %v2391_v21 }
 0xfda   :  { %v2394_v55 = vpop.xlane.xlu1 %2393 }
 0xfdb   :  { %7597 = vrcp.f32 %v2394_v55 }
 0xfde   :  { %v2397_v2 = vpop.xlane.xlu0 %2396 }
 0xfdf   :  { %7599 = vrcp.f32 %v2397_v2 }
 0xfe0   :  { %v7594_v15 = vpop.eup %7593 }
 0xfe1   :  { %v2406_v27 = vmul.f32 %v7594_v15, %v7584_v29  ;;  %v11150_v29 = vpack.c.bf16 %v9330_v58, %v9327_v36  ;;  %v2774_v36 = vmul.f32 %v8166_v49, %v9338_v30  ;;  %v11153_v30 = vpack.c.bf16 %v9317_v43, %v9320_v14 }
 0xfe2   :  { %v2400_v44 = vpop.xlane.xlu1 %2399 }
 0xfe3   :  { %7601 = vrcp.f32 %v2400_v44  ;;  %v2777_v58 = vpack.c.bf16 %v2774_v36, %v2774_v36  ;;  %v2779_v51 = vsel %vm148_vm2, %v11153_v30, 0 }
 0xfe4   :  { %v7596_v53 = vpop.eup %7595 }
 0xfe5   :  { %v2407_v46 = vmul.f32 %v7596_v53, %v7586_v17  ;;  %v2570_v17 = vsel %vm148_vm2, %v11150_v29, 0 }
 0xfe7   :  { %v2416_v26 = vpack.c.bf16 %v2407_v46, %v2406_v27 }
 0xfe8   :  { %v7598_v41 = vpop.eup %7597 }
 0xfe9   :  { %7021 = vmatmul.mubr.msk.bf16.vlgmr.msra.gmra.mxu1 %vm555_vm15, %v2416_v26  ;;  %v2408_v25 = vmul.f32 %v7598_v41, %v7588_v11  ;;  %v11151_v11 = vpack.c.bf16 %v9314_v3, %v9311_v13  ;;  %v11152_v13 = vpack.c.bf16 %v9333_v61, %v9336_v7 }
 0xfea   :  { %7051 = vmatpush3.bf16.xpose.msra.mxu1 %v2573_v40  ;;  %7024 = vmatprep.mubr.msk.bf16.mxu1 %vm7845_vm0, %v11135_v9 }
 0xfeb   :  { %7052 = vmatprep.subr.bf16.mxu1 %v11135_v9  ;;  %v2782_v3 = vsel %vm148_vm2, %v11152_v13, 0  ;;  %v2222_v13 = vpop.xlane.xlu1 %2221 }
 0xfec   :  { %v7600_v23 = vpop.eup %7599 }
 0xfed   :  { %v2409_v24 = vmul.f32 %v7600_v23, %v7590_v62  ;;  %v2567_v62 = vsel %vm148_vm2, %v11151_v11, 0 }
 0xfef   :  { %v2417_v16 = vpack.c.bf16 %v2409_v24, %v2408_v25 }
 0xff0   :  { %v7602_v21 = vpop.eup %7601 }
 0xff1   :  { %7025 = vmatmul.mubr.msk.bf16.gmra.mxu1 %vm555_vm15, %v2417_v16  ;;  %v2410_v55 = vmul.f32 %v7602_v21, %v7592_v28  ;;  %v2785_v28 = vsel %vm148_vm2, %v2777_v58, 0 }
 0xff2   :  { %7053 = vmatpush3.bf16.xpose.msra.mxu1 %v2570_v17  ;;  %7028 = vmatprep.mubr.msk.bf16.mxu1 %vm7845_vm0, %v11135_v9 }
 0xff3   :  { %7054 = vmatprep.subr.bf16.mxu1 %v11135_v9  ;;  %v2418_v2 = vpack.c.bf16 %v2410_v55, %v2410_v55 }
 0xff9   :  { %7029 = vmatmul.mubr.msk.bf16.gmra.mxu1 %vm555_vm15, %v2418_v2  ;;  %v2219_v2 = vpop.xlane.xlu0 %2218 }
 0xffa   :  { %7055 = vmatpush3.bf16.xpose.msra.mxu1 %v2567_v62  ;;  %7056 = vmatprep.mubr.msk.bf16.mxu1 %vm7845_vm0, %v11135_v9 }
 0xffb   :  { %7086 = vmatprep.subr.bf16.mxu1 %v11135_v9 }
 0xffd   :  { %v2225_v30 = vpop.xlane.xlu0 %2224 }
0x1001   :  { %7057 = vmatmul.mubr.msk.bf16.vlgmr.msra.gmra.mxu1 %vm148_vm2, %v9380_v8 }
0x1002   :  { %7087 = vmatpush3.bf16.xpose.msra.mxu1 %v2785_v28  ;;  %7060 = vmatprep.mubr.msk.bf16.mxu1 %vm7845_vm0, %v11135_v9 }
0x1003   :  { %7088 = vmatprep.subr.bf16.mxu1 %v11135_v9 }
0x1009   :  { %7061 = vmatmul.mubr.msk.bf16.gmra.mxu1 %vm148_vm2, %v9404_v45 }
0x100a   :  { %7089 = vmatpush3.bf16.xpose.msra.mxu1 %v2782_v3  ;;  %7064 = vmatprep.mubr.msk.bf16.mxu1 %vm7845_vm0, %v11135_v9 }
0x100b   :  { %7090 = vmatprep.subr.bf16.mxu1 %v11135_v9 }
0x1011   :  { %7065 = vmatmul.mubr.msk.bf16.gmra.mxu1 %vm148_vm2, %v9425_v6 }
0x1012   :  { %7091 = vmatpush3.bf16.xpose.msra.mxu1 %v2779_v51  ;;  %7092 = vmatprep.mubr.msk.bf16.mxu1 %vm7845_vm0, %v11135_v9 }
0x1013   :  { %7122 = vmatprep.subr.bf16.mxu1 %v11135_v9 }
0x1019   :  { %7093 = vmatmul.mubr.msk.bf16.vlgmr.msra.gmra.mxu1 %vm148_vm2, %v9380_v8 }
0x101a   :  { %7096 = vmatprep.mubr.msk.bf16.mxu1 %vm7845_vm0, %v11135_v9 }
0x1021   :  { %7097 = vmatmul.mubr.msk.bf16.gmra.mxu1 %vm148_vm2, %v9404_v45 }
0x1022   :  { %7100 = vmatprep.mubr.msk.bf16.mxu1 %vm7845_vm0, %v11135_v9 }
0x1029   :  { %7101 = vmatmul.mubr.msk.bf16.gmra.mxu1 %vm148_vm2, %v9425_v6 }
0x102a   :  { %7130 = vmatprep.mubr.msk.bf16.mxu1 %vm7845_vm0, %v11135_v9 }
0x10a9   :  { %v9570_v61 = vpop.f32.mrf.mxu1 }
0x10ab   :  { %v7022_v7 = vpop.f32.mrf.mxu1 }
0x10ac   :  { %v2232_v7 = vsub.f32 %v9481_v34, %v2219_v2 }
0x10ad   :  { %v9572_v43 = vpop.f32.mrf.mxu1 }
0x10af   :  { %v7023_v14 = vpop.f32.mrf.mxu1 }
0x10b1   :  { %v9574_v8 = vpop.f32.mrf.mxu1 }
0x10b3   :  { %v7026_v15 = vpop.f32.mrf.mxu1 }
0x10b5   :  { %v9576_v44 = vpop.f32.mrf.mxu1 }
0x10b7   :  { %v7027_v45 = vpop.f32.mrf.mxu1 }
0x10b8   :  { %v2233_v45 = vsub.f32 %v9486_v5, %v2222_v13 }
0x10b9   :  { %v9578_v53 = vpop.f32.mrf.mxu1 }
0x10bb   :  { %v7030_v27 = vpop.f32.mrf.mxu1 }
0x10bd   :  { %v2487_v46 = vpop.f32.mrf.mxu1 }
0x10be   :  { %v2237_v46 = vmul.f32 1.442695, %v2232_v7 }
0x10bf   :  { %v7031_v6 = vpop.f32.mrf.mxu1 }
0x10c0   :  { %v2234_v6 = vsub.f32 %v9490_v57, %v2225_v30  ;;  %7603 = vpow2.f32 %v2237_v46 }
0x10c1   :  { %v2609_v52 = vpop.f32.mrf.mxu1 }
0x10c2   :  { %v9581_v26 = vadd.f32 %v9440_v47, %v2609_v52  ;;  %v2228_v52 = vpop.xlane.xlu1 %2227 }
0x10c3   :  { %v7058_v40 = vpop.f32.mrf.mxu1  ;;  %v2235_v34 = vsub.f32 %v9496_v35, %v2228_v52 }
0x10c4   :  { %v2631_v41 = vsel %vm555_vm15, %v9581_v26, -inf  ;;  %v2231_v40 = vpop.xlane.xlu0 %2230 }
0x10c5   :  { %2632 = vmax.xlane.f32.xlu1 %v2631_v41  ;;  %v2612_v23 = vpop.f32.mrf.mxu1  ;;  %v2243_v2 = vmul.f32 1.442695, %v2235_v34 }
0x10c6   :  { %v9586_v25 = vadd.f32 %v9449_v39, %v2612_v23 }
0x10c7   :  { %v7059_v24 = vpop.f32.mrf.mxu1 }
0x10c8   :  { %v2634_v16 = vsel %vm555_vm15, %v9586_v25, -inf  ;;  %v2239_v24 = vmul.f32 1.442695, %v2233_v45 }
0x10c9   :  { %2635 = vmax.xlane.f32.xlu0 %v2634_v16  ;;  %v2617_v21 = vpop.f32.mrf.mxu1 }
0x10ca   :  { %v9591_v29 = vadd.f32 %v9458_v4, %v2617_v21  ;;  %v2241_v21 = vmul.f32 1.442695, %v2234_v6  ;;  %7605 = vpow2.f32 %v2239_v24 }
0x10cb   :  { %v7062_v17 = vpop.f32.mrf.mxu1 }
0x10cc   :  { %v2637_v55 = vsel %vm555_vm15, %v9591_v29, -inf  ;;  %v2236_v17 = vsub.f32 %v9499_v19, %v2231_v40  ;;  %7607 = vpow2.f32 %v2241_v21 }
0x10cd   :  { %2638 = vmax.xlane.f32.xlu1 %v2637_v55  ;;  %v2620_v11 = vpop.f32.mrf.mxu1  ;;  %7609 = vpow2.f32 %v2243_v2  ;;  %v9630_v7 = vpop.eup %7603 }
0x10ce   :  { %v9596_v62 = vadd.f32 %v9465_v59, %v2620_v11  ;;  %v2245_v11 = vmul.f32 1.442695, %v2236_v17 }
0x10cf   :  { %v7063_v36 = vpop.f32.mrf.mxu1 }
0x10d0   :  { %v2640_v58 = vsel %vm555_vm15, %v9596_v62, -inf  ;;  %7611 = vpow2.f32 %v2245_v11 }
0x10d1   :  { %2641 = vmax.xlane.f32.xlu0 %v2640_v58  ;;  %v2625_v28 = vpop.f32.mrf.mxu1 }
0x10d2   :  { %v9601_v3 = vadd.f32 %v9472_v38, %v2625_v28 }
0x10d3   :  { %v7066_v51 = vpop.f32.mrf.mxu1 }
0x10d4   :  { %v2643_v14 = vsel %vm568_vm1, %v9601_v3, -inf }
0x10d5   :  { %2644 = vmax.xlane.f32.xlu1 %v2643_v14  ;;  %v2628_v15 = vpop.f32.mrf.mxu1 }
0x10d7   :  { %v7067_v27 = vpop.f32.mrf.mxu1  ;;  %v9635_v45 = vpop.eup %7605 }
0x10d8   :  { %v2247_v27 = vsel %vm555_vm15, %v9630_v7, 0.0 }
0x10d9   :  { %v2821_v41 = vpop.f32.mrf.mxu1  ;;  %v9641_v46 = vpop.eup %7607 }
0x10da   :  { %v9609_v23 = vadd.f32 %v9440_v47, %v2821_v41  ;;  %v9643_v40 = vpop.eup %7609  ;;  %v2250_v41 = vsel %vm555_vm15, %v9635_v45, 0.0 }
0x10db   :  { %v7094_v16 = vpop.f32.mrf.mxu1 }
0x10dc   :  { %v2843_v5 = vsel %vm555_vm15, %v9609_v23, -inf  ;;  %v2256_v16 = vsel %vm555_vm15, %v9643_v40, 0.0 }
0x10dd   :  { %2844 = vmax.xlane.f32.xlu0 %v2843_v5  ;;  %v2824_v55 = vpop.f32.mrf.mxu1  ;;  %v9649_v24 = vpop.eup %7611 }
0x10de   :  { %v9616_v57 = vadd.f32 %v9449_v39, %v2824_v55  ;;  %v2259_v34 = vsel %vm568_vm1, %v9649_v24, 0.0 }
0x10df   :  { %v7095_v47 = vpop.f32.mrf.mxu1 }
0x10e0   :  { %v2846_v35 = vsel %vm555_vm15, %v9616_v57, -inf }
0x10e1   :  { %2847 = vmax.xlane.f32.xlu1 %v2846_v35  ;;  %v2829_v36 = vpop.f32.mrf.mxu1 }
0x10e2   :  { %v9621_v19 = vadd.f32 %v9458_v4, %v2829_v36 }
0x10e3   :  { %v7098_v58 = vpop.f32.mrf.mxu1 }
0x10e4   :  { %v2849_v39 = vsel %vm555_vm15, %v9621_v19, -inf }
0x10e5   :  { %2850 = vmax.xlane.f32.xlu0 %v2849_v39  ;;  %v2832_v28 = vpop.f32.mrf.mxu1 }
0x10e6   :  { %v9626_v13 = vadd.f32 %v9465_v59, %v2832_v28 }
0x10e7   :  { %v7099_v30 = vpop.f32.mrf.mxu1 }
0x10e8   :  { %v2852_v51 = vsel %vm555_vm15, %v9626_v13, -inf }
0x10e9   :  { %2853 = vmax.xlane.f32.xlu1 %v2852_v51  ;;  %v2837_v4 = vpop.f32.mrf.mxu1 }
0x10ea   :  { %v9633_v14 = vadd.f32 %v9472_v38, %v2837_v4  ;;  %v2253_v38 = vsel %vm555_vm15, %v9641_v46, 0.0 }
0x10eb   :  { %v7102_v15 = vpop.f32.mrf.mxu1 }
0x10ec   :  { %v2855_v59 = vsel %vm568_vm1, %v9633_v14, -inf }
0x10ed   :  { %2248 = vadd.xlane.f32.xlu1 %v2247_v27  ;;  %2856 = vmax.xlane.f32.xlu0 %v2855_v59  ;;  %v2840_v6 = vpop.f32.mrf.mxu1 }
0x10ef   :  { %v7103_v52 = vpop.f32.mrf.mxu1 }
0x10f1   :  { %2254 = vadd.xlane.f32.xlu1 %v2253_v38  ;;  %2251 = vadd.xlane.f32.xlu0 %v2250_v41 }
0x10f5   :  { %2260 = vadd.xlane.f32.xlu1 %v2259_v34  ;;  %2257 = vadd.xlane.f32.xlu0 %v2256_v16 }
0x114e   :  { %v2633_v21 = vpop.xlane.xlu1 %2632 }
0x114f   :  { %v2646_v17 = vsub.f32 %v9581_v26, %v2633_v21 }
0x1151   :  { %v2651_v5 = vmul.f32 1.442695, %v2646_v17 }
0x1152   :  { %v2636_v55 = vpop.xlane.xlu0 %2635 }
0x1153   :  { %7613 = vpow2.f32 %v2651_v5  ;;  %v2647_v2 = vsub.f32 %v9586_v25, %v2636_v55 }
0x1155   :  { %v2653_v47 = vmul.f32 1.442695, %v2647_v2 }
0x1156   :  { %v2639_v11 = vpop.xlane.xlu1 %2638 }
0x1157   :  { %7615 = vpow2.f32 %v2653_v47  ;;  %v2648_v35 = vsub.f32 %v9591_v29, %v2639_v11 }
0x1159   :  { %v2655_v36 = vmul.f32 1.442695, %v2648_v35 }
0x115a   :  { %v2642_v58 = vpop.xlane.xlu0 %2641 }
0x115b   :  { %7617 = vpow2.f32 %v2655_v36  ;;  %v2649_v39 = vsub.f32 %v9596_v62, %v2642_v58 }
0x115d   :  { %v2657_v28 = vmul.f32 1.442695, %v2649_v39 }
0x115e   :  { %v2645_v30 = vpop.xlane.xlu1 %2644 }
0x115f   :  { %7619 = vpow2.f32 %v2657_v28  ;;  %v2650_v26 = vsub.f32 %v9601_v3, %v2645_v30 }
0x1160   :  { %v9660_v51 = vpop.eup %7613 }
0x1161   :  { %v2659_v4 = vmul.f32 1.442695, %v2650_v26  ;;  %v2661_v25 = vsel %vm555_vm15, %v9660_v51, 0.0 }
0x1162   :  { %2662 = vadd.xlane.f32.xlu0 %v2661_v25 }
0x1163   :  { %7621 = vpow2.f32 %v2659_v4 }
0x1164   :  { %v9664_v15 = vpop.eup %7615 }
0x1165   :  { %v2664_v29 = vsel %vm555_vm15, %v9664_v15, 0.0 }
0x1166   :  { %v2845_v27 = vpop.xlane.xlu0 %2844  ;;  %2665 = vadd.xlane.f32.xlu1 %v2664_v29 }
0x1167   :  { %v2858_v62 = vsub.f32 %v9609_v23, %v2845_v27 }
0x1168   :  { %v9669_v59 = vpop.eup %7617 }
0x1169   :  { %v2863_v3 = vmul.f32 1.442695, %v2858_v62  ;;  %v2667_v6 = vsel %vm555_vm15, %v9669_v59, 0.0 }
0x116a   :  { %v2848_v52 = vpop.xlane.xlu1 %2847  ;;  %2668 = vadd.xlane.f32.xlu0 %v2667_v6  ;;  %v2690_v6 = vmul.f32 %v8163_v48, %v9366_v20 }
0x116b   :  { %7623 = vpow2.f32 %v2863_v3  ;;  %v2859_v38 = vsub.f32 %v9616_v57, %v2848_v52 }
0x116c   :  { %v9674_v41 = vpop.eup %7619 }
0x116d   :  { %v2865_v34 = vmul.f32 1.442695, %v2859_v38  ;;  %v2670_v16 = vsel %vm555_vm15, %v9674_v41, 0.0 }
0x116e   :  { %v2851_v21 = vpop.xlane.xlu0 %2850  ;;  %2671 = vadd.xlane.f32.xlu1 %v2670_v16 }
0x116f   :  { %7625 = vpow2.f32 %v2865_v34  ;;  %v2860_v23 = vsub.f32 %v9621_v19, %v2851_v21 }
0x1170   :  { %v9679_v17 = vpop.eup %7621 }
0x1171   :  { %v2867_v5 = vmul.f32 1.442695, %v2860_v23  ;;  %v2673_v55 = vsel %vm568_vm1, %v9679_v17, 0.0  ;;  %v2696_v23 = vpack.c.bf16 %v2690_v6, %v2690_v6 }
0x1172   :  { %v2854_v2 = vpop.xlane.xlu1 %2853  ;;  %2674 = vadd.xlane.f32.xlu0 %v2673_v55 }
0x1173   :  { %7627 = vpow2.f32 %v2867_v5  ;;  %v2861_v57 = vsub.f32 %v9626_v13, %v2854_v2  ;;  %v2707_v2 = vsel %vm771_vm14, %v2696_v23, 0 }
0x1175   :  { %v2869_v47 = vmul.f32 1.442695, %v2861_v57 }
0x1176   :  { %v2857_v11 = vpop.xlane.xlu0 %2856  ;;  %v2249_v35 = vpop.xlane.xlu1 %2248 }
0x1177   :  { %7629 = vpow2.f32 %v2869_v47  ;;  %v2862_v36 = vsub.f32 %v9633_v14, %v2857_v11 }
0x1178   :  { %v9685_v58 = vpop.eup %7623  ;;  %7631 = vrcp.f32 %v2249_v35  ;;  %v11155_v35 = vpack.c.bf16 %v9255_v33, %v9258_v1  ;;  %v2902_v1 = vmul.f32 %v8166_v49, %v9366_v20 }
0x1179   :  { %v2871_v19 = vmul.f32 1.442695, %v2862_v36  ;;  %v2873_v39 = vsel %vm555_vm15, %v9685_v58, 0.0 }
0x117a   :  { %2874 = vadd.xlane.f32.xlu1 %v2873_v39  ;;  %v2252_v28 = vpop.xlane.xlu0 %2251  ;;  %v2255_v14 = vpop.xlane.xlu1 %2254 }
0x117b   :  { %7633 = vpow2.f32 %v2871_v19 }
0x117c   :  { %v9689_v30 = vpop.eup %7625  ;;  %7635 = vrcp.f32 %v2252_v28 }
0x117d   :  { %v2876_v13 = vsel %vm555_vm15, %v9689_v30, 0.0 }
0x117e   :  { %2877 = vadd.xlane.f32.xlu0 %v2876_v13  ;;  %v2258_v26 = vpop.xlane.xlu0 %2257  ;;  %v2261_v62 = vpop.xlane.xlu1 %2260 }
0x117f   :  { %7637 = vrcp.f32 %v2258_v26  ;;  %v2908_v26 = vpack.c.bf16 %v2902_v1, %v2902_v1 }
0x1180   :  { %v9693_v4 = vpop.eup %7627  ;;  %7639 = vrcp.f32 %v2255_v14 }
0x1181   :  { %v2879_v25 = vsel %vm555_vm15, %v9693_v4, 0.0  ;;  %7641 = vrcp.f32 %v2261_v62 }
0x1182   :  { %2880 = vadd.xlane.f32.xlu1 %v2879_v25  ;;  %v2919_v25 = vsel %vm771_vm14, %v2908_v26, 0  ;;  %v2124_v26 = vld [vmem:[%s11101_s5 + $0x328] sm:$0xff] }
0x1184   :  { %v9697_v29 = vpop.eup %7629 }
0x1185   :  { %v2882_v27 = vsel %vm555_vm15, %v9697_v29, 0.0  ;;  %v7632_v3 = vpop.eup %7631 }
0x1186   :  { %2883 = vadd.xlane.f32.xlu0 %v2882_v27  ;;  %v2267_v16 = vmul.f32 %v7632_v3, %v9630_v7 }
0x1188   :  { %v9703_v52 = vpop.eup %7633 }
0x1189   :  { %v2885_v38 = vsel %vm568_vm1, %v9703_v52, 0.0  ;;  %v7636_v34 = vpop.eup %7635 }
0x118a   :  { %2886 = vadd.xlane.f32.xlu1 %v2885_v38  ;;  %v2268_v21 = vmul.f32 %v7636_v34, %v9635_v45  ;;  %v11154_v45 = vpack.c.bf16 %v9286_v10, %v9290_v31  ;;  %v11157_v34 = vpack.c.bf16 %v9264_v12, %v9261_v56 }
0x118c   :  { %v2277_v5 = vpack.c.bf16 %v2268_v21, %v2267_v16  ;;  %v7638_v55 = vpop.eup %7637 }
0x118d   :  { %v7640_v48 = vpop.eup %7639  ;;  %v2270_v57 = vmul.f32 %v7638_v55, %v9643_v40 }
0x118e   :  { %7039 = vmatmul.mubr.msk.bf16.vlgmr.msra.gmra.mxu0 %vm555_vm15, %v2277_v5  ;;  %v2269_v7 = vmul.f32 %v7640_v48, %v9641_v46  ;;  %v7642_v11 = vpop.eup %7641 }
0x118f   :  { %7069 = vmatpush3.bf16.msra.mxu0 %v2707_v2  ;;  %7042 = vmatprep.mubr.msk.bf16.mxu0 %vm7845_vm0, %v11135_v9  ;;  %v2271_v40 = vmul.f32 %v7642_v11, %v9649_v24 }
0x1190   :  { %7070 = vmatprep.subr.bf16.mxu0 %v11135_v9  ;;  %v2278_v47 = vpack.c.bf16 %v2270_v57, %v2269_v7 }
0x1191   :  { %v2279_v46 = vpack.c.bf16 %v2271_v40, %v2271_v40 }
0x1193   :  { %7071 = vmatpush3.bf16.msra.mxu0 %v11154_v45  ;;  %v11158_v45 = vmov 0  }
0x1194   :  { %7072 = vmatprep.subr.bf16.mxu0 %v11135_v9 }
0x1196   :  { %7043 = vmatmul.mubr.msk.bf16.gmra.mxu0 %vm555_vm15, %v2278_v47 }
0x1197   :  { %7073 = vmatpush3.bf16.msra.mxu0 %v11155_v35  ;;  %7046 = vmatprep.mubr.msk.bf16.mxu0 %vm7845_vm0, %v11135_v9 }
0x1198   :  { %7104 = vmatprep.subr.bf16.mxu0 %v11135_v9 }
0x119e   :  { %7047 = vmatmul.mubr.msk.bf16.gmra.mxu0 %vm555_vm15, %v2279_v46 }
0x119f   :  { %7074 = vmatprep.mubr.msk.bf16.mxu0 %vm7845_vm0, %v11135_v9 }
0x11eb   :  { %v2663_v10 = vpop.xlane.xlu0 %2662 }
0x11ec   :  { %7643 = vrcp.f32 %v2663_v10 }
0x11ef   :  { %v2666_v31 = vpop.xlane.xlu1 %2665 }
0x11f0   :  { %7645 = vrcp.f32 %v2666_v31  ;;  %v2129_v31 = vld [vmem:[%s11101_s5 + $0x350] sm:$0xff] }
0x11f3   :  { %v2669_v36 = vpop.xlane.xlu0 %2668 }
0x11f4   :  { %7647 = vrcp.f32 %v2669_v36 }
0x11f7   :  { %v2672_v33 = vpop.xlane.xlu1 %2671 }
0x11f8   :  { %7649 = vrcp.f32 %v2672_v33 }
0x11f9   :  { %v7644_v24 = vpop.eup %7643 }
0x11fa   :  { %v2681_v28 = vmul.f32 %v7644_v24, %v9660_v51  ;;  %v2126_v24 = vld [vmem:[%s11101_s5 + $0x338] sm:$0xff] }
0x11fb   :  { %v2675_v19 = vpop.xlane.xlu0 %2674 }
0x11fc   :  { %7651 = vrcp.f32 %v2675_v19  ;;  %v2127_v19 = vld [vmem:[%s11101_s5 + $0x340] sm:$0xff] }
0x11fd   :  { %v7646_v39 = vpop.eup %7645 }
0x11fe   :  { %v2682_v13 = vmul.f32 %v7646_v39, %v9664_v15  ;;  %v11156_v15 = vpack.c.bf16 %v9298_v54, %v9294_v32 }
0x1200   :  { %v2691_v14 = vpack.c.bf16 %v2682_v13, %v2681_v28  ;;  %v2986_v28 = vpack.c.bf16 %v2127_v19, %v2126_v24  ;;  %v9811_v24 = vld [vmem:[%s11101_s5 + $0x468] sm:$0xff] }
0x1201   :  { %v7648_v27 = vpop.eup %7647 }
0x1202   :  { %7075 = vmatmul.mubr.msk.bf16.vlgmr.msra.gmra.mxu0 %vm555_vm15, %v2691_v14  ;;  %v2683_v20 = vmul.f32 %v7648_v27, %v9669_v59  ;;  %v2125_v14 = vld [vmem:[%s11101_s5 + $0x330] sm:$0xff] }
0x1203   :  { %7105 = vmatpush3.bf16.msra.mxu0 %v2919_v25  ;;  %v2875_v62 = vpop.xlane.xlu1 %2874  ;;  %7078 = vmatprep.mubr.msk.bf16.mxu0 %vm7845_vm0, %v11135_v9  ;;  %v2985_v27 = vpack.c.bf16 %v2125_v14, %v2124_v26 }
0x1204   :  { %7106 = vmatprep.subr.bf16.mxu0 %v11135_v9  ;;  %7653 = vrcp.f32 %v2875_v62 }
0x1205   :  { %v7650_v49 = vpop.eup %7649 }
0x1206   :  { %v2684_v51 = vmul.f32 %v7650_v49, %v9674_v41 }
0x1207   :  { %7107 = vmatpush3.bf16.msra.mxu0 %v11156_v15  ;;  %v2878_v3 = vpop.xlane.xlu0 %2877 }
0x1208   :  { %7655 = vrcp.f32 %v2878_v3  ;;  %7108 = vmatprep.subr.bf16.mxu0 %v11135_v9  ;;  %v2692_v6 = vpack.c.bf16 %v2684_v51, %v2683_v20 }
0x1209   :  { %v7652_v38 = vpop.eup %7651 }
0x120a   :  { %7079 = vmatmul.mubr.msk.bf16.gmra.mxu0 %vm555_vm15, %v2692_v6  ;;  %v2685_v59 = vmul.f32 %v7652_v38, %v9679_v17 }
0x120b   :  { %7109 = vmatpush3.bf16.msra.mxu0 %v11157_v34  ;;  %v2881_v16 = vpop.xlane.xlu1 %2880  ;;  %7082 = vmatprep.mubr.msk.bf16.mxu0 %vm7845_vm0, %v11135_v9 }
0x120c   :  { %7657 = vrcp.f32 %v2881_v16  ;;  %v2693_v54 = vpack.c.bf16 %v2685_v59, %v2685_v59 }
0x120f   :  { %v2884_v32 = vpop.xlane.xlu0 %2883 }
0x1210   :  { %7659 = vrcp.f32 %v2884_v32 }
0x1211   :  { %v7654_v41 = vpop.eup %7653 }
0x1212   :  { %7083 = vmatmul.mubr.msk.bf16.gmra.mxu0 %vm555_vm15, %v2693_v54  ;;  %v2893_v12 = vmul.f32 %v7654_v41, %v9685_v58 }
0x1213   :  { %v2887_v21 = vpop.xlane.xlu1 %2886  ;;  %7110 = vmatprep.mubr.msk.bf16.mxu0 %vm7845_vm0, %v11135_v9 }
0x1214   :  { %7661 = vrcp.f32 %v2887_v21 }
0x1215   :  { %v7656_v56 = vpop.eup %7655 }
0x1216   :  { %v2894_v23 = vmul.f32 %v7656_v56, %v9689_v30 }
0x1218   :  { %v2903_v5 = vpack.c.bf16 %v2894_v23, %v2893_v12 }
0x1219   :  { %v7658_v17 = vpop.eup %7657 }
0x121a   :  { %7111 = vmatmul.mubr.msk.bf16.vlgmr.msra.gmra.mxu0 %vm555_vm15, %v2903_v5  ;;  %v2895_v2 = vmul.f32 %v7658_v17, %v9693_v4  ;;  %v2130_v4 = vld [vmem:[%s11101_s5 + $0x358] sm:$0xff] }
0x121b   :  { %7114 = vmatprep.mubr.msk.bf16.mxu0 %vm7845_vm0, %v11135_v9 }
0x121d   :  { %v7660_v55 = vpop.eup %7659 }
0x121e   :  { %v2896_v48 = vmul.f32 %v7660_v55, %v9697_v29  ;;  %v2131_v29 = vld [vmem:[%s11101_s5 + $0x360] sm:$0xff] }
0x121f   :  { %v2988_v46 = vpack.c.bf16 %v2131_v29, %v2130_v4 }
0x1220   :  { %v2904_v57 = vpack.c.bf16 %v2896_v48, %v2895_v2 }
0x1221   :  { %v7662_v7 = vpop.eup %7661  ;;  %7123 = vmatpush3.bf16.msra.mxu1 %v2988_v46 }
0x1222   :  { %7115 = vmatmul.mubr.msk.bf16.gmra.mxu0 %vm555_vm15, %v2904_v57  ;;  %v2897_v58 = vmul.f32 %v7662_v7, %v9703_v52  ;;  %7124 = vmatprep.subr.bf16.mxu1 %v11135_v9  ;;  %v2128_v52 = vld [vmem:[%s11101_s5 + $0x348] sm:$0xff] }
0x1223   :  { %7118 = vmatprep.mubr.msk.bf16.mxu0 %vm7845_vm0, %v11135_v9  ;;  %v2987_v33 = vpack.c.bf16 %v2129_v31, %v2128_v52 }
0x1224   :  { %v2905_v30 = vpack.c.bf16 %v2897_v58, %v2897_v58 }
0x1225   :  { %7125 = vmatpush3.bf16.msra.mxu1 %v2987_v33 }
0x1226   :  { %7126 = vmatprep.subr.bf16.mxu1 %v11135_v9 }
0x1229   :  { %7127 = vmatpush3.bf16.msra.mxu1 %v2986_v28 }
0x122a   :  { %7119 = vmatmul.mubr.msk.bf16.gmra.mxu0 %vm555_vm15, %v2905_v30  ;;  %7128 = vmatprep.subr.bf16.mxu1 %v11135_v9 }
0x122b   :  { %3227 = vmatprep.mubr.bf16.mxu0 %v11158_v45 }
0x122d   :  { %7129 = vmatpush3.bf16.msra.mxu1 %v2985_v27 }
0x124e   :  { %v2536_v47 = vpop.f32.mrf.mxu0 }
0x124f   :  { %v2537_v56 = vadd.f32 %v2536_v47, %v9570_v61 }
0x1250   :  { %v7040_v11 = vpop.f32.mrf.mxu0 }
0x1252   :  { %v2539_v35 = vpop.f32.mrf.mxu0 }
0x1253   :  { %v2540_v12 = vadd.f32 %v2539_v35, %v9572_v43 }
0x1254   :  { %v7041_v40 = vpop.f32.mrf.mxu0 }
0x1256   :  { %v2544_v10 = vpop.f32.mrf.mxu0 }
0x1257   :  { %v2545_v30 = vadd.f32 %v2544_v10, %v9574_v8 }
0x1258   :  { %v7044_v36 = vpop.f32.mrf.mxu0 }
0x125a   :  { %v2547_v1 = vpop.f32.mrf.mxu0 }
0x125b   :  { %v2548_v11 = vadd.f32 %v2547_v1, %v9576_v44 }
0x125c   :  { %v7045_v39 = vpop.f32.mrf.mxu0 }
0x125e   :  { %v2552_v13 = vpop.f32.mrf.mxu0 }
0x125f   :  { %v2553_v46 = vadd.f32 %v2552_v13, %v9578_v53  ;;  %v2992_v53 = vrot.slane %v9811_v24, %v8739_v22 }
0x1260   :  { %v7048_v25 = vpop.f32.mrf.mxu0 }
0x1262   :  { %v2555_v62 = vpop.f32.mrf.mxu0 }
0x1264   :  { %v7049_v49 = vpop.f32.mrf.mxu0 }
0x12c2   :  { %v2743_v20 = vpop.f32.mrf.mxu0 }
0x12c3   :  { %v2765_v5 = vadd.f32 %v2743_v20, %v2537_v56 }
0x12c4   :  { %v7076_v51 = vpop.f32.mrf.mxu0 }
0x12c6   :  { %v2746_v15 = vpop.f32.mrf.mxu0 }
0x12c7   :  { %v2766_v17 = vadd.f32 %v2746_v15, %v2540_v12 }
0x12c8   :  { %v7077_v3 = vpop.f32.mrf.mxu0 }
0x12ca   :  { %v2751_v6 = vpop.f32.mrf.mxu0 }
0x12cb   :  { %v2767_v61 = vadd.f32 %v2751_v6, %v2545_v30 }
0x12cc   :  { %v7080_v38 = vpop.f32.mrf.mxu0 }
0x12ce   :  { %v2754_v34 = vpop.f32.mrf.mxu0 }
0x12cf   :  { %v2768_v43 = vadd.f32 %v2754_v34, %v2548_v11 }
0x12d0   :  { %v7081_v16 = vpop.f32.mrf.mxu0 }
0x12d2   :  { %v2759_v59 = vpop.f32.mrf.mxu0 }
0x12d3   :  { %v2769_v36 = vadd.f32 %v2759_v59, %v2553_v46 }
0x12d4   :  { %v7084_v32 = vpop.f32.mrf.mxu0 }
0x12d6   :  { %v2762_v54 = vpop.f32.mrf.mxu0 }
0x12d8   :  { %v7085_v41 = vpop.f32.mrf.mxu0 }
0x12da   :  { %v2955_v21 = vpop.f32.mrf.mxu0 }
0x12db   :  { %v2977_v2 = vadd.f32 %v2955_v21, %v2765_v5 }
0x12dc   :  { %v7112_v23 = vpop.f32.mrf.mxu0 }
0x12de   :  { %v2958_v55 = vpop.f32.mrf.mxu0 }
0x12df   :  { %v2978_v48 = vadd.f32 %v2958_v55, %v2766_v17 }
0x12e0   :  { %v7113_v57 = vpop.f32.mrf.mxu0 }
0x12e1   :  { %v2982_v7 = vpack.c.bf16 %v2978_v48, %v2977_v2 }
0x12e2   :  { %v2963_v58 = vpop.f32.mrf.mxu0 }
0x12e3   :  { %7131 = vmatmul.mubr.msk.bf16.vlgmr.msra.gmra.mxu1 %vm148_vm2, %v2982_v7  ;;  %v2979_v35 = vadd.f32 %v2963_v58, %v2767_v61 }
0x12e4   :  { %v7116_v4 = vpop.f32.mrf.mxu0  ;;  %7134 = vmatprep.mubr.msk.bf16.mxu1 %vm7845_vm0, %v11135_v9 }
0x12e6   :  { %v2966_v47 = vpop.f32.mrf.mxu0 }
0x12e7   :  { %v2980_v29 = vadd.f32 %v2966_v47, %v2768_v43 }
0x12e8   :  { %v7117_v40 = vpop.f32.mrf.mxu0 }
0x12e9   :  { %v2983_v52 = vpack.c.bf16 %v2980_v29, %v2979_v35 }
0x12ea   :  { %v2971_v31 = vpop.f32.mrf.mxu0 }
0x12eb   :  { %7135 = vmatmul.mubr.msk.bf16.gmra.mxu1 %vm148_vm2, %v2983_v52  ;;  %v2981_v44 = vadd.f32 %v2971_v31, %v2769_v36 }
0x12ec   :  { %v7120_v8 = vpop.f32.mrf.mxu0  ;;  %7138 = vmatprep.mubr.msk.bf16.mxu1 %vm7845_vm0, %v11135_v9 }
0x12ed   :  { %v2984_v1 = vpack.c.bf16 %v2981_v44, %v2981_v44  ;;  %v3159_v8 = vld [vmem:[%s11103_s7 + $0xf8] sm:$0xff]  ;;  %v3161_v44 = vld [vmem:[%s11103_s7 + $0x108] sm:$0xff] }
0x12ee   :  { %v2974_v10 = vpop.f32.mrf.mxu0 }
0x12ef   :  { %v3172_v10 = vpack.c.bf16 %v3161_v44, %v3159_v8 }
0x12f0   :  { %v7121_v33 = vpop.f32.mrf.mxu0 }
0x12f1   :  { %v3158_v33 = vld [vmem:[%s11103_s7 + $0xf0] sm:$0xff]  ;;  %3203 = vmatprep.subr.bf16.mxu0 %v3172_v10 }
0x12f3   :  { %7139 = vmatmul.mubr.msk.bf16.gmra.mxu1 %vm148_vm2, %v2984_v1  ;;  %v3160_v1 = vld [vmem:[%s11103_s7 + $0x100] sm:$0xff] }
0x13a3   :  { %v3036_v19 = vpop.f32.mrf.mxu1 }
0x13a4   :  { %v3037_v39 = vadd.f32 %v3036_v19, %v2992_v53  ;;  %v3155_v19 = vld [vmem:[%s11103_s7 + $0xd8] sm:$0xff] }
0x13a5   :  { %v7132_v28 = vpop.f32.mrf.mxu1 }
0x13a6   :  { %v9816_v13 = vadd.f32 %v3037_v39, %v9053_v37  ;;  %v3157_v39 = vld [vmem:[%s11103_s7 + $0xe8] sm:$0xff] }
0x13a7   :  { %v3039_v26 = vpop.f32.mrf.mxu1  ;;  %v3170_v28 = vpack.c.bf16 %v3157_v39, %v3155_v19 }
0x13a8   :  { %v3040_v14 = vadd.f32 %v3039_v26, %v2992_v53  ;;  %v3063_v25 = vsel %vm148_vm2, %v9816_v13, 0.0  ;;  %v3154_v26 = vld [vmem:[%s11103_s7 + $0xd0] sm:$0xff] }
0x13a9   :  { %3064 = vadd.xlane.f32.xlu0 %v3063_v25  ;;  %v7133_v27 = vpop.f32.mrf.mxu1 }
0x13aa   :  { %v9821_v62 = vadd.f32 %v3040_v14, %v9058_v42  ;;  %v3156_v14 = vld [vmem:[%s11103_s7 + $0xe0] sm:$0xff]  ;;  %v3151_v27 = vld [vmem:[%s11103_s7 + $0xb8] sm:$0xff] }
0x13ab   :  { %v3044_v49 = vpop.f32.mrf.mxu1  ;;  %v3169_v25 = vpack.c.bf16 %v3156_v14, %v3154_v26 }
0x13ac   :  { %v3045_v20 = vadd.f32 %v3044_v49, %v2992_v53  ;;  %v3066_v51 = vsel %vm148_vm2, %v9821_v62, 0.0  ;;  %v3153_v49 = vld [vmem:[%s11103_s7 + $0xc8] sm:$0xff] }
0x13ad   :  { %3067 = vadd.xlane.f32.xlu1 %v3066_v51  ;;  %v7136_v15 = vpop.f32.mrf.mxu1  ;;  %v3150_v51 = vld [vmem:[%s11103_s7 + $0xb0] sm:$0xff] }
0x13ae   :  { %v9826_v37 = vadd.f32 %v3045_v20, %v9063_v18  ;;  %v3168_v20 = vpack.c.bf16 %v3153_v49, %v3151_v27  ;;  %v3152_v15 = vld [vmem:[%s11103_s7 + $0xc0] sm:$0xff] }
0x13af   :  { %v3047_v3 = vpop.f32.mrf.mxu1  ;;  %v3361_v49 = vld [vmem:[%s11101_s5 + $0x3e0] sm:$0xff] }
0x13b0   :  { %v3048_v6 = vadd.f32 %v3047_v3, %v2992_v53  ;;  %v3069_v38 = vsel %vm148_vm2, %v9826_v37, 0.0  ;;  %v3167_v3 = vpack.c.bf16 %v3152_v15, %v3150_v51  ;;  %v3374_v51 = vld [vmem:[%s11101_s5 + $0x448] sm:$0xff]  ;;  %v3375_v15 = vld [vmem:[%s11101_s5 + $0x450] sm:$0xff] }
0x13b1   :  { %3070 = vadd.xlane.f32.xlu0 %v3069_v38  ;;  %v7137_v34 = vpop.f32.mrf.mxu1  ;;  %v3149_v38 = vld [vmem:[%s11103_s7 + $0xa8] sm:$0xff] }
0x13b2   :  { %v9831_v42 = vadd.f32 %v3048_v6, %v9068_v50  ;;  %v3147_v6 = vld [vmem:[%s11103_s7 + $0x98] sm:$0xff] }
0x13b3   :  { %v3052_v16 = vpop.f32.mrf.mxu1  ;;  %v3166_v34 = vpack.c.bf16 %v3149_v38, %v3147_v6  ;;  %v3358_v6 = vld [vmem:[%s11101_s5 + $0x3c8] sm:$0xff]  ;;  %v3359_v38 = vld [vmem:[%s11101_s5 + $0x3d0] sm:$0xff] }
0x13b4   :  { %v3053_v59 = vadd.f32 %v3052_v16, %v2992_v53  ;;  %v3072_v32 = vsel %vm148_vm2, %v9831_v42, 0.0  ;;  %v3171_v53 = vpack.c.bf16 %v3160_v1, %v3158_v33  ;;  %v3146_v16 = vld [vmem:[%s11103_s7 + $0x90] sm:$0xff] }
0x13b5   :  { %3073 = vadd.xlane.f32.xlu1 %v3072_v32  ;;  %v7140_v54 = vpop.f32.mrf.mxu1 }
0x13b6   :  { %v9836_v18 = vadd.f32 %v3053_v59, %v9073_v60  ;;  %3204 = vmatpush1.bf16.msra.mxu0 %v3171_v53  ;;  %v3148_v59 = vld [vmem:[%s11103_s7 + $0xa0] sm:$0xff] }
0x13b7   :  { %v3055_v41 = vpop.f32.mrf.mxu1  ;;  %3205 = vmatprep.subr.bf16.mxu0 %v3170_v28  ;;  %v3165_v32 = vpack.c.bf16 %v3148_v59, %v3146_v16  ;;  %v3372_v16 = vld [vmem:[%s11101_s5 + $0x438] sm:$0xff]  ;;  %v3373_v59 = vld [vmem:[%s11101_s5 + $0x440] sm:$0xff] }
0x13b8   :  { %v3075_v21 = vsel %vm161_vm3, %v9836_v18, 0.0 }
0x13b9   :  { %3076 = vadd.xlane.f32.xlu0 %v3075_v21  ;;  %v7141_v56 = vpop.f32.mrf.mxu1 }
0x13ba   :  { %3206 = vmatpush1.bf16.msra.mxu0 %v3169_v25 }
0x13bb   :  { %3207 = vmatprep.subr.bf16.mxu0 %v3168_v20 }
0x13be   :  { %3208 = vmatpush1.bf16.msra.mxu0 %v3167_v3  ;;  %v3398_v3 = vpack.c.bf16 %v3375_v15, %v3374_v51 }
0x13bf   :  { %3209 = vmatprep.subr.bf16.mxu0 %v3166_v34  ;;  %v3390_v34 = vpack.c.bf16 %v3359_v38, %v3358_v6 }
0x13c2   :  { %3210 = vmatpush1.bf16.msra.mxu0 %v3165_v32  ;;  %v3397_v32 = vpack.c.bf16 %v3373_v59, %v3372_v16 }
0x13c3   :  { %7142 = vmatprep.subr.mxu0 %v11135_v9 }
0x1432   :  { %v3065_v12 = vpop.xlane.xlu0 %3064 }
0x1433   :  { %v3078_v23 = vmul.f32 0.015625, %v3065_v12 }
0x1435   :  { %v9841_v50 = vsub.f32 %v9816_v13, %v3078_v23 }
0x1436   :  { %v3068_v5 = vpop.xlane.xlu1 %3067 }
0x1437   :  { %v3079_v17 = vmul.f32 0.015625, %v3068_v5  ;;  %v3088_v55 = vmul.f32 %v9841_v50, %v9841_v50 }
0x1439   :  { %v9846_v2 = vsub.f32 %v9821_v62, %v3079_v17  ;;  %v3093_v60 = vsel %vm148_vm2, %v3088_v55, 0.0 }
0x143a   :  { %v3071_v48 = vpop.xlane.xlu0 %3070  ;;  %3094 = vadd.xlane.f32.xlu1 %v3093_v60 }
0x143b   :  { %v3080_v57 = vmul.f32 0.015625, %v3071_v48  ;;  %v3089_v7 = vmul.f32 %v9846_v2, %v9846_v2 }
0x143d   :  { %v9852_v58 = vsub.f32 %v9826_v37, %v3080_v57  ;;  %v3096_v30 = vsel %vm148_vm2, %v3089_v7, 0.0 }
0x143e   :  { %v3074_v11 = vpop.xlane.xlu1 %3073  ;;  %3097 = vadd.xlane.f32.xlu0 %v3096_v30 }
0x143f   :  { %v3081_v4 = vmul.f32 0.015625, %v3074_v11  ;;  %v3090_v61 = vmul.f32 %v9852_v58, %v9852_v58 }
0x1441   :  { %v9858_v43 = vsub.f32 %v9831_v42, %v3081_v4  ;;  %v3099_v47 = vsel %vm148_vm2, %v3090_v61, 0.0  ;;  %v3131_v4 = vrot.slane %v9811_v24, %v8854_v0 }
0x1442   :  { %3100 = vadd.xlane.f32.xlu1 %v3099_v47  ;;  %v3077_v35 = vpop.xlane.xlu0 %3076 }
0x1443   :  { %v3082_v29 = vmul.f32 0.015625, %v3077_v35  ;;  %v3091_v40 = vmul.f32 %v9858_v43, %v9858_v43 }
0x1445   :  { %v9864_v46 = vsub.f32 %v9836_v18, %v3082_v29  ;;  %v3102_v52 = vsel %vm148_vm2, %v3091_v40, 0.0  ;;  %v3140_v29 = vrot.slane %v9811_v24, %v8860_v63 }
0x1446   :  { %3103 = vadd.xlane.f32.xlu0 %v3102_v52 }
0x1447   :  { %v3092_v31 = vmul.f32 %v9864_v46, %v9864_v46 }
0x1449   :  { %v3105_v36 = vsel %vm161_vm3, %v3092_v31, 0.0 }
0x144a   :  { %3106 = vadd.xlane.f32.xlu1 %v3105_v36 }
0x14c3   :  { %v3095_v54 = vpop.xlane.xlu1 %3094 }
0x14c4   :  { %v3108_v41 = vmul.f32 0.015625, %v3095_v54  ;;  %v3356_v54 = vld [vmem:[%s11101_s5 + $0x3b8] sm:$0xff] }
0x14c6   :  { %v3113_v21 = vadd.f32 1e-06, %v3108_v41  ;;  %v3357_v41 = vld [vmem:[%s11101_s5 + $0x3c0] sm:$0xff] }
0x14c7   :  { %v3098_v56 = vpop.xlane.xlu0 %3097 }
0x14c8   :  { %7663 = vrsqrt.f32 %v3113_v21  ;;  %v3109_v12 = vmul.f32 0.015625, %v3098_v56  ;;  %v3389_v21 = vpack.c.bf16 %v3357_v41, %v3356_v54  ;;  %v3370_v56 = vld [vmem:[%s11101_s5 + $0x428] sm:$0xff] }
0x14ca   :  { %v3114_v23 = vadd.f32 1e-06, %v3109_v12  ;;  %v3371_v12 = vld [vmem:[%s11101_s5 + $0x430] sm:$0xff] }
0x14cb   :  { %v3101_v5 = vpop.xlane.xlu1 %3100 }
0x14cc   :  { %7665 = vrsqrt.f32 %v3114_v23  ;;  %v3110_v17 = vmul.f32 0.015625, %v3101_v5  ;;  %v3396_v23 = vpack.c.bf16 %v3371_v12, %v3370_v56  ;;  %v3354_v5 = vld [vmem:[%s11101_s5 + $0x3a8] sm:$0xff] }
0x14ce   :  { %v3115_v55 = vadd.f32 1e-06, %v3110_v17  ;;  %v3355_v17 = vld [vmem:[%s11101_s5 + $0x3b0] sm:$0xff] }
0x14cf   :  { %v3104_v60 = vpop.xlane.xlu0 %3103 }
0x14d0   :  { %7667 = vrsqrt.f32 %v3115_v55  ;;  %v3111_v48 = vmul.f32 0.015625, %v3104_v60  ;;  %v3388_v55 = vpack.c.bf16 %v3355_v17, %v3354_v5  ;;  %v3368_v60 = vld [vmem:[%s11101_s5 + $0x418] sm:$0xff] }
0x14d2   :  { %v3116_v57 = vadd.f32 1e-06, %v3111_v48  ;;  %v3369_v48 = vld [vmem:[%s11101_s5 + $0x420] sm:$0xff] }
0x14d3   :  { %v3107_v7 = vpop.xlane.xlu1 %3106 }
0x14d4   :  { %7669 = vrsqrt.f32 %v3116_v57  ;;  %v3112_v30 = vmul.f32 0.015625, %v3107_v7  ;;  %v3395_v57 = vpack.c.bf16 %v3369_v48, %v3368_v60  ;;  %v3352_v7 = vld [vmem:[%s11101_s5 + $0x398] sm:$0xff] }
0x14d5   :  { %v7664_v11 = vpop.eup %7663 }
0x14d6   :  { %v3123_v61 = vmul.f32 %v7664_v11, %v9841_v50  ;;  %v3117_v47 = vadd.f32 1e-06, %v3112_v30  ;;  %v3353_v30 = vld [vmem:[%s11101_s5 + $0x3a0] sm:$0xff] }
0x14d7   :  { %v3387_v11 = vpack.c.bf16 %v3353_v30, %v3352_v7 }
0x14d8   :  { %7671 = vrsqrt.f32 %v3117_v47  ;;  %v3132_v40 = vmul.f32 %v3131_v4, %v3123_v61  ;;  %v3367_v61 = vld [vmem:[%s11101_s5 + $0x410] sm:$0xff] }
0x14d9   :  { %v7666_v35 = vpop.eup %7665 }
0x14da   :  { %v3124_v52 = vmul.f32 %v7666_v35, %v9846_v2  ;;  %v3141_v8 = vadd.f32 %v3140_v29, %v3132_v40  ;;  %v3350_v35 = vld [vmem:[%s11101_s5 + $0x388] sm:$0xff] }
0x14dc   :  { %v3133_v31 = vmul.f32 %v3131_v4, %v3124_v52  ;;  %v3364_v52 = vld [vmem:[%s11101_s5 + $0x3f8] sm:$0xff] }
0x14dd   :  { %v7668_v36 = vpop.eup %7667 }
0x14de   :  { %v3142_v44 = vadd.f32 %v3140_v29, %v3133_v31  ;;  %v3125_v10 = vmul.f32 %v7668_v36, %v9852_v58  ;;  %v3365_v31 = vld [vmem:[%s11101_s5 + $0x400] sm:$0xff] }
0x14df   :  { %v3393_v36 = vpack.c.bf16 %v3365_v31, %v3364_v52 }
0x14e0   :  { %v3162_v33 = vpack.c.bf16 %v3142_v44, %v3141_v8  ;;  %v3134_v50 = vmul.f32 %v3131_v4, %v3125_v10  ;;  %v3348_v8 = vld [vmem:[%s11101_s5 + $0x378] sm:$0xff]  ;;  %v3349_v44 = vld [vmem:[%s11101_s5 + $0x380] sm:$0xff] }
0x14e1   :  { %v7670_v1 = vpop.eup %7669  ;;  %v3385_v10 = vpack.c.bf16 %v3349_v44, %v3348_v8 }
0x14e2   :  { %v3126_v53 = vmul.f32 %v7670_v1, %v9858_v43  ;;  %6285 = vmatmul.mubr.msk.bf16.vlgmr.msra.gmra.mxu0 %vm148_vm2, %v3162_v33  ;;  %v3143_v2 = vadd.f32 %v3140_v29, %v3134_v50  ;;  %v3376_v43 = vld [vmem:[%s11101_s5 + $0x458] sm:$0xff]  ;;  %v3362_v33 = vld [vmem:[%s11101_s5 + $0x3e8] sm:$0xff]  ;;  %v3363_v1 = vld [vmem:[%s11101_s5 + $0x3f0] sm:$0xff] }
0x14e3   :  { %3237 = vmatprep.mubr.bf16.mxu0 %v11158_v45  ;;  %v3392_v50 = vpack.c.bf16 %v3363_v1, %v3362_v33 }
0x14e4   :  { %v3135_v19 = vmul.f32 %v3131_v4, %v3126_v53  ;;  %v3346_v53 = vld [vmem:[%s11101_s5 + $0x368] sm:$0xff] }
0x14e5   :  { %v7672_v24 = vpop.eup %7671 }
0x14e6   :  { %v3127_v39 = vmul.f32 %v7672_v24, %v9864_v46  ;;  %v3144_v28 = vadd.f32 %v3140_v29, %v3135_v19  ;;  %v3377_v46 = vld [vmem:[%s11101_s5 + $0x460] sm:$0xff]  ;;  %v3347_v19 = vld [vmem:[%s11101_s5 + $0x370] sm:$0xff] }
0x14e7   :  { %v3399_v27 = vpack.c.bf16 %v3377_v46, %v3376_v43  ;;  %v3384_v24 = vpack.c.bf16 %v3347_v19, %v3346_v53 }
0x14e8   :  { %v3163_v26 = vpack.c.bf16 %v3144_v28, %v3143_v2  ;;  %v3136_v14 = vmul.f32 %v3131_v4, %v3127_v39  ;;  %v3366_v4 = vld [vmem:[%s11101_s5 + $0x408] sm:$0xff]  ;;  %v6284_v39 = vld [vmem:[%s11103_s7 + $0x110] ss:$8 sm:$0x3] }
0x14e9   :  { %6526 = vmatprep.subr.bf16.mxu1 %v3399_v27  ;;  %v3394_v47 = vpack.c.bf16 %v3367_v61, %v3366_v4  ;;  %v11159_v2 = vld [vmem:[#allocation6_spill] sm:$0xff] }
0x14ea   :  { %6286 = vmatmul.mubr.msk.bf16.gmra.mxu0 %vm148_vm2, %v3163_v26  ;;  %v3145_v58 = vadd.f32 %v3140_v29, %v3136_v14  ;;  %v3351_v29 = vld [vmem:[%s11101_s5 + $0x390] sm:$0xff]  ;;  %v3179_v28 = vrot.slane %v6284_v39, %v11159_v2  ;;  %v11160_v26 = vld [vmem:[#allocation7_spill] sm:$0xff] }
0x14eb   :  { %3247 = vmatprep.mubr.bf16.mxu0 %v11158_v45  ;;  %v3360_v45 = vld [vmem:[%s11101_s5 + $0x3d8] sm:$0xff]  ;;  %v3386_v40 = vpack.c.bf16 %v3351_v29, %v3350_v35  ;;  %v3183_v14 = vrot.slane %v6284_v39, %v11160_v26 }
0x14ec   :  { %v3164_v25 = vpack.c.bf16 %v3145_v58, %v3145_v58  ;;  %v3391_v20 = vpack.c.bf16 %v3361_v49, %v3360_v45 }
0x14ee   :  { %6527 = vmatpush3.bf16.msra.mxu1 %v3391_v20 }
0x14ef   :  { %6528 = vmatprep.subr.bf16.mxu1 %v3398_v3 }
0x14f2   :  { %6287 = vmatmul.mubr.msk.bf16.gmra.mxu0 %vm148_vm2, %v3164_v25  ;;  %6529 = vmatpush3.bf16.msra.mxu1 %v3390_v34 }
0x14f3   :  { %7152 = vmatprep.mubr.msk.f32.mxu0 %vm7845_vm0, %v11135_v9  ;;  %6530 = vmatprep.subr.bf16.mxu1 %v3397_v32 }
0x14f6   :  { %6531 = vmatpush3.bf16.msra.mxu1 %v3389_v21 }
0x14f7   :  { %6532 = vmatprep.subr.bf16.mxu1 %v3396_v23 }
0x14fa   :  { %6533 = vmatpush3.bf16.msra.mxu1 %v3388_v55 }
0x14fb   :  { %6534 = vmatprep.subr.bf16.mxu1 %v3395_v57 }
0x14fe   :  { %6535 = vmatpush3.bf16.msra.mxu1 %v3387_v11 }
0x14ff   :  { %6536 = vmatprep.subr.bf16.mxu1 %v3394_v47 }
0x1502   :  { %6537 = vmatpush3.bf16.msra.mxu1 %v3386_v40 }
0x1503   :  { %6538 = vmatprep.subr.bf16.mxu1 %v3393_v36 }
0x1506   :  { %6539 = vmatpush3.bf16.msra.mxu1 %v3385_v10 }
0x1507   :  { %6540 = vmatprep.subr.bf16.mxu1 %v3392_v50 }
0x150a   :  { %6541 = vmatpush3.bf16.msra.mxu1 %v3384_v24 }
0x150b   :  { %7167 = vmatprep.subr.bf16.mxu1 %v11135_v9 }
0x15a2   :  { %v3229_v58 = vpop.f32.mrf.mxu0 }
0x15a3   :  { %v10037_v25 = vadd.f32 %v3229_v58, %v3179_v28 }
0x15a4   :  { %v3231_v43 = vpop.f32.mrf.mxu0 }
0x15a5   :  { %v3266_v46 = vmul.f32 0.044715, %v10037_v25  ;;  %v10040_v27 = vadd.f32 %v3231_v43, %v3183_v14 }
0x15a6   :  { %v3233_v45 = vpop.f32.mrf.mxu0 }
0x15a7   :  { %v3276_v49 = vmul.f32 %v3266_v46, %v10037_v25  ;;  %v3267_v20 = vmul.f32 0.044715, %v10040_v27  ;;  %v10044_v51 = vadd.f32 %v3233_v45, %v3179_v28 }
0x15a8   :  { %v3235_v15 = vpop.f32.mrf.mxu0 }
0x15a9   :  { %v3286_v3 = vmul.f32 %v3276_v49, %v10037_v25  ;;  %v3277_v6 = vmul.f32 %v3267_v20, %v10040_v27  ;;  %v3268_v38 = vmul.f32 0.044715, %v10044_v51  ;;  %v10049_v34 = vadd.f32 %v3235_v15, %v3183_v14 }
0x15aa   :  { %v3239_v16 = vpop.f32.mrf.mxu0 }
0x15ab   :  { %v3296_v59 = vadd.f32 %v3286_v3, %v10037_v25  ;;  %v3287_v32 = vmul.f32 %v3277_v6, %v10040_v27  ;;  %v3278_v54 = vmul.f32 %v3268_v38, %v10044_v51  ;;  %v10054_v41 = vadd.f32 %v3239_v16, %v3179_v28 }
0x15ac   :  { %v3269_v21 = vmul.f32 0.044715, %v10049_v34  ;;  %v3241_v56 = vpop.f32.mrf.mxu0 }
0x15ad   :  { %v3306_v12 = vmul.f32 0.7978846, %v3296_v59  ;;  %v3288_v23 = vmul.f32 %v3278_v54, %v10044_v51  ;;  %v3270_v5 = vmul.f32 0.044715, %v10054_v41  ;;  %v10059_v17 = vadd.f32 %v3241_v56, %v3183_v14 }
0x15ae   :  { %v3279_v55 = vmul.f32 %v3269_v21, %v10049_v34  ;;  %v3243_v60 = vpop.f32.mrf.mxu0  ;;  %v3297_v48 = vadd.f32 %v3287_v32, %v10040_v27 }
0x15af   :  { %v3298_v57 = vadd.f32 %v3288_v23, %v10044_v51  ;;  %v3280_v7 = vmul.f32 %v3270_v5, %v10054_v41  ;;  %v3271_v30 = vmul.f32 0.044715, %v10059_v17  ;;  %7673 = vtanh.f32 %v3306_v12 }
0x15b0   :  { %v3289_v11 = vmul.f32 %v3279_v55, %v10049_v34  ;;  %v10067_v4 = vadd.f32 %v3243_v60, %v3179_v28  ;;  %v3245_v61 = vpop.f32.mrf.mxu0  ;;  %v3307_v47 = vmul.f32 0.7978846, %v3297_v48 }
0x15b1   :  { %v3308_v35 = vmul.f32 0.7978846, %v3298_v57  ;;  %v3290_v29 = vmul.f32 %v3280_v7, %v10054_v41  ;;  %v3281_v40 = vmul.f32 %v3271_v30, %v10059_v17  ;;  %v10071_v52 = vadd.f32 %v3245_v61, %v3183_v14 }
0x15b2   :  { %v3272_v31 = vmul.f32 0.044715, %v10067_v4  ;;  %v3249_v36 = vpop.f32.mrf.mxu0  ;;  %v3299_v8 = vadd.f32 %v3289_v11, %v10049_v34  ;;  %7675 = vtanh.f32 %v3307_v47  ;;  %v3258_v61 = vmul.f32 0.5, %v10044_v51 }
0x15b3   :  { %7677 = vtanh.f32 %v3308_v35  ;;  %v3300_v44 = vadd.f32 %v3290_v29, %v10054_v41  ;;  %v3291_v10 = vmul.f32 %v3281_v40, %v10059_v17  ;;  %v3273_v33 = vmul.f32 0.044715, %v10071_v52 }
0x15b4   :  { %v3282_v1 = vmul.f32 %v3272_v31, %v10067_v4  ;;  %v10079_v53 = vadd.f32 %v3249_v36, %v3179_v28  ;;  %v3251_v50 = vpop.f32.mrf.mxu0  ;;  %v3309_v19 = vmul.f32 0.7978846, %v3299_v8  ;;  %v3257_v47 = vmul.f32 0.5, %v10040_v27 }
0x15b5   :  { %v3283_v24 = vmul.f32 %v3273_v33, %v10071_v52  ;;  %v10082_v39 = vadd.f32 %v3251_v50, %v3183_v14  ;;  %v3301_v58 = vadd.f32 %v3291_v10, %v10059_v17  ;;  %v3310_v49 = vmul.f32 0.7978846, %v3300_v44 }
0x15b6   :  { %v3292_v43 = vmul.f32 %v3282_v1, %v10067_v4  ;;  %v3274_v46 = vmul.f32 0.044715, %v10079_v53  ;;  %v3253_v45 = vpop.f32.mrf.mxu0  ;;  %7679 = vtanh.f32 %v3309_v19  ;;  %v3259_v35 = vmul.f32 0.5, %v10049_v34 }
0x15b7   :  { %v3293_v20 = vmul.f32 %v3283_v24, %v10071_v52  ;;  %v3275_v28 = vmul.f32 0.044715, %v10082_v39  ;;  %v3311_v15 = vmul.f32 0.7978846, %v3301_v58  ;;  %v3256_v40 = vmul.f32 0.5, %v10037_v25 }
0x15b8   :  { %v3302_v3 = vadd.f32 %v3292_v43, %v10067_v4  ;;  %v3284_v6 = vmul.f32 %v3274_v46, %v10079_v53  ;;  %v3254_v14 = vpop.f32.mrf.mxu0  ;;  %v3261_v51 = vmul.f32 0.5, %v10059_v17  ;;  %v3263_v34 = vmul.f32 0.5, %v10071_v52 }
0x15b9   :  { %v3285_v38 = vmul.f32 %v3275_v28, %v10082_v39  ;;  %v3303_v16 = vadd.f32 %v3293_v20, %v10071_v52  ;;  %7681 = vtanh.f32 %v3311_v15  ;;  %v3262_v25 = vmul.f32 0.5, %v10067_v4 }
0x15ba   :  { %v3312_v59 = vmul.f32 0.7978846, %v3302_v3  ;;  %v3294_v32 = vmul.f32 %v3284_v6, %v10079_v53  ;;  %7683 = vtanh.f32 %v3310_v49  ;;  %v3260_v28 = vmul.f32 0.5, %v10054_v41 }
0x15bb   :  { %v3313_v54 = vmul.f32 0.7978846, %v3303_v16  ;;  %v3295_v21 = vmul.f32 %v3285_v38, %v10082_v39  ;;  %v3265_v38 = vmul.f32 0.5, %v10082_v39  ;;  %v3264_v4 = vmul.f32 0.5, %v10079_v53 }
0x15bc   :  { %7685 = vtanh.f32 %v3312_v59  ;;  %v3304_v56 = vadd.f32 %v3294_v32, %v10079_v53  ;;  %v7674_v12 = vpop.eup %7673 }
0x15bd   :  { %7687 = vtanh.f32 %v3313_v54  ;;  %v3305_v23 = vadd.f32 %v3295_v21, %v10082_v39  ;;  %v3326_v11 = vadd.f32 1.0, %v7674_v12 }
0x15be   :  { %v3314_v5 = vmul.f32 0.7978846, %v3304_v56 }
0x15bf   :  { %v7676_v55 = vpop.eup %7675  ;;  %v3315_v60 = vmul.f32 0.7978846, %v3305_v23  ;;  %v3336_v10 = vmul.f32 %v3326_v11, %v3256_v40 }
0x15c0   :  { %v7678_v48 = vpop.eup %7677  ;;  %7689 = vtanh.f32 %v3314_v5  ;;  %v3327_v7 = vadd.f32 1.0, %v7676_v55 }
0x15c1   :  { %v3328_v57 = vadd.f32 1.0, %v7678_v48  ;;  %7691 = vtanh.f32 %v3315_v60 }
0x15c2   :  { %v3337_v8 = vmul.f32 %v3327_v7, %v3257_v47  ;;  %v6288_v47 = vld [vmem:[%s11101_s5 + $0x470] ss:$0 sm:$0xff] }
0x15c3   :  { %v7680_v30 = vpop.eup %7679  ;;  %v3338_v31 = vmul.f32 %v3328_v57, %v3258_v61 }
0x15c4   :  { %v3329_v29 = vadd.f32 1.0, %v7680_v30 }
0x15c5   :  { %v3378_v19 = vpack.c.bf16 %v3338_v31, %v3336_v10 }
0x15c6   :  { %v7682_v36 = vpop.eup %7681  ;;  %v3339_v44 = vmul.f32 %v3329_v29, %v3259_v35 }
0x15c7   :  { %v7684_v33 = vpop.eup %7683  ;;  %v3331_v24 = vadd.f32 1.0, %v7682_v36 }
0x15c8   :  { %v3379_v1 = vpack.c.bf16 %v3339_v44, %v3337_v8  ;;  %v3330_v46 = vadd.f32 1.0, %v7684_v33 }
0x15c9   :  { %v7686_v50 = vpop.eup %7685  ;;  %v3341_v49 = vmul.f32 %v3331_v24, %v3261_v51 }
0x15ca   :  { %v7688_v58 = vpop.eup %7687  ;;  %3432 = vmatprep.mubr.bf16.mxu1 %v3379_v1  ;;  %v3332_v27 = vadd.f32 1.0, %v7686_v50  ;;  %v3340_v14 = vmul.f32 %v3330_v46, %v3260_v28 }
0x15cb   :  { %3433 = vmatmul.mubr.bf16.vlgmr.msra.gmra.mxu1 %v3378_v19  ;;  %v3333_v43 = vadd.f32 1.0, %v7688_v58 }
0x15cc   :  { %v3342_v15 = vmul.f32 %v3332_v27, %v3262_v25 }
0x15cd   :  { %v7690_v45 = vpop.eup %7689  ;;  %v3343_v20 = vmul.f32 %v3333_v43, %v3263_v34 }
0x15ce   :  { %v7692_v3 = vpop.eup %7691  ;;  %v3380_v16 = vpack.c.bf16 %v3342_v15, %v3340_v14  ;;  %v3334_v52 = vadd.f32 1.0, %v7690_v45 }
0x15cf   :  { %v3381_v6 = vpack.c.bf16 %v3343_v20, %v3341_v49  ;;  %v3335_v17 = vadd.f32 1.0, %v7692_v3 }
0x15d0   :  { %v3344_v54 = vmul.f32 %v3334_v52, %v3264_v4 }
0x15d1   :  { %3440 = vmatprep.mubr.bf16.mxu1 %v3381_v6  ;;  %v3345_v59 = vmul.f32 %v3335_v17, %v3265_v38 }
0x15d2   :  { %v3382_v21 = vpack.c.bf16 %v3344_v54, %v3344_v54 }
0x15d3   :  { %3441 = vmatmul.mubr.bf16.gmra.mxu1 %v3380_v16  ;;  %v3383_v32 = vpack.c.bf16 %v3345_v59, %v3345_v59 }
0x15d5   :  { %3448 = vmatprep.mubr.bf16.mxu1 %v3383_v32 }
0x15db   :  { %3449 = vmatmul.mubr.bf16.gmra.mxu1 %v3382_v21 }
0x15dc   :  { %7175 = vmatprep.mubr.msk.bf16.mxu1 %vm7845_vm0, %v11135_v9 }
0x168b   :  { %v6542_v41 = vpop.f32.mrf.mxu1 }
0x168d   :  { %v6543_v56 = vpop.f32.mrf.mxu1 }
0x168e   :  { %v6544_v40 = vadd.f32 %v6543_v56, %v6542_v41 }
0x168f   :  { %v6545_v12 = vpop.f32.mrf.mxu1 }
0x1691   :  { %v6546_v39 = vpop.f32.mrf.mxu1 }
0x1692   :  { %v6547_v60 = vadd.f32 %v6546_v39, %v6545_v12 }
0x1693   :  { %v6548_v23 = vpop.f32.mrf.mxu1 }
0x1694   :  { %v3457_v53 = vadd.f32 %v6547_v60, %v9821_v62 }
0x1695   :  { %v6549_v5 = vpop.f32.mrf.mxu1 }
0x1696   :  { %v6550_v30 = vadd.f32 %v6549_v5, %v6548_v23  ;;  %v3466_v10 = vadd.f32 %v6288_v47, %v3457_v53 }
0x1697   :  { %v6551_v55 = vpop.f32.mrf.mxu1 }
0x1698   :  { %v3458_v36 = vadd.f32 %v6550_v30, %v9826_v37  ;;  %v3474_v50 = vsel %vm148_vm2, %v3466_v10, 0.0 }
0x1699   :  { %v6552_v48 = vpop.f32.mrf.mxu1 }
0x169a   :  { %v6553_v57 = vadd.f32 %v6552_v48, %v6551_v55  ;;  %v3467_v19 = vadd.f32 %v6288_v47, %v3458_v36 }
0x169b   :  { %v6554_v7 = vpop.f32.mrf.mxu1 }
0x169c   :  { %v3459_v11 = vadd.f32 %v6553_v57, %v9831_v42  ;;  %v3456_v42 = vadd.f32 %v6544_v40, %v9816_v13  ;;  %v3477_v24 = vsel %vm148_vm2, %v3467_v19, 0.0 }
0x169d   :  { %v6555_v61 = vpop.f32.mrf.mxu1 }
0x169e   :  { %v6556_v35 = vadd.f32 %v6555_v61, %v6554_v7  ;;  %v3468_v29 = vadd.f32 %v6288_v47, %v3459_v11  ;;  %v3465_v37 = vadd.f32 %v6288_v47, %v3456_v42 }
0x169f   :  { %v6557_v31 = vpop.f32.mrf.mxu1 }
0x16a0   :  { %v3460_v8 = vadd.f32 %v6556_v35, %v9836_v18  ;;  %v3480_v44 = vsel %vm148_vm2, %v3468_v29, 0.0  ;;  %v3471_v18 = vsel %vm148_vm2, %v3465_v37, 0.0  ;;  %v3470_v35 = vld [vmem:[%s11101_s5 + $0x478] sm:$0x3] }
0x16a1   :  { %v6558_v62 = vpop.f32.mrf.mxu1  ;;  %3481 = vadd.xlane.f32.xlu1 %v3480_v44 }
0x16a2   :  { %v3469_v33 = vadd.f32 %v6288_v47, %v3460_v8 }
0x16a4   :  { %v3483_v1 = vsel %vm161_vm3, %v3469_v33, 0.0 }
0x16a5   :  { %3484 = vadd.xlane.f32.xlu0 %v3483_v1  ;;  %3475 = vadd.xlane.f32.xlu1 %v3474_v50 }
0x16a9   :  { %3478 = vadd.xlane.f32.xlu0 %v3477_v24 }
0x16ad   :  { %3472 = vadd.xlane.f32.xlu0 %v3471_v18 }
0x172a   :  { %v3482_v58 = vpop.xlane.xlu1 %3481 }
0x172b   :  { %v3489_v51 = vmul.f32 0.015625, %v3482_v58 }
0x172d   :  { %v3494_v27 = vsub.f32 %v3468_v29, %v3489_v51  ;;  %v3539_v29 = vrot.slane %v3470_v35, %v11159_v2 }
0x172e   :  { %v3485_v34 = vpop.xlane.xlu0 %3484  ;;  %v3476_v43 = vpop.xlane.xlu1 %3475 }
0x172f   :  { %v3490_v13 = vmul.f32 0.015625, %v3485_v34  ;;  %v3487_v25 = vmul.f32 0.015625, %v3476_v43  ;;  %v3499_v46 = vmul.f32 %v3494_v27, %v3494_v27  ;;  %v11162_v43 = vld [vmem:[#allocation8_spill] sm:$0xff] }
0x1730   :  { %vm3820_vm7 = vcmp.ge.s32.totalorder %v11162_v43, 8  ;;  %vm3824_vm8 = vcmp.lt.s32.totalorder %v11162_v43, 24  ;;  %vm3828_vm9 = vcmp.ge.s32.totalorder %v11162_v43, 24 }
0x1731   :  { %v3495_v45 = vsub.f32 %v3469_v33, %v3490_v13  ;;  %v3492_v49 = vsub.f32 %v3466_v10, %v3487_v25  ;;  %v3510_v20 = vsel %vm148_vm2, %v3499_v46, 0.0  ;;  %v3548_v10 = vrot.slane %v3470_v35, %v11160_v26  ;;  %v3644_v13 = vld [vmem:[%s11101_s5 + $0x4b0] sm:$0xff]  ;;  %v3645_v25 = vld [vmem:[%s11101_s5 + $0x4b8] sm:$0xff]  ;;  %vm3821_vm13 = vmand %vm3820_vm7, %vm34_vm12 }
0x1732   :  { %v3479_v28 = vpop.xlane.xlu0 %3478  ;;  %3511 = vadd.xlane.f32.xlu0 %v3510_v20  ;;  %vm3825_vm14 = vmand %vm38_vm10, %vm3824_vm8  ;;  %vm4072_vm10 = vcmask 130048  }
0x1733   :  { %v3488_v15 = vmul.f32 0.015625, %v3479_v28  ;;  %v3500_v3 = vmul.f32 %v3495_v45, %v3495_v45  ;;  %v3497_v6 = vmul.f32 %v3492_v49, %v3492_v49  ;;  %v3650_v28 = vpack.c.bf16 %v3645_v25, %v3644_v13  ;;  %v3735_v13 = vld [vmem:[%s11100_s4 + $0x20] sm:$0xff] }
0x1735   :  { %v3493_v14 = vsub.f32 %v3467_v19, %v3488_v15  ;;  %v3513_v38 = vsel %vm161_vm3, %v3500_v3, 0.0  ;;  %v3504_v17 = vsel %vm148_vm2, %v3497_v6, 0.0  ;;  %v11161_v19 = vld [vmem:[#allocation5_spill] sm:$0xff]  ;;  %v3642_v15 = vld [vmem:[%s11101_s5 + $0x4a0] sm:$0xff]  ;;  %v3643_v3 = vld [vmem:[%s11101_s5 + $0x4a8] sm:$0xff] }
0x1736   :  { %3514 = vadd.xlane.f32.xlu1 %v3513_v38  ;;  %3505 = vadd.xlane.f32.xlu0 %v3504_v17  ;;  %v3473_v16 = vpop.xlane.xlu0 %3472  ;;  %v3556_v24 = vmul.u32 17, %v11161_v19  ;;  %v3649_v6 = vpack.c.bf16 %v3643_v3, %v3642_v15  ;;  %v3641_v38 = vld [vmem:[%s11101_s5 + $0x498] sm:$0xff] }
0x1737   :  { %v3486_v59 = vmul.f32 0.015625, %v3473_v16  ;;  %v3498_v52 = vmul.f32 %v3493_v14, %v3493_v14  ;;  %v3638_v16 = vld [vmem:[%s11101_s5 + $0x480] sm:$0xff] }
0x1738   :  { %vm3557_vm5 = vcmp.eq.s32.totalorder %v11162_v43, %v3556_v24 }
0x1739   :  { %v3491_v32 = vsub.f32 %v3465_v37, %v3486_v59  ;;  %v3507_v4 = vsel %vm148_vm2, %v3498_v52, 0.0  ;;  %v6289_v20 = vsel %vm3557_vm5, 1.0, %v11135_v9  ;;  %v3639_v59 = vld [vmem:[%s11101_s5 + $0x488] sm:$0xff] }
0x173a   :  { %3508 = vadd.xlane.f32.xlu1 %v3507_v4  ;;  %v3647_v52 = vpack.c.bf16 %v3639_v59, %v3638_v16 }
0x173b   :  { %v3496_v54 = vmul.f32 %v3491_v32, %v3491_v32 }
0x173d   :  { %v3501_v21 = vsel %vm148_vm2, %v3496_v54, 0.0 }
0x173e   :  { %3502 = vadd.xlane.f32.xlu1 %v3501_v21  ;;  %v3861_v21 = vld [vmem:[%s11100_s4 + $0x58] sm:$0xff] }
0x17bb   :  { %v3512_v41 = vpop.xlane.xlu0 %3511 }
0x17bc   :  { %v3519_v56 = vmul.f32 0.015625, %v3512_v41  ;;  %v3862_v41 = vld [vmem:[%s11100_s4 + $0x60] sm:$0xff] }
0x17be   :  { %v3524_v12 = vadd.f32 1e-06, %v3519_v56  ;;  %v3859_v56 = vld [vmem:[%s11100_s4 + $0x48] sm:$0xff] }
0x17bf   :  { %v3515_v39 = vpop.xlane.xlu1 %3514  ;;  %v3506_v23 = vpop.xlane.xlu0 %3505 }
0x17c0   :  { %7693 = vrsqrt.f32 %v3524_v12  ;;  %v3520_v5 = vmul.f32 0.015625, %v3515_v39  ;;  %v3517_v55 = vmul.f32 0.015625, %v3506_v23  ;;  %v3865_v12 = vpack.c.bf16 %v3862_v41, %v3861_v21  ;;  %v3860_v39 = vld [vmem:[%s11100_s4 + $0x50] sm:$0xff]  ;;  %v3731_v21 = vld [vmem:[%s11100_s4] sm:$0xff]  ;;  %v3732_v41 = vld [vmem:[%s11100_s4 + $0x8] sm:$0xff] }
0x17c1   :  { %v3864_v23 = vpack.c.bf16 %v3860_v39, %v3859_v56  ;;  %v3740_v56 = vpack.c.bf16 %v3732_v41, %v3731_v21  ;;  %v10294_v39 = vsel %vm3821_vm13, 1.0, %v11135_v9 }
0x17c2   :  { %v3525_v60 = vadd.f32 1e-06, %v3520_v5  ;;  %v3522_v48 = vadd.f32 1e-06, %v3517_v55  ;;  %v10189_v5 = vld [vmem:[%s11097_s1] sm:$0xff]  ;;  %v10194_v55 = vld [vmem:[%s11097_s1 + $0x8] sm:$0xff] }
0x17c3   :  { %v3509_v57 = vpop.xlane.xlu1 %3508 }
0x17c4   :  { %7695 = vrsqrt.f32 %v3525_v60  ;;  %v3518_v7 = vmul.f32 0.015625, %v3509_v57  ;;  %v3917_v60 = vld [vmem:[%s11100_s4 + $0x78] sm:$0xff]  ;;  %v10205_v57 = vpack.c.bf16 %v10194_v55, %v10189_v5 }
0x17c5   :  { %7697 = vrsqrt.f32 %v3522_v48  ;;  %v3918_v48 = vld [vmem:[%s11100_s4 + $0x80] sm:$0xff] }
0x17c6   :  { %v3523_v53 = vadd.f32 1e-06, %v3518_v7  ;;  %v3920_v7 = vpack.c.bf16 %v3918_v48, %v3917_v60  ;;  %v10301_v48 = vsel %vm3825_vm14, 1.0, %v11135_v9 }
0x17c7   :  { %v3503_v30 = vpop.xlane.xlu1 %3502 }
0x17c8   :  { %7699 = vrsqrt.f32 %v3523_v53  ;;  %v3516_v11 = vmul.f32 0.015625, %v3503_v30  ;;  %v3915_v53 = vld [vmem:[%s11100_s4 + $0x68] sm:$0xff]  ;;  %v3916_v30 = vld [vmem:[%s11100_s4 + $0x70] sm:$0xff] }
0x17ca   :  { %v3521_v61 = vadd.f32 1e-06, %v3516_v11  ;;  %v3919_v11 = vpack.c.bf16 %v3916_v30, %v3915_v53 }
0x17cc   :  { %7701 = vrsqrt.f32 %v3521_v61  ;;  %v10227_v61 = vld [vmem:[%s11101_s5 + $0x4c0] sm:$0x7] }
0x17cd   :  { %v7694_v47 = vpop.eup %7693 }
0x17ce   :  { %v3534_v40 = vmul.f32 %v7694_v47, %v3494_v27  ;;  %v3654_v47 = vrot.slane %v10227_v61, %v11159_v2 }
0x17d0   :  { %v3543_v62 = vmul.f32 %v3539_v29, %v3534_v40 }
0x17d1   :  { %v7696_v31 = vpop.eup %7695 }
0x17d2   :  { %v7698_v36 = vpop.eup %7697  ;;  %v3535_v8 = vmul.f32 %v7696_v31, %v3495_v45  ;;  %v3552_v37 = vadd.f32 %v3548_v10, %v3543_v62 }
0x17d3   :  { %v3532_v33 = vmul.f32 %v7698_v36, %v3492_v49 }
0x17d4   :  { %v3544_v44 = vmul.f32 %v3539_v29, %v3535_v8 }
0x17d5   :  { %v7700_v42 = vpop.eup %7699  ;;  %v3541_v58 = vmul.f32 %v3539_v29, %v3532_v33 }
0x17d6   :  { %v3553_v1 = vadd.f32 %v3548_v10, %v3544_v44  ;;  %v3533_v50 = vmul.f32 %v7700_v42, %v3493_v14  ;;  %v3640_v14 = vld [vmem:[%s11101_s5 + $0x490] sm:$0xff] }
0x17d7   :  { %v3550_v46 = vadd.f32 %v3548_v10, %v3541_v58  ;;  %v3648_v17 = vpack.c.bf16 %v3641_v38, %v3640_v14  ;;  %v3733_v14 = vld [vmem:[%s11100_s4 + $0x10] sm:$0xff]  ;;  %v3734_v38 = vld [vmem:[%s11100_s4 + $0x18] sm:$0xff] }
0x17d8   :  { %7143 = vmatpush3.msk.msra.mxu0 %vm3563_vm4, %v3553_v1  ;;  %v3542_v18 = vmul.f32 %v3539_v29, %v3533_v50 }
0x17d9   :  { %v7702_v51 = vpop.eup %7701  ;;  %7144 = vmatprep.subr.mxu0 %v11135_v9 }
0x17da   :  { %7145 = vmatpush3.msra.mxu0 %v3552_v37  ;;  %v3551_v27 = vadd.f32 %v3548_v10, %v3542_v18  ;;  %v3531_v34 = vmul.f32 %v7702_v51, %v3491_v32  ;;  %v10240_v18 = vld [vmem:[%s11100_s4 + $0x188] sm:$0xff] }
0x17db   :  { %7146 = vmatprep.subr.mxu0 %v11135_v9  ;;  %v3924_v51 = vrot.slane %v10240_v18, %v11160_v26 }
0x17dc   :  { %7147 = vmatpush3.msra.mxu0 %v3551_v27  ;;  %v3540_v45 = vmul.f32 %v3539_v29, %v3531_v34  ;;  %v3737_v27 = vld [vmem:[%s11100_s4 + $0x30] sm:$0xff]  ;;  %v3738_v34 = vld [vmem:[%s11100_s4 + $0x38] sm:$0xff] }
0x17dd   :  { %7148 = vmatprep.subr.mxu0 %v11135_v9  ;;  %v3743_v25 = vpack.c.bf16 %v3738_v34, %v3737_v27 }
0x17de   :  { %7149 = vmatpush3.msra.mxu0 %v3550_v46  ;;  %v3549_v49 = vadd.f32 %v3548_v10, %v3540_v45  ;;  %v3736_v45 = vld [vmem:[%s11100_s4 + $0x28] sm:$0xff] }
0x17df   :  { %7150 = vmatprep.subr.mxu0 %v11135_v9  ;;  %7168 = vmatpush3.bf16.msra.mxu1 %v3743_v25  ;;  %v3742_v15 = vpack.c.bf16 %v3736_v45, %v3735_v13  ;;  %v3968_v25 = vld [vmem:[%s11100_s4 + $0x98] sm:$0xff] }
0x17e0   :  { %7151 = vmatpush3.msra.mxu0 %v3549_v49  ;;  %7169 = vmatprep.subr.bf16.mxu1 %v11135_v9 }
0x17e1   :  { %7153 = vmatmul.mubr.msk.f32.vlgmr.msra.gmra.mxu0 %vm555_vm15, %v6289_v20  ;;  %7155 = vmatprep.subr.bf16.mxu0 %v11135_v9  ;;  %vm3829_vm15 = vmand %vm3828_vm9, %vm39_vm11  ;;  %vm3791_vm11 = vcmask 254976  }
0x17e2   :  { %7156 = vmatpush3.bf16.msra.mxu0 %v3650_v28  ;;  %7163 = vmatprep.mubr.msk.bf16.mxu0 %vm7845_vm0, %v11135_v9 }
0x17e3   :  { %7157 = vmatprep.subr.bf16.mxu0 %v11135_v9  ;;  %7170 = vmatpush3.bf16.msra.mxu1 %v3742_v15 }
0x17e4   :  { %7171 = vmatprep.subr.bf16.mxu1 %v11135_v9 }
0x17e6   :  { %7158 = vmatpush3.bf16.msra.mxu0 %v3649_v6  ;;  %v3869_v6 = vrot.slane %v10240_v18, %v11159_v2 }
0x17e7   :  { %7159 = vmatprep.subr.bf16.mxu0 %v11135_v9 }
0x17ea   :  { %7160 = vmatpush3.bf16.msra.mxu0 %v3648_v17 }
0x17eb   :  { %7161 = vmatprep.subr.bf16.mxu0 %v11135_v9 }
0x17ee   :  { %7162 = vmatpush3.bf16.msra.mxu0 %v3647_v52  ;;  %v3741_v52 = vpack.c.bf16 %v3734_v38, %v3733_v14 }
0x17ef   :  { %7179 = vmatprep.subr.bf16.mxu0 %v11135_v9 }
0x17f0   :  { %7172 = vmatpush3.bf16.msra.mxu1 %v3741_v52 }
0x17f1   :  { %7173 = vmatprep.subr.bf16.mxu1 %v11135_v9 }
0x17f4   :  { %7174 = vmatpush3.bf16.msra.mxu1 %v3740_v56 }
0x17f5   :  { %7195 = vmatprep.subr.bf16.mxu1 %v11135_v9 }
0x18a1   :  { %v3633_v32 = vpop.f32.mrf.mxu0 }
0x18a2   :  { %v3646_v4 = vpack.c.bf16 %v3633_v32, %v3633_v32 }
0x18a3   :  { %v7154_v54 = vpop.f32.mrf.mxu0 }
0x18a4   :  { %7164 = vmatmul.mubr.msk.bf16.vlgmr.msra.gmra.mxu0 %vm148_vm2, %v3646_v4 }
0x18a5   :  { %7183 = vmatprep.mubr.msk.bf16.mxu0 %vm7845_vm0, %v11135_v9  ;;  %7180 = vmatpush3.bf16.msra.mxu0 %v3865_v12 }
0x18a6   :  { %7181 = vmatprep.subr.bf16.mxu0 %v11135_v9 }
0x18a9   :  { %7182 = vmatpush3.bf16.msra.mxu0 %v3864_v23 }
0x18aa   :  { %7187 = vmatprep.subr.bf16.mxu0 %v11135_v9 }
0x18ac   :  { %7184 = vmatmul.mubr.msk.bf16.vlgmr.msra.gmra.mxu0 %vm3870_vm6, %v10205_v57 }
0x18ad   :  { %7188 = vmatpush3.bf16.msra.mxu0 %v3920_v7  ;;  %7191 = vmatprep.mubr.msk.bf16.mxu0 %vm7845_vm0, %v11135_v9  ;;  %v10306_v7 = vsel %vm3829_vm15, 1.0, %v11135_v9 }
0x18ae   :  { %7189 = vmatprep.subr.bf16.mxu0 %v11135_v9 }
0x18b1   :  { %7190 = vmatpush3.bf16.msra.mxu0 %v3919_v11 }
0x18b2   :  { %7203 = vmatprep.subr.bf16.mxu0 %v11135_v9 }
0x18b4   :  { %7192 = vmatmul.mubr.msk.bf16.vlgmr.msra.gmra.mxu0 %vm3870_vm6, %v10205_v57 }
0x18b5   :  { %7205 = vmatprep.mubr.msk.bf16.mxu0 %vm7845_vm0, %v11135_v9 }
0x1964   :  { %v3692_v35 = vpop.f32.mrf.mxu0 }
0x1965   :  { %v3693_v29 = vadd.f32 %v3692_v35, %v3654_v47 }
0x1966   :  { %v7165_v40 = vpop.f32.mrf.mxu0 }
0x1967   :  { %v3698_v31 = vsel %vm161_vm3, %v3693_v29, 0.0 }
0x1968   :  { %3699 = vadd.xlane.f32.xlu0 %v3698_v31  ;;  %v3695_v36 = vpop.f32.mrf.mxu0 }
0x196a   :  { %v7166_v8 = vpop.f32.mrf.mxu0 }
0x196b   :  { %v3714_v8 = vrot.slane %v10227_v61, %v11160_v26 }
0x196c   :  { %v3908_v1 = vpop.f32.mrf.mxu0 }
0x196d   :  { %v3909_v32 = vadd.f32 %v3908_v1, %v3869_v6 }
0x196e   :  { %v7185_v50 = vpop.f32.mrf.mxu0 }
0x1970   :  { %v3911_v19 = vpop.f32.mrf.mxu0 }
0x1971   :  { %v3912_v4 = vadd.f32 %v3911_v19, %v3869_v6 }
0x1972   :  { %v7186_v24 = vpop.f32.mrf.mxu0 }
0x1973   :  { %v10280_v12 = vpack.c.bf16 %v3912_v4, %v3909_v32 }
0x1974   :  { %v3959_v37 = vpop.f32.mrf.mxu0 }
0x1975   :  { %v3960_v20 = vadd.f32 %v3959_v37, %v3924_v51 }
0x1976   :  { %v7193_v58 = vpop.f32.mrf.mxu0 }
0x1977   :  { %v4099_v23 = vmul.f32 %v10294_v39, %v3960_v20  ;;  %v10309_v53 = vmul.f32 %v10301_v48, %v3960_v20  ;;  %v10315_v47 = vmul.f32 %v10306_v7, %v3960_v20 }
0x1978   :  { %v3962_v46 = vpop.f32.mrf.mxu0 }
0x1979   :  { %v3963_v28 = vadd.f32 %v3962_v46, %v3924_v51 }
0x197a   :  { %v7194_v3 = vpop.f32.mrf.mxu0 }
0x197b   :  { %v4100_v60 = vmul.f32 %v10294_v39, %v3963_v28  ;;  %v10312_v30 = vmul.f32 %v10301_v48, %v3963_v28  ;;  %v10318_v35 = vmul.f32 %v10306_v7, %v3963_v28 }
0x197d   :  { %v4101_v11 = vpack.c.bf16 %v4100_v60, %v4099_v23 }
0x197f   :  { %v4103_v3 = vsel %vm3870_vm6, %v4101_v11, 0 }
0x19f1   :  { %v3700_v44 = vpop.xlane.xlu0 %3699 }
0x19f2   :  { %v3701_v10 = vmul.f32 0.015625, %v3700_v44 }
0x19f4   :  { %v10232_v62 = vsub.f32 %v3693_v29, %v3701_v10  ;;  %v4381_v29 = vpack.c.bf16 %v10318_v35, %v10315_v47  ;;  %v11163_v10 = vld [vmem:[#allocation13_spill] sm:$0xff] }
0x19f5   :  { %v3975_v32 = vrot.slane %v10240_v18, %v11163_v10 }
0x19f6   :  { %v3703_v33 = vmul.f32 %v10232_v62, %v10232_v62 }
0x19f8   :  { %v3704_v42 = vsel %vm161_vm3, %v3703_v33, 0.0  ;;  %vm3816_vm3 = vcmp.lt.s32.totalorder %v11162_v43, 8  ;;  %v4262_v43 = vpack.c.bf16 %v10312_v30, %v10309_v53  ;;  %v3719_v33 = vrot.slane %v10227_v61, %v11163_v10  ;;  %v3969_v61 = vld [vmem:[%s11100_s4 + $0xa0] sm:$0xff] }
0x19f9   :  { %3705 = vadd.xlane.f32.xlu1 %v3704_v42  ;;  %v10258_v49 = vsel %vm3816_vm3, 1.0, %v11135_v9  ;;  %v3971_v46 = vpack.c.bf16 %v3969_v61, %v3968_v25 }
0x19fa   :  { %v4022_v17 = vmul.f32 %v10258_v49, %v3960_v20  ;;  %v4023_v16 = vmul.f32 %v10258_v49, %v3963_v28  ;;  %v3966_v20 = vld [vmem:[%s11100_s4 + $0x88] sm:$0xff]  ;;  %v3967_v28 = vld [vmem:[%s11100_s4 + $0x90] sm:$0xff] }
0x19fb   :  { %v3970_v15 = vpack.c.bf16 %v3967_v28, %v3966_v20 }
0x19fc   :  { %v4024_v59 = vpack.c.bf16 %v4023_v16, %v4022_v17 }
0x19fe   :  { %v4029_v54 = vsel %vm3870_vm6, %v4024_v59, 0 }
0x19ff   :  { %7204 = vmatpush3.bf16.xpose.msra.mxu0 %v4029_v54 }
0x1a00   :  { %7215 = vmatprep.subr.bf16.mxu0 %v11135_v9 }
0x1a06   :  { %7206 = vmatmul.mubr.msk.bf16.vlgmr.msra.gmra.mxu0 %vm3870_vm6, %v10280_v12 }
0x1a07   :  { %7217 = vmatprep.mubr.msk.bf16.mxu0 %vm7845_vm0, %v11135_v9 }
0x1a82   :  { %v3706_v40 = vpop.xlane.xlu1 %3705 }
0x1a83   :  { %v3707_v31 = vmul.f32 0.015625, %v3706_v40 }
0x1a85   :  { %v3708_v36 = vadd.f32 1e-05, %v3707_v31 }
0x1a87   :  { %7703 = vrsqrt.f32 %v3708_v36 }
0x1a94   :  { %v7704_v44 = vpop.eup %7703 }
0x1a95   :  { %v3710_v42 = vmul.f32 %v7704_v44, %v10232_v62 }
0x1a97   :  { %v3715_v1 = vmul.f32 %v3714_v8, %v3710_v42 }
0x1a99   :  { %v3720_v50 = vadd.f32 %v3719_v33, %v3715_v1  ;;  %v10376_v33 = vld [vmem:[%s11099_s3] sm:$0xff] }
0x1a9b   :  { %v3722_v19 = vmul.f32 0.044715, %v3720_v50  ;;  %v3721_v34 = vmul.f32 0.5, %v3720_v50 }
0x1a9d   :  { %v3723_v24 = vmul.f32 %v3722_v19, %v3720_v50 }
0x1a9f   :  { %v3724_v37 = vmul.f32 %v3723_v24, %v3720_v50 }
0x1aa1   :  { %v3725_v58 = vadd.f32 %v3724_v37, %v3720_v50 }
0x1aa3   :  { %v3726_v51 = vmul.f32 0.7978846, %v3725_v58 }
0x1aa5   :  { %7705 = vtanh.f32 %v3726_v51 }
0x1ab2   :  { %v7706_v27 = vpop.eup %7705 }
0x1ab3   :  { %v3728_v13 = vadd.f32 1.0, %v7706_v27 }
0x1ab5   :  { %v3729_v62 = vmul.f32 %v3728_v13, %v3721_v34  ;;  %v10390_v34 = vld [vmem:[%s11099_s3 + $0x8] sm:$0xff] }
0x1ab7   :  { %v3739_v45 = vpack.c.bf16 %v3729_v62, %v3729_v62 }
0x1ab9   :  { %7176 = vmatmul.mubr.msk.bf16.vlgmr.msra.gmra.mxu1 %vm148_vm2, %v3739_v45 }
0x1aba   :  { %7196 = vmatpush3.bf16.msra.mxu1 %v3971_v46  ;;  %7199 = vmatprep.mubr.msk.bf16.mxu1 %vm7845_vm0, %v11135_v9 }
0x1abb   :  { %7197 = vmatprep.subr.bf16.mxu1 %v11135_v9 }
0x1abe   :  { %7198 = vmatpush3.bf16.msra.mxu1 %v3970_v15 }
0x1abf   :  { %7209 = vmatprep.subr.bf16.mxu1 %v11135_v9 }
0x1ac1   :  { %7200 = vmatmul.mubr.msk.bf16.vlgmr.msra.gmra.mxu1 %vm3870_vm6, %v10205_v57 }
0x1ac2   :  { %7210 = vmatpush3.bf16.xpose.msra.mxu1 %v4103_v3  ;;  %7211 = vmatprep.mubr.msk.bf16.mxu1 %vm7845_vm0, %v11135_v9 }
0x1ac3   :  { %7221 = vmatprep.subr.bf16.mxu1 %v11135_v9 }
0x1ac6   :  { %v4065_v6 = vpop.f32.mrf.mxu0 }
0x1ac8   :  { %v7207_v14 = vpop.f32.mrf.mxu0 }
0x1ac9   :  { %7212 = vmatmul.mubr.msk.bf16.vlgmr.msra.gmra.mxu1 %vm3870_vm6, %v10280_v12 }
0x1aca   :  { %7223 = vmatprep.mubr.msk.bf16.mxu1 %vm7845_vm0, %v11135_v9  ;;  %v4068_v38 = vpop.f32.mrf.mxu0 }
0x1acc   :  { %v7208_v17 = vpop.f32.mrf.mxu0 }
0x1acd   :  { %v4066_v17 = vadd.f32 %v4065_v6, %v10376_v33 }
0x1b79   :  { %v10356_v16 = vpop.f32.mrf.mxu1 }
0x1b7b   :  { %v7177_v57 = vpop.f32.mrf.mxu1 }
0x1b7d   :  { %v3788_v59 = vpop.f32.mrf.mxu1 }
0x1b7f   :  { %v7178_v52 = vpop.f32.mrf.mxu1 }
0x1b80   :  { %v4069_v52 = vadd.f32 %v4068_v38, %v10390_v34  ;;  %v4264_v38 = vsel %vm3870_vm6, %v4262_v43, 0 }
0x1b81   :  { %v4010_v4 = vpop.f32.mrf.mxu1 }
0x1b82   :  { %v4011_v54 = vadd.f32 %v4010_v4, %v3975_v32  ;;  %v4073_v4 = vsel %vm4072_vm10, %v4066_v17, -inf }
0x1b83   :  { %v7201_v21 = vpop.f32.mrf.mxu1 }
0x1b84   :  { %v4095_v23 = vmul.f32 %v10258_v49, %v4011_v54  ;;  %v4168_v60 = vmul.f32 %v10294_v39, %v4011_v54  ;;  %v10363_v11 = vmul.f32 %v10301_v48, %v4011_v54  ;;  %v10379_v42 = vmul.f32 %v10306_v7, %v4011_v54 }
0x1b85   :  { %v4013_v41 = vpop.f32.mrf.mxu1  ;;  %v4076_v54 = vsel %vm4072_vm10, %v4069_v52, -inf }
0x1b86   :  { %v4014_v56 = vadd.f32 %v4013_v41, %v3975_v32 }
0x1b87   :  { %v7202_v40 = vpop.f32.mrf.mxu1 }
0x1b88   :  { %v4096_v31 = vmul.f32 %v10258_v49, %v4014_v56  ;;  %v4169_v36 = vmul.f32 %v10294_v39, %v4014_v56  ;;  %v10368_v8 = vmul.f32 %v10301_v48, %v4014_v56  ;;  %v10371_v44 = vmul.f32 %v10306_v7, %v4014_v56 }
0x1b89   :  { %v4139_v1 = vpop.f32.mrf.mxu1 }
0x1b8a   :  { %v4140_v50 = vadd.f32 %v4139_v1, %v10376_v33  ;;  %v4171_v19 = vpack.c.bf16 %v4169_v36, %v4168_v60  ;;  %v4098_v24 = vpack.c.bf16 %v4096_v31, %v4095_v23  ;;  %v4332_v37 = vpack.c.bf16 %v10368_v8, %v10363_v11 }
0x1b8b   :  { %v7213_v58 = vpop.f32.mrf.mxu1  ;;  %v4451_v51 = vpack.c.bf16 %v10371_v44, %v10379_v42  ;;  %v4383_v31 = vsel %vm3870_vm6, %v4381_v29, 0  ;;  %v4592_v44 = vld [vmem:[%s11100_s4 + $0xe0] sm:$0xff] }
0x1b8c   :  { %v4146_v27 = vsel %vm4072_vm10, %v4140_v50, -inf  ;;  %7216 = vmatpush3.bf16.msra.mxu0 %v4171_v19  ;;  %7222 = vmatpush3.bf16.msra.mxu1 %v4098_v24 }
0x1b8d   :  { %4147 = vmax.xlane.f32.xlu0 %v4146_v27  ;;  %v4142_v13 = vpop.f32.mrf.mxu1  ;;  %7227 = vmatprep.subr.bf16.mxu0 %v11135_v9 }
0x1b8e   :  { %v4143_v25 = vadd.f32 %v4142_v13, %v10390_v34  ;;  %7233 = vmatprep.subr.bf16.mxu1 %v11135_v9 }
0x1b8f   :  { %v7214_v61 = vpop.f32.mrf.mxu1 }
0x1b90   :  { %v4149_v62 = vsel %vm4072_vm10, %v4143_v25, -inf }
0x1b91   :  { %4150 = vmax.xlane.f32.xlu1 %v4149_v62 }
0x1c16   :  { %v4148_v46 = vpop.xlane.xlu0 %4147 }
0x1c17   :  { %v4152_v45 = vsub.f32 %v4140_v50, %v4148_v46 }
0x1c19   :  { %v4154_v20 = vmul.f32 1.442695, %v4152_v45 }
0x1c1a   :  { %v4151_v28 = vpop.xlane.xlu1 %4150 }
0x1c1b   :  { %7707 = vpow2.f32 %v4154_v20  ;;  %v4153_v15 = vsub.f32 %v4143_v25, %v4151_v28 }
0x1c1d   :  { %v4156_v3 = vmul.f32 1.442695, %v4153_v15 }
0x1c1f   :  { %7709 = vpow2.f32 %v4156_v3 }
0x1c28   :  { %v7708_v14 = vpop.eup %7707 }
0x1c29   :  { %v4158_v57 = vsel %vm4072_vm10, %v7708_v14, 0.0 }
0x1c2a   :  { %4159 = vadd.xlane.f32.xlu0 %v4158_v57 }
0x1c2c   :  { %v7710_v59 = vpop.eup %7709 }
0x1c2d   :  { %v4161_v32 = vsel %vm4072_vm10, %v7710_v59, 0.0 }
0x1c2e   :  { %4162 = vadd.xlane.f32.xlu1 %v4161_v32  ;;  %4074 = vmax.xlane.f32.xlu0 %v4073_v4 }
0x1c32   :  { %4077 = vmax.xlane.f32.xlu1 %v4076_v54 }
0x1cb3   :  { %v4160_v21 = vpop.xlane.xlu0 %4159 }
0x1cb4   :  { %7711 = vrcp.f32 %v4160_v21 }
0x1cb7   :  { %v4163_v41 = vpop.xlane.xlu1 %4162  ;;  %v4075_v53 = vpop.xlane.xlu0 %4074 }
0x1cb8   :  { %7713 = vrcp.f32 %v4163_v41  ;;  %v4079_v30 = vsub.f32 %v4066_v17, %v4075_v53 }
0x1cba   :  { %v4081_v35 = vmul.f32 1.442695, %v4079_v30 }
0x1cbb   :  { %v4078_v43 = vpop.xlane.xlu1 %4077 }
0x1cbc   :  { %v4080_v29 = vsub.f32 %v4069_v52, %v4078_v43  ;;  %7715 = vpow2.f32 %v4081_v35 }
0x1cbe   :  { %v4083_v19 = vmul.f32 1.442695, %v4080_v29 }
0x1cc0   :  { %7717 = vpow2.f32 %v4083_v19 }
0x1cc1   :  { %v7712_v6 = vpop.eup %7711 }
0x1cc2   :  { %v4166_v23 = vmul.f32 %v7712_v6, %v7708_v14 }
0x1cc5   :  { %v7714_v56 = vpop.eup %7713 }
0x1cc6   :  { %v4167_v60 = vmul.f32 %v7714_v56, %v7710_v59 }
0x1cc8   :  { %v4170_v40 = vpack.c.bf16 %v4167_v60, %v4166_v23 }
0x1cc9   :  { %v7716_v15 = vpop.eup %7715 }
0x1cca   :  { %7218 = vmatmul.mubr.msk.bf16.vlgmr.msra.gmra.mxu0 %vm4072_vm10, %v4170_v40  ;;  %v4085_v57 = vsel %vm4072_vm10, %v7716_v15, 0.0 }
0x1ccb   :  { %7228 = vmatpush3.bf16.xpose.msra.mxu0 %v4264_v38  ;;  %7229 = vmatprep.mubr.msk.bf16.mxu0 %vm7845_vm0, %v11135_v9 }
0x1ccc   :  { %7239 = vmatprep.subr.bf16.mxu0 %v11135_v9 }
0x1ccd   :  { %v7718_v52 = vpop.eup %7717 }
0x1cce   :  { %v4088_v32 = vsel %vm4072_vm10, %v7718_v52, 0.0 }
0x1cd2   :  { %7230 = vmatmul.mubr.msk.bf16.vlgmr.msra.gmra.mxu0 %vm3870_vm6, %v10280_v12 }
0x1cd3   :  { %7240 = vmatpush3.bf16.xpose.msra.mxu0 %v4383_v31  ;;  %7241 = vmatprep.mubr.msk.bf16.mxu0 %vm7845_vm0, %v11135_v9 }
0x1cd4   :  { %7251 = vmatprep.subr.bf16.mxu0 %v11135_v9 }
0x1cda   :  { %7242 = vmatmul.mubr.msk.bf16.vlgmr.msra.gmra.mxu0 %vm3870_vm6, %v10280_v12 }
0x1cdb   :  { %7255 = vmatprep.mubr.msk.bf16.mxu0 %vm7845_vm0, %v11135_v9 }
0x1d8a   :  { %v10423_v36 = vpop.f32.mrf.mxu0 }
0x1d8c   :  { %v7219_v47 = vpop.f32.mrf.mxu0 }
0x1d8d   :  { %v10441_v47 = vld [vmem:[%s11100_s4 + $0x40] sm:$0x7] }
0x1d8e   :  { %v10425_v1 = vpop.f32.mrf.mxu0  ;;  %v3747_v29 = vrot.slane %v10441_v47, %v11159_v2 }
0x1d90   :  { %v7220_v50 = vpop.f32.mrf.mxu0 }
0x1d92   :  { %v4300_v24 = vpop.f32.mrf.mxu0 }
0x1d93   :  { %v4301_v58 = vadd.f32 %v4300_v24, %v10376_v33  ;;  %v3786_v24 = vadd.f32 %v10356_v16, %v3747_v29 }
0x1d94   :  { %v7231_v12 = vpop.f32.mrf.mxu0 }
0x1d95   :  { %v4307_v27 = vsel %vm4072_vm10, %v4301_v58, -inf }
0x1d96   :  { %4308 = vmax.xlane.f32.xlu0 %v4307_v27  ;;  %v4303_v13 = vpop.f32.mrf.mxu0 }
0x1d97   :  { %v4304_v25 = vadd.f32 %v4303_v13, %v10390_v34 }
0x1d98   :  { %v7232_v61 = vpop.f32.mrf.mxu0 }
0x1d99   :  { %v4310_v62 = vsel %vm4072_vm10, %v4304_v25, -inf }
0x1d9a   :  { %4311 = vmax.xlane.f32.xlu1 %v4310_v62  ;;  %v4419_v46 = vpop.f32.mrf.mxu0 }
0x1d9b   :  { %v4420_v45 = vadd.f32 %v4419_v46, %v10376_v33 }
0x1d9c   :  { %v7243_v20 = vpop.f32.mrf.mxu0 }
0x1d9d   :  { %v4426_v28 = vsel %vm4072_vm10, %v4420_v45, -inf }
0x1d9e   :  { %4427 = vmax.xlane.f32.xlu0 %v4426_v28  ;;  %v4422_v3 = vpop.f32.mrf.mxu0 }
0x1d9f   :  { %v4423_v14 = vadd.f32 %v4422_v3, %v10390_v34 }
0x1da0   :  { %v7244_v17 = vpop.f32.mrf.mxu0 }
0x1da1   :  { %v4429_v59 = vsel %vm4072_vm10, %v4423_v14, -inf }
0x1da2   :  { %4086 = vadd.xlane.f32.xlu0 %v4085_v57  ;;  %4430 = vmax.xlane.f32.xlu1 %v4429_v59 }
0x1da6   :  { %4089 = vadd.xlane.f32.xlu1 %v4088_v32 }
0x1e1f   :  { %v4309_v33 = vpop.xlane.xlu0 %4308 }
0x1e20   :  { %v4313_v4 = vsub.f32 %v4301_v58, %v4309_v33 }
0x1e22   :  { %v4315_v54 = vmul.f32 1.442695, %v4313_v4 }
0x1e23   :  { %v4312_v21 = vpop.xlane.xlu1 %4311 }
0x1e24   :  { %7719 = vpow2.f32 %v4315_v54  ;;  %v4314_v41 = vsub.f32 %v4304_v25, %v4312_v21  ;;  %v3792_v25 = vsel %vm3791_vm11, %v3786_v24, 0.0 }
0x1e26   :  { %v4317_v6 = vmul.f32 1.442695, %v4314_v41 }
0x1e27   :  { %v4428_v56 = vpop.xlane.xlu0 %4427 }
0x1e28   :  { %7721 = vpow2.f32 %v4317_v6  ;;  %v4432_v34 = vsub.f32 %v4420_v45, %v4428_v56  ;;  %v4591_v6 = vld [vmem:[%s11100_s4 + $0xd8] sm:$0xff]  ;;  %v4590_v56 = vld [vmem:[%s11100_s4 + $0xd0] sm:$0xff] }
0x1e29   :  { %v4595_v42 = vpack.c.bf16 %v4592_v44, %v4591_v6 }
0x1e2a   :  { %v4434_v23 = vmul.f32 1.442695, %v4432_v34 }
0x1e2b   :  { %v4431_v60 = vpop.xlane.xlu1 %4430  ;;  %v4087_v40 = vpop.xlane.xlu0 %4086 }
0x1e2c   :  { %7723 = vpow2.f32 %v4434_v23  ;;  %v4433_v38 = vsub.f32 %v4423_v14, %v4431_v60 }
0x1e2d   :  { %7725 = vrcp.f32 %v4087_v40 }
0x1e2e   :  { %v4436_v31 = vmul.f32 1.442695, %v4433_v38 }
0x1e2f   :  { %v4090_v53 = vpop.xlane.xlu1 %4089 }
0x1e30   :  { %7727 = vpow2.f32 %v4436_v31  ;;  %v4019_v31 = vld [vmem:[%s11100_s4 + $0xb8] sm:$0xff] }
0x1e31   :  { %v7720_v30 = vpop.eup %7719  ;;  %7729 = vrcp.f32 %v4090_v53  ;;  %v4020_v53 = vld [vmem:[%s11100_s4 + $0xc0] sm:$0xff] }
0x1e32   :  { %v4319_v43 = vsel %vm4072_vm10, %v7720_v30, 0.0 }
0x1e33   :  { %4320 = vadd.xlane.f32.xlu0 %v4319_v43  ;;  %v4017_v43 = vld [vmem:[%s11100_s4 + $0xa8] sm:$0xff] }
0x1e35   :  { %v7722_v35 = vpop.eup %7721 }
0x1e36   :  { %v4322_v50 = vsel %vm4072_vm10, %v7722_v35, 0.0 }
0x1e37   :  { %4323 = vadd.xlane.f32.xlu1 %v4322_v50 }
0x1e39   :  { %v7724_v19 = vpop.eup %7723 }
0x1e3a   :  { %v4438_v58 = vsel %vm4072_vm10, %v7724_v19, 0.0  ;;  %v7726_v12 = vpop.eup %7725 }
0x1e3b   :  { %4439 = vadd.xlane.f32.xlu0 %v4438_v58  ;;  %v4093_v62 = vmul.f32 %v7726_v12, %v7716_v15  ;;  %v3809_v58 = vrot.slane %v10441_v47, %v11160_v26 }
0x1e3d   :  { %v7728_v27 = vpop.eup %7727 }
0x1e3e   :  { %v7730_v13 = vpop.eup %7729  ;;  %v4441_v61 = vsel %vm4072_vm10, %v7728_v27, 0.0 }
0x1e3f   :  { %v4094_v46 = vmul.f32 %v7730_v13, %v7718_v52  ;;  %3793 = vadd.xlane.f32.xlu0 %v3792_v25  ;;  %4442 = vadd.xlane.f32.xlu1 %v4441_v61 }
0x1e41   :  { %v4097_v45 = vpack.c.bf16 %v4094_v46, %v4093_v62 }
0x1e43   :  { %7224 = vmatmul.mubr.msk.bf16.vlgmr.msra.gmra.mxu1 %vm4072_vm10, %v4097_v45 }
0x1e44   :  { %7234 = vmatpush3.bf16.msra.mxu1 %v4332_v37  ;;  %7235 = vmatprep.mubr.msk.bf16.mxu1 %vm7845_vm0, %v11135_v9 }
0x1e45   :  { %7245 = vmatprep.subr.bf16.mxu1 %v11135_v9 }
0x1ebc   :  { %v4321_v16 = vpop.xlane.xlu0 %4320 }
0x1ebd   :  { %7731 = vrcp.f32 %v4321_v16 }
0x1ec0   :  { %v4324_v20 = vpop.xlane.xlu1 %4323 }
0x1ec1   :  { %7733 = vrcp.f32 %v4324_v20 }
0x1ec4   :  { %v4440_v28 = vpop.xlane.xlu0 %4439 }
0x1ec5   :  { %7735 = vrcp.f32 %v4440_v28 }
0x1ec8   :  { %v3794_v15 = vpop.xlane.xlu0 %3793  ;;  %v4443_v3 = vpop.xlane.xlu1 %4442 }
0x1ec9   :  { %v3796_v14 = vmul.f32 0.03125, %v3794_v15  ;;  %7737 = vrcp.f32 %v4443_v3 }
0x1eca   :  { %v7732_v57 = vpop.eup %7731 }
0x1ecb   :  { %v3797_v17 = vsub.f32 %v3786_v24, %v3796_v14  ;;  %v4327_v8 = vmul.f32 %v7732_v57, %v7720_v30  ;;  %v4500_v30 = vpack.c.bf16 %v4020_v53, %v4019_v31  ;;  %v4645_v57 = vld [vmem:[%s11100_s4 + $0xf8] sm:$0xff] }
0x1ecd   :  { %v3798_v59 = vmul.f32 %v3797_v17, %v3797_v17  ;;  %7252 = vmatpush3.bf16.msra.mxu0 %v4500_v30 }
0x1ece   :  { %v7734_v11 = vpop.eup %7733  ;;  %7253 = vmatprep.subr.bf16.mxu0 %v11135_v9 }
0x1ecf   :  { %v4328_v37 = vmul.f32 %v7734_v11, %v7722_v35  ;;  %v3799_v52 = vsel %vm3791_vm11, %v3798_v59, 0.0  ;;  %v4018_v35 = vld [vmem:[%s11100_s4 + $0xb0] sm:$0xff]  ;;  %v4646_v59 = vld [vmem:[%s11100_s4 + $0x100] sm:$0xff] }
0x1ed0   :  { %3800 = vadd.xlane.f32.xlu1 %v3799_v52  ;;  %v4499_v29 = vpack.c.bf16 %v4018_v35, %v4017_v43 }
0x1ed1   :  { %v4331_v32 = vpack.c.bf16 %v4328_v37, %v4327_v8 }
0x1ed2   :  { %v7736_v33 = vpop.eup %7735  ;;  %7254 = vmatpush3.bf16.msra.mxu0 %v4499_v29 }
0x1ed3   :  { %7236 = vmatmul.mubr.msk.bf16.vlgmr.msra.gmra.mxu1 %vm4072_vm10, %v4331_v32  ;;  %v4446_v54 = vmul.f32 %v7736_v33, %v7724_v19  ;;  %7267 = vmatprep.subr.bf16.mxu0 %v11135_v9  ;;  %v4649_v32 = vpack.c.bf16 %v4646_v59, %v4645_v57 }
0x1ed4   :  { %7246 = vmatpush3.bf16.msra.mxu1 %v4451_v51  ;;  %7247 = vmatprep.mubr.msk.bf16.mxu1 %vm7845_vm0, %v11135_v9  ;;  %v4589_v51 = vld [vmem:[%s11100_s4 + $0xc8] sm:$0xff] }
0x1ed5   :  { %7259 = vmatprep.subr.bf16.mxu1 %v11135_v9  ;;  %v4594_v34 = vpack.c.bf16 %v4590_v56, %v4589_v51  ;;  %v11164_v56 = vld [vmem:[#allocation9_spill] sm:$0xff] }
0x1ed6   :  { %v7738_v4 = vpop.eup %7737 }
0x1ed7   :  { %v4447_v21 = vmul.f32 %v7738_v4, %v7728_v27  ;;  %v3814_v27 = vrot.slane %v10441_v47, %v11163_v10 }
0x1ed9   :  { %v4450_v41 = vpack.c.bf16 %v4447_v21, %v4446_v54  ;;  %v4599_v54 = vrot.slane %v10240_v18, %v8854_v0 }
0x1edb   :  { %7248 = vmatmul.mubr.msk.bf16.vlgmr.msra.gmra.mxu1 %vm4072_vm10, %v4450_v41 }
0x1edc   :  { %7263 = vmatprep.mubr.msk.bf16.mxu1 %vm7845_vm0, %v11135_v9  ;;  %7260 = vmatpush3.bf16.msra.mxu1 %v4595_v42 }
0x1edd   :  { %7261 = vmatprep.subr.bf16.mxu1 %v11135_v9 }
0x1ee0   :  { %7262 = vmatpush3.bf16.msra.mxu1 %v4594_v34  ;;  %v4504_v34 = vrot.slane %v10240_v18, %v11164_v56 }
0x1ee1   :  { %7275 = vmatprep.subr.bf16.mxu1 %v11135_v9 }
0x1f03   :  { %v4253_v23 = vpop.f32.mrf.mxu1 }
0x1f04   :  { %v4254_v15 = vadd.f32 %v4253_v23, %v10423_v36  ;;  %v4643_v36 = vld [vmem:[%s11100_s4 + $0xe8] sm:$0xff] }
0x1f05   :  { %v7225_v60 = vpop.f32.mrf.mxu1 }
0x1f07   :  { %v4256_v40 = vpop.f32.mrf.mxu1 }
0x1f08   :  { %v4257_v47 = vadd.f32 %v4256_v40, %v10425_v1  ;;  %v4644_v1 = vld [vmem:[%s11100_s4 + $0xf0] sm:$0xff] }
0x1f09   :  { %v7226_v38 = vpop.f32.mrf.mxu1  ;;  %v4648_v4 = vpack.c.bf16 %v4644_v1, %v4643_v36  ;;  %v4586_v36 = vrot.slane %v10240_v18, %v8739_v22 }
0x1f59   :  { %v3801_v50 = vpop.xlane.xlu1 %3800 }
0x1f5a   :  { %v3802_v19 = vmul.f32 0.03125, %v3801_v50 }
0x1f5c   :  { %v3803_v24 = vadd.f32 1e-05, %v3802_v19 }
0x1f5e   :  { %7739 = vrsqrt.f32 %v3803_v24 }
0x1f6b   :  { %v7740_v12 = vpop.eup %7739 }
0x1f6c   :  { %v3805_v13 = vmul.f32 %v7740_v12, %v3797_v17 }
0x1f6e   :  { %v3810_v25 = vmul.f32 %v3809_v58, %v3805_v13 }
0x1f70   :  { %v3815_v61 = vadd.f32 %v3814_v27, %v3810_v25 }
0x1f72   :  { %v10500_v62 = vpack.c.bf16 %v3815_v61, %v3815_v61 }
0x1f74   :  { %7264 = vmatmul.mubr.msk.bf16.vlgmr.msra.gmra.mxu1 %vm3870_vm6, %v10500_v62 }
0x1f75   :  { %7279 = vmatprep.mubr.msk.bf16.mxu1 %vm7845_vm0, %v11135_v9 }
0x1f93   :  { %v4370_v46 = vpop.f32.mrf.mxu1 }
0x1f94   :  { %v4377_v14 = vadd.f32 %v4370_v46, %v4254_v15 }
0x1f95   :  { %v7237_v45 = vpop.f32.mrf.mxu1 }
0x1f97   :  { %v4373_v16 = vpop.f32.mrf.mxu1 }
0x1f98   :  { %v4378_v17 = vadd.f32 %v4373_v16, %v4257_v47 }
0x1f99   :  { %v7238_v20 = vpop.f32.mrf.mxu1 }
0x1f9b   :  { %v4489_v28 = vpop.f32.mrf.mxu1 }
0x1f9c   :  { %v4496_v8 = vadd.f32 %v4489_v28, %v4377_v14  ;;  %v4653_v14 = vrot.slane %v10240_v18, %v8860_v63 }
0x1f9d   :  { %v7249_v3 = vpop.f32.mrf.mxu1 }
0x1f9f   :  { %v4492_v11 = vpop.f32.mrf.mxu1 }
0x1fa0   :  { %v4497_v37 = vadd.f32 %v4492_v11, %v4378_v17  ;;  %v11165_v11 = vld [vmem:[#allocation12_spill] sm:$0xff] }
0x1fa1   :  { %v7250_v52 = vpop.f32.mrf.mxu1 }
0x1fa2   :  { %v4498_v33 = vpack.c.bf16 %v4497_v37, %v4496_v8  ;;  %v4580_v8 = vrot.slane %v10240_v18, %v11165_v11 }
0x1fa4   :  { %7256 = vmatmul.mubr.msk.bf16.vlgmr.msra.gmra.mxu0 %vm3870_vm6, %v4498_v33 }
0x1fa5   :  { %7268 = vmatpush3.bf16.msra.mxu0 %v4649_v32  ;;  %7271 = vmatprep.mubr.msk.bf16.mxu0 %vm7845_vm0, %v11135_v9 }
0x1fa6   :  { %7269 = vmatprep.subr.bf16.mxu0 %v11135_v9 }
0x1fa9   :  { %7270 = vmatpush3.bf16.msra.mxu0 %v4648_v4 }
0x1faa   :  { %7283 = vmatprep.subr.bf16.mxu0 %v11135_v9 }
0x2034   :  { %v4637_v21 = vpop.f32.mrf.mxu1 }
0x2035   :  { %v4638_v41 = vadd.f32 %v4637_v21, %v4599_v54 }
0x2036   :  { %v7265_v6 = vpop.f32.mrf.mxu1 }
0x2037   :  { %v4647_v44 = vpack.c.bf16 %v4638_v41, %v4638_v41 }
0x2038   :  { %v4640_v42 = vpop.f32.mrf.mxu1 }
0x2039   :  { %7272 = vmatmul.mubr.msk.bf16.vlgmr.msra.gmra.mxu0 %vm3870_vm6, %v4647_v44 }
0x203a   :  { %v7266_v51 = vpop.f32.mrf.mxu1  ;;  %7299 = vmatprep.mubr.msk.bf16.mxu0 %vm7845_vm0, %v11135_v9 }
0x2064   :  { %v4542_v23 = vpop.f32.mrf.mxu0 }
0x2065   :  { %v4543_v60 = vadd.f32 %v4542_v23, %v4504_v34 }
0x2066   :  { %v7257_v40 = vpop.f32.mrf.mxu0 }
0x2067   :  { %v4549_v38 = vadd.f32 %v4543_v60, %v10189_v5 }
0x2068   :  { %v4545_v31 = vpop.f32.mrf.mxu0 }
0x2069   :  { %v4546_v53 = vadd.f32 %v4545_v31, %v4504_v34  ;;  %v4551_v30 = vsel %vm3870_vm6, %v4549_v38, 0.0 }
0x206a   :  { %4552 = vadd.xlane.f32.xlu0 %v4551_v30  ;;  %v7258_v43 = vpop.f32.mrf.mxu0 }
0x206b   :  { %v4550_v35 = vadd.f32 %v4546_v53, %v10194_v55 }
0x206d   :  { %v4554_v29 = vsel %vm3870_vm6, %v4550_v35, 0.0 }
0x206e   :  { %4555 = vadd.xlane.f32.xlu1 %v4554_v29 }
0x20f3   :  { %v4553_v50 = vpop.xlane.xlu0 %4552 }
0x20f4   :  { %v4557_v19 = vmul.f32 0.03125, %v4553_v50 }
0x20f6   :  { %v4559_v24 = vsub.f32 %v4549_v38, %v4557_v19 }
0x20f7   :  { %v4556_v58 = vpop.xlane.xlu1 %4555 }
0x20f8   :  { %v4558_v12 = vmul.f32 0.03125, %v4556_v58  ;;  %v4561_v27 = vmul.f32 %v4559_v24, %v4559_v24  ;;  %v4754_v58 = vld [vmem:[%s11102_s6 + $0x18] sm:$0xff] }
0x20f9   :  { %v4691_v13 = vpop.f32.mrf.mxu0 }
0x20fa   :  { %v4560_v25 = vsub.f32 %v4550_v35, %v4558_v12  ;;  %v4563_v5 = vsel %vm3870_vm6, %v4561_v27, 0.0  ;;  %v4692_v57 = vadd.f32 %v4691_v13, %v4653_v14  ;;  %v4751_v27 = vld [vmem:[%s11102_s6] sm:$0xff]  ;;  %v4752_v13 = vld [vmem:[%s11102_s6 + $0x8] sm:$0xff] }
0x20fb   :  { %4564 = vadd.xlane.f32.xlu0 %v4563_v5  ;;  %v7273_v61 = vpop.f32.mrf.mxu0 }
0x20fc   :  { %v4562_v46 = vmul.f32 %v4560_v25, %v4560_v25  ;;  %v4706_v59 = vrot.slane %v4692_v57, %v11160_v26  ;;  %v4700_v52 = vrot.slane %v4692_v57, %v11159_v2 }
0x20fd   :  { %v4694_v45 = vpop.f32.mrf.mxu0 }
0x20fe   :  { %v4566_v16 = vsel %vm3870_vm6, %v4562_v46, 0.0  ;;  %v4707_v32 = vmul.f32 0.0, %v4706_v59  ;;  %v4702_v54 = vmul.f32 0.0, %v4700_v52 }
0x20ff   :  { %4567 = vadd.xlane.f32.xlu1 %v4566_v16  ;;  %v7274_v55 = vpop.f32.mrf.mxu0 }
0x2100   :  { %v4709_v21 = vadd.f32 %v4707_v32, %v4700_v52  ;;  %v4710_v51 = vadd.f32 %v4706_v59, %v4702_v54  ;;  %v4839_v32 = vld [vmem:[%s11100_s4 + $0x178] sm:$0xff] }
0x2184   :  { %v4565_v20 = vpop.xlane.xlu0 %4564 }
0x2185   :  { %v4569_v28 = vmul.f32 0.03125, %v4565_v20  ;;  %v10567_v20 = vld [vmem:[%s11100_s4 + $0x190] sm:$0x1f] }
0x2186   :  { %v4748_v57 = vrot.slane %v10567_v20, %v11160_v26 }
0x2187   :  { %v4571_v15 = vadd.f32 1e-05, %v4569_v28 }
0x2188   :  { %v4568_v47 = vpop.xlane.xlu1 %4567 }
0x2189   :  { %7741 = vrsqrt.f32 %v4571_v15  ;;  %v4570_v3 = vmul.f32 0.03125, %v4568_v47  ;;  %v4742_v15 = vrot.slane %v10567_v20, %v11159_v2 }
0x218b   :  { %v4572_v17 = vadd.f32 1e-05, %v4570_v3 }
0x218d   :  { %7743 = vrsqrt.f32 %v4572_v17 }
0x2196   :  { %v7742_v37 = vpop.eup %7741 }
0x2197   :  { %v4575_v33 = vmul.f32 %v7742_v37, %v4559_v24  ;;  %v4753_v24 = vld [vmem:[%s11102_s6 + $0x10] sm:$0xff] }
0x2198   :  { %v4757_v12 = vpack.c.bf16 %v4754_v58, %v4753_v24 }
0x2199   :  { %v4581_v1 = vmul.f32 %v4580_v8, %v4575_v33  ;;  %v4840_v33 = vld [vmem:[%s11100_s4 + $0x180] sm:$0xff] }
0x219a   :  { %v7744_v4 = vpop.eup %7743  ;;  %7276 = vmatpush3.bf16.msra.mxu1 %v4757_v12 }
0x219b   :  { %v4587_v41 = vadd.f32 %v4586_v36, %v4581_v1  ;;  %v4576_v6 = vmul.f32 %v7744_v4, %v4560_v25  ;;  %v4756_v25 = vpack.c.bf16 %v4752_v13, %v4751_v27  ;;  %7277 = vmatprep.subr.bf16.mxu1 %v11135_v9  ;;  %v4837_v1 = vld [vmem:[%s11100_s4 + $0x168] sm:$0xff]  ;;  %v4838_v4 = vld [vmem:[%s11100_s4 + $0x170] sm:$0xff] }
0x219c   :  { %v4848_v54 = vpack.c.bf16 %v4838_v4, %v4837_v1  ;;  %v4853_v1 = vrot.slane %v10567_v20, %v11163_v10 }
0x219d   :  { %v4711_v44 = vadd.f32 %v4709_v21, %v4587_v41  ;;  %v4582_v42 = vmul.f32 %v4580_v8, %v4576_v6  ;;  %v4835_v21 = vld [vmem:[%s11100_s4 + $0x158] sm:$0xff]  ;;  %v4836_v41 = vld [vmem:[%s11100_s4 + $0x160] sm:$0xff] }
0x219e   :  { %7278 = vmatpush3.bf16.msra.mxu1 %v4756_v25  ;;  %v4847_v6 = vpack.c.bf16 %v4836_v41, %v4835_v21 }
0x219f   :  { %v4713_v34 = vsel %vm3870_vm6, %v4711_v44, 0.0  ;;  %v4588_v23 = vadd.f32 %v4586_v36, %v4582_v42  ;;  %7303 = vmatprep.subr.bf16.mxu1 %v11135_v9  ;;  %v4849_v36 = vpack.c.bf16 %v4840_v33, %v4839_v32  ;;  %v4834_v42 = vld [vmem:[%s11100_s4 + $0x150] sm:$0xff] }
0x21a0   :  { %4714 = vadd.xlane.f32.xlu0 %v4713_v34 }
0x21a1   :  { %v4712_v60 = vadd.f32 %v4710_v51, %v4588_v23  ;;  %7284 = vmatpush3.bf16.msra.mxu0 %v4849_v36  ;;  %v4831_v51 = vld [vmem:[%s11100_s4 + $0x138] sm:$0xff]  ;;  %v4832_v23 = vld [vmem:[%s11100_s4 + $0x140] sm:$0xff] }
0x21a2   :  { %7285 = vmatprep.subr.bf16.mxu0 %v11135_v9 }
0x21a3   :  { %v4716_v40 = vsel %vm3870_vm6, %v4712_v60, 0.0 }
0x21a4   :  { %4717 = vadd.xlane.f32.xlu1 %v4716_v40  ;;  %v4829_v40 = vld [vmem:[%s11100_s4 + $0x128] sm:$0xff] }
0x21a5   :  { %7286 = vmatpush3.bf16.msra.mxu0 %v4848_v54 }
0x21a6   :  { %7287 = vmatprep.subr.bf16.mxu0 %v11135_v9 }
0x21a9   :  { %7288 = vmatpush3.bf16.msra.mxu0 %v4847_v6 }
0x21aa   :  { %7289 = vmatprep.subr.bf16.mxu0 %v11135_v9 }
0x2229   :  { %v4715_v38 = vpop.xlane.xlu0 %4714 }
0x222a   :  { %v4719_v31 = vmul.f32 0.03125, %v4715_v38  ;;  %v4830_v38 = vld [vmem:[%s11100_s4 + $0x130] sm:$0xff] }
0x222c   :  { %v4721_v18 = vsub.f32 %v4711_v44, %v4719_v31  ;;  %v4833_v44 = vld [vmem:[%s11100_s4 + $0x148] sm:$0xff]  ;;  %v4844_v31 = vpack.c.bf16 %v4830_v38, %v4829_v40 }
0x222d   :  { %v4718_v53 = vpop.xlane.xlu1 %4717  ;;  %v4846_v34 = vpack.c.bf16 %v4834_v42, %v4833_v44 }
0x222e   :  { %v4720_v30 = vmul.f32 0.03125, %v4718_v53  ;;  %v4723_v43 = vmul.f32 %v4721_v18, %v4721_v18  ;;  %v4828_v53 = vld [vmem:[%s11100_s4 + $0x120] sm:$0xff] }
0x222f   :  { %7290 = vmatpush3.bf16.msra.mxu0 %v4846_v34 }
0x2230   :  { %v4722_v35 = vsub.f32 %v4712_v60, %v4720_v30  ;;  %v4725_v29 = vsel %vm3870_vm6, %v4723_v43, 0.0  ;;  %v4845_v60 = vpack.c.bf16 %v4832_v23, %v4831_v51  ;;  %7291 = vmatprep.subr.bf16.mxu0 %v11135_v9  ;;  %v4825_v43 = vld [vmem:[%s11100_s4 + $0x108] sm:$0xff] }
0x2231   :  { %4726 = vadd.xlane.f32.xlu0 %v4725_v29 }
0x2232   :  { %v4724_v50 = vmul.f32 %v4722_v35, %v4722_v35 }
0x2233   :  { %7292 = vmatpush3.bf16.msra.mxu0 %v4845_v60 }
0x2234   :  { %v4728_v19 = vsel %vm3870_vm6, %v4724_v50, 0.0  ;;  %7293 = vmatprep.subr.bf16.mxu0 %v11135_v9  ;;  %v6312_v50 = vld [vmem:[%s11102_s6 + $0x20] ss:$0 sm:$0xff] }
0x2235   :  { %4729 = vadd.xlane.f32.xlu1 %v4728_v19 }
0x2237   :  { %7294 = vmatpush3.bf16.msra.mxu0 %v4844_v31 }
0x2238   :  { %7295 = vmatprep.subr.bf16.mxu0 %v11135_v9 }
0x22ba   :  { %v4727_v5 = vpop.xlane.xlu0 %4726 }
0x22bb   :  { %v4731_v61 = vmul.f32 0.03125, %v4727_v5 }
0x22bd   :  { %v4733_v46 = vadd.f32 1e-05, %v4731_v61 }
0x22be   :  { %v4730_v45 = vpop.xlane.xlu1 %4729 }
0x22bf   :  { %7745 = vrsqrt.f32 %v4733_v46  ;;  %v4732_v16 = vmul.f32 0.03125, %v4730_v45 }
0x22c1   :  { %v4734_v55 = vadd.f32 1e-05, %v4732_v16 }
0x22c3   :  { %7747 = vrsqrt.f32 %v4734_v55 }
0x22cc   :  { %v7746_v28 = vpop.eup %7745 }
0x22cd   :  { %v4737_v47 = vmul.f32 %v7746_v28, %v4721_v18  ;;  %v4827_v18 = vld [vmem:[%s11100_s4 + $0x118] sm:$0xff] }
0x22ce   :  { %v4843_v30 = vpack.c.bf16 %v4828_v53, %v4827_v18 }
0x22cf   :  { %v4743_v14 = vmul.f32 %v4742_v15, %v4737_v47 }
0x22d0   :  { %v7748_v3 = vpop.eup %7747  ;;  %7296 = vmatpush3.bf16.msra.mxu0 %v4843_v30 }
0x22d1   :  { %v4738_v17 = vmul.f32 %v7748_v3, %v4722_v35  ;;  %v10573_v8 = vadd.f32 %v4748_v57, %v4743_v14  ;;  %v4826_v35 = vld [vmem:[%s11100_s4 + $0x110] sm:$0xff]  ;;  %7297 = vmatprep.subr.bf16.mxu0 %v11135_v9 }
0x22d2   :  { %v4842_v29 = vpack.c.bf16 %v4826_v35, %v4825_v43 }
0x22d3   :  { %v4744_v59 = vmul.f32 %v4742_v15, %v4738_v17 }
0x22d4   :  { %7298 = vmatpush3.bf16.msra.mxu0 %v4842_v29  ;;  %v4940_v29 = vld [vmem:[%s11100_s4 + $0x1b0] sm:$0xff] }
0x22d5   :  { %v10575_v37 = vadd.f32 %v4748_v57, %v4744_v59  ;;  %7333 = vmatprep.subr.bf16.mxu0 %v11135_v9 }
0x22d7   :  { %v4755_v52 = vpack.c.bf16 %v10575_v37, %v10573_v8 }
0x22d9   :  { %7280 = vmatmul.mubr.msk.bf16.vlgmr.msra.gmra.mxu1 %vm3870_vm6, %v4755_v52 }
0x22da   :  { %7307 = vmatprep.mubr.msk.bf16.mxu1 %vm7845_vm0, %v11135_v9 }
0x2399   :  { %v4800_v19 = vpop.f32.mrf.mxu1 }
0x239a   :  { %v4801_v24 = vadd.f32 %v6312_v50, %v4800_v19  ;;  %v4937_v19 = vld [vmem:[%s11100_s4 + $0x198] sm:$0xff] }
0x239b   :  { %v7281_v58 = vpop.f32.mrf.mxu1 }
0x239c   :  { %v4809_v12 = vmul.f32 0.044715, %v4801_v24  ;;  %v4807_v57 = vmul.f32 0.5, %v4801_v24 }
0x239d   :  { %v4803_v27 = vpop.f32.mrf.mxu1 }
0x239e   :  { %v4811_v13 = vmul.f32 %v4809_v12, %v4801_v24  ;;  %v4804_v25 = vadd.f32 %v6312_v50, %v4803_v27 }
0x239f   :  { %v7282_v5 = vpop.f32.mrf.mxu1 }
0x23a0   :  { %v4813_v61 = vmul.f32 %v4811_v13, %v4801_v24  ;;  %v4810_v46 = vmul.f32 0.044715, %v4804_v25  ;;  %v4808_v59 = vmul.f32 0.5, %v4804_v25 }
0x23a2   :  { %v4815_v45 = vadd.f32 %v4813_v61, %v4801_v24  ;;  %v4812_v16 = vmul.f32 %v4810_v46, %v4804_v25  ;;  %v4938_v24 = vld [vmem:[%s11100_s4 + $0x1a0] sm:$0xff] }
0x23a3   :  { %v4942_v58 = vpack.c.bf16 %v4938_v24, %v4937_v19 }
0x23a4   :  { %v4817_v55 = vmul.f32 0.7978846, %v4815_v45  ;;  %v4814_v28 = vmul.f32 %v4812_v16, %v4804_v25  ;;  %v4926_v45 = vrot.slane %v10567_v20, %v11164_v56 }
0x23a6   :  { %7749 = vtanh.f32 %v4817_v55  ;;  %v4816_v15 = vadd.f32 %v4814_v28, %v4804_v25 }
0x23a8   :  { %v4818_v47 = vmul.f32 0.7978846, %v4816_v15 }
0x23aa   :  { %7751 = vtanh.f32 %v4818_v47  ;;  %v4932_v47 = vrot.slane %v10567_v20, %v11165_v11  ;;  %v4992_v20 = vld [vmem:[%s11100_s4 + $0x1b8] sm:$0xff] }
0x23b3   :  { %v7750_v3 = vpop.eup %7749 }
0x23b4   :  { %v4821_v14 = vadd.f32 1.0, %v7750_v3 }
0x23b6   :  { %v4823_v32 = vmul.f32 %v4821_v14, %v4807_v57  ;;  %v4994_v14 = vld [vmem:[%s11100_s4 + $0x1c8] sm:$0xff] }
0x23b7   :  { %v7752_v17 = vpop.eup %7751 }
0x23b8   :  { %v4822_v52 = vadd.f32 1.0, %v7752_v17  ;;  %v4995_v17 = vld [vmem:[%s11100_s4 + $0x1d0] sm:$0xff] }
0x23ba   :  { %v4824_v33 = vmul.f32 %v4822_v52, %v4808_v59  ;;  %v4997_v52 = vpack.c.bf16 %v4995_v17, %v4994_v14 }
0x23bc   :  { %v4841_v36 = vpack.c.bf16 %v4824_v33, %v4823_v32  ;;  %v4993_v33 = vld [vmem:[%s11100_s4 + $0x1c0] sm:$0xff] }
0x23be   :  { %7300 = vmatmul.mubr.bf16.vlgmr.msra.gmra.mxu0 %v4841_v36  ;;  %v4996_v36 = vpack.c.bf16 %v4993_v33, %v4992_v20 }
0x23bf   :  { %7335 = vmatprep.mubr.msk.bf16.mxu0 %vm7845_vm0, %v11135_v9 }
0x247e   :  { %v4888_v4 = vpop.f32.mrf.mxu0 }
0x247f   :  { %v4889_v54 = vadd.f32 %v4888_v4, %v4853_v1  ;;  %v5046_v4 = vld [vmem:[%s11100_s4 + $0x1f0] sm:$0xff] }
0x2480   :  { %v7301_v21 = vpop.f32.mrf.mxu0 }
0x2481   :  { %v4895_v41 = vadd.f32 %v4889_v54, %v10573_v8  ;;  %v5043_v21 = vld [vmem:[%s11100_s4 + $0x1d8] sm:$0xff] }
0x2482   :  { %v4891_v6 = vpop.f32.mrf.mxu0 }
0x2483   :  { %v4892_v44 = vadd.f32 %v4891_v6, %v4853_v1  ;;  %v4897_v42 = vsel %vm3870_vm6, %v4895_v41, 0.0  ;;  %v5045_v1 = vld [vmem:[%s11100_s4 + $0x1e8] sm:$0xff] }
0x2484   :  { %4898 = vadd.xlane.f32.xlu0 %v4897_v42  ;;  %v7302_v51 = vpop.f32.mrf.mxu0  ;;  %v5048_v54 = vpack.c.bf16 %v5046_v4, %v5045_v1 }
0x2485   :  { %v4896_v34 = vadd.f32 %v4892_v44, %v10575_v37  ;;  %v4939_v37 = vld [vmem:[%s11100_s4 + $0x1a8] sm:$0xff] }
0x2486   :  { %v4943_v50 = vpack.c.bf16 %v4940_v29, %v4939_v37 }
0x2487   :  { %v4900_v23 = vsel %vm3870_vm6, %v4896_v34, 0.0 }
0x2488   :  { %4901 = vadd.xlane.f32.xlu1 %v4900_v23  ;;  %7304 = vmatpush3.bf16.msra.mxu1 %v4943_v50 }
0x2489   :  { %7305 = vmatprep.subr.bf16.mxu1 %v11135_v9 }
0x248c   :  { %7306 = vmatpush3.bf16.msra.mxu1 %v4942_v58 }
0x248d   :  { %7311 = vmatprep.subr.bf16.mxu1 %v11135_v9 }
0x250d   :  { %v4899_v60 = vpop.xlane.xlu0 %4898 }
0x250e   :  { %v4903_v40 = vmul.f32 0.03125, %v4899_v60 }
0x2510   :  { %v4905_v38 = vsub.f32 %v4895_v41, %v4903_v40  ;;  %v5044_v41 = vld [vmem:[%s11100_s4 + $0x1e0] sm:$0xff] }
0x2511   :  { %v4902_v31 = vpop.xlane.xlu1 %4901  ;;  %v5047_v6 = vpack.c.bf16 %v5044_v41, %v5043_v21 }
0x2512   :  { %v4904_v18 = vmul.f32 0.03125, %v4902_v31  ;;  %v4907_v53 = vmul.f32 %v4905_v38, %v4905_v38 }
0x2514   :  { %v4906_v30 = vsub.f32 %v4896_v34, %v4904_v18  ;;  %v4909_v8 = vsel %vm3870_vm6, %v4907_v53, 0.0  ;;  %v10715_v34 = vld [vmem:[%s11100_s4 + $0x2d8] sm:$0xff] }
0x2515   :  { %4910 = vadd.xlane.f32.xlu0 %v4909_v8  ;;  %v5001_v60 = vrot.slane %v10715_v34, %v11160_v26 }
0x2516   :  { %v4908_v43 = vmul.f32 %v4906_v30, %v4906_v30 }
0x2518   :  { %v4912_v35 = vsel %vm3870_vm6, %v4908_v43, 0.0 }
0x2519   :  { %4913 = vadd.xlane.f32.xlu1 %v4912_v35 }
0x259e   :  { %v4911_v12 = vpop.xlane.xlu0 %4910 }
0x259f   :  { %v4915_v27 = vmul.f32 0.03125, %v4911_v12 }
0x25a1   :  { %v4917_v13 = vadd.f32 1e-05, %v4915_v27 }
0x25a2   :  { %v4914_v25 = vpop.xlane.xlu1 %4913 }
0x25a3   :  { %7753 = vrsqrt.f32 %v4917_v13  ;;  %v4916_v5 = vmul.f32 0.03125, %v4914_v25 }
0x25a5   :  { %v4918_v61 = vadd.f32 1e-05, %v4916_v5 }
0x25a7   :  { %7755 = vrsqrt.f32 %v4918_v61 }
0x25b0   :  { %v7754_v46 = vpop.eup %7753 }
0x25b1   :  { %v4921_v16 = vmul.f32 %v7754_v46, %v4905_v38 }
0x25b3   :  { %v4927_v28 = vmul.f32 %v4926_v45, %v4921_v16 }
0x25b4   :  { %v7756_v55 = vpop.eup %7755 }
0x25b5   :  { %v4922_v15 = vmul.f32 %v7756_v55, %v4906_v30  ;;  %v10675_v57 = vadd.f32 %v4932_v47, %v4927_v28  ;;  %v5052_v30 = vrot.slane %v10715_v34, %v11163_v10 }
0x25b7   :  { %v4928_v3 = vmul.f32 %v4926_v45, %v4922_v15  ;;  %v4947_v45 = vrot.slane %v10715_v34, %v11159_v2 }
0x25b9   :  { %v10677_v59 = vadd.f32 %v4932_v47, %v4928_v3 }
0x25bb   :  { %v4941_v32 = vpack.c.bf16 %v10677_v59, %v10675_v57 }
0x25bd   :  { %7308 = vmatmul.mubr.msk.bf16.vlgmr.msra.gmra.mxu1 %vm3870_vm6, %v4941_v32 }
0x25be   :  { %7312 = vmatpush3.bf16.msra.mxu1 %v4997_v52  ;;  %7315 = vmatprep.mubr.msk.bf16.mxu1 %vm7845_vm0, %v11135_v9 }
0x25bf   :  { %7313 = vmatprep.subr.bf16.mxu1 %v11135_v9 }
0x25c2   :  { %7314 = vmatpush3.bf16.msra.mxu1 %v4996_v36 }
0x25c3   :  { %7319 = vmatprep.subr.bf16.mxu1 %v11135_v9 }
0x25c5   :  { %7316 = vmatmul.mubr.msk.bf16.vlgmr.msra.gmra.mxu1 %vm3870_vm6, %v4941_v32 }
0x25c6   :  { %7320 = vmatpush3.bf16.msra.mxu1 %v5048_v54  ;;  %7323 = vmatprep.mubr.msk.bf16.mxu1 %vm7845_vm0, %v11135_v9 }
0x25c7   :  { %7321 = vmatprep.subr.bf16.mxu1 %v11135_v9 }
0x25ca   :  { %7322 = vmatpush3.bf16.msra.mxu1 %v5047_v6 }
0x25cb   :  { %7327 = vmatprep.subr.bf16.mxu1 %v11135_v9 }
0x25cd   :  { %7324 = vmatmul.mubr.msk.bf16.vlgmr.msra.gmra.mxu1 %vm3870_vm6, %v4941_v32 }
0x25ce   :  { %7329 = vmatprep.mubr.msk.bf16.mxu1 %vm7845_vm0, %v11135_v9 }
0x267d   :  { %v4985_v44 = vpop.f32.mrf.mxu1 }
0x267e   :  { %v4986_v4 = vadd.f32 %v4985_v44, %v4947_v45 }
0x267f   :  { %v7309_v42 = vpop.f32.mrf.mxu1 }
0x2681   :  { %v4988_v51 = vpop.f32.mrf.mxu1 }
0x2682   :  { %v4989_v15 = vadd.f32 %v4988_v51, %v4947_v45 }
0x2683   :  { %v7310_v23 = vpop.f32.mrf.mxu1 }
0x2684   :  { %v10767_v42 = vpack.c.bf16 %v4989_v15, %v4986_v4 }
0x2685   :  { %v5036_v40 = vpop.f32.mrf.mxu1 }
0x2686   :  { %v5037_v38 = vadd.f32 %v5036_v40, %v5001_v60 }
0x2687   :  { %v7317_v31 = vpop.f32.mrf.mxu1 }
0x2688   :  { %v5099_v43 = vmul.f32 %v10258_v49, %v5037_v38  ;;  %v5175_v35 = vmul.f32 %v10294_v39, %v5037_v38  ;;  %v10724_v37 = vmul.f32 %v10301_v48, %v5037_v38  ;;  %v10735_v12 = vmul.f32 %v10306_v7, %v5037_v38  ;;  %v10789_v38 = vld [vmem:[%s11099_s3 + $0x8] sm:$0xff] }
0x2689   :  { %v5039_v18 = vpop.f32.mrf.mxu1 }
0x268a   :  { %v5040_v53 = vadd.f32 %v5039_v18, %v5001_v60 }
0x268b   :  { %v7318_v8 = vpop.f32.mrf.mxu1 }
0x268c   :  { %v5100_v29 = vmul.f32 %v10258_v49, %v5040_v53  ;;  %v5176_v50 = vmul.f32 %v10294_v39, %v5040_v53  ;;  %v10729_v19 = vmul.f32 %v10301_v48, %v5040_v53  ;;  %v10732_v24 = vmul.f32 %v10306_v7, %v5040_v53 }
0x268d   :  { %v5087_v58 = vpop.f32.mrf.mxu1 }
0x268e   :  { %v5088_v27 = vadd.f32 %v5087_v58, %v5052_v30  ;;  %v5101_v13 = vpack.c.bf16 %v5100_v29, %v5099_v43  ;;  %v5177_v25 = vpack.c.bf16 %v5176_v50, %v5175_v35  ;;  %v5338_v5 = vpack.c.bf16 %v10729_v19, %v10724_v37 }
0x268f   :  { %v7325_v61 = vpop.f32.mrf.mxu1  ;;  %v5457_v46 = vpack.c.bf16 %v10732_v24, %v10735_v12 }
0x2690   :  { %v5106_v55 = vsel %vm3870_vm6, %v5101_v13, 0  ;;  %v5179_v28 = vsel %vm3870_vm6, %v5177_v25, 0  ;;  %v5171_v47 = vmul.f32 %v10258_v49, %v5088_v27  ;;  %v5244_v14 = vmul.f32 %v10294_v39, %v5088_v27 }
0x2691   :  { %v5090_v16 = vpop.f32.mrf.mxu1  ;;  %7328 = vmatpush3.bf16.xpose.msra.mxu1 %v5106_v55  ;;  %7334 = vmatpush3.bf16.xpose.msra.mxu0 %v5179_v28  ;;  %v10748_v17 = vmul.f32 %v10301_v48, %v5088_v27  ;;  %v10751_v52 = vmul.f32 %v10306_v7, %v5088_v27  ;;  %v5340_v4 = vsel %vm3870_vm6, %v5338_v5, 0 }
0x2692   :  { %v5091_v3 = vadd.f32 %v5090_v16, %v5052_v30  ;;  %7339 = vmatprep.subr.bf16.mxu1 %v11135_v9  ;;  %7345 = vmatprep.subr.bf16.mxu0 %v11135_v9 }
0x2693   :  { %v7326_v32 = vpop.f32.mrf.mxu1 }
0x2694   :  { %v5172_v20 = vmul.f32 %v10258_v49, %v5091_v3  ;;  %v5245_v33 = vmul.f32 %v10294_v39, %v5091_v3  ;;  %v10758_v36 = vmul.f32 %v10301_v48, %v5091_v3  ;;  %v10761_v1 = vmul.f32 %v10306_v7, %v5091_v3  ;;  %v10782_v48 = vld [vmem:[%s11099_s3] sm:$0xff] }
0x2696   :  { %v5247_v54 = vpack.c.bf16 %v5245_v33, %v5244_v14  ;;  %v5174_v21 = vpack.c.bf16 %v5172_v20, %v5171_v47  ;;  %v5408_v41 = vpack.c.bf16 %v10758_v36, %v10748_v17  ;;  %v5527_v6 = vpack.c.bf16 %v10761_v1, %v10751_v52  ;;  %v5667_v36 = vld [vmem:[%s11100_s4 + $0x228] sm:$0xff]  ;;  %v5665_v52 = vld [vmem:[%s11100_s4 + $0x218] sm:$0xff]  ;;  %v5666_v1 = vld [vmem:[%s11100_s4 + $0x220] sm:$0xff] }
0x2698   :  { %7330 = vmatmul.mubr.msk.bf16.vlgmr.msra.gmra.mxu1 %vm3870_vm6, %v10767_v42  ;;  %7336 = vmatmul.mubr.msk.bf16.vlgmr.msra.gmra.mxu0 %vm3870_vm6, %v10767_v42 }
0x2699   :  { %7340 = vmatpush3.bf16.msra.mxu1 %v5247_v54  ;;  %7346 = vmatpush3.bf16.msra.mxu0 %v5174_v21  ;;  %v5459_v54 = vsel %vm3870_vm6, %v5457_v46, 0 }
0x269a   :  { %7341 = vmatprep.mubr.msk.bf16.mxu1 %vm7845_vm0, %v11135_v9  ;;  %7351 = vmatprep.subr.bf16.mxu1 %v11135_v9 }
0x269b   :  { %7347 = vmatprep.mubr.msk.bf16.mxu0 %vm7845_vm0, %v11135_v9  ;;  %7357 = vmatprep.subr.bf16.mxu0 %v11135_v9 }
0x2758   :  { %v5142_v49 = vpop.f32.mrf.mxu1  ;;  %v5215_v39 = vpop.f32.mrf.mxu0 }
0x2759   :  { %v5216_v7 = vadd.f32 %v10782_v48, %v5215_v39  ;;  %v5143_v13 = vadd.f32 %v10782_v48, %v5142_v49 }
0x275a   :  { %v7331_v44 = vpop.f32.mrf.mxu1  ;;  %v7337_v51 = vpop.f32.mrf.mxu0 }
0x275b   :  { %v5222_v23 = vsel %vm4072_vm10, %v5216_v7, -inf  ;;  %v5149_v16 = vsel %vm4072_vm10, %v5143_v13, -inf }
0x275c   :  { %v5145_v60 = vpop.f32.mrf.mxu1  ;;  %5223 = vmax.xlane.f32.xlu0 %v5222_v23  ;;  %v5218_v40 = vpop.f32.mrf.mxu0 }
0x275d   :  { %v5219_v31 = vadd.f32 %v10789_v38, %v5218_v40  ;;  %v5146_v45 = vadd.f32 %v10789_v38, %v5145_v60 }
0x275e   :  { %v7332_v18 = vpop.f32.mrf.mxu1  ;;  %v7338_v53 = vpop.f32.mrf.mxu0 }
0x275f   :  { %v5225_v30 = vsel %vm4072_vm10, %v5219_v31, -inf  ;;  %v5152_v28 = vsel %vm4072_vm10, %v5146_v45, -inf }
0x2760   :  { %5226 = vmax.xlane.f32.xlu1 %v5225_v30 }
0x27e5   :  { %v5224_v8 = vpop.xlane.xlu0 %5223 }
0x27e6   :  { %v5228_v43 = vsub.f32 %v5216_v7, %v5224_v8 }
0x27e8   :  { %v5230_v35 = vmul.f32 1.442695, %v5228_v43 }
0x27e9   :  { %v5227_v29 = vpop.xlane.xlu1 %5226 }
0x27ea   :  { %7757 = vpow2.f32 %v5230_v35  ;;  %v5229_v50 = vsub.f32 %v5219_v31, %v5227_v29 }
0x27ec   :  { %v5232_v58 = vmul.f32 1.442695, %v5229_v50 }
0x27ee   :  { %7759 = vpow2.f32 %v5232_v58 }
0x27f7   :  { %v7758_v27 = vpop.eup %7757 }
0x27f8   :  { %v5234_v25 = vsel %vm4072_vm10, %v7758_v27, 0.0 }
0x27f9   :  { %5235 = vadd.xlane.f32.xlu0 %v5234_v25 }
0x27fb   :  { %v7760_v61 = vpop.eup %7759 }
0x27fc   :  { %v5237_v55 = vsel %vm4072_vm10, %v7760_v61, 0.0 }
0x27fd   :  { %5150 = vmax.xlane.f32.xlu0 %v5149_v16  ;;  %5238 = vadd.xlane.f32.xlu1 %v5237_v55 }
0x2801   :  { %5153 = vmax.xlane.f32.xlu1 %v5152_v28 }
0x2882   :  { %v5236_v15 = vpop.xlane.xlu0 %5235 }
0x2883   :  { %7761 = vrcp.f32 %v5236_v15 }
0x2886   :  { %v5239_v47 = vpop.xlane.xlu1 %5238  ;;  %v5151_v37 = vpop.xlane.xlu0 %5150 }
0x2887   :  { %7763 = vrcp.f32 %v5239_v47  ;;  %v5155_v19 = vsub.f32 %v5143_v13, %v5151_v37 }
0x2889   :  { %v5157_v12 = vmul.f32 1.442695, %v5155_v19 }
0x288a   :  { %v5154_v5 = vpop.xlane.xlu1 %5153 }
0x288b   :  { %v5156_v46 = vsub.f32 %v5146_v45, %v5154_v5  ;;  %7765 = vpow2.f32 %v5157_v12 }
0x288d   :  { %v5159_v7 = vmul.f32 1.442695, %v5156_v46 }
0x288f   :  { %7767 = vpow2.f32 %v5159_v7 }
0x2890   :  { %v7762_v3 = vpop.eup %7761 }
0x2891   :  { %v5242_v32 = vmul.f32 %v7762_v3, %v7758_v27 }
0x2894   :  { %v7764_v14 = vpop.eup %7763 }
0x2895   :  { %v5243_v20 = vmul.f32 %v7764_v14, %v7760_v61 }
0x2897   :  { %v5246_v33 = vpack.c.bf16 %v5243_v20, %v5242_v32 }
0x2898   :  { %v7766_v35 = vpop.eup %7765 }
0x2899   :  { %7342 = vmatmul.mubr.msk.bf16.vlgmr.msra.gmra.mxu1 %vm4072_vm10, %v5246_v33  ;;  %v5161_v27 = vsel %vm4072_vm10, %v7766_v35, 0.0 }
0x289a   :  { %7352 = vmatpush3.bf16.xpose.msra.mxu1 %v5340_v4  ;;  %7353 = vmatprep.mubr.msk.bf16.mxu1 %vm7845_vm0, %v11135_v9 }
0x289b   :  { %7363 = vmatprep.subr.bf16.mxu1 %v11135_v9 }
0x289c   :  { %v7768_v25 = vpop.eup %7767 }
0x289d   :  { %v5164_v61 = vsel %vm4072_vm10, %v7768_v25, 0.0 }
0x28a1   :  { %7354 = vmatmul.mubr.msk.bf16.vlgmr.msra.gmra.mxu1 %vm3870_vm6, %v10767_v42 }
0x28a2   :  { %7364 = vmatpush3.bf16.xpose.msra.mxu1 %v5459_v54  ;;  %7365 = vmatprep.mubr.msk.bf16.mxu1 %vm7845_vm0, %v11135_v9 }
0x28a3   :  { %7375 = vmatprep.subr.bf16.mxu1 %v11135_v9 }
0x28a9   :  { %7366 = vmatmul.mubr.msk.bf16.vlgmr.msra.gmra.mxu1 %vm3870_vm6, %v10767_v42 }
0x28aa   :  { %7379 = vmatprep.mubr.msk.bf16.mxu1 %vm7845_vm0, %v11135_v9 }
0x2959   :  { %v10820_v21 = vpop.f32.mrf.mxu1 }
0x295b   :  { %v7343_v24 = vpop.f32.mrf.mxu1 }
0x295d   :  { %v10822_v49 = vpop.f32.mrf.mxu1 }
0x295f   :  { %v7344_v39 = vpop.f32.mrf.mxu1 }
0x2961   :  { %v5376_v44 = vpop.f32.mrf.mxu1 }
0x2962   :  { %v5377_v51 = vadd.f32 %v10782_v48, %v5376_v44 }
0x2963   :  { %v7355_v42 = vpop.f32.mrf.mxu1 }
0x2964   :  { %v5383_v23 = vsel %vm4072_vm10, %v5377_v51, -inf }
0x2965   :  { %5384 = vmax.xlane.f32.xlu0 %v5383_v23  ;;  %v5379_v60 = vpop.f32.mrf.mxu1 }
0x2966   :  { %v5380_v40 = vadd.f32 %v10789_v38, %v5379_v60 }
0x2967   :  { %v7356_v31 = vpop.f32.mrf.mxu1 }
0x2968   :  { %v5386_v18 = vsel %vm4072_vm10, %v5380_v40, -inf }
0x2969   :  { %5387 = vmax.xlane.f32.xlu1 %v5386_v18  ;;  %v5495_v53 = vpop.f32.mrf.mxu1 }
0x296a   :  { %v5496_v30 = vadd.f32 %v10782_v48, %v5495_v53 }
0x296b   :  { %v7367_v8 = vpop.f32.mrf.mxu1 }
0x296c   :  { %v5502_v43 = vsel %vm4072_vm10, %v5496_v30, -inf }
0x296d   :  { %5503 = vmax.xlane.f32.xlu0 %v5502_v43  ;;  %v5498_v29 = vpop.f32.mrf.mxu1 }
0x296e   :  { %v5499_v50 = vadd.f32 %v10789_v38, %v5498_v29 }
0x296f   :  { %v7368_v58 = vpop.f32.mrf.mxu1 }
0x2970   :  { %v5505_v13 = vsel %vm4072_vm10, %v5499_v50, -inf }
0x2971   :  { %5162 = vadd.xlane.f32.xlu0 %v5161_v27  ;;  %5506 = vmax.xlane.f32.xlu1 %v5505_v13 }
0x2975   :  { %5165 = vadd.xlane.f32.xlu1 %v5164_v61 }
0x29ee   :  { %v5385_v48 = vpop.xlane.xlu0 %5384 }
0x29ef   :  { %v5389_v45 = vsub.f32 %v5377_v51, %v5385_v48 }
0x29f1   :  { %v5391_v16 = vmul.f32 1.442695, %v5389_v45 }
0x29f2   :  { %v5388_v55 = vpop.xlane.xlu1 %5387 }
0x29f3   :  { %7769 = vpow2.f32 %v5391_v16  ;;  %v5390_v28 = vsub.f32 %v5380_v40, %v5388_v55  ;;  %v5096_v16 = vld [vmem:[%s11100_s4 + $0x208] sm:$0xff]  ;;  %v5097_v55 = vld [vmem:[%s11100_s4 + $0x210] sm:$0xff] }
0x29f5   :  { %v5393_v15 = vmul.f32 1.442695, %v5390_v28  ;;  %v5576_v28 = vpack.c.bf16 %v5097_v55, %v5096_v16 }
0x29f6   :  { %v5504_v47 = vpop.xlane.xlu0 %5503 }
0x29f7   :  { %7771 = vpow2.f32 %v5393_v15  ;;  %v5508_v38 = vsub.f32 %v5496_v30, %v5504_v47  ;;  %7376 = vmatpush3.bf16.msra.mxu1 %v5576_v28  ;;  %v5095_v15 = vld [vmem:[%s11100_s4 + $0x200] sm:$0xff] }
0x29f8   :  { %7377 = vmatprep.subr.bf16.mxu1 %v11135_v9 }
0x29f9   :  { %v5510_v3 = vmul.f32 1.442695, %v5508_v38 }
0x29fa   :  { %v5507_v14 = vpop.xlane.xlu1 %5506  ;;  %v5163_v32 = vpop.xlane.xlu0 %5162 }
0x29fb   :  { %7773 = vpow2.f32 %v5510_v3  ;;  %v5509_v20 = vsub.f32 %v5499_v50, %v5507_v14 }
0x29fc   :  { %7775 = vrcp.f32 %v5163_v32 }
0x29fd   :  { %v5512_v33 = vmul.f32 1.442695, %v5509_v20 }
0x29fe   :  { %v5166_v4 = vpop.xlane.xlu1 %5165 }
0x29ff   :  { %7777 = vpow2.f32 %v5512_v33 }
0x2a00   :  { %v7770_v54 = vpop.eup %7769  ;;  %7779 = vrcp.f32 %v5166_v4 }
0x2a01   :  { %v5395_v37 = vsel %vm4072_vm10, %v7770_v54, 0.0 }
0x2a02   :  { %5396 = vadd.xlane.f32.xlu0 %v5395_v37 }
0x2a04   :  { %v7772_v19 = vpop.eup %7771 }
0x2a05   :  { %v5398_v5 = vsel %vm4072_vm10, %v7772_v19, 0.0 }
0x2a06   :  { %5399 = vadd.xlane.f32.xlu1 %v5398_v5  ;;  %v5717_v5 = vld [vmem:[%s11100_s4 + $0x248] sm:$0xff] }
0x2a08   :  { %v7774_v24 = vpop.eup %7773 }
0x2a09   :  { %v5514_v12 = vsel %vm4072_vm10, %v7774_v24, 0.0  ;;  %v7776_v46 = vpop.eup %7775 }
0x2a0a   :  { %5515 = vadd.xlane.f32.xlu0 %v5514_v12  ;;  %v5169_v51 = vmul.f32 %v7776_v46, %v7766_v35 }
0x2a0c   :  { %v7778_v39 = vpop.eup %7777 }
0x2a0d   :  { %v7780_v7 = vpop.eup %7779  ;;  %v5517_v44 = vsel %vm4072_vm10, %v7778_v39, 0.0 }
0x2a0e   :  { %v5170_v42 = vmul.f32 %v7780_v7, %v7768_v25  ;;  %5518 = vadd.xlane.f32.xlu1 %v5517_v44 }
0x2a10   :  { %v5173_v23 = vpack.c.bf16 %v5170_v42, %v5169_v51  ;;  %v5716_v42 = vld [vmem:[%s11100_s4 + $0x240] sm:$0xff] }
0x2a12   :  { %7348 = vmatmul.mubr.msk.bf16.vlgmr.msra.gmra.mxu0 %vm4072_vm10, %v5173_v23 }
0x2a13   :  { %7358 = vmatpush3.bf16.msra.mxu0 %v5408_v41  ;;  %7359 = vmatprep.mubr.msk.bf16.mxu0 %vm7845_vm0, %v11135_v9  ;;  %v5668_v41 = vld [vmem:[%s11100_s4 + $0x230] sm:$0xff] }
0x2a14   :  { %7369 = vmatprep.subr.bf16.mxu0 %v11135_v9  ;;  %v5670_v27 = vpack.c.bf16 %v5668_v41, %v5667_v36 }
0x2a8b   :  { %v5397_v60 = vpop.xlane.xlu0 %5396 }
0x2a8c   :  { %7781 = vrcp.f32 %v5397_v60 }
0x2a8f   :  { %v5400_v40 = vpop.xlane.xlu1 %5399 }
0x2a90   :  { %7783 = vrcp.f32 %v5400_v40 }
0x2a93   :  { %v5516_v31 = vpop.xlane.xlu0 %5515 }
0x2a94   :  { %7785 = vrcp.f32 %v5516_v31 }
0x2a97   :  { %v5519_v18 = vpop.xlane.xlu1 %5518 }
0x2a98   :  { %7787 = vrcp.f32 %v5519_v18 }
0x2a99   :  { %v7782_v53 = vpop.eup %7781 }
0x2a9a   :  { %v5403_v8 = vmul.f32 %v7782_v53, %v7770_v54 }
0x2a9d   :  { %v7784_v30 = vpop.eup %7783 }
0x2a9e   :  { %v5404_v43 = vmul.f32 %v7784_v30, %v7772_v19  ;;  %v5580_v30 = vrot.slane %v10715_v34, %v11164_v56 }
0x2aa0   :  { %v5407_v35 = vpack.c.bf16 %v5404_v43, %v5403_v8 }
0x2aa1   :  { %v7786_v17 = vpop.eup %7785 }
0x2aa2   :  { %7360 = vmatmul.mubr.msk.bf16.vlgmr.msra.gmra.mxu0 %vm4072_vm10, %v5407_v35  ;;  %v5522_v50 = vmul.f32 %v7786_v17, %v7774_v24  ;;  %v5718_v24 = vld [vmem:[%s11100_s4 + $0x250] sm:$0xff] }
0x2aa3   :  { %7370 = vmatpush3.bf16.msra.mxu0 %v5527_v6  ;;  %7371 = vmatprep.mubr.msk.bf16.mxu0 %vm7845_vm0, %v11135_v9  ;;  %v5669_v6 = vpack.c.bf16 %v5666_v1, %v5665_v52  ;;  %v5721_v44 = vpack.c.bf16 %v5718_v24, %v5717_v5 }
0x2aa4   :  { %7383 = vmatprep.subr.bf16.mxu0 %v11135_v9 }
0x2aa5   :  { %v7788_v29 = vpop.eup %7787 }
0x2aa6   :  { %v5523_v58 = vmul.f32 %v7788_v29, %v7778_v39 }
0x2aa8   :  { %v5526_v13 = vpack.c.bf16 %v5523_v58, %v5522_v50 }
0x2aaa   :  { %7372 = vmatmul.mubr.msk.bf16.vlgmr.msra.gmra.mxu0 %vm4072_vm10, %v5526_v13 }
0x2aab   :  { %7384 = vmatpush3.bf16.msra.mxu0 %v5670_v27  ;;  %7387 = vmatprep.mubr.msk.bf16.mxu0 %vm7845_vm0, %v11135_v9 }
0x2aac   :  { %7385 = vmatprep.subr.bf16.mxu0 %v11135_v9 }
0x2aaf   :  { %7386 = vmatpush3.bf16.msra.mxu0 %v5669_v6 }
0x2ab0   :  { %7399 = vmatprep.subr.bf16.mxu0 %v11135_v9 }
0x2ab2   :  { %7388 = vmatmul.mubr.msk.bf16.vlgmr.msra.gmra.mxu0 %vm3870_vm6, %v10500_v62  ;;  %v5094_v62 = vld [vmem:[%s11100_s4 + $0x1f8] sm:$0xff] }
0x2ab3   :  { %7403 = vmatprep.mubr.msk.bf16.mxu0 %vm7845_vm0, %v11135_v9  ;;  %v5575_v47 = vpack.c.bf16 %v5095_v15, %v5094_v62 }
0x2ab5   :  { %7378 = vmatpush3.bf16.msra.mxu1 %v5575_v47 }
0x2ab6   :  { %7391 = vmatprep.subr.bf16.mxu1 %v11135_v9 }
0x2ad2   :  { %v5329_v25 = vpop.f32.mrf.mxu0 }
0x2ad3   :  { %v5330_v33 = vadd.f32 %v5329_v25, %v10820_v21  ;;  %v5674_v21 = vrot.slane %v10715_v34, %v8854_v0 }
0x2ad4   :  { %v7349_v61 = vpop.f32.mrf.mxu0 }
0x2ad6   :  { %v5332_v48 = vpop.f32.mrf.mxu0 }
0x2ad7   :  { %v5333_v4 = vadd.f32 %v5332_v48, %v10822_v49  ;;  %v5715_v49 = vld [vmem:[%s11100_s4 + $0x238] sm:$0xff] }
0x2ad8   :  { %v7350_v45 = vpop.f32.mrf.mxu0  ;;  %v5720_v40 = vpack.c.bf16 %v5716_v42, %v5715_v49 }
0x2b62   :  { %v5446_v38 = vpop.f32.mrf.mxu0 }
0x2b63   :  { %v5453_v37 = vadd.f32 %v5446_v38, %v5330_v33 }
0x2b64   :  { %v7361_v3 = vpop.f32.mrf.mxu0 }
0x2b66   :  { %v5449_v14 = vpop.f32.mrf.mxu0 }
0x2b67   :  { %v5454_v19 = vadd.f32 %v5449_v14, %v5333_v4 }
0x2b68   :  { %v7362_v32 = vpop.f32.mrf.mxu0 }
0x2b69   :  { %v5725_v32 = vrot.slane %v10715_v34, %v8860_v63 }
0x2b6a   :  { %v5565_v20 = vpop.f32.mrf.mxu0 }
0x2b6b   :  { %v5572_v46 = vadd.f32 %v5565_v20, %v5453_v37 }
0x2b6c   :  { %v7373_v54 = vpop.f32.mrf.mxu0 }
0x2b6d   :  { %v5656_v54 = vrot.slane %v10715_v34, %v11165_v11 }
0x2b6e   :  { %v5568_v12 = vpop.f32.mrf.mxu0 }
0x2b6f   :  { %v5573_v39 = vadd.f32 %v5568_v12, %v5454_v19  ;;  %v5662_v12 = vrot.slane %v10715_v34, %v8739_v22 }
0x2b70   :  { %v7374_v7 = vpop.f32.mrf.mxu0 }
0x2b71   :  { %v5574_v51 = vpack.c.bf16 %v5573_v39, %v5572_v46 }
0x2b72   :  { %v5709_v23 = vpop.f32.mrf.mxu0 }
0x2b73   :  { %7380 = vmatmul.mubr.msk.bf16.vlgmr.msra.gmra.mxu1 %vm3870_vm6, %v5574_v51  ;;  %v5710_v31 = vadd.f32 %v5709_v23, %v5674_v21 }
0x2b74   :  { %v7389_v60 = vpop.f32.mrf.mxu0  ;;  %7392 = vmatpush3.bf16.msra.mxu1 %v5721_v44  ;;  %7395 = vmatprep.mubr.msk.bf16.mxu1 %vm7845_vm0, %v11135_v9 }
0x2b75   :  { %7393 = vmatprep.subr.bf16.mxu1 %v11135_v9  ;;  %v5719_v53 = vpack.c.bf16 %v5710_v31, %v5710_v31 }
0x2b76   :  { %v5712_v0 = vpop.f32.mrf.mxu0 }
0x2b78   :  { %v7390_v18 = vpop.f32.mrf.mxu0  ;;  %7394 = vmatpush3.bf16.msra.mxu1 %v5720_v40 }
0x2b79   :  { %7407 = vmatprep.subr.bf16.mxu1 %v11135_v9 }
0x2b7b   :  { %7396 = vmatmul.mubr.msk.bf16.vlgmr.msra.gmra.mxu1 %vm3870_vm6, %v5719_v53 }
0x2b7c   :  { %7423 = vmatprep.mubr.msk.bf16.mxu1 %vm7845_vm0, %v11135_v9 }
0x2c33   :  { %v5618_v8 = vpop.f32.mrf.mxu1 }
0x2c34   :  { %v5619_v43 = vadd.f32 %v5618_v8, %v5580_v30 }
0x2c35   :  { %v7381_v35 = vpop.f32.mrf.mxu1 }
0x2c36   :  { %v5625_v17 = vadd.f32 %v5619_v43, %v10675_v57 }
0x2c37   :  { %v5621_v36 = vpop.f32.mrf.mxu1 }
0x2c38   :  { %v5622_v41 = vadd.f32 %v5621_v36, %v5580_v30  ;;  %v5627_v29 = vsel %vm3870_vm6, %v5625_v17, 0.0  ;;  %v5825_v36 = vld [vmem:[%s11102_s6 + $0x38] sm:$0xff] }
0x2c39   :  { %5628 = vadd.xlane.f32.xlu0 %v5627_v29  ;;  %v7382_v50 = vpop.f32.mrf.mxu1 }
0x2c3a   :  { %v5626_v58 = vadd.f32 %v5622_v41, %v10677_v59  ;;  %v5826_v41 = vld [vmem:[%s11102_s6 + $0x40] sm:$0xff]  ;;  %v5823_v50 = vld [vmem:[%s11102_s6 + $0x28] sm:$0xff] }
0x2c3b   :  { %v5763_v27 = vpop.f32.mrf.mxu1  ;;  %v5829_v29 = vpack.c.bf16 %v5826_v41, %v5825_v36 }
0x2c3c   :  { %v5630_v13 = vsel %vm3870_vm6, %v5626_v58, 0.0  ;;  %v5764_v33 = vadd.f32 %v5763_v27, %v5725_v32  ;;  %v5912_v32 = vld [vmem:[%s11100_s4 + $0x2d0] sm:$0xff] }
0x2c3d   :  { %5631 = vadd.xlane.f32.xlu1 %v5630_v13  ;;  %v7397_v52 = vpop.f32.mrf.mxu1  ;;  %7400 = vmatpush3.bf16.msra.mxu0 %v5829_v29 }
0x2c3e   :  { %v5778_v4 = vrot.slane %v5764_v33, %v11160_v26  ;;  %v5772_v19 = vrot.slane %v5764_v33, %v11159_v2  ;;  %7401 = vmatprep.subr.bf16.mxu0 %v11135_v9  ;;  %v5909_v33 = vld [vmem:[%s11100_s4 + $0x2b8] sm:$0xff] }
0x2c3f   :  { %v5766_v1 = vpop.f32.mrf.mxu1 }
0x2c40   :  { %v5779_v5 = vmul.f32 0.0, %v5778_v4  ;;  %v5774_v7 = vmul.f32 0.0, %v5772_v19 }
0x2c41   :  { %v7398_v6 = vpop.f32.mrf.mxu1 }
0x2c42   :  { %v5781_v63 = vadd.f32 %v5779_v5, %v5772_v19  ;;  %v5782_v42 = vadd.f32 %v5778_v4, %v5774_v7  ;;  %v5910_v4 = vld [vmem:[%s11100_s4 + $0x2c0] sm:$0xff]  ;;  %v5908_v19 = vld [vmem:[%s11100_s4 + $0x2b0] sm:$0xff] }
0x2c43   :  { %v5904_v7 = vld [vmem:[%s11100_s4 + $0x290] sm:$0xff] }
0x2cc2   :  { %v5629_v25 = vpop.xlane.xlu0 %5628 }
0x2cc3   :  { %v5633_v61 = vmul.f32 0.03125, %v5629_v25 }
0x2cc5   :  { %v5635_v48 = vsub.f32 %v5625_v17, %v5633_v61 }
0x2cc6   :  { %v5632_v45 = vpop.xlane.xlu1 %5631 }
0x2cc7   :  { %v5634_v57 = vmul.f32 0.03125, %v5632_v45  ;;  %v5637_v16 = vmul.f32 %v5635_v48, %v5635_v48 }
0x2cc9   :  { %v5636_v55 = vsub.f32 %v5626_v58, %v5634_v57  ;;  %v5639_v28 = vsel %vm3870_vm6, %v5637_v16, 0.0  ;;  %v5824_v58 = vld [vmem:[%s11102_s6 + $0x30] sm:$0xff] }
0x2cca   :  { %5640 = vadd.xlane.f32.xlu0 %v5639_v28  ;;  %v5828_v27 = vpack.c.bf16 %v5824_v58, %v5823_v50 }
0x2ccb   :  { %v5638_v62 = vmul.f32 %v5636_v55, %v5636_v55 }
0x2ccc   :  { %7402 = vmatpush3.bf16.msra.mxu0 %v5828_v27 }
0x2ccd   :  { %v5642_v59 = vsel %vm3870_vm6, %v5638_v62, 0.0  ;;  %7427 = vmatprep.subr.bf16.mxu0 %v11135_v9 }
0x2cce   :  { %5643 = vadd.xlane.f32.xlu1 %v5642_v59 }
0x2d53   :  { %v5641_v15 = vpop.xlane.xlu0 %5640 }
0x2d54   :  { %v5645_v47 = vmul.f32 0.03125, %v5641_v15 }
0x2d56   :  { %v5647_v38 = vadd.f32 1e-05, %v5645_v47 }
0x2d57   :  { %v5644_v3 = vpop.xlane.xlu1 %5643 }
0x2d58   :  { %7789 = vrsqrt.f32 %v5647_v38  ;;  %v5646_v14 = vmul.f32 0.03125, %v5644_v3 }
0x2d5a   :  { %v5648_v20 = vadd.f32 1e-05, %v5646_v14  ;;  %v5911_v14 = vld [vmem:[%s11100_s4 + $0x2c8] sm:$0xff] }
0x2d5c   :  { %7791 = vrsqrt.f32 %v5648_v20  ;;  %v5921_v20 = vpack.c.bf16 %v5912_v32, %v5911_v14 }
0x2d5e   :  { %7408 = vmatpush3.bf16.msra.mxu1 %v5921_v20 }
0x2d5f   :  { %7409 = vmatprep.subr.bf16.mxu1 %v11135_v9 }
0x2d65   :  { %v7790_v37 = vpop.eup %7789 }
0x2d66   :  { %v5651_v24 = vmul.f32 %v7790_v37, %v5635_v48  ;;  %v10948_v48 = vld [vmem:[%s11100_s4 + $0x2e0] sm:$0x1f]  ;;  %v5907_v37 = vld [vmem:[%s11100_s4 + $0x2a8] sm:$0xff] }
0x2d67   :  { %v5814_v57 = vrot.slane %v10948_v48, %v11159_v2  ;;  %v5820_v59 = vrot.slane %v10948_v48, %v11160_v26  ;;  %v5919_v5 = vpack.c.bf16 %v5908_v19, %v5907_v37 }
0x2d68   :  { %v5657_v46 = vmul.f32 %v5656_v54, %v5651_v24  ;;  %v5905_v24 = vld [vmem:[%s11100_s4 + $0x298] sm:$0xff] }
0x2d69   :  { %v7792_v39 = vpop.eup %7791 }
0x2d6a   :  { %v5663_v44 = vadd.f32 %v5662_v12, %v5657_v46  ;;  %v5652_v51 = vmul.f32 %v7792_v39, %v5636_v55  ;;  %v5903_v46 = vld [vmem:[%s11100_s4 + $0x288] sm:$0xff] }
0x2d6c   :  { %v5783_v21 = vadd.f32 %v5781_v63, %v5663_v44  ;;  %v5658_v49 = vmul.f32 %v5656_v54, %v5652_v51  ;;  %v5920_v54 = vpack.c.bf16 %v5910_v4, %v5909_v33  ;;  %v5917_v63 = vpack.c.bf16 %v5904_v7, %v5903_v46  ;;  %v5901_v44 = vld [vmem:[%s11100_s4 + $0x278] sm:$0xff]  ;;  %v5902_v51 = vld [vmem:[%s11100_s4 + $0x280] sm:$0xff] }
0x2d6e   :  { %v5785_v23 = vsel %vm3870_vm6, %v5783_v21, 0.0  ;;  %v5664_v60 = vadd.f32 %v5662_v12, %v5658_v49  ;;  %7410 = vmatpush3.bf16.msra.mxu1 %v5920_v54  ;;  %v5906_v12 = vld [vmem:[%s11100_s4 + $0x2a0] sm:$0xff]  ;;  %v5899_v49 = vld [vmem:[%s11100_s4 + $0x268] sm:$0xff] }
0x2d6f   :  { %5786 = vadd.xlane.f32.xlu0 %v5785_v23  ;;  %7411 = vmatprep.subr.bf16.mxu1 %v11135_v9  ;;  %v5918_v39 = vpack.c.bf16 %v5906_v12, %v5905_v24 }
0x2d70   :  { %v5784_v40 = vadd.f32 %v5782_v42, %v5664_v60  ;;  %v5900_v42 = vld [vmem:[%s11100_s4 + $0x270] sm:$0xff]  ;;  %v5897_v60 = vld [vmem:[%s11100_s4 + $0x258] sm:$0xff] }
0x2d71   :  { %v5915_v23 = vpack.c.bf16 %v5900_v42, %v5899_v49  ;;  %v5998_v42 = vrot.slane %v10948_v48, %v11164_v56 }
0x2d72   :  { %v5788_v31 = vsel %vm3870_vm6, %v5784_v40, 0.0  ;;  %7412 = vmatpush3.bf16.msra.mxu1 %v5919_v5 }
0x2d73   :  { %5789 = vadd.xlane.f32.xlu1 %v5788_v31  ;;  %7413 = vmatprep.subr.bf16.mxu1 %v11135_v9 }
0x2d76   :  { %7414 = vmatpush3.bf16.msra.mxu1 %v5918_v39 }
0x2d77   :  { %7415 = vmatprep.subr.bf16.mxu1 %v11135_v9 }
0x2d7a   :  { %7416 = vmatpush3.bf16.msra.mxu1 %v5917_v63 }
0x2d7b   :  { %7417 = vmatprep.subr.bf16.mxu1 %v11135_v9 }
0x2df8   :  { %v5787_v0 = vpop.xlane.xlu0 %5786 }
0x2df9   :  { %v5791_v18 = vmul.f32 0.03125, %v5787_v0  ;;  %v6328_v0 = vld [vmem:[%s11102_s6 + $0x48] ss:$0 sm:$0xff] }
0x2dfb   :  { %v5793_v22 = vsub.f32 %v5783_v21, %v5791_v18  ;;  %v5916_v21 = vpack.c.bf16 %v5902_v51, %v5901_v44 }
0x2dfc   :  { %v5790_v34 = vpop.xlane.xlu1 %5789 }
0x2dfd   :  { %v5792_v53 = vmul.f32 0.03125, %v5790_v34  ;;  %v5795_v30 = vmul.f32 %v5793_v22, %v5793_v22  ;;  %7418 = vmatpush3.bf16.msra.mxu1 %v5916_v21 }
0x2dfe   :  { %7419 = vmatprep.subr.bf16.mxu1 %v11135_v9 }
0x2dff   :  { %v5794_v8 = vsub.f32 %v5784_v40, %v5792_v53  ;;  %v5797_v43 = vsel %vm3870_vm6, %v5795_v30, 0.0  ;;  %v5898_v40 = vld [vmem:[%s11100_s4 + $0x260] sm:$0xff] }
0x2e00   :  { %5798 = vadd.xlane.f32.xlu0 %v5797_v43  ;;  %v5914_v31 = vpack.c.bf16 %v5898_v40, %v5897_v60  ;;  %v6004_v40 = vrot.slane %v10948_v48, %v11165_v11 }
0x2e01   :  { %v5796_v35 = vmul.f32 %v5794_v8, %v5794_v8  ;;  %7420 = vmatpush3.bf16.msra.mxu1 %v5915_v23 }
0x2e02   :  { %7421 = vmatprep.subr.bf16.mxu1 %v11135_v9 }
0x2e03   :  { %v5800_v17 = vsel %vm3870_vm6, %v5796_v35, 0.0 }
0x2e04   :  { %5801 = vadd.xlane.f32.xlu1 %v5800_v17 }
0x2e05   :  { %7422 = vmatpush3.bf16.msra.mxu1 %v5914_v31 }
0x2e89   :  { %v5799_v13 = vpop.xlane.xlu0 %5798 }
0x2e8a   :  { %v5803_v52 = vmul.f32 0.03125, %v5799_v13 }
0x2e8c   :  { %v5805_v1 = vadd.f32 1e-05, %v5803_v52 }
0x2e8d   :  { %v5802_v6 = vpop.xlane.xlu1 %5801 }
0x2e8e   :  { %7793 = vrsqrt.f32 %v5805_v1  ;;  %v5804_v25 = vmul.f32 0.03125, %v5802_v6 }
0x2e90   :  { %v5806_v61 = vadd.f32 1e-05, %v5804_v25 }
0x2e92   :  { %7795 = vrsqrt.f32 %v5806_v61 }
0x2e9b   :  { %v7794_v45 = vpop.eup %7793 }
0x2e9c   :  { %v5809_v16 = vmul.f32 %v7794_v45, %v5793_v22 }
0x2e9e   :  { %v5815_v28 = vmul.f32 %v5814_v57, %v5809_v16 }
0x2e9f   :  { %v7796_v55 = vpop.eup %7795 }
0x2ea0   :  { %v5810_v62 = vmul.f32 %v7796_v55, %v5794_v8  ;;  %v10954_v47 = vadd.f32 %v5820_v59, %v5815_v28  ;;  %v5925_v28 = vrot.slane %v10948_v48, %v11163_v10 }
0x2ea2   :  { %v5816_v15 = vmul.f32 %v5814_v57, %v5810_v62 }
0x2ea4   :  { %v10956_v38 = vadd.f32 %v5820_v59, %v5816_v15 }
0x2ea6   :  { %v5827_v3 = vpack.c.bf16 %v10956_v38, %v10954_v47 }
0x2ea8   :  { %7404 = vmatmul.mubr.msk.bf16.vlgmr.msra.gmra.mxu0 %vm3870_vm6, %v5827_v3 }
0x2ea9   :  { %7431 = vmatprep.mubr.msk.bf16.mxu0 %vm7845_vm0, %v11135_v9 }
0x2f68   :  { %v5872_v18 = vpop.f32.mrf.mxu0 }
0x2f69   :  { %v5873_v22 = vadd.f32 %v6328_v0, %v5872_v18 }
0x2f6a   :  { %v7405_v34 = vpop.f32.mrf.mxu0 }
0x2f6b   :  { %v5881_v53 = vmul.f32 0.044715, %v5873_v22  ;;  %v5879_v25 = vmul.f32 0.5, %v5873_v22 }
0x2f6c   :  { %v5875_v30 = vpop.f32.mrf.mxu0 }
0x2f6d   :  { %v5883_v8 = vmul.f32 %v5881_v53, %v5873_v22  ;;  %v5876_v43 = vadd.f32 %v6328_v0, %v5875_v30 }
0x2f6e   :  { %v7406_v35 = vpop.f32.mrf.mxu0 }
0x2f6f   :  { %v5885_v17 = vmul.f32 %v5883_v8, %v5873_v22  ;;  %v5882_v36 = vmul.f32 0.044715, %v5876_v43  ;;  %v5880_v61 = vmul.f32 0.5, %v5876_v43 }
0x2f71   :  { %v5887_v41 = vadd.f32 %v5885_v17, %v5873_v22  ;;  %v5884_v29 = vmul.f32 %v5882_v36, %v5876_v43 }
0x2f73   :  { %v5889_v50 = vmul.f32 0.7978846, %v5887_v41  ;;  %v5886_v58 = vmul.f32 %v5884_v29, %v5876_v43 }
0x2f75   :  { %7797 = vtanh.f32 %v5889_v50  ;;  %v5888_v27 = vadd.f32 %v5886_v58, %v5876_v43  ;;  %v6048_v58 = vld [vmem:[%s11101_s5 + $0x4d8] sm:$0xff] }
0x2f77   :  { %v5890_v13 = vmul.f32 0.7978846, %v5888_v27  ;;  %v6049_v27 = vld [vmem:[%s11101_s5 + $0x4e0] sm:$0xff] }
0x2f79   :  { %7799 = vtanh.f32 %v5890_v13  ;;  %v6052_v13 = vpack.c.bf16 %v6049_v27, %v6048_v58 }
0x2f7b   :  { %7428 = vmatpush3.bf16.msra.mxu0 %v6052_v13 }
0x2f7c   :  { %7429 = vmatprep.subr.bf16.mxu0 %v11135_v9 }
0x2f82   :  { %v7798_v52 = vpop.eup %7797 }
0x2f83   :  { %v5893_v1 = vadd.f32 1.0, %v7798_v52  ;;  %v6046_v52 = vld [vmem:[%s11101_s5 + $0x4c8] sm:$0xff] }
0x2f85   :  { %v5895_v57 = vmul.f32 %v5893_v1, %v5879_v25  ;;  %v6047_v1 = vld [vmem:[%s11101_s5 + $0x4d0] sm:$0xff] }
0x2f86   :  { %v7800_v6 = vpop.eup %7799 }
0x2f87   :  { %v5894_v45 = vadd.f32 1.0, %v7800_v6  ;;  %v6051_v6 = vpack.c.bf16 %v6047_v1, %v6046_v52 }
0x2f89   :  { %v5896_v16 = vmul.f32 %v5894_v45, %v5880_v61  ;;  %7430 = vmatpush3.bf16.msra.mxu0 %v6051_v6 }
0x2f8a   :  { %7435 = vmatprep.subr.bf16.mxu0 %v11135_v9 }
0x2f8b   :  { %v5913_v55 = vpack.c.bf16 %v5896_v16, %v5895_v57 }
0x2f8d   :  { %7424 = vmatmul.mubr.bf16.vlgmr.msra.gmra.mxu1 %v5913_v55 }
0x304d   :  { %v5960_v62 = vpop.f32.mrf.mxu1 }
0x304e   :  { %v5961_v59 = vadd.f32 %v5960_v62, %v5925_v28 }
0x304f   :  { %v7425_v15 = vpop.f32.mrf.mxu1 }
0x3050   :  { %v5967_v3 = vadd.f32 %v5961_v59, %v10954_v47 }
0x3051   :  { %v5963_v14 = vpop.f32.mrf.mxu1 }
0x3052   :  { %v5964_v32 = vadd.f32 %v5963_v14, %v5925_v28  ;;  %v5969_v20 = vsel %vm3870_vm6, %v5967_v3, 0.0  ;;  %v6007_v28 = vld [vmem:[%s11100_s4 + $0x2e8] sm:$0x3] }
0x3053   :  { %5970 = vadd.xlane.f32.xlu0 %v5969_v20  ;;  %v7426_v33 = vpop.f32.mrf.mxu1  ;;  %v6037_v59 = vrot.slane %v6007_v28, %v11159_v2  ;;  %v6043_v14 = vrot.slane %v6007_v28, %v11160_v26  ;;  %v6127_v2 = vld [vmem:[%s11102_s6 + $0x88] sm:$0xff] }
0x3054   :  { %v5968_v4 = vadd.f32 %v5964_v32, %v10956_v38 }
0x3056   :  { %v5972_v54 = vsel %vm3870_vm6, %v5968_v4, 0.0 }
0x3057   :  { %5973 = vadd.xlane.f32.xlu1 %v5972_v54 }
0x30dc   :  { %v5971_v37 = vpop.xlane.xlu0 %5970 }
0x30dd   :  { %v5975_v19 = vmul.f32 0.03125, %v5971_v37 }
0x30df   :  { %v5977_v5 = vsub.f32 %v5967_v3, %v5975_v19  ;;  %v6126_v19 = vld [vmem:[%s11102_s6 + $0x80] sm:$0xff] }
0x30e0   :  { %v5974_v10 = vpop.xlane.xlu1 %5973  ;;  %v6132_v26 = vpack.c.bf16 %v6127_v2, %v6126_v19 }
0x30e1   :  { %v5976_v24 = vmul.f32 0.03125, %v5974_v10  ;;  %v5979_v12 = vmul.f32 %v5977_v5, %v5977_v5  ;;  %v6125_v10 = vld [vmem:[%s11102_s6 + $0x78] sm:$0xff] }
0x30e3   :  { %v5978_v46 = vsub.f32 %v5968_v4, %v5976_v24  ;;  %v5981_v47 = vsel %vm3870_vm6, %v5979_v12, 0.0  ;;  %v6122_v12 = vld [vmem:[%s11102_s6 + $0x60] sm:$0xff] }
0x30e4   :  { %5982 = vadd.xlane.f32.xlu0 %v5981_v47 }
0x30e5   :  { %v5980_v39 = vmul.f32 %v5978_v46, %v5978_v46 }
0x30e7   :  { %v5984_v7 = vsel %vm3870_vm6, %v5980_v39, 0.0  ;;  %v6120_v39 = vld [vmem:[%s11102_s6 + $0x50] sm:$0xff] }
0x30e8   :  { %5985 = vadd.xlane.f32.xlu1 %v5984_v7  ;;  %v6121_v7 = vld [vmem:[%s11102_s6 + $0x58] sm:$0xff] }
0x316d   :  { %v5983_v63 = vpop.xlane.xlu0 %5982 }
0x316e   :  { %v5987_v44 = vmul.f32 0.03125, %v5983_v63  ;;  %v6129_v63 = vpack.c.bf16 %v6121_v7, %v6120_v39 }
0x3170   :  { %v5989_v38 = vadd.f32 1e-05, %v5987_v44  ;;  %v6330_v44 = vld [vmem:[%s11101_s5 + $0x4e8] ss:$0 sm:$0xff] }
0x3171   :  { %v5986_v51 = vpop.xlane.xlu1 %5985 }
0x3172   :  { %7801 = vrsqrt.f32 %v5989_v38  ;;  %v5988_v21 = vmul.f32 0.03125, %v5986_v51 }
0x3174   :  { %v5990_v49 = vadd.f32 1e-05, %v5988_v21 }
0x3176   :  { %7803 = vrsqrt.f32 %v5990_v49 }
0x317f   :  { %v7802_v23 = vpop.eup %7801 }
0x3180   :  { %v5993_v60 = vmul.f32 %v7802_v23, %v5977_v5  ;;  %v6124_v5 = vld [vmem:[%s11102_s6 + $0x70] sm:$0xff] }
0x3181   :  { %v6131_v24 = vpack.c.bf16 %v6125_v10, %v6124_v5 }
0x3182   :  { %v5999_v31 = vmul.f32 %v5998_v42, %v5993_v60 }
0x3183   :  { %v7804_v0 = vpop.eup %7803 }
0x3184   :  { %v6005_v18 = vadd.f32 %v6004_v40, %v5999_v31  ;;  %v5994_v22 = vmul.f32 %v7804_v0, %v5978_v46  ;;  %v6123_v46 = vld [vmem:[%s11102_s6 + $0x68] sm:$0xff] }
0x3185   :  { %v6130_v47 = vpack.c.bf16 %v6123_v46, %v6122_v12 }
0x3186   :  { %v6008_v34 = vsel %vm3870_vm6, %v6005_v18, 0.0  ;;  %v6000_v53 = vmul.f32 %v5998_v42, %v5994_v22 }
0x3187   :  { %6009 = vadd.xlane.f32.xlu0 %v6008_v34 }
0x3188   :  { %v6006_v30 = vadd.f32 %v6004_v40, %v6000_v53 }
0x318a   :  { %v6011_v8 = vsel %vm3870_vm6, %v6006_v30, 0.0 }
0x318b   :  { %6012 = vadd.xlane.f32.xlu1 %v6011_v8 }
0x3210   :  { %v6010_v43 = vpop.xlane.xlu0 %6009 }
0x3211   :  { %v6014_v35 = vmul.f32 0.03125, %v6010_v43 }
0x3213   :  { %v6016_v56 = vsub.f32 %v6005_v18, %v6014_v35 }
0x3214   :  { %v6013_v17 = vpop.xlane.xlu1 %6012 }
0x3215   :  { %v6015_v36 = vmul.f32 0.03125, %v6013_v17  ;;  %v6018_v41 = vmul.f32 %v6016_v56, %v6016_v56 }
0x3217   :  { %v6017_v29 = vsub.f32 %v6006_v30, %v6015_v36  ;;  %v6020_v11 = vsel %vm3870_vm6, %v6018_v41, 0.0 }
0x3218   :  { %6021 = vadd.xlane.f32.xlu0 %v6020_v11 }
0x3219   :  { %v6019_v48 = vmul.f32 %v6017_v29, %v6017_v29 }
0x321b   :  { %v6023_v50 = vsel %vm3870_vm6, %v6019_v48, 0.0  ;;  %v6332_v48 = vld [vmem:[%s11102_s6 + $0x90] ss:$0 sm:$0xff] }
0x321c   :  { %6024 = vadd.xlane.f32.xlu1 %v6023_v50 }
0x32a1   :  { %v6022_v25 = vpop.xlane.xlu0 %6021 }
0x32a2   :  { %v6026_v61 = vmul.f32 0.03125, %v6022_v25 }
0x32a4   :  { %v6028_v45 = vadd.f32 1e-05, %v6026_v61 }
0x32a5   :  { %v6025_v57 = vpop.xlane.xlu1 %6024 }
0x32a6   :  { %7805 = vrsqrt.f32 %v6028_v45  ;;  %v6027_v16 = vmul.f32 0.03125, %v6025_v57 }
0x32a8   :  { %v6029_v55 = vadd.f32 1e-05, %v6027_v16 }
0x32aa   :  { %7807 = vrsqrt.f32 %v6029_v55 }
0x32b3   :  { %v7806_v62 = vpop.eup %7805 }
0x32b4   :  { %v6032_v15 = vmul.f32 %v7806_v62, %v6016_v56 }
0x32b6   :  { %v6038_v32 = vmul.f32 %v6037_v59, %v6032_v15 }
0x32b7   :  { %v7808_v3 = vpop.eup %7807 }
0x32b8   :  { %v6033_v20 = vmul.f32 %v7808_v3, %v6017_v29  ;;  %v6044_v4 = vadd.f32 %v6043_v14, %v6038_v32 }
0x32ba   :  { %v6039_v33 = vmul.f32 %v6037_v59, %v6033_v20 }
0x32bc   :  { %v6045_v54 = vadd.f32 %v6043_v14, %v6039_v33 }
0x32be   :  { %v6050_v37 = vpack.c.bf16 %v6045_v54, %v6044_v4 }
0x32c0   :  { %7432 = vmatmul.mubr.msk.bf16.vlgmr.msra.gmra.mxu0 %vm3870_vm6, %v6050_v37 }
0x32c1   :  { %7443 = vmatprep.mubr.msk.bf16.mxu0 %vm7845_vm0, %v11135_v9  ;;  %7436 = vmatpush3.bf16.msra.mxu0 %v6132_v26 }
0x32c2   :  { %7437 = vmatprep.subr.bf16.mxu0 %v11135_v9 }
0x32c5   :  { %7438 = vmatpush3.bf16.msra.mxu0 %v6131_v24 }
0x32c6   :  { %7439 = vmatprep.subr.bf16.mxu0 %v11135_v9 }
0x32c9   :  { %7440 = vmatpush3.bf16.msra.mxu0 %v6130_v47 }
0x32ca   :  { %7441 = vmatprep.subr.bf16.mxu0 %v11135_v9 }
0x32cd   :  { %7442 = vmatpush3.bf16.msra.mxu0 %v6129_v63 }
0x3380   :  { %v6095_v38 = vpop.f32.mrf.mxu0 }
0x3381   :  { %v6096_v51 = vadd.f32 %v6330_v44, %v6095_v38 }
0x3382   :  { %v7433_v21 = vpop.f32.mrf.mxu0 }
0x3383   :  { %v6104_v49 = vmul.f32 0.044715, %v6096_v51  ;;  %v6102_v56 = vmul.f32 0.5, %v6096_v51 }
0x3384   :  { %v6098_v42 = vpop.f32.mrf.mxu0 }
0x3385   :  { %v6106_v9 = vmul.f32 %v6104_v49, %v6096_v51  ;;  %v6099_v23 = vadd.f32 %v6330_v44, %v6098_v42 }
0x3386   :  { %v7434_v60 = vpop.f32.mrf.mxu0 }
0x3387   :  { %v6108_v40 = vmul.f32 %v6106_v9, %v6096_v51  ;;  %v6105_v31 = vmul.f32 0.044715, %v6099_v23  ;;  %v6103_v17 = vmul.f32 0.5, %v6099_v23 }
0x3389   :  { %v6110_v0 = vadd.f32 %v6108_v40, %v6096_v51  ;;  %v6107_v18 = vmul.f32 %v6105_v31, %v6099_v23 }
0x338b   :  { %v6112_v22 = vmul.f32 0.7978846, %v6110_v0  ;;  %v6109_v34 = vmul.f32 %v6107_v18, %v6099_v23 }
0x338d   :  { %7809 = vtanh.f32 %v6112_v22  ;;  %v6111_v53 = vadd.f32 %v6109_v34, %v6099_v23 }
0x338f   :  { %v6113_v30 = vmul.f32 0.7978846, %v6111_v53 }
0x3391   :  { %7811 = vtanh.f32 %v6113_v30 }
0x339a   :  { %v7810_v8 = vpop.eup %7809 }
0x339b   :  { %v6116_v43 = vadd.f32 1.0, %v7810_v8 }
0x339d   :  { %v6118_v41 = vmul.f32 %v6116_v43, %v6102_v56 }
0x339e   :  { %v7812_v35 = vpop.eup %7811 }
0x339f   :  { %v6117_v36 = vadd.f32 1.0, %v7812_v35 }
0x33a1   :  { %v6119_v29 = vmul.f32 %v6117_v36, %v6103_v17 }
0x33a3   :  { %v6128_v11 = vpack.c.bf16 %v6119_v29, %v6118_v41 }
0x33a5   :  { %7444 = vmatmul.mubr.msk.bf16.vlgmr.msra.gmra.mxu0 %vm148_vm2, %v6128_v11 }
0x3465   :  { %v6175_v50 = vpop.f32.mrf.mxu0 }
0x3466   :  { %v6176_v58 = vadd.f32 %v6332_v48, %v6175_v50 }
0x3467   :  { %v7445_v27 = vpop.f32.mrf.mxu0 }
0x3468   :  { %6182 = vst [vmem:[#allocation2] sm:$0xff] %v6176_v58 }
0x3469   :  { %v6178_v13 = vpop.f32.mrf.mxu0 }
0x346a   :  { %v6179_v52 = vadd.f32 %v6332_v48, %v6178_v13 }
0x346b   :  { %v7446_v1 = vpop.f32.mrf.mxu0 }
0x346c   :  { %6183 = vst [vmem:[#allocation2 + $0x8] sm:$0xff] %v6179_v52 }
0x346d   :  { %7833 = shalt.err (!%p7830_p4)
}
0x346e   :  { %s7848_s24 = smov 128   ;;  %s7849_s6 = smov 8  }
0x346f   :  { %6195 = dma.vmem_to_hbm [thread:$0]  %s6190_s22, 256, %s11104_s8, [#allocation3], %s7848_s24, %s7848_s24, %s7849_s6  }
0x3470   :  { %7842 = dma.done.wait [#allocation3], 256  }
0x3471   :  { %7843 = vsyncadd [#allocation3], 4294967040 }
0x3472   :  { %6199 = vsyncpa [#allocation3], 1 }

</bundles_post_ra>
